<compile_context>
chip_gen: v5e
topology: v5e:2x2
jax: 0.10.0
libtpu: 0.0.40
codegen_flags: <defaults>
</compile_context>

<pallas_src>
import math

import numpy as np
import jax
import jax.numpy as jnp
from jax import lax
from jax.experimental import pallas as pl
from jax.experimental.pallas import tpu as pltpu

# MXU operand dtype: bf16 is the fast MXU path on all current TPU generations; accumulation
# is always f32 via preferred_element_type.  Set to jnp.float32 for bit-faithful numerics.
MXU_DTYPE = jnp.bfloat16
LN_EPS = 1e-5


# ----------------------------------------------------------------------------------
# In-kernel helpers (pure jnp/lax — traced inside Pallas kernel bodies)
# ----------------------------------------------------------------------------------
def _mm(a, b, transpose_rhs=False):
    """MXU matmul, bf16 operands, f32 accumulation."""
    dn = (((1,), (1,) if transpose_rhs else (0,)), ((), ()))
    return lax.dot_general(
        a.astype(MXU_DTYPE), b.astype(MXU_DTYPE), dn,
        preferred_element_type=jnp.float32,
    )


def _erf(x):
    # Abramowitz & Stegun 7.1.26 rational approximation, max abs error 1.5e-7.
    a1, a2, a3, a4, a5 = 0.254829592, -0.284496736, 1.421413741, -1.453152027, 1.061405429
    p = 0.3275911
    s = jnp.where(x < 0.0, -1.0, 1.0)
    ax = jnp.abs(x)
    t = 1.0 / (1.0 + p * ax)
    poly = ((((a5 * t + a4) * t + a3) * t + a2) * t + a1) * t
    return s * (1.0 - poly * jnp.exp(-(ax * ax)))


def _gelu(x):
    # Exact (erf-based) GELU, matching F.gelu / activation='gelu'.
    return 0.5 * x * (1.0 + _erf(x * 0.7071067811865476))


def _roll_rows(x, delta, L):
    """y[t, :] = x[(t + delta) % L, :] via a 0/1 permutation matmul (no gathers)."""
    ti = lax.broadcasted_iota(jnp.int32, (L, L), 0).astype(jnp.float32)
    si = lax.broadcasted_iota(jnp.int32, (L, L), 1).astype(jnp.float32)
    diff = ti + float(delta) - si
    P = jnp.where((diff == 0.0) | (diff == float(L)) | (diff == float(-L)), 1.0, 0.0)
    return _mm(P, x)


def _my_layernorm_2d(x, gamma, beta):
    """my_Layernorm on a single [L, d] tile: LayerNorm(d) then subtract time-mean."""
    mu = jnp.mean(x, axis=-1, keepdims=True)
    var = jnp.mean((x - mu) ** 2, axis=-1, keepdims=True)
    x_hat = (x - mu) / jnp.sqrt(var + LN_EPS) * gamma + beta
    return x_hat - jnp.mean(x_hat, axis=0, keepdims=True)


def _autocorr_block(q_in, kv_in, wq, bq, wk, bk, wv, bv, wo, bo, L, S, d_model, top_k):
    """Full AutoCorrelationLayer (projections + circular correlation + top-k delay
    aggregation + output projection) on one batch element, entirely in VMEM."""
    Q = _mm(q_in, wq) + bq            # [L, d]
    K = _mm(kv_in, wk) + bk           # [S, d]
    V = _mm(kv_in, wv) + bv           # [S, d]
    if S < L:                         # static (trace-time) length adjustment
        pad = jnp.zeros((L - S, d_model), jnp.float32)
        K = jnp.concatenate([K, pad], axis=0)
        V = jnp.concatenate([V, pad], axis=0)
    elif S > L:
        K = K[:L]
        V = V[:L]

    # scores[t, s] = Q[t] . K[s]   (never leaves VMEM)
    scores = _mm(Q, K, transpose_rhs=True)          # [L, L]

    ti = lax.broadcasted_iota(jnp.int32, (L, L), 0).astype(jnp.float32)
    si = lax.broadcasted_iota(jnp.int32, (L, L), 1).astype(jnp.float32)
    lane = lax.broadcasted_iota(jnp.int32, (1, L), 1).astype(jnp.float32)

    # corr[tau] = (1/d) * sum_t scores[t, (t - tau) % L]  (circular diagonal sums)
    dshift = ti - si + float(L)                     # (t - s) + L  in [1, 2L-1]
    corr = jnp.zeros((1, L), jnp.float32)
    for tau in range(L):
        hit = (dshift == float(tau)) | (dshift == float(tau + L))
        diag_sum = jnp.sum(jnp.where(hit, scores, 0.0), keepdims=True)          # (1,1)
        corr = corr + jnp.where(lane == float(tau), diag_sum, 0.0)
    corr = corr * (1.0 / d_model)

    # top-k delays (iterative max + first-argmax trick), softmax over the k weights
    vals = corr
    top_vals, top_idx = [], []
    for _ in range(top_k):
        mval = jnp.max(vals, keepdims=True)                                       # (1,1)
        midx = jnp.min(jnp.where(vals >= mval, lane, float(L)), keepdims=True)    # (1,1)
        top_vals.append(mval)
        top_idx.append(midx)
        vals = jnp.where(lane == midx, -1e30, vals)
    exps = [jnp.exp(v - top_vals[0]) for v in top_vals]
    denom = exps[0]
    for e in exps[1:]:
        denom = denom + e

    # aggregation matrix G[t, s] = sum_i softmax_i * [s == (t + delay_i) % L]
    G = jnp.zeros((L, L), jnp.float32)
    for i in range(top_k):
        diff = ti + top_idx[i] - si
        hit = (diff == 0.0) | (diff == float(L))
        G = G + jnp.where(hit, exps[i] / denom, 0.0)

    out = _mm(G, V)                                  # delay aggregation
    return _mm(out, wo) + bo                         # output projection


def _top_k(factor, L):
    return max(1, min(L, int(factor * math.log(L))))


def moving_avg_matrix(L, k):
    """Replicate-padded moving-average as a static [L, L] band matrix."""
    p = (k - 1) // 2
    A = np.zeros((L, L), np.float32)
    for t in range(L):
        for j in range(k):
            s = min(max(t + j - p, 0), L - 1)
            A[t, s] += 1.0 / k
    return jnp.asarray(A)


def _w_spec(arr):
    shp = arr.shape
    return pl.BlockSpec(shp, lambda b: (0,) * len(shp))


# ----------------------------------------------------------------------------------
# Pallas-wrapped building blocks
# ----------------------------------------------------------------------------------
def pallas_linear(x2d, w, add):
    """y = x2d @ w + add, single full-M block (no row slabs, no padding)."""
    M, K = x2d.shape
    N = w.shape[1]

    def kernel(x_ref, w_ref, a_ref, o_ref):
        o_ref[...] = _mm(x_ref[...], w_ref[...]) + a_ref[...]

    return pl.pallas_call(
        kernel,
        out_shape=jax.ShapeDtypeStruct((M, N), jnp.float32),
        grid=(1,),
        in_specs=[pl.BlockSpec((M, K), lambda i: (0, 0)),
                  pl.BlockSpec((K, N), lambda i: (0, 0)),
                  pl.BlockSpec(add.shape, lambda i: (0, 0))],
        out_specs=pl.BlockSpec((M, N), lambda i: (0, 0)),
        compiler_params=pltpu.CompilerParams(dimension_semantics=("arbitrary",)),
    )(x2d, w, add)


def series_decomp(x, A_ma):
    """Initial series_decomp (outside the fused layers): one launch, grid over batch."""
    B, L, C = x.shape

    def kernel(x_ref, a_ref, seas_ref, trend_ref):
        xb = x_ref[0]
        mean = _mm(a_ref[...], xb)
        seas_ref[0] = xb - mean
        trend_ref[0] = mean

    seas, trend = pl.pallas_call(
        kernel,
        out_shape=(jax.ShapeDtypeStruct((B, L, C), jnp.float32),
                   jax.ShapeDtypeStruct((B, L, C), jnp.float32)),
        grid=(B,),
        in_specs=[pl.BlockSpec((1, L, C), lambda b: (b, 0, 0)),
                  pl.BlockSpec((L, L), lambda b: (0, 0))],
        out_specs=(pl.BlockSpec((1, L, C), lambda b: (b, 0, 0)),
                   pl.BlockSpec((1, L, C), lambda b: (b, 0, 0))),
        compiler_params=pltpu.CompilerParams(dimension_semantics=("parallel",)),
    )(x, A_ma)
    return seas, trend


def space_embedding(x, p):
    # TODO(synk): SpaceEmbedding source not provided; implemented as a shape-preserving
    # per-channel time-axis MLP Linear(seq_len->d_model)->Linear(d_model->seq_len),
    # both matmuls fused into one kernel.
    B, L, C = x.shape
    d = p["w1"].shape[1]
    xt = jnp.transpose(x, (0, 2, 1)).reshape(B * C, L)

    def kernel(x_ref, w1, b1, w2, b2, o_ref):
        h = _mm(x_ref[...], w1[...]) + b1[...]
        o_ref[...] = _mm(h, w2[...]) + b2[...]

    y = pl.pallas_call(
        kernel,
        out_shape=jax.ShapeDtypeStruct((B * C, L), jnp.float32),
        grid=(1,),
        in_specs=[pl.BlockSpec((B * C, L), lambda i: (0, 0)),
                  pl.BlockSpec((L, d), lambda i: (0, 0)),
                  pl.BlockSpec((1, d), lambda i: (0, 0)),
                  pl.BlockSpec((d, L), lambda i: (0, 0)),
                  pl.BlockSpec((1, L), lambda i: (0, 0))],
        out_specs=pl.BlockSpec((B * C, L), lambda i: (0, 0)),
        compiler_params=pltpu.CompilerParams(dimension_semantics=("arbitrary",)),
    )(xt, p["w1"], p["b1"].reshape(1, -1), p["w2"], p["b2"].reshape(1, -1))
    return jnp.transpose(y.reshape(B, C, L), (0, 2, 1))


def my_layernorm(x, gamma, beta):
    """my_Layernorm as one pallas_call, grid over batch."""
    B, L, d = x.shape

    def kernel(x_ref, g_ref, b_ref, o_ref):
        o_ref[0] = _my_layernorm_2d(x_ref[0], g_ref[...], b_ref[...])

    return pl.pallas_call(
        kernel,
        out_shape=jax.ShapeDtypeStruct((B, L, d), jnp.float32),
        grid=(B,),
        in_specs=[pl.BlockSpec((1, L, d), lambda b: (b, 0, 0)),
                  pl.BlockSpec((1, d), lambda b: (0, 0)),
                  pl.BlockSpec((1, d), lambda b: (0, 0))],
        out_specs=pl.BlockSpec((1, L, d), lambda b: (b, 0, 0)),
        compiler_params=pltpu.CompilerParams(dimension_semantics=("parallel",)),
    )(x, gamma.reshape(1, -1), beta.reshape(1, -1))


def decoder_head(xd, trend, gamma, beta, proj_w, proj_b):
    """Fused decoder head: my_Layernorm -> Linear(d_model->c_out) -> + trend."""
    B, L, d = xd.shape
    c_out = proj_w.shape[1]

    def kernel(x_ref, t_ref, g_ref, be_ref, w_ref, b_ref, o_ref):
        xh = _my_layernorm_2d(x_ref[0], g_ref[...], be_ref[...])
        o_ref[0] = t_ref[0] + _mm(xh, w_ref[...]) + b_ref[...]

    return pl.pallas_call(
        kernel,
        out_shape=jax.ShapeDtypeStruct((B, L, c_out), jnp.float32),
        grid=(B,),
        in_specs=[pl.BlockSpec((1, L, d), lambda b: (b, 0, 0)),
                  pl.BlockSpec((1, L, c_out), lambda b: (b, 0, 0)),
                  pl.BlockSpec((1, d), lambda b: (0, 0)),
                  pl.BlockSpec((1, d), lambda b: (0, 0)),
                  pl.BlockSpec((d, c_out), lambda b: (0, 0)),
                  pl.BlockSpec((1, c_out), lambda b: (0, 0))],
        out_specs=pl.BlockSpec((1, L, c_out), lambda b: (b, 0, 0)),
        compiler_params=pltpu.CompilerParams(dimension_semantics=("parallel",)),
    )(xd, trend, gamma.reshape(1, -1), beta.reshape(1, -1), proj_w, proj_b.reshape(1, -1))


def positional_embedding(max_len, d_model):
    position = jnp.arange(max_len, dtype=jnp.float32)[:, None]
    div_term = jnp.exp(
        jnp.arange(0, d_model, 2, dtype=jnp.float32) * -(math.log(10000.0) / d_model)
    )
    pe = jnp.zeros((max_len, d_model), jnp.float32)
    pe = pe.at[:, 0::2].set(jnp.sin(position * div_term))
    pe = pe.at[:, 1::2].set(jnp.cos(position * div_term))
    return pe


def fixed_embedding(c_in, d_model):
    return positional_embedding(c_in, d_model)


def data_embedding(x, x_mark, token_w, pe, temporal_tables):
    """TokenEmbedding (circular k=3 conv, taps folded into one matmul) + positional +
    fixed temporal embedding; the matmul and all adds happen in one kernel launch."""
    B, L, C = x.shape
    d_model = token_w.shape[1]
    xm1 = jnp.roll(x, 1, axis=1)
    xp1 = jnp.roll(x, -1, axis=1)
    xc = jnp.concatenate([xm1, x, xp1], axis=-1).reshape(B * L, 3 * C)
    month_t, day_t, weekday_t, hour_t = temporal_tables
    temp = (
        jnp.take(hour_t, x_mark[..., 3], axis=0)
        + jnp.take(weekday_t, x_mark[..., 2], axis=0)
        + jnp.take(day_t, x_mark[..., 1], axis=0)
        + jnp.take(month_t, x_mark[..., 0], axis=0)
    )
    extra = (pe[:L][None, :, :] + temp).reshape(B * L, d_model)
    y = pallas_linear(xc, token_w, extra)
    return y.reshape(B, L, d_model)


# ----------------------------------------------------------------------------------
# Fused per-layer kernels
# ----------------------------------------------------------------------------------
def encoder_layer(x, p, A_ma, cfg):
    B, L, d = x.shape
    top_k = _top_k(cfg["factor"], L)
    a = p["attn"]

    def kernel(x_ref, wq, bq, wk, bk, wv, bv, wo, bo, a_ref, w1, w2, o_ref):
        xb = x_ref[0]
        A = a_ref[...]
        attn = _autocorr_block(xb, xb, wq[...], bq[...], wk[...], bk[...],
                               wv[...], bv[...], wo[...], bo[...],
                               L, L, d, top_k)
        xb = xb + attn
        xb = xb - _mm(A, xb)                       # decomp1 (seasonal part)
        y = _mm(_gelu(_mm(xb, w1[...])), w2[...])  # FFN: conv1 -> gelu -> conv2
        s = xb + y
        o_ref[0] = s - _mm(A, s)                   # decomp2 (seasonal part)

    args = (x,
            a["wq"], a["bq"].reshape(1, -1), a["wk"], a["bk"].reshape(1, -1),
            a["wv"], a["bv"].reshape(1, -1), a["wo"], a["bo"].reshape(1, -1),
            A_ma, p["conv1_w"], p["conv2_w"])
    in_specs = [pl.BlockSpec((1, L, d), lambda b: (b, 0, 0))] + [_w_spec(t) for t in args[1:]]
    return pl.pallas_call(
        kernel,
        out_shape=jax.ShapeDtypeStruct((B, L, d), jnp.float32),
        grid=(B,),
        in_specs=in_specs,
        out_specs=pl.BlockSpec((1, L, d), lambda b: (b, 0, 0)),
        compiler_params=pltpu.CompilerParams(dimension_semantics=("parallel",)),
    )(*args)


def decoder_layer(x, cross, p, A_ma, cfg):
    B, L, d = x.shape
    S = cross.shape[1]
    c_out = p["trend_w1"].shape[1]
    top_k = _top_k(cfg["factor"], L)
    sa, ca = p["self_attn"], p["cross_attn"]

    def kernel(x_ref, cr_ref,
               swq, sbq, swk, sbk, swv, sbv, swo, sbo,
               cwq, cbq, cwk, cbk, cwv, cbv, cwo, cbo,
               a_ref, w1, w2, t0, t1, t2,
               xo_ref, to_ref):
        xb = x_ref[0]
        cb = cr_ref[0]
        A = a_ref[...]
        # self attention + decomp1
        xb = xb + _autocorr_block(xb, xb, swq[...], sbq[...], swk[...], sbk[...],
                                  swv[...], sbv[...], swo[...], sbo[...],
                                  L, L, d, top_k)
        m1 = _mm(A, xb)
        xb = xb - m1
        # cross attention + decomp2
        xb = xb + _autocorr_block(xb, cb, cwq[...], cbq[...], cwk[...], cbk[...],
                                  cwv[...], cbv[...], cwo[...], cbo[...],
                                  L, S, d, top_k)
        m2 = _mm(A, xb)
        xb = xb - m2
        # FFN + decomp3
        y = _mm(_gelu(_mm(xb, w1[...])), w2[...])
        s = xb + y
        m3 = _mm(A, s)
        xb = s - m3
        # residual trend + circular k=3 conv projection (d_model -> c_out)
        trend = m1 + m2 + m3
        rt = (_mm(_roll_rows(trend, -1, L), t0[...])
              + _mm(trend, t1[...])
              + _mm(_roll_rows(trend, 1, L), t2[...]))
        xo_ref[0] = xb
        to_ref[0] = rt

    args = (x, cross,
            sa["wq"], sa["bq"].reshape(1, -1), sa["wk"], sa["bk"].reshape(1, -1),
            sa["wv"], sa["bv"].reshape(1, -1), sa["wo"], sa["bo"].reshape(1, -1),
            ca["wq"], ca["bq"].reshape(1, -1), ca["wk"], ca["bk"].reshape(1, -1),
            ca["wv"], ca["bv"].reshape(1, -1), ca["wo"], ca["bo"].reshape(1, -1),
            A_ma, p["conv1_w"], p["conv2_w"],
            p["trend_w0"], p["trend_w1"], p["trend_w2"])
    in_specs = ([pl.BlockSpec((1, L, d), lambda b: (b, 0, 0)),
                 pl.BlockSpec((1, S, d), lambda b: (b, 0, 0))]
                + [_w_spec(t) for t in args[2:]])
    xo, to = pl.pallas_call(
        kernel,
        out_shape=(jax.ShapeDtypeStruct((B, L, d), jnp.float32),
                   jax.ShapeDtypeStruct((B, L, c_out), jnp.float32)),
        grid=(B,),
        in_specs=in_specs,
        out_specs=(pl.BlockSpec((1, L, d), lambda b: (b, 0, 0)),
                   pl.BlockSpec((1, L, c_out), lambda b: (b, 0, 0))),
        compiler_params=pltpu.CompilerParams(dimension_semantics=("parallel",)),
    )(*args)
    return xo, to


# ----------------------------------------------------------------------------------
# Full forward pass
# ----------------------------------------------------------------------------------
def autoformer_forward(params, x_enc, x_mark_enc, x_dec, x_mark_dec, cfg):
    label_len, pred_len = cfg["label_len"], cfg["pred_len"]
    seq_len = cfg["seq_len"]
    dec_len = label_len + pred_len
    A_enc = moving_avg_matrix(seq_len, cfg["move_avg"])
    A_dec = moving_avg_matrix(dec_len, cfg["move_avg"])

    x_enc = space_embedding(x_enc, params["space_emb"])
    mean = jnp.repeat(jnp.mean(x_enc, axis=1, keepdims=True), pred_len, axis=1)
    zeros = jnp.zeros((x_dec.shape[0], pred_len, x_dec.shape[2]), jnp.float32)
    seasonal_init, trend_init = series_decomp(x_enc, A_enc)
    trend_init = jnp.concatenate([trend_init[:, -label_len:, :], mean], axis=1)
    seasonal_init = jnp.concatenate([seasonal_init[:, -label_len:, :], zeros], axis=1)

    enc_out = data_embedding(x_enc, x_mark_enc, params["enc_emb"]["token_w"],
                             params["pe"], params["temporal_tables"])
    for lp in params["enc_layers"]:
        enc_out = encoder_layer(enc_out, lp, A_enc, cfg)
    enc_out = my_layernorm(enc_out, params["enc_norm"]["gamma"], params["enc_norm"]["beta"])

    dec_out = data_embedding(seasonal_init, x_mark_dec, params["dec_emb"]["token_w"],
                             params["pe"], params["temporal_tables"])
    trend = trend_init
    xd = dec_out
    for lp in params["dec_layers"]:
        xd, residual_trend = decoder_layer(xd, enc_out, lp, A_dec, cfg)
        trend = trend + residual_trend

    dec_out = decoder_head(xd, trend,
                           params["dec_norm"]["gamma"], params["dec_norm"]["beta"],
                           params["dec_proj_w"], params["dec_proj_b"])
    return dec_out[:, -pred_len:, :]


# ----------------------------------------------------------------------------------
# Deterministic parameter init (synthetic weights, shapes per module __init__)
# ----------------------------------------------------------------------------------
def init_params(key, cfg):
    keys = iter(jax.random.split(key, 256))

    def nrm(shape, scale=0.02):
        return scale * jax.random.normal(next(keys), shape, dtype=jnp.float32)

    d_model, d_ff = cfg["d_model"], cfg["d_ff"]
    enc_in, dec_in, c_out = cfg["enc_in"], cfg["dec_in"], cfg["c_out"]
    seq_len = cfg["seq_len"]
    dec_len = cfg["label_len"] + cfg["pred_len"]

    def attn_params():
        return dict(
            wq=nrm((d_model, d_model)), bq=jnp.zeros((d_model,), jnp.float32),
            wk=nrm((d_model, d_model)), bk=jnp.zeros((d_model,), jnp.float32),
            wv=nrm((d_model, d_model)), bv=jnp.zeros((d_model,), jnp.float32),
            wo=nrm((d_model, d_model)), bo=jnp.zeros((d_model,), jnp.float32),
        )

    params = dict(
        space_emb=dict(
            w1=nrm((seq_len, d_model)), b1=jnp.zeros((d_model,), jnp.float32),
            w2=nrm((d_model, seq_len)), b2=jnp.zeros((seq_len,), jnp.float32),
        ),
        enc_emb=dict(token_w=nrm((3 * enc_in, d_model))),
        dec_emb=dict(token_w=nrm((3 * dec_in, d_model))),
        enc_layers=[
            dict(attn=attn_params(),
                 conv1_w=nrm((d_model, d_ff)),
                 conv2_w=nrm((d_ff, d_model)))
            for _ in range(cfg["e_layers"])
        ],
        enc_norm=dict(gamma=jnp.ones((d_model,), jnp.float32),
                      beta=jnp.zeros((d_model,), jnp.float32)),
        dec_layers=[
            dict(
                self_attn=attn_params(),
                cross_attn=attn_params(),
                conv1_w=nrm((d_model, d_ff)),
                conv2_w=nrm((d_ff, d_model)),
                trend_w0=nrm((d_model, c_out)),   # tap at t-1
                trend_w1=nrm((d_model, c_out)),   # tap at t
                trend_w2=nrm((d_model, c_out)),   # tap at t+1
            )
            for _ in range(cfg["d_layers"])
        ],
        dec_norm=dict(gamma=jnp.ones((d_model,), jnp.float32),
                      beta=jnp.zeros((d_model,), jnp.float32)),
        dec_proj_w=nrm((d_model, c_out)),
        dec_proj_b=jnp.zeros((c_out,), jnp.float32),
        pe=positional_embedding(max(seq_len, dec_len), d_model),
        temporal_tables=(
            fixed_embedding(13, d_model),   # month
            fixed_embedding(32, d_model),   # day
            fixed_embedding(7, d_model),    # weekday
            fixed_embedding(24, d_model),   # hour
        ),
    )
    return params


# ----------------------------------------------------------------------------------
# Main
# ----------------------------------------------------------------------------------
if __name__ == "__main__":
    cfg = dict(
        enc_in=4, dec_in=4, c_out=4,
        seq_len=16, label_len=8, pred_len=8,
        factor=1, d_model=32, n_heads=4,
        e_layers=2, d_layers=1, d_ff=32,
        move_avg=5,
    )
    B = 2
    dec_len = cfg["label_len"] + cfg["pred_len"]

    key = jax.random.PRNGKey(0)
    k1, k2, k3, k4, kp = jax.random.split(key, 5)

    x_enc = jax.random.normal(k1, (B, cfg["seq_len"], cfg["enc_in"]), jnp.float32)
    x_dec = jax.random.normal(k2, (B, dec_len, cfg["dec_in"]), jnp.float32)

    def make_marks(k, L):
        return jnp.stack(
            [
                jax.random.randint(jax.random.fold_in(k, 0), (B, L), 0, 13),   # month
                jax.random.randint(jax.random.fold_in(k, 1), (B, L), 0, 32),   # day
                jax.random.randint(jax.random.fold_in(k, 2), (B, L), 0, 7),    # weekday
                jax.random.randint(jax.random.fold_in(k, 3), (B, L), 0, 24),   # hour
            ],
            axis=-1,
        ).astype(jnp.int32)

    x_mark_enc = make_marks(k3, cfg["seq_len"])
    x_mark_dec = make_marks(k4, dec_len)

    params = init_params(kp, cfg)

    fwd = jax.jit(lambda p, xe, me, xd, md: autoformer_forward(p, xe, me, xd, md, cfg))
    out = fwd(params, x_enc, x_mark_enc, x_dec, x_mark_dec)
    out = jax.block_until_ready(out)

    assert out.shape == (B, cfg["pred_len"], cfg["c_out"]), out.shape
    assert bool(jnp.all(jnp.isfinite(out)))
    print("KERNEL_OK")
</pallas_src>

<mosaic_0001>
module attributes {stable_mosaic.version = 11 : i64} {
  func.func @kernel(%arg0: i32, %arg1: memref<8x16xf32, #tpu.memory_space<vmem>>, %arg2: memref<16x32xf32, #tpu.memory_space<vmem>>, %arg3: memref<1x32xf32, #tpu.memory_space<vmem>>, %arg4: memref<32x16xf32, #tpu.memory_space<vmem>>, %arg5: memref<1x16xf32, #tpu.memory_space<vmem>>, %arg6: memref<8x16xf32, #tpu.memory_space<vmem>>) attributes {dimension_semantics = [#tpu.dimension_semantics<arbitrary>], iteration_bounds = array<i64: 1>, scalar_prefetch = 0 : i64, scratch_operands = 0 : i64, tpu.core_type = #tpu.core_type<tc>, window_params = [{pipeline_mode = #tpu.pipeline_mode<synchronous>, transform_indices = @transform_0, window_bounds = array<i64: 8, 16>}, {pipeline_mode = #tpu.pipeline_mode<synchronous>, transform_indices = @transform_1, window_bounds = array<i64: 16, 32>}, {pipeline_mode = #tpu.pipeline_mode<synchronous>, transform_indices = @transform_2, window_bounds = array<i64: 1, 32>}, {pipeline_mode = #tpu.pipeline_mode<synchronous>, transform_indices = @transform_3, window_bounds = array<i64: 32, 16>}, {pipeline_mode = #tpu.pipeline_mode<synchronous>, transform_indices = @transform_4, window_bounds = array<i64: 1, 16>}, {pipeline_mode = #tpu.pipeline_mode<synchronous>, transform_indices = @transform_5, window_bounds = array<i64: 8, 16>}]} {
    %c0 = arith.constant 0 : index
    %c0_0 = arith.constant 0 : index
    %0 = vector.load %arg1[%c0, %c0_0] : memref<8x16xf32, #tpu.memory_space<vmem>>, vector<8x16xf32>
    %c0_1 = arith.constant 0 : index
    %c0_2 = arith.constant 0 : index
    %1 = vector.load %arg2[%c0_1, %c0_2] : memref<16x32xf32, #tpu.memory_space<vmem>>, vector<16x32xf32>
    %2 = arith.truncf %0 : vector<8x16xf32> to vector<8x16xbf16>
    %3 = arith.truncf %1 : vector<16x32xf32> to vector<16x32xbf16>
    %cst = arith.constant dense<0.000000e+00> : vector<8x32xf32>
    %4 = tpu.matmul %2, %3, %cst {dimension_numbers = #tpu.dot_dimension_numbers<[1], [0], [0], [1], [0, 0, 1, 1], [], []>} : vector<8x16xbf16>, vector<16x32xbf16>, vector<8x32xf32> -> vector<8x32xf32>
    %c0_3 = arith.constant 0 : index
    %c0_4 = arith.constant 0 : index
    %5 = vector.load %arg3[%c0_3, %c0_4] : memref<1x32xf32, #tpu.memory_space<vmem>>, vector<1x32xf32>
    %6 = vector.broadcast %5 : vector<1x32xf32> to vector<8x32xf32>
    %7 = arith.addf %4, %6 : vector<8x32xf32>
    %c0_5 = arith.constant 0 : index
    %c0_6 = arith.constant 0 : index
    %8 = vector.load %arg4[%c0_5, %c0_6] : memref<32x16xf32, #tpu.memory_space<vmem>>, vector<32x16xf32>
    %9 = arith.truncf %7 : vector<8x32xf32> to vector<8x32xbf16>
    %10 = arith.truncf %8 : vector<32x16xf32> to vector<32x16xbf16>
    %cst_7 = arith.constant dense<0.000000e+00> : vector<8x16xf32>
    %11 = tpu.matmul %9, %10, %cst_7 {dimension_numbers = #tpu.dot_dimension_numbers<[1], [0], [0], [1], [0, 0, 1, 1], [], []>} : vector<8x32xbf16>, vector<32x16xbf16>, vector<8x16xf32> -> vector<8x16xf32>
    %c0_8 = arith.constant 0 : index
    %c0_9 = arith.constant 0 : index
    %12 = vector.load %arg5[%c0_8, %c0_9] : memref<1x16xf32, #tpu.memory_space<vmem>>, vector<1x16xf32>
    %13 = vector.broadcast %12 : vector<1x16xf32> to vector<8x16xf32>
    %14 = arith.addf %11, %13 : vector<8x16xf32>
    %c0_10 = arith.constant 0 : index
    %c0_11 = arith.constant 0 : index
    %15 = vector.load %arg6[%c0_10, %c0_11] : memref<8x16xf32, #tpu.memory_space<vmem>>, vector<8x16xf32>
    tpu.vector_store %arg6[%c0_10, %c0_11], %14 {strides = array<i32>} : memref<8x16xf32, #tpu.memory_space<vmem>>, vector<8x16xf32>,
    return
  }
  func.func @transform_0(%arg0: i32) -> (i32, i32) {
    %c0_i32 = arith.constant 0 : i32
    %c0_i32_0 = arith.constant 0 : i32
    %c0_i32_1 = arith.constant 0 : i32
    return %c0_i32, %c0_i32_0 : i32, i32
  }
  func.func @transform_1(%arg0: i32) -> (i32, i32) {
    %c0_i32 = arith.constant 0 : i32
    %c0_i32_0 = arith.constant 0 : i32
    %c0_i32_1 = arith.constant 0 : i32
    return %c0_i32, %c0_i32_0 : i32, i32
  }
  func.func @transform_2(%arg0: i32) -> (i32, i32) {
    %c0_i32 = arith.constant 0 : i32
    %c0_i32_0 = arith.constant 0 : i32
    %c0_i32_1 = arith.constant 0 : i32
    return %c0_i32, %c0_i32_0 : i32, i32
  }
  func.func @transform_3(%arg0: i32) -> (i32, i32) {
    %c0_i32 = arith.constant 0 : i32
    %c0_i32_0 = arith.constant 0 : i32
    %c0_i32_1 = arith.constant 0 : i32
    return %c0_i32, %c0_i32_0 : i32, i32
  }
  func.func @transform_4(%arg0: i32) -> (i32, i32) {
    %c0_i32 = arith.constant 0 : i32
    %c0_i32_0 = arith.constant 0 : i32
    %c0_i32_1 = arith.constant 0 : i32
    return %c0_i32, %c0_i32_0 : i32, i32
  }
  func.func @transform_5(%arg0: i32) -> (i32, i32) {
    %c0_i32 = arith.constant 0 : i32
    %c0_i32_0 = arith.constant 0 : i32
    %c0_i32_1 = arith.constant 0 : i32
    return %c0_i32, %c0_i32_0 : i32, i32
  }
}

module attributes {stable_mosaic.version = 11 : i64} {
  func.func @kernel(%arg0: i32, %arg1: memref<1x16x4xf32, #tpu.memory_space<vmem>>, %arg2: memref<16x16xf32, #tpu.memory_space<vmem>>, %arg3: memref<1x16x4xf32, #tpu.memory_space<vmem>>, %arg4: memref<1x16x4xf32, #tpu.memory_space<vmem>>) attributes {dimension_semantics = [#tpu.dimension_semantics<parallel>], iteration_bounds = array<i64: 2>, scalar_prefetch = 0 : i64, scratch_operands = 0 : i64, tpu.core_type = #tpu.core_type<tc>, window_params = [{transform_indices = @transform_0, window_bounds = array<i64: 1, 16, 4>}, {pipeline_mode = #tpu.pipeline_mode<synchronous>, transform_indices = @transform_1, window_bounds = array<i64: 16, 16>}, {transform_indices = @transform_2, window_bounds = array<i64: 1, 16, 4>}, {transform_indices = @transform_3, window_bounds = array<i64: 1, 16, 4>}]} {
    %c0 = arith.constant 0 : index
    %c0_0 = arith.constant 0 : index
    %c0_1 = arith.constant 0 : index
    %0 = vector.load %arg1[%c0, %c0_0, %c0_1] : memref<1x16x4xf32, #tpu.memory_space<vmem>>, vector<1x16x4xf32>
    %1 = vector.shape_cast %0 : vector<1x16x4xf32> to vector<16x4xf32>
    %c0_2 = arith.constant 0 : index
    %c0_3 = arith.constant 0 : index
    %2 = vector.load %arg2[%c0_2, %c0_3] : memref<16x16xf32, #tpu.memory_space<vmem>>, vector<16x16xf32>
    %3 = arith.truncf %2 : vector<16x16xf32> to vector<16x16xbf16>
    %4 = arith.truncf %1 : vector<16x4xf32> to vector<16x4xbf16>
    %cst = arith.constant dense<0.000000e+00> : vector<16x4xf32>
    %5 = tpu.matmul %3, %4, %cst {dimension_numbers = #tpu.dot_dimension_numbers<[1], [0], [0], [1], [0, 0, 1, 1], [], []>} : vector<16x16xbf16>, vector<16x4xbf16>, vector<16x4xf32> -> vector<16x4xf32>
    %6 = arith.subf %1, %5 : vector<16x4xf32>
    %c0_4 = arith.constant 0 : index
    %c0_5 = arith.constant 0 : index
    %c0_6 = arith.constant 0 : index
    %7 = vector.load %arg3[%c0_4, %c0_5, %c0_6] : memref<1x16x4xf32, #tpu.memory_space<vmem>>, vector<1x16x4xf32>
    %8 = vector.shape_cast %7 : vector<1x16x4xf32> to vector<16x4xf32>
    %9 = vector.shape_cast %6 : vector<16x4xf32> to vector<1x16x4xf32>
    tpu.vector_store %arg3[%c0_4, %c0_5, %c0_6], %9 {strides = array<i32>} : memref<1x16x4xf32, #tpu.memory_space<vmem>>, vector<1x16x4xf32>,
    %c0_7 = arith.constant 0 : index
    %c0_8 = arith.constant 0 : index
    %c0_9 = arith.constant 0 : index
    %10 = vector.load %arg4[%c0_7, %c0_8, %c0_9] : memref<1x16x4xf32, #tpu.memory_space<vmem>>, vector<1x16x4xf32>
    %11 = vector.shape_cast %10 : vector<1x16x4xf32> to vector<16x4xf32>
    %12 = vector.shape_cast %5 : vector<16x4xf32> to vector<1x16x4xf32>
    tpu.vector_store %arg4[%c0_7, %c0_8, %c0_9], %12 {strides = array<i32>} : memref<1x16x4xf32, #tpu.memory_space<vmem>>, vector<1x16x4xf32>,
    return
  }
  func.func @transform_0(%arg0: i32) -> (i32, i32, i32) {
    %c0_i32 = arith.constant 0 : i32
    %c0_i32_0 = arith.constant 0 : i32
    %c0_i32_1 = arith.constant 0 : i32
    return %arg0, %c0_i32, %c0_i32_0 : i32, i32, i32
  }
  func.func @transform_1(%arg0: i32) -> (i32, i32) {
    %c0_i32 = arith.constant 0 : i32
    %c0_i32_0 = arith.constant 0 : i32
    %c0_i32_1 = arith.constant 0 : i32
    return %c0_i32, %c0_i32_0 : i32, i32
  }
  func.func @transform_2(%arg0: i32) -> (i32, i32, i32) {
    %c0_i32 = arith.constant 0 : i32
    %c0_i32_0 = arith.constant 0 : i32
    %c0_i32_1 = arith.constant 0 : i32
    return %arg0, %c0_i32, %c0_i32_0 : i32, i32, i32
  }
  func.func @transform_3(%arg0: i32) -> (i32, i32, i32) {
    %c0_i32 = arith.constant 0 : i32
    %c0_i32_0 = arith.constant 0 : i32
    %c0_i32_1 = arith.constant 0 : i32
    return %arg0, %c0_i32, %c0_i32_0 : i32, i32, i32
  }
}

module attributes {stable_mosaic.version = 11 : i64} {
  func.func @kernel(%arg0: i32, %arg1: memref<32x12xf32, #tpu.memory_space<vmem>>, %arg2: memref<12x32xf32, #tpu.memory_space<vmem>>, %arg3: memref<32x32xf32, #tpu.memory_space<vmem>>, %arg4: memref<32x32xf32, #tpu.memory_space<vmem>>) attributes {dimension_semantics = [#tpu.dimension_semantics<arbitrary>], iteration_bounds = array<i64: 1>, scalar_prefetch = 0 : i64, scratch_operands = 0 : i64, tpu.core_type = #tpu.core_type<tc>, window_params = [{pipeline_mode = #tpu.pipeline_mode<synchronous>, transform_indices = @transform_0, window_bounds = array<i64: 32, 12>}, {pipeline_mode = #tpu.pipeline_mode<synchronous>, transform_indices = @transform_1, window_bounds = array<i64: 12, 32>}, {pipeline_mode = #tpu.pipeline_mode<synchronous>, transform_indices = @transform_2, window_bounds = array<i64: 32, 32>}, {pipeline_mode = #tpu.pipeline_mode<synchronous>, transform_indices = @transform_3, window_bounds = array<i64: 32, 32>}]} {
    %c0 = arith.constant 0 : index
    %c0_0 = arith.constant 0 : index
    %0 = vector.load %arg1[%c0, %c0_0] : memref<32x12xf32, #tpu.memory_space<vmem>>, vector<32x12xf32>
    %c0_1 = arith.constant 0 : index
    %c0_2 = arith.constant 0 : index
    %1 = vector.load %arg2[%c0_1, %c0_2] : memref<12x32xf32, #tpu.memory_space<vmem>>, vector<12x32xf32>
    %2 = arith.truncf %0 : vector<32x12xf32> to vector<32x12xbf16>
    %3 = arith.truncf %1 : vector<12x32xf32> to vector<12x32xbf16>
    %cst = arith.constant dense<0.000000e+00> : vector<32x32xf32>
    %4 = tpu.matmul %2, %3, %cst {dimension_numbers = #tpu.dot_dimension_numbers<[1], [0], [0], [1], [0, 0, 1, 1], [], []>} : vector<32x12xbf16>, vector<12x32xbf16>, vector<32x32xf32> -> vector<32x32xf32>
    %c0_3 = arith.constant 0 : index
    %c0_4 = arith.constant 0 : index
    %5 = vector.load %arg3[%c0_3, %c0_4] : memref<32x32xf32, #tpu.memory_space<vmem>>, vector<32x32xf32>
    %6 = arith.addf %4, %5 : vector<32x32xf32>
    %c0_5 = arith.constant 0 : index
    %c0_6 = arith.constant 0 : index
    %7 = vector.load %arg4[%c0_5, %c0_6] : memref<32x32xf32, #tpu.memory_space<vmem>>, vector<32x32xf32>
    tpu.vector_store %arg4[%c0_5, %c0_6], %6 {strides = array<i32>} : memref<32x32xf32, #tpu.memory_space<vmem>>, vector<32x32xf32>,
    return
  }
  func.func @transform_0(%arg0: i32) -> (i32, i32) {
    %c0_i32 = arith.constant 0 : i32
    %c0_i32_0 = arith.constant 0 : i32
    %c0_i32_1 = arith.constant 0 : i32
    return %c0_i32, %c0_i32_0 : i32, i32
  }
  func.func @transform_1(%arg0: i32) -> (i32, i32) {
    %c0_i32 = arith.constant 0 : i32
    %c0_i32_0 = arith.constant 0 : i32
    %c0_i32_1 = arith.constant 0 : i32
    return %c0_i32, %c0_i32_0 : i32, i32
  }
  func.func @transform_2(%arg0: i32) -> (i32, i32) {
    %c0_i32 = arith.constant 0 : i32
    %c0_i32_0 = arith.constant 0 : i32
    %c0_i32_1 = arith.constant 0 : i32
    return %c0_i32, %c0_i32_0 : i32, i32
  }
  func.func @transform_3(%arg0: i32) -> (i32, i32) {
    %c0_i32 = arith.constant 0 : i32
    %c0_i32_0 = arith.constant 0 : i32
    %c0_i32_1 = arith.constant 0 : i32
    return %c0_i32, %c0_i32_0 : i32, i32
  }
}

module attributes {stable_mosaic.version = 11 : i64} {
  func.func @kernel(%arg0: i32, %arg1: memref<1x16x32xf32, #tpu.memory_space<vmem>>, %arg2: memref<32x32xf32, #tpu.memory_space<vmem>>, %arg3: memref<1x32xf32, #tpu.memory_space<vmem>>, %arg4: memref<32x32xf32, #tpu.memory_space<vmem>>, %arg5: memref<1x32xf32, #tpu.memory_space<vmem>>, %arg6: memref<32x32xf32, #tpu.memory_space<vmem>>, %arg7: memref<1x32xf32, #tpu.memory_space<vmem>>, %arg8: memref<32x32xf32, #tpu.memory_space<vmem>>, %arg9: memref<1x32xf32, #tpu.memory_space<vmem>>, %arg10: memref<16x16xf32, #tpu.memory_space<vmem>>, %arg11: memref<32x32xf32, #tpu.memory_space<vmem>>, %arg12: memref<32x32xf32, #tpu.memory_space<vmem>>, %arg13: memref<1x16x32xf32, #tpu.memory_space<vmem>>) attributes {dimension_semantics = [#tpu.dimension_semantics<parallel>], iteration_bounds = array<i64: 2>, scalar_prefetch = 0 : i64, scratch_operands = 0 : i64, tpu.core_type = #tpu.core_type<tc>, window_params = [{transform_indices = @transform_0, window_bounds = array<i64: 1, 16, 32>}, {pipeline_mode = #tpu.pipeline_mode<synchronous>, transform_indices = @transform_1, window_bounds = array<i64: 32, 32>}, {pipeline_mode = #tpu.pipeline_mode<synchronous>, transform_indices = @transform_2, window_bounds = array<i64: 1, 32>}, {pipeline_mode = #tpu.pipeline_mode<synchronous>, transform_indices = @transform_3, window_bounds = array<i64: 32, 32>}, {pipeline_mode = #tpu.pipeline_mode<synchronous>, transform_indices = @transform_4, window_bounds = array<i64: 1, 32>}, {pipeline_mode = #tpu.pipeline_mode<synchronous>, transform_indices = @transform_5, window_bounds = array<i64: 32, 32>}, {pipeline_mode = #tpu.pipeline_mode<synchronous>, transform_indices = @transform_6, window_bounds = array<i64: 1, 32>}, {pipeline_mode = #tpu.pipeline_mode<synchronous>, transform_indices = @transform_7, window_bounds = array<i64: 32, 32>}, {pipeline_mode = #tpu.pipeline_mode<synchronous>, transform_indices = @transform_8, window_bounds = array<i64: 1, 32>}, {pipeline_mode = #tpu.pipeline_mode<synchronous>, transform_indices = @transform_9, window_bounds = array<i64: 16, 16>}, {pipeline_mode = #tpu.pipeline_mode<synchronous>, transform_indices = @transform_10, window_bounds = array<i64: 32, 32>}, {pipeline_mode = #tpu.pipeline_mode<synchronous>, transform_indices = @transform_11, window_bounds = array<i64: 32, 32>}, {transform_indices = @transform_12, window_bounds = array<i64: 1, 16, 32>}]} {
    %c0 = arith.constant 0 : index
    %c0_0 = arith.constant 0 : index
    %c0_1 = arith.constant 0 : index
    %0 = vector.load %arg1[%c0, %c0_0, %c0_1] : memref<1x16x32xf32, #tpu.memory_space<vmem>>, vector<1x16x32xf32>
    %1 = vector.shape_cast %0 : vector<1x16x32xf32> to vector<16x32xf32>
    %c0_2 = arith.constant 0 : index
    %c0_3 = arith.constant 0 : index
    %2 = vector.load %arg10[%c0_2, %c0_3] : memref<16x16xf32, #tpu.memory_space<vmem>>, vector<16x16xf32>
    %c0_4 = arith.constant 0 : index
    %c0_5 = arith.constant 0 : index
    %3 = vector.load %arg2[%c0_4, %c0_5] : memref<32x32xf32, #tpu.memory_space<vmem>>, vector<32x32xf32>
    %c0_6 = arith.constant 0 : index
    %c0_7 = arith.constant 0 : index
    %4 = vector.load %arg3[%c0_6, %c0_7] : memref<1x32xf32, #tpu.memory_space<vmem>>, vector<1x32xf32>
    %c0_8 = arith.constant 0 : index
    %c0_9 = arith.constant 0 : index
    %5 = vector.load %arg4[%c0_8, %c0_9] : memref<32x32xf32, #tpu.memory_space<vmem>>, vector<32x32xf32>
    %c0_10 = arith.constant 0 : index
    %c0_11 = arith.constant 0 : index
    %6 = vector.load %arg5[%c0_10, %c0_11] : memref<1x32xf32, #tpu.memory_space<vmem>>, vector<1x32xf32>
    %c0_12 = arith.constant 0 : index
    %c0_13 = arith.constant 0 : index
    %7 = vector.load %arg6[%c0_12, %c0_13] : memref<32x32xf32, #tpu.memory_space<vmem>>, vector<32x32xf32>
    %c0_14 = arith.constant 0 : index
    %c0_15 = arith.constant 0 : index
    %8 = vector.load %arg7[%c0_14, %c0_15] : memref<1x32xf32, #tpu.memory_space<vmem>>, vector<1x32xf32>
    %c0_16 = arith.constant 0 : index
    %c0_17 = arith.constant 0 : index
    %9 = vector.load %arg8[%c0_16, %c0_17] : memref<32x32xf32, #tpu.memory_space<vmem>>, vector<32x32xf32>
    %c0_18 = arith.constant 0 : index
    %c0_19 = arith.constant 0 : index
    %10 = vector.load %arg9[%c0_18, %c0_19] : memref<1x32xf32, #tpu.memory_space<vmem>>, vector<1x32xf32>
    %11 = arith.truncf %1 : vector<16x32xf32> to vector<16x32xbf16>
    %12 = arith.truncf %3 : vector<32x32xf32> to vector<32x32xbf16>
    %cst = arith.constant dense<0.000000e+00> : vector<16x32xf32>
    %13 = tpu.matmul %11, %12, %cst {dimension_numbers = #tpu.dot_dimension_numbers<[1], [0], [0], [1], [0, 0, 1, 1], [], []>} : vector<16x32xbf16>, vector<32x32xbf16>, vector<16x32xf32> -> vector<16x32xf32>
    %14 = vector.broadcast %4 : vector<1x32xf32> to vector<16x32xf32>
    %15 = arith.addf %13, %14 : vector<16x32xf32>
    %16 = arith.truncf %1 : vector<16x32xf32> to vector<16x32xbf16>
    %17 = arith.truncf %5 : vector<32x32xf32> to vector<32x32xbf16>
    %cst_20 = arith.constant dense<0.000000e+00> : vector<16x32xf32>
    %18 = tpu.matmul %16, %17, %cst_20 {dimension_numbers = #tpu.dot_dimension_numbers<[1], [0], [0], [1], [0, 0, 1, 1], [], []>} : vector<16x32xbf16>, vector<32x32xbf16>, vector<16x32xf32> -> vector<16x32xf32>
    %19 = vector.broadcast %6 : vector<1x32xf32> to vector<16x32xf32>
    %20 = arith.addf %18, %19 : vector<16x32xf32>
    %21 = arith.truncf %1 : vector<16x32xf32> to vector<16x32xbf16>
    %22 = arith.truncf %7 : vector<32x32xf32> to vector<32x32xbf16>
    %cst_21 = arith.constant dense<0.000000e+00> : vector<16x32xf32>
    %23 = tpu.matmul %21, %22, %cst_21 {dimension_numbers = #tpu.dot_dimension_numbers<[1], [0], [0], [1], [0, 0, 1, 1], [], []>} : vector<16x32xbf16>, vector<32x32xbf16>, vector<16x32xf32> -> vector<16x32xf32>
    %24 = vector.broadcast %8 : vector<1x32xf32> to vector<16x32xf32>
    %25 = arith.addf %23, %24 : vector<16x32xf32>
    %26 = arith.truncf %15 : vector<16x32xf32> to vector<16x32xbf16>
    %27 = arith.truncf %20 : vector<16x32xf32> to vector<16x32xbf16>
    %cst_22 = arith.constant dense<0.000000e+00> : vector<16x16xf32>
    %28 = tpu.matmul %26, %27, %cst_22 {dimension_numbers = #tpu.dot_dimension_numbers<[1], [1], [0], [0], [0, 0, 1, 0], [], []>} : vector<16x32xbf16>, vector<16x32xbf16>, vector<16x16xf32> -> vector<16x16xf32>
    %29 = tpu.iota {dimensions = array<i32: 0>} : vector<16x16xi32>
    %30 = arith.sitofp %29 : vector<16x16xi32> to vector<16x16xf32>
    %31 = tpu.iota {dimensions = array<i32: 1>} : vector<16x16xi32>
    %32 = arith.sitofp %31 : vector<16x16xi32> to vector<16x16xf32>
    %33 = tpu.iota {dimensions = array<i32: 1>} : vector<1x16xi32>
    %34 = arith.sitofp %33 : vector<1x16xi32> to vector<1x16xf32>
    %35 = arith.subf %30, %32 : vector<16x16xf32>
    %cst_23 = arith.constant 1.600000e+01 : f32
    %36 = vector.broadcast %cst_23 : f32 to vector<16x16xf32>
    %37 = arith.addf %35, %36 : vector<16x16xf32>
    %cst_24 = arith.constant 0.000000e+00 : f32
    %38 = vector.broadcast %cst_24 : f32 to vector<1x16xf32>
    %cst_25 = arith.constant 0.000000e+00 : f32
    %39 = vector.broadcast %cst_25 : f32 to vector<16x16xf32>
    %40 = arith.cmpf oeq, %37, %39 : vector<16x16xf32>
    %cst_26 = arith.constant 1.600000e+01 : f32
    %41 = vector.broadcast %cst_26 : f32 to vector<16x16xf32>
    %42 = arith.cmpf oeq, %37, %41 : vector<16x16xf32>
    %43 = arith.ori %40, %42 : vector<16x16xi1>
    %cst_27 = arith.constant 0.000000e+00 : f32
    %44 = vector.broadcast %cst_27 : f32 to vector<16x16xf32>
    %45 = arith.select %43, %28, %44 : vector<16x16xi1>, vector<16x16xf32>
    %46 = vector.shape_cast %45 : vector<16x16xf32> to vector<1x16x16xf32>
    %cst_28 = arith.constant dense<0.000000e+00> : vector<1xf32>
    %47 = vector.multi_reduction <add>, %46, %cst_28 [1, 2] : vector<1x16x16xf32> to vector<1xf32>
    %48 = vector.shape_cast %47 : vector<1xf32> to vector<1x1x1xf32>
    %49 = vector.extract %48[0, 0, 0] : f32 from vector<1x1x1xf32>
    %50 = vector.broadcast %49 : f32 to vector<1x1xf32>
    %cst_29 = arith.constant 0.000000e+00 : f32
    %51 = vector.broadcast %cst_29 : f32 to vector<1x16xf32>
    %52 = arith.cmpf oeq, %34, %51 : vector<1x16xf32>
    %cst_30 = arith.constant 0.000000e+00 : f32
    %53 = vector.shape_cast %50 : vector<1x1xf32> to vector<1x1xf32>
    %54 = vector.broadcast %53 : vector<1x1xf32> to vector<1x16xf32>
    %55 = vector.broadcast %cst_30 : f32 to vector<1x16xf32>
    %56 = arith.select %52, %54, %55 : vector<1x16xi1>, vector<1x16xf32>
    %57 = arith.addf %38, %56 : vector<1x16xf32>
    %cst_31 = arith.constant 1.000000e+00 : f32
    %58 = vector.broadcast %cst_31 : f32 to vector<16x16xf32>
    %59 = arith.cmpf oeq, %37, %58 : vector<16x16xf32>
    %cst_32 = arith.constant 1.700000e+01 : f32
    %60 = vector.broadcast %cst_32 : f32 to vector<16x16xf32>
    %61 = arith.cmpf oeq, %37, %60 : vector<16x16xf32>
    %62 = arith.ori %59, %61 : vector<16x16xi1>
    %cst_33 = arith.constant 0.000000e+00 : f32
    %63 = vector.broadcast %cst_33 : f32 to vector<16x16xf32>
    %64 = arith.select %62, %28, %63 : vector<16x16xi1>, vector<16x16xf32>
    %65 = vector.shape_cast %64 : vector<16x16xf32> to vector<1x16x16xf32>
    %cst_34 = arith.constant dense<0.000000e+00> : vector<1xf32>
    %66 = vector.multi_reduction <add>, %65, %cst_34 [1, 2] : vector<1x16x16xf32> to vector<1xf32>
    %67 = vector.shape_cast %66 : vector<1xf32> to vector<1x1x1xf32>
    %68 = vector.extract %67[0, 0, 0] : f32 from vector<1x1x1xf32>
    %69 = vector.broadcast %68 : f32 to vector<1x1xf32>
    %cst_35 = arith.constant 1.000000e+00 : f32
    %70 = vector.broadcast %cst_35 : f32 to vector<1x16xf32>
    %71 = arith.cmpf oeq, %34, %70 : vector<1x16xf32>
    %cst_36 = arith.constant 0.000000e+00 : f32
    %72 = vector.shape_cast %69 : vector<1x1xf32> to vector<1x1xf32>
    %73 = vector.broadcast %72 : vector<1x1xf32> to vector<1x16xf32>
    %74 = vector.broadcast %cst_36 : f32 to vector<1x16xf32>
    %75 = arith.select %71, %73, %74 : vector<1x16xi1>, vector<1x16xf32>
    %76 = arith.addf %57, %75 : vector<1x16xf32>
    %cst_37 = arith.constant 2.000000e+00 : f32
    %77 = vector.broadcast %cst_37 : f32 to vector<16x16xf32>
    %78 = arith.cmpf oeq, %37, %77 : vector<16x16xf32>
    %cst_38 = arith.constant 1.800000e+01 : f32
    %79 = vector.broadcast %cst_38 : f32 to vector<16x16xf32>
    %80 = arith.cmpf oeq, %37, %79 : vector<16x16xf32>
    %81 = arith.ori %78, %80 : vector<16x16xi1>
    %cst_39 = arith.constant 0.000000e+00 : f32
    %82 = vector.broadcast %cst_39 : f32 to vector<16x16xf32>
    %83 = arith.select %81, %28, %82 : vector<16x16xi1>, vector<16x16xf32>
    %84 = vector.shape_cast %83 : vector<16x16xf32> to vector<1x16x16xf32>
    %cst_40 = arith.constant dense<0.000000e+00> : vector<1xf32>
    %85 = vector.multi_reduction <add>, %84, %cst_40 [1, 2] : vector<1x16x16xf32> to vector<1xf32>
    %86 = vector.shape_cast %85 : vector<1xf32> to vector<1x1x1xf32>
    %87 = vector.extract %86[0, 0, 0] : f32 from vector<1x1x1xf32>
    %88 = vector.broadcast %87 : f32 to vector<1x1xf32>
    %cst_41 = arith.constant 2.000000e+00 : f32
    %89 = vector.broadcast %cst_41 : f32 to vector<1x16xf32>
    %90 = arith.cmpf oeq, %34, %89 : vector<1x16xf32>
    %cst_42 = arith.constant 0.000000e+00 : f32
    %91 = vector.shape_cast %88 : vector<1x1xf32> to vector<1x1xf32>
    %92 = vector.broadcast %91 : vector<1x1xf32> to vector<1x16xf32>
    %93 = vector.broadcast %cst_42 : f32 to vector<1x16xf32>
    %94 = arith.select %90, %92, %93 : vector<1x16xi1>, vector<1x16xf32>
    %95 = arith.addf %76, %94 : vector<1x16xf32>
    %cst_43 = arith.constant 3.000000e+00 : f32
    %96 = vector.broadcast %cst_43 : f32 to vector<16x16xf32>
    %97 = arith.cmpf oeq, %37, %96 : vector<16x16xf32>
    %cst_44 = arith.constant 1.900000e+01 : f32
    %98 = vector.broadcast %cst_44 : f32 to vector<16x16xf32>
    %99 = arith.cmpf oeq, %37, %98 : vector<16x16xf32>
    %100 = arith.ori %97, %99 : vector<16x16xi1>
    %cst_45 = arith.constant 0.000000e+00 : f32
    %101 = vector.broadcast %cst_45 : f32 to vector<16x16xf32>
    %102 = arith.select %100, %28, %101 : vector<16x16xi1>, vector<16x16xf32>
    %103 = vector.shape_cast %102 : vector<16x16xf32> to vector<1x16x16xf32>
    %cst_46 = arith.constant dense<0.000000e+00> : vector<1xf32>
    %104 = vector.multi_reduction <add>, %103, %cst_46 [1, 2] : vector<1x16x16xf32> to vector<1xf32>
    %105 = vector.shape_cast %104 : vector<1xf32> to vector<1x1x1xf32>
    %106 = vector.extract %105[0, 0, 0] : f32 from vector<1x1x1xf32>
    %107 = vector.broadcast %106 : f32 to vector<1x1xf32>
    %cst_47 = arith.constant 3.000000e+00 : f32
    %108 = vector.broadcast %cst_47 : f32 to vector<1x16xf32>
    %109 = arith.cmpf oeq, %34, %108 : vector<1x16xf32>
    %cst_48 = arith.constant 0.000000e+00 : f32
    %110 = vector.shape_cast %107 : vector<1x1xf32> to vector<1x1xf32>
    %111 = vector.broadcast %110 : vector<1x1xf32> to vector<1x16xf32>
    %112 = vector.broadcast %cst_48 : f32 to vector<1x16xf32>
    %113 = arith.select %109, %111, %112 : vector<1x16xi1>, vector<1x16xf32>
    %114 = arith.addf %95, %113 : vector<1x16xf32>
    %cst_49 = arith.constant 4.000000e+00 : f32
    %115 = vector.broadcast %cst_49 : f32 to vector<16x16xf32>
    %116 = arith.cmpf oeq, %37, %115 : vector<16x16xf32>
    %cst_50 = arith.constant 2.000000e+01 : f32
    %117 = vector.broadcast %cst_50 : f32 to vector<16x16xf32>
    %118 = arith.cmpf oeq, %37, %117 : vector<16x16xf32>
    %119 = arith.ori %116, %118 : vector<16x16xi1>
    %cst_51 = arith.constant 0.000000e+00 : f32
    %120 = vector.broadcast %cst_51 : f32 to vector<16x16xf32>
    %121 = arith.select %119, %28, %120 : vector<16x16xi1>, vector<16x16xf32>
    %122 = vector.shape_cast %121 : vector<16x16xf32> to vector<1x16x16xf32>
    %cst_52 = arith.constant dense<0.000000e+00> : vector<1xf32>
    %123 = vector.multi_reduction <add>, %122, %cst_52 [1, 2] : vector<1x16x16xf32> to vector<1xf32>
    %124 = vector.shape_cast %123 : vector<1xf32> to vector<1x1x1xf32>
    %125 = vector.extract %124[0, 0, 0] : f32 from vector<1x1x1xf32>
    %126 = vector.broadcast %125 : f32 to vector<1x1xf32>
    %cst_53 = arith.constant 4.000000e+00 : f32
    %127 = vector.broadcast %cst_53 : f32 to vector<1x16xf32>
    %128 = arith.cmpf oeq, %34, %127 : vector<1x16xf32>
    %cst_54 = arith.constant 0.000000e+00 : f32
    %129 = vector.shape_cast %126 : vector<1x1xf32> to vector<1x1xf32>
    %130 = vector.broadcast %129 : vector<1x1xf32> to vector<1x16xf32>
    %131 = vector.broadcast %cst_54 : f32 to vector<1x16xf32>
    %132 = arith.select %128, %130, %131 : vector<1x16xi1>, vector<1x16xf32>
    %133 = arith.addf %114, %132 : vector<1x16xf32>
    %cst_55 = arith.constant 5.000000e+00 : f32
    %134 = vector.broadcast %cst_55 : f32 to vector<16x16xf32>
    %135 = arith.cmpf oeq, %37, %134 : vector<16x16xf32>
    %cst_56 = arith.constant 2.100000e+01 : f32
    %136 = vector.broadcast %cst_56 : f32 to vector<16x16xf32>
    %137 = arith.cmpf oeq, %37, %136 : vector<16x16xf32>
    %138 = arith.ori %135, %137 : vector<16x16xi1>
    %cst_57 = arith.constant 0.000000e+00 : f32
    %139 = vector.broadcast %cst_57 : f32 to vector<16x16xf32>
    %140 = arith.select %138, %28, %139 : vector<16x16xi1>, vector<16x16xf32>
    %141 = vector.shape_cast %140 : vector<16x16xf32> to vector<1x16x16xf32>
    %cst_58 = arith.constant dense<0.000000e+00> : vector<1xf32>
    %142 = vector.multi_reduction <add>, %141, %cst_58 [1, 2] : vector<1x16x16xf32> to vector<1xf32>
    %143 = vector.shape_cast %142 : vector<1xf32> to vector<1x1x1xf32>
    %144 = vector.extract %143[0, 0, 0] : f32 from vector<1x1x1xf32>
    %145 = vector.broadcast %144 : f32 to vector<1x1xf32>
    %cst_59 = arith.constant 5.000000e+00 : f32
    %146 = vector.broadcast %cst_59 : f32 to vector<1x16xf32>
    %147 = arith.cmpf oeq, %34, %146 : vector<1x16xf32>
    %cst_60 = arith.constant 0.000000e+00 : f32
    %148 = vector.shape_cast %145 : vector<1x1xf32> to vector<1x1xf32>
    %149 = vector.broadcast %148 : vector<1x1xf32> to vector<1x16xf32>
    %150 = vector.broadcast %cst_60 : f32 to vector<1x16xf32>
    %151 = arith.select %147, %149, %150 : vector<1x16xi1>, vector<1x16xf32>
    %152 = arith.addf %133, %151 : vector<1x16xf32>
    %cst_61 = arith.constant 6.000000e+00 : f32
    %153 = vector.broadcast %cst_61 : f32 to vector<16x16xf32>
    %154 = arith.cmpf oeq, %37, %153 : vector<16x16xf32>
    %cst_62 = arith.constant 2.200000e+01 : f32
    %155 = vector.broadcast %cst_62 : f32 to vector<16x16xf32>
    %156 = arith.cmpf oeq, %37, %155 : vector<16x16xf32>
    %157 = arith.ori %154, %156 : vector<16x16xi1>
    %cst_63 = arith.constant 0.000000e+00 : f32
    %158 = vector.broadcast %cst_63 : f32 to vector<16x16xf32>
    %159 = arith.select %157, %28, %158 : vector<16x16xi1>, vector<16x16xf32>
    %160 = vector.shape_cast %159 : vector<16x16xf32> to vector<1x16x16xf32>
    %cst_64 = arith.constant dense<0.000000e+00> : vector<1xf32>
    %161 = vector.multi_reduction <add>, %160, %cst_64 [1, 2] : vector<1x16x16xf32> to vector<1xf32>
    %162 = vector.shape_cast %161 : vector<1xf32> to vector<1x1x1xf32>
    %163 = vector.extract %162[0, 0, 0] : f32 from vector<1x1x1xf32>
    %164 = vector.broadcast %163 : f32 to vector<1x1xf32>
    %cst_65 = arith.constant 6.000000e+00 : f32
    %165 = vector.broadcast %cst_65 : f32 to vector<1x16xf32>
    %166 = arith.cmpf oeq, %34, %165 : vector<1x16xf32>
    %cst_66 = arith.constant 0.000000e+00 : f32
    %167 = vector.shape_cast %164 : vector<1x1xf32> to vector<1x1xf32>
    %168 = vector.broadcast %167 : vector<1x1xf32> to vector<1x16xf32>
    %169 = vector.broadcast %cst_66 : f32 to vector<1x16xf32>
    %170 = arith.select %166, %168, %169 : vector<1x16xi1>, vector<1x16xf32>
    %171 = arith.addf %152, %170 : vector<1x16xf32>
    %cst_67 = arith.constant 7.000000e+00 : f32
    %172 = vector.broadcast %cst_67 : f32 to vector<16x16xf32>
    %173 = arith.cmpf oeq, %37, %172 : vector<16x16xf32>
    %cst_68 = arith.constant 2.300000e+01 : f32
    %174 = vector.broadcast %cst_68 : f32 to vector<16x16xf32>
    %175 = arith.cmpf oeq, %37, %174 : vector<16x16xf32>
    %176 = arith.ori %173, %175 : vector<16x16xi1>
    %cst_69 = arith.constant 0.000000e+00 : f32
    %177 = vector.broadcast %cst_69 : f32 to vector<16x16xf32>
    %178 = arith.select %176, %28, %177 : vector<16x16xi1>, vector<16x16xf32>
    %179 = vector.shape_cast %178 : vector<16x16xf32> to vector<1x16x16xf32>
    %cst_70 = arith.constant dense<0.000000e+00> : vector<1xf32>
    %180 = vector.multi_reduction <add>, %179, %cst_70 [1, 2] : vector<1x16x16xf32> to vector<1xf32>
    %181 = vector.shape_cast %180 : vector<1xf32> to vector<1x1x1xf32>
    %182 = vector.extract %181[0, 0, 0] : f32 from vector<1x1x1xf32>
    %183 = vector.broadcast %182 : f32 to vector<1x1xf32>
    %cst_71 = arith.constant 7.000000e+00 : f32
    %184 = vector.broadcast %cst_71 : f32 to vector<1x16xf32>
    %185 = arith.cmpf oeq, %34, %184 : vector<1x16xf32>
    %cst_72 = arith.constant 0.000000e+00 : f32
    %186 = vector.shape_cast %183 : vector<1x1xf32> to vector<1x1xf32>
    %187 = vector.broadcast %186 : vector<1x1xf32> to vector<1x16xf32>
    %188 = vector.broadcast %cst_72 : f32 to vector<1x16xf32>
    %189 = arith.select %185, %187, %188 : vector<1x16xi1>, vector<1x16xf32>
    %190 = arith.addf %171, %189 : vector<1x16xf32>
    %cst_73 = arith.constant 8.000000e+00 : f32
    %191 = vector.broadcast %cst_73 : f32 to vector<16x16xf32>
    %192 = arith.cmpf oeq, %37, %191 : vector<16x16xf32>
    %cst_74 = arith.constant 2.400000e+01 : f32
    %193 = vector.broadcast %cst_74 : f32 to vector<16x16xf32>
    %194 = arith.cmpf oeq, %37, %193 : vector<16x16xf32>
    %195 = arith.ori %192, %194 : vector<16x16xi1>
    %cst_75 = arith.constant 0.000000e+00 : f32
    %196 = vector.broadcast %cst_75 : f32 to vector<16x16xf32>
    %197 = arith.select %195, %28, %196 : vector<16x16xi1>, vector<16x16xf32>
    %198 = vector.shape_cast %197 : vector<16x16xf32> to vector<1x16x16xf32>
    %cst_76 = arith.constant dense<0.000000e+00> : vector<1xf32>
    %199 = vector.multi_reduction <add>, %198, %cst_76 [1, 2] : vector<1x16x16xf32> to vector<1xf32>
    %200 = vector.shape_cast %199 : vector<1xf32> to vector<1x1x1xf32>
    %201 = vector.extract %200[0, 0, 0] : f32 from vector<1x1x1xf32>
    %202 = vector.broadcast %201 : f32 to vector<1x1xf32>
    %cst_77 = arith.constant 8.000000e+00 : f32
    %203 = vector.broadcast %cst_77 : f32 to vector<1x16xf32>
    %204 = arith.cmpf oeq, %34, %203 : vector<1x16xf32>
    %cst_78 = arith.constant 0.000000e+00 : f32
    %205 = vector.shape_cast %202 : vector<1x1xf32> to vector<1x1xf32>
    %206 = vector.broadcast %205 : vector<1x1xf32> to vector<1x16xf32>
    %207 = vector.broadcast %cst_78 : f32 to vector<1x16xf32>
    %208 = arith.select %204, %206, %207 : vector<1x16xi1>, vector<1x16xf32>
    %209 = arith.addf %190, %208 : vector<1x16xf32>
    %cst_79 = arith.constant 9.000000e+00 : f32
    %210 = vector.broadcast %cst_79 : f32 to vector<16x16xf32>
    %211 = arith.cmpf oeq, %37, %210 : vector<16x16xf32>
    %cst_80 = arith.constant 2.500000e+01 : f32
    %212 = vector.broadcast %cst_80 : f32 to vector<16x16xf32>
    %213 = arith.cmpf oeq, %37, %212 : vector<16x16xf32>
    %214 = arith.ori %211, %213 : vector<16x16xi1>
    %cst_81 = arith.constant 0.000000e+00 : f32
    %215 = vector.broadcast %cst_81 : f32 to vector<16x16xf32>
    %216 = arith.select %214, %28, %215 : vector<16x16xi1>, vector<16x16xf32>
    %217 = vector.shape_cast %216 : vector<16x16xf32> to vector<1x16x16xf32>
    %cst_82 = arith.constant dense<0.000000e+00> : vector<1xf32>
    %218 = vector.multi_reduction <add>, %217, %cst_82 [1, 2] : vector<1x16x16xf32> to vector<1xf32>
    %219 = vector.shape_cast %218 : vector<1xf32> to vector<1x1x1xf32>
    %220 = vector.extract %219[0, 0, 0] : f32 from vector<1x1x1xf32>
    %221 = vector.broadcast %220 : f32 to vector<1x1xf32>
    %cst_83 = arith.constant 9.000000e+00 : f32
    %222 = vector.broadcast %cst_83 : f32 to vector<1x16xf32>
    %223 = arith.cmpf oeq, %34, %222 : vector<1x16xf32>
    %cst_84 = arith.constant 0.000000e+00 : f32
    %224 = vector.shape_cast %221 : vector<1x1xf32> to vector<1x1xf32>
    %225 = vector.broadcast %224 : vector<1x1xf32> to vector<1x16xf32>
    %226 = vector.broadcast %cst_84 : f32 to vector<1x16xf32>
    %227 = arith.select %223, %225, %226 : vector<1x16xi1>, vector<1x16xf32>
    %228 = arith.addf %209, %227 : vector<1x16xf32>
    %cst_85 = arith.constant 1.000000e+01 : f32
    %229 = vector.broadcast %cst_85 : f32 to vector<16x16xf32>
    %230 = arith.cmpf oeq, %37, %229 : vector<16x16xf32>
    %cst_86 = arith.constant 2.600000e+01 : f32
    %231 = vector.broadcast %cst_86 : f32 to vector<16x16xf32>
    %232 = arith.cmpf oeq, %37, %231 : vector<16x16xf32>
    %233 = arith.ori %230, %232 : vector<16x16xi1>
    %cst_87 = arith.constant 0.000000e+00 : f32
    %234 = vector.broadcast %cst_87 : f32 to vector<16x16xf32>
    %235 = arith.select %233, %28, %234 : vector<16x16xi1>, vector<16x16xf32>
    %236 = vector.shape_cast %235 : vector<16x16xf32> to vector<1x16x16xf32>
    %cst_88 = arith.constant dense<0.000000e+00> : vector<1xf32>
    %237 = vector.multi_reduction <add>, %236, %cst_88 [1, 2] : vector<1x16x16xf32> to vector<1xf32>
    %238 = vector.shape_cast %237 : vector<1xf32> to vector<1x1x1xf32>
    %239 = vector.extract %238[0, 0, 0] : f32 from vector<1x1x1xf32>
    %240 = vector.broadcast %239 : f32 to vector<1x1xf32>
    %cst_89 = arith.constant 1.000000e+01 : f32
    %241 = vector.broadcast %cst_89 : f32 to vector<1x16xf32>
    %242 = arith.cmpf oeq, %34, %241 : vector<1x16xf32>
    %cst_90 = arith.constant 0.000000e+00 : f32
    %243 = vector.shape_cast %240 : vector<1x1xf32> to vector<1x1xf32>
    %244 = vector.broadcast %243 : vector<1x1xf32> to vector<1x16xf32>
    %245 = vector.broadcast %cst_90 : f32 to vector<1x16xf32>
    %246 = arith.select %242, %244, %245 : vector<1x16xi1>, vector<1x16xf32>
    %247 = arith.addf %228, %246 : vector<1x16xf32>
    %cst_91 = arith.constant 1.100000e+01 : f32
    %248 = vector.broadcast %cst_91 : f32 to vector<16x16xf32>
    %249 = arith.cmpf oeq, %37, %248 : vector<16x16xf32>
    %cst_92 = arith.constant 2.700000e+01 : f32
    %250 = vector.broadcast %cst_92 : f32 to vector<16x16xf32>
    %251 = arith.cmpf oeq, %37, %250 : vector<16x16xf32>
    %252 = arith.ori %249, %251 : vector<16x16xi1>
    %cst_93 = arith.constant 0.000000e+00 : f32
    %253 = vector.broadcast %cst_93 : f32 to vector<16x16xf32>
    %254 = arith.select %252, %28, %253 : vector<16x16xi1>, vector<16x16xf32>
    %255 = vector.shape_cast %254 : vector<16x16xf32> to vector<1x16x16xf32>
    %cst_94 = arith.constant dense<0.000000e+00> : vector<1xf32>
    %256 = vector.multi_reduction <add>, %255, %cst_94 [1, 2] : vector<1x16x16xf32> to vector<1xf32>
    %257 = vector.shape_cast %256 : vector<1xf32> to vector<1x1x1xf32>
    %258 = vector.extract %257[0, 0, 0] : f32 from vector<1x1x1xf32>
    %259 = vector.broadcast %258 : f32 to vector<1x1xf32>
    %cst_95 = arith.constant 1.100000e+01 : f32
    %260 = vector.broadcast %cst_95 : f32 to vector<1x16xf32>
    %261 = arith.cmpf oeq, %34, %260 : vector<1x16xf32>
    %cst_96 = arith.constant 0.000000e+00 : f32
    %262 = vector.shape_cast %259 : vector<1x1xf32> to vector<1x1xf32>
    %263 = vector.broadcast %262 : vector<1x1xf32> to vector<1x16xf32>
    %264 = vector.broadcast %cst_96 : f32 to vector<1x16xf32>
    %265 = arith.select %261, %263, %264 : vector<1x16xi1>, vector<1x16xf32>
    %266 = arith.addf %247, %265 : vector<1x16xf32>
    %cst_97 = arith.constant 1.200000e+01 : f32
    %267 = vector.broadcast %cst_97 : f32 to vector<16x16xf32>
    %268 = arith.cmpf oeq, %37, %267 : vector<16x16xf32>
    %cst_98 = arith.constant 2.800000e+01 : f32
    %269 = vector.broadcast %cst_98 : f32 to vector<16x16xf32>
    %270 = arith.cmpf oeq, %37, %269 : vector<16x16xf32>
    %271 = arith.ori %268, %270 : vector<16x16xi1>
    %cst_99 = arith.constant 0.000000e+00 : f32
    %272 = vector.broadcast %cst_99 : f32 to vector<16x16xf32>
    %273 = arith.select %271, %28, %272 : vector<16x16xi1>, vector<16x16xf32>
    %274 = vector.shape_cast %273 : vector<16x16xf32> to vector<1x16x16xf32>
    %cst_100 = arith.constant dense<0.000000e+00> : vector<1xf32>
    %275 = vector.multi_reduction <add>, %274, %cst_100 [1, 2] : vector<1x16x16xf32> to vector<1xf32>
    %276 = vector.shape_cast %275 : vector<1xf32> to vector<1x1x1xf32>
    %277 = vector.extract %276[0, 0, 0] : f32 from vector<1x1x1xf32>
    %278 = vector.broadcast %277 : f32 to vector<1x1xf32>
    %cst_101 = arith.constant 1.200000e+01 : f32
    %279 = vector.broadcast %cst_101 : f32 to vector<1x16xf32>
    %280 = arith.cmpf oeq, %34, %279 : vector<1x16xf32>
    %cst_102 = arith.constant 0.000000e+00 : f32
    %281 = vector.shape_cast %278 : vector<1x1xf32> to vector<1x1xf32>
    %282 = vector.broadcast %281 : vector<1x1xf32> to vector<1x16xf32>
    %283 = vector.broadcast %cst_102 : f32 to vector<1x16xf32>
    %284 = arith.select %280, %282, %283 : vector<1x16xi1>, vector<1x16xf32>
    %285 = arith.addf %266, %284 : vector<1x16xf32>
    %cst_103 = arith.constant 1.300000e+01 : f32
    %286 = vector.broadcast %cst_103 : f32 to vector<16x16xf32>
    %287 = arith.cmpf oeq, %37, %286 : vector<16x16xf32>
    %cst_104 = arith.constant 2.900000e+01 : f32
    %288 = vector.broadcast %cst_104 : f32 to vector<16x16xf32>
    %289 = arith.cmpf oeq, %37, %288 : vector<16x16xf32>
    %290 = arith.ori %287, %289 : vector<16x16xi1>
    %cst_105 = arith.constant 0.000000e+00 : f32
    %291 = vector.broadcast %cst_105 : f32 to vector<16x16xf32>
    %292 = arith.select %290, %28, %291 : vector<16x16xi1>, vector<16x16xf32>
    %293 = vector.shape_cast %292 : vector<16x16xf32> to vector<1x16x16xf32>
    %cst_106 = arith.constant dense<0.000000e+00> : vector<1xf32>
    %294 = vector.multi_reduction <add>, %293, %cst_106 [1, 2] : vector<1x16x16xf32> to vector<1xf32>
    %295 = vector.shape_cast %294 : vector<1xf32> to vector<1x1x1xf32>
    %296 = vector.extract %295[0, 0, 0] : f32 from vector<1x1x1xf32>
    %297 = vector.broadcast %296 : f32 to vector<1x1xf32>
    %cst_107 = arith.constant 1.300000e+01 : f32
    %298 = vector.broadcast %cst_107 : f32 to vector<1x16xf32>
    %299 = arith.cmpf oeq, %34, %298 : vector<1x16xf32>
    %cst_108 = arith.constant 0.000000e+00 : f32
    %300 = vector.shape_cast %297 : vector<1x1xf32> to vector<1x1xf32>
    %301 = vector.broadcast %300 : vector<1x1xf32> to vector<1x16xf32>
    %302 = vector.broadcast %cst_108 : f32 to vector<1x16xf32>
    %303 = arith.select %299, %301, %302 : vector<1x16xi1>, vector<1x16xf32>
    %304 = arith.addf %285, %303 : vector<1x16xf32>
    %cst_109 = arith.constant 1.400000e+01 : f32
    %305 = vector.broadcast %cst_109 : f32 to vector<16x16xf32>
    %306 = arith.cmpf oeq, %37, %305 : vector<16x16xf32>
    %cst_110 = arith.constant 3.000000e+01 : f32
    %307 = vector.broadcast %cst_110 : f32 to vector<16x16xf32>
    %308 = arith.cmpf oeq, %37, %307 : vector<16x16xf32>
    %309 = arith.ori %306, %308 : vector<16x16xi1>
    %cst_111 = arith.constant 0.000000e+00 : f32
    %310 = vector.broadcast %cst_111 : f32 to vector<16x16xf32>
    %311 = arith.select %309, %28, %310 : vector<16x16xi1>, vector<16x16xf32>
    %312 = vector.shape_cast %311 : vector<16x16xf32> to vector<1x16x16xf32>
    %cst_112 = arith.constant dense<0.000000e+00> : vector<1xf32>
    %313 = vector.multi_reduction <add>, %312, %cst_112 [1, 2] : vector<1x16x16xf32> to vector<1xf32>
    %314 = vector.shape_cast %313 : vector<1xf32> to vector<1x1x1xf32>
    %315 = vector.extract %314[0, 0, 0] : f32 from vector<1x1x1xf32>
    %316 = vector.broadcast %315 : f32 to vector<1x1xf32>
    %cst_113 = arith.constant 1.400000e+01 : f32
    %317 = vector.broadcast %cst_113 : f32 to vector<1x16xf32>
    %318 = arith.cmpf oeq, %34, %317 : vector<1x16xf32>
    %cst_114 = arith.constant 0.000000e+00 : f32
    %319 = vector.shape_cast %316 : vector<1x1xf32> to vector<1x1xf32>
    %320 = vector.broadcast %319 : vector<1x1xf32> to vector<1x16xf32>
    %321 = vector.broadcast %cst_114 : f32 to vector<1x16xf32>
    %322 = arith.select %318, %320, %321 : vector<1x16xi1>, vector<1x16xf32>
    %323 = arith.addf %304, %322 : vector<1x16xf32>
    %cst_115 = arith.constant 1.500000e+01 : f32
    %324 = vector.broadcast %cst_115 : f32 to vector<16x16xf32>
    %325 = arith.cmpf oeq, %37, %324 : vector<16x16xf32>
    %cst_116 = arith.constant 3.100000e+01 : f32
    %326 = vector.broadcast %cst_116 : f32 to vector<16x16xf32>
    %327 = arith.cmpf oeq, %37, %326 : vector<16x16xf32>
    %328 = arith.ori %325, %327 : vector<16x16xi1>
    %cst_117 = arith.constant 0.000000e+00 : f32
    %329 = vector.broadcast %cst_117 : f32 to vector<16x16xf32>
    %330 = arith.select %328, %28, %329 : vector<16x16xi1>, vector<16x16xf32>
    %331 = vector.shape_cast %330 : vector<16x16xf32> to vector<1x16x16xf32>
    %cst_118 = arith.constant dense<0.000000e+00> : vector<1xf32>
    %332 = vector.multi_reduction <add>, %331, %cst_118 [1, 2] : vector<1x16x16xf32> to vector<1xf32>
    %333 = vector.shape_cast %332 : vector<1xf32> to vector<1x1x1xf32>
    %334 = vector.extract %333[0, 0, 0] : f32 from vector<1x1x1xf32>
    %335 = vector.broadcast %334 : f32 to vector<1x1xf32>
    %cst_119 = arith.constant 1.500000e+01 : f32
    %336 = vector.broadcast %cst_119 : f32 to vector<1x16xf32>
    %337 = arith.cmpf oeq, %34, %336 : vector<1x16xf32>
    %cst_120 = arith.constant 0.000000e+00 : f32
    %338 = vector.shape_cast %335 : vector<1x1xf32> to vector<1x1xf32>
    %339 = vector.broadcast %338 : vector<1x1xf32> to vector<1x16xf32>
    %340 = vector.broadcast %cst_120 : f32 to vector<1x16xf32>
    %341 = arith.select %337, %339, %340 : vector<1x16xi1>, vector<1x16xf32>
    %342 = arith.addf %323, %341 : vector<1x16xf32>
    %cst_121 = arith.constant 3.125000e-02 : f32
    %343 = vector.broadcast %cst_121 : f32 to vector<1x16xf32>
    %344 = arith.mulf %342, %343 : vector<1x16xf32>
    %345 = vector.shape_cast %344 : vector<1x16xf32> to vector<1x1x16xf32>
    %cst_122 = arith.constant dense<0xFF800000> : vector<1xf32>
    %346 = vector.multi_reduction <maximumf>, %345, %cst_122 [1, 2] : vector<1x1x16xf32> to vector<1xf32>
    %347 = vector.shape_cast %346 : vector<1xf32> to vector<1x1x1xf32>
    %348 = vector.extract %347[0, 0, 0] : f32 from vector<1x1x1xf32>
    %349 = vector.broadcast %348 : f32 to vector<1x1xf32>
    %350 = vector.broadcast %349 : vector<1x1xf32> to vector<1x16xf32>
    %351 = arith.cmpf oge, %344, %350 : vector<1x16xf32>
    %cst_123 = arith.constant 1.600000e+01 : f32
    %352 = vector.broadcast %cst_123 : f32 to vector<1x16xf32>
    %353 = arith.select %351, %34, %352 : vector<1x16xi1>, vector<1x16xf32>
    %354 = vector.shape_cast %353 : vector<1x16xf32> to vector<1x1x16xf32>
    %cst_124 = arith.constant dense<0x7F800000> : vector<1xf32>
    %355 = vector.multi_reduction <minimumf>, %354, %cst_124 [1, 2] : vector<1x1x16xf32> to vector<1xf32>
    %356 = vector.shape_cast %355 : vector<1xf32> to vector<1x1x1xf32>
    %357 = vector.extract %356[0, 0, 0] : f32 from vector<1x1x1xf32>
    %358 = vector.broadcast %357 : f32 to vector<1x1xf32>
    %359 = vector.broadcast %358 : vector<1x1xf32> to vector<1x16xf32>
    %360 = arith.cmpf oeq, %34, %359 : vector<1x16xf32>
    %cst_125 = arith.constant -1.000000e+30 : f32
    %361 = vector.broadcast %cst_125 : f32 to vector<1x16xf32>
    %362 = arith.select %360, %361, %344 : vector<1x16xi1>, vector<1x16xf32>
    %363 = vector.shape_cast %362 : vector<1x16xf32> to vector<1x1x16xf32>
    %cst_126 = arith.constant dense<0xFF800000> : vector<1xf32>
    %364 = vector.multi_reduction <maximumf>, %363, %cst_126 [1, 2] : vector<1x1x16xf32> to vector<1xf32>
    %365 = vector.shape_cast %364 : vector<1xf32> to vector<1x1x1xf32>
    %366 = vector.extract %365[0, 0, 0] : f32 from vector<1x1x1xf32>
    %367 = vector.broadcast %366 : f32 to vector<1x1xf32>
    %368 = vector.broadcast %367 : vector<1x1xf32> to vector<1x16xf32>
    %369 = arith.cmpf oge, %362, %368 : vector<1x16xf32>
    %cst_127 = arith.constant 1.600000e+01 : f32
    %370 = vector.broadcast %cst_127 : f32 to vector<1x16xf32>
    %371 = arith.select %369, %34, %370 : vector<1x16xi1>, vector<1x16xf32>
    %372 = vector.shape_cast %371 : vector<1x16xf32> to vector<1x1x16xf32>
    %cst_128 = arith.constant dense<0x7F800000> : vector<1xf32>
    %373 = vector.multi_reduction <minimumf>, %372, %cst_128 [1, 2] : vector<1x1x16xf32> to vector<1xf32>
    %374 = vector.shape_cast %373 : vector<1xf32> to vector<1x1x1xf32>
    %375 = vector.extract %374[0, 0, 0] : f32 from vector<1x1x1xf32>
    %376 = vector.broadcast %375 : f32 to vector<1x1xf32>
    %377 = arith.subf %349, %349 : vector<1x1xf32>
    %378 = math.exp %377 : vector<1x1xf32>
    %379 = arith.subf %367, %349 : vector<1x1xf32>
    %380 = math.exp %379 : vector<1x1xf32>
    %381 = arith.addf %378, %380 : vector<1x1xf32>
    %cst_129 = arith.constant 0.000000e+00 : f32
    %382 = vector.broadcast %cst_129 : f32 to vector<16x16xf32>
    %383 = vector.broadcast %358 : vector<1x1xf32> to vector<16x16xf32>
    %384 = arith.addf %30, %383 : vector<16x16xf32>
    %385 = arith.subf %384, %32 : vector<16x16xf32>
    %cst_130 = arith.constant 0.000000e+00 : f32
    %386 = vector.broadcast %cst_130 : f32 to vector<16x16xf32>
    %387 = arith.cmpf oeq, %385, %386 : vector<16x16xf32>
    %cst_131 = arith.constant 1.600000e+01 : f32
    %388 = vector.broadcast %cst_131 : f32 to vector<16x16xf32>
    %389 = arith.cmpf oeq, %385, %388 : vector<16x16xf32>
    %390 = arith.ori %387, %389 : vector<16x16xi1>
    %391 = arith.divf %378, %381 : vector<1x1xf32>
    %cst_132 = arith.constant 0.000000e+00 : f32
    %392 = vector.shape_cast %391 : vector<1x1xf32> to vector<1x1xf32>
    %393 = vector.broadcast %392 : vector<1x1xf32> to vector<16x16xf32>
    %394 = vector.broadcast %cst_132 : f32 to vector<16x16xf32>
    %395 = arith.select %390, %393, %394 : vector<16x16xi1>, vector<16x16xf32>
    %396 = arith.addf %382, %395 : vector<16x16xf32>
    %397 = vector.broadcast %376 : vector<1x1xf32> to vector<16x16xf32>
    %398 = arith.addf %30, %397 : vector<16x16xf32>
    %399 = arith.subf %398, %32 : vector<16x16xf32>
    %cst_133 = arith.constant 0.000000e+00 : f32
    %400 = vector.broadcast %cst_133 : f32 to vector<16x16xf32>
    %401 = arith.cmpf oeq, %399, %400 : vector<16x16xf32>
    %cst_134 = arith.constant 1.600000e+01 : f32
    %402 = vector.broadcast %cst_134 : f32 to vector<16x16xf32>
    %403 = arith.cmpf oeq, %399, %402 : vector<16x16xf32>
    %404 = arith.ori %401, %403 : vector<16x16xi1>
    %405 = arith.divf %380, %381 : vector<1x1xf32>
    %cst_135 = arith.constant 0.000000e+00 : f32
    %406 = vector.shape_cast %405 : vector<1x1xf32> to vector<1x1xf32>
    %407 = vector.broadcast %406 : vector<1x1xf32> to vector<16x16xf32>
    %408 = vector.broadcast %cst_135 : f32 to vector<16x16xf32>
    %409 = arith.select %404, %407, %408 : vector<16x16xi1>, vector<16x16xf32>
    %410 = arith.addf %396, %409 : vector<16x16xf32>
    %411 = arith.truncf %410 : vector<16x16xf32> to vector<16x16xbf16>
    %412 = arith.truncf %25 : vector<16x32xf32> to vector<16x32xbf16>
    %cst_136 = arith.constant dense<0.000000e+00> : vector<16x32xf32>
    %413 = tpu.matmul %411, %412, %cst_136 {dimension_numbers = #tpu.dot_dimension_numbers<[1], [0], [0], [1], [0, 0, 1, 1], [], []>} : vector<16x16xbf16>, vector<16x32xbf16>, vector<16x32xf32> -> vector<16x32xf32>
    %414 = arith.truncf %413 : vector<16x32xf32> to vector<16x32xbf16>
    %415 = arith.truncf %9 : vector<32x32xf32> to vector<32x32xbf16>
    %cst_137 = arith.constant dense<0.000000e+00> : vector<16x32xf32>
    %416 = tpu.matmul %414, %415, %cst_137 {dimension_numbers = #tpu.dot_dimension_numbers<[1], [0], [0], [1], [0, 0, 1, 1], [], []>} : vector<16x32xbf16>, vector<32x32xbf16>, vector<16x32xf32> -> vector<16x32xf32>
    %417 = vector.broadcast %10 : vector<1x32xf32> to vector<16x32xf32>
    %418 = arith.addf %416, %417 : vector<16x32xf32>
    %419 = arith.addf %1, %418 : vector<16x32xf32>
    %420 = arith.truncf %2 : vector<16x16xf32> to vector<16x16xbf16>
    %421 = arith.truncf %419 : vector<16x32xf32> to vector<16x32xbf16>
    %cst_138 = arith.constant dense<0.000000e+00> : vector<16x32xf32>
    %422 = tpu.matmul %420, %421, %cst_138 {dimension_numbers = #tpu.dot_dimension_numbers<[1], [0], [0], [1], [0, 0, 1, 1], [], []>} : vector<16x16xbf16>, vector<16x32xbf16>, vector<16x32xf32> -> vector<16x32xf32>
    %423 = arith.subf %419, %422 : vector<16x32xf32>
    %c0_139 = arith.constant 0 : index
    %c0_140 = arith.constant 0 : index
    %424 = vector.load %arg11[%c0_139, %c0_140] : memref<32x32xf32, #tpu.memory_space<vmem>>, vector<32x32xf32>
    %425 = arith.truncf %423 : vector<16x32xf32> to vector<16x32xbf16>
    %426 = arith.truncf %424 : vector<32x32xf32> to vector<32x32xbf16>
    %cst_141 = arith.constant dense<0.000000e+00> : vector<16x32xf32>
    %427 = tpu.matmul %425, %426, %cst_141 {dimension_numbers = #tpu.dot_dimension_numbers<[1], [0], [0], [1], [0, 0, 1, 1], [], []>} : vector<16x32xbf16>, vector<32x32xbf16>, vector<16x32xf32> -> vector<16x32xf32>
    %cst_142 = arith.constant 5.000000e-01 : f32
    %428 = vector.broadcast %cst_142 : f32 to vector<16x32xf32>
    %429 = arith.mulf %428, %427 : vector<16x32xf32>
    %cst_143 = arith.constant 0.707106769 : f32
    %430 = vector.broadcast %cst_143 : f32 to vector<16x32xf32>
    %431 = arith.mulf %427, %430 : vector<16x32xf32>
    %cst_144 = arith.constant 0.000000e+00 : f32
    %432 = vector.broadcast %cst_144 : f32 to vector<16x32xf32>
    %433 = arith.cmpf olt, %431, %432 : vector<16x32xf32>
    %cst_145 = arith.constant -1.000000e+00 : f32
    %cst_146 = arith.constant 1.000000e+00 : f32
    %434 = vector.broadcast %cst_145 : f32 to vector<16x32xf32>
    %435 = vector.broadcast %cst_146 : f32 to vector<16x32xf32>
    %436 = arith.select %433, %434, %435 : vector<16x32xi1>, vector<16x32xf32>
    %437 = math.absf %431 : vector<16x32xf32>
    %cst_147 = arith.constant 0.327591091 : f32
    %438 = vector.broadcast %cst_147 : f32 to vector<16x32xf32>
    %439 = arith.mulf %438, %437 : vector<16x32xf32>
    %cst_148 = arith.constant 1.000000e+00 : f32
    %440 = vector.broadcast %cst_148 : f32 to vector<16x32xf32>
    %441 = arith.addf %440, %439 : vector<16x32xf32>
    %cst_149 = arith.constant 1.000000e+00 : f32
    %442 = vector.broadcast %cst_149 : f32 to vector<16x32xf32>
    %443 = arith.divf %442, %441 : vector<16x32xf32>
    %cst_150 = arith.constant 1.06140542 : f32
    %444 = vector.broadcast %cst_150 : f32 to vector<16x32xf32>
    %445 = arith.mulf %444, %443 : vector<16x32xf32>
    %cst_151 = arith.constant -1.45315206 : f32
    %446 = vector.broadcast %cst_151 : f32 to vector<16x32xf32>
    %447 = arith.addf %445, %446 : vector<16x32xf32>
    %448 = arith.mulf %447, %443 : vector<16x32xf32>
    %cst_152 = arith.constant 1.42141378 : f32
    %449 = vector.broadcast %cst_152 : f32 to vector<16x32xf32>
    %450 = arith.addf %448, %449 : vector<16x32xf32>
    %451 = arith.mulf %450, %443 : vector<16x32xf32>
    %cst_153 = arith.constant -0.284496725 : f32
    %452 = vector.broadcast %cst_153 : f32 to vector<16x32xf32>
    %453 = arith.addf %451, %452 : vector<16x32xf32>
    %454 = arith.mulf %453, %443 : vector<16x32xf32>
    %cst_154 = arith.constant 0.254829586 : f32
    %455 = vector.broadcast %cst_154 : f32 to vector<16x32xf32>
    %456 = arith.addf %454, %455 : vector<16x32xf32>
    %457 = arith.mulf %456, %443 : vector<16x32xf32>
    %458 = arith.mulf %437, %437 : vector<16x32xf32>
    %cst_155 = arith.constant 0.000000e+00 : f32
    %459 = vector.broadcast %cst_155 : f32 to vector<16x32xf32>
    %460 = arith.subf %459, %458 : vector<16x32xf32>
    %461 = math.exp %460 : vector<16x32xf32>
    %462 = arith.mulf %457, %461 : vector<16x32xf32>
    %cst_156 = arith.constant 1.000000e+00 : f32
    %463 = vector.broadcast %cst_156 : f32 to vector<16x32xf32>
    %464 = arith.subf %463, %462 : vector<16x32xf32>
    %465 = arith.mulf %436, %464 : vector<16x32xf32>
    %cst_157 = arith.constant 1.000000e+00 : f32
    %466 = vector.broadcast %cst_157 : f32 to vector<16x32xf32>
    %467 = arith.addf %466, %465 : vector<16x32xf32>
    %468 = arith.mulf %429, %467 : vector<16x32xf32>
    %c0_158 = arith.constant 0 : index
    %c0_159 = arith.constant 0 : index
    %469 = vector.load %arg12[%c0_158, %c0_159] : memref<32x32xf32, #tpu.memory_space<vmem>>, vector<32x32xf32>
    %470 = arith.truncf %468 : vector<16x32xf32> to vector<16x32xbf16>
    %471 = arith.truncf %469 : vector<32x32xf32> to vector<32x32xbf16>
    %cst_160 = arith.constant dense<0.000000e+00> : vector<16x32xf32>
    %472 = tpu.matmul %470, %471, %cst_160 {dimension_numbers = #tpu.dot_dimension_numbers<[1], [0], [0], [1], [0, 0, 1, 1], [], []>} : vector<16x32xbf16>, vector<32x32xbf16>, vector<16x32xf32> -> vector<16x32xf32>
    %473 = arith.addf %423, %472 : vector<16x32xf32>
    %474 = arith.truncf %2 : vector<16x16xf32> to vector<16x16xbf16>
    %475 = arith.truncf %473 : vector<16x32xf32> to vector<16x32xbf16>
    %cst_161 = arith.constant dense<0.000000e+00> : vector<16x32xf32>
    %476 = tpu.matmul %474, %475, %cst_161 {dimension_numbers = #tpu.dot_dimension_numbers<[1], [0], [0], [1], [0, 0, 1, 1], [], []>} : vector<16x16xbf16>, vector<16x32xbf16>, vector<16x32xf32> -> vector<16x32xf32>
    %477 = arith.subf %473, %476 : vector<16x32xf32>
    %c0_162 = arith.constant 0 : index
    %c0_163 = arith.constant 0 : index
    %c0_164 = arith.constant 0 : index
    %478 = vector.load %arg13[%c0_162, %c0_163, %c0_164] : memref<1x16x32xf32, #tpu.memory_space<vmem>>, vector<1x16x32xf32>
    %479 = vector.shape_cast %478 : vector<1x16x32xf32> to vector<16x32xf32>
    %480 = vector.shape_cast %477 : vector<16x32xf32> to vector<1x16x32xf32>
    tpu.vector_store %arg13[%c0_162, %c0_163, %c0_164], %480 {strides = array<i32>} : memref<1x16x32xf32, #tpu.memory_space<vmem>>, vector<1x16x32xf32>,
    return
  }
  func.func @transform_0(%arg0: i32) -> (i32, i32, i32) {
    %c0_i32 = arith.constant 0 : i32
    %c0_i32_0 = arith.constant 0 : i32
    %c0_i32_1 = arith.constant 0 : i32
    return %arg0, %c0_i32, %c0_i32_0 : i32, i32, i32
  }
  func.func @transform_1(%arg0: i32) -> (i32, i32) {
    %c0_i32 = arith.constant 0 : i32
    %c0_i32_0 = arith.constant 0 : i32
    %c0_i32_1 = arith.constant 0 : i32
    return %c0_i32, %c0_i32_0 : i32, i32
  }
  func.func @transform_2(%arg0: i32) -> (i32, i32) {
    %c0_i32 = arith.constant 0 : i32
    %c0_i32_0 = arith.constant 0 : i32
    %c0_i32_1 = arith.constant 0 : i32
    return %c0_i32, %c0_i32_0 : i32, i32
  }
  func.func @transform_3(%arg0: i32) -> (i32, i32) {
    %c0_i32 = arith.constant 0 : i32
    %c0_i32_0 = arith.constant 0 : i32
    %c0_i32_1 = arith.constant 0 : i32
    return %c0_i32, %c0_i32_0 : i32, i32
  }
  func.func @transform_4(%arg0: i32) -> (i32, i32) {
    %c0_i32 = arith.constant 0 : i32
    %c0_i32_0 = arith.constant 0 : i32
    %c0_i32_1 = arith.constant 0 : i32
    return %c0_i32, %c0_i32_0 : i32, i32
  }
  func.func @transform_5(%arg0: i32) -> (i32, i32) {
    %c0_i32 = arith.constant 0 : i32
    %c0_i32_0 = arith.constant 0 : i32
    %c0_i32_1 = arith.constant 0 : i32
    return %c0_i32, %c0_i32_0 : i32, i32
  }
  func.func @transform_6(%arg0: i32) -> (i32, i32) {
    %c0_i32 = arith.constant 0 : i32
    %c0_i32_0 = arith.constant 0 : i32
    %c0_i32_1 = arith.constant 0 : i32
    return %c0_i32, %c0_i32_0 : i32, i32
  }
  func.func @transform_7(%arg0: i32) -> (i32, i32) {
    %c0_i32 = arith.constant 0 : i32
    %c0_i32_0 = arith.constant 0 : i32
    %c0_i32_1 = arith.constant 0 : i32
    return %c0_i32, %c0_i32_0 : i32, i32
  }
  func.func @transform_8(%arg0: i32) -> (i32, i32) {
    %c0_i32 = arith.constant 0 : i32
    %c0_i32_0 = arith.constant 0 : i32
    %c0_i32_1 = arith.constant 0 : i32
    return %c0_i32, %c0_i32_0 : i32, i32
  }
  func.func @transform_9(%arg0: i32) -> (i32, i32) {
    %c0_i32 = arith.constant 0 : i32
    %c0_i32_0 = arith.constant 0 : i32
    %c0_i32_1 = arith.constant 0 : i32
    return %c0_i32, %c0_i32_0 : i32, i32
  }
  func.func @transform_10(%arg0: i32) -> (i32, i32) {
    %c0_i32 = arith.constant 0 : i32
    %c0_i32_0 = arith.constant 0 : i32
    %c0_i32_1 = arith.constant 0 : i32
    return %c0_i32, %c0_i32_0 : i32, i32
  }
  func.func @transform_11(%arg0: i32) -> (i32, i32) {
    %c0_i32 = arith.constant 0 : i32
    %c0_i32_0 = arith.constant 0 : i32
    %c0_i32_1 = arith.constant 0 : i32
    return %c0_i32, %c0_i32_0 : i32, i32
  }
  func.func @transform_12(%arg0: i32) -> (i32, i32, i32) {
    %c0_i32 = arith.constant 0 : i32
    %c0_i32_0 = arith.constant 0 : i32
    %c0_i32_1 = arith.constant 0 : i32
    return %arg0, %c0_i32, %c0_i32_0 : i32, i32, i32
  }
}

module attributes {stable_mosaic.version = 11 : i64} {
  func.func @kernel(%arg0: i32, %arg1: memref<1x16x32xf32, #tpu.memory_space<vmem>>, %arg2: memref<1x32xf32, #tpu.memory_space<vmem>>, %arg3: memref<1x32xf32, #tpu.memory_space<vmem>>, %arg4: memref<1x16x32xf32, #tpu.memory_space<vmem>>) attributes {dimension_semantics = [#tpu.dimension_semantics<parallel>], iteration_bounds = array<i64: 2>, scalar_prefetch = 0 : i64, scratch_operands = 0 : i64, tpu.core_type = #tpu.core_type<tc>, window_params = [{transform_indices = @transform_0, window_bounds = array<i64: 1, 16, 32>}, {pipeline_mode = #tpu.pipeline_mode<synchronous>, transform_indices = @transform_1, window_bounds = array<i64: 1, 32>}, {pipeline_mode = #tpu.pipeline_mode<synchronous>, transform_indices = @transform_2, window_bounds = array<i64: 1, 32>}, {transform_indices = @transform_3, window_bounds = array<i64: 1, 16, 32>}]} {
    %c0 = arith.constant 0 : index
    %c0_0 = arith.constant 0 : index
    %c0_1 = arith.constant 0 : index
    %0 = vector.load %arg1[%c0, %c0_0, %c0_1] : memref<1x16x32xf32, #tpu.memory_space<vmem>>, vector<1x16x32xf32>
    %1 = vector.shape_cast %0 : vector<1x16x32xf32> to vector<16x32xf32>
    %c0_2 = arith.constant 0 : index
    %c0_3 = arith.constant 0 : index
    %2 = vector.load %arg2[%c0_2, %c0_3] : memref<1x32xf32, #tpu.memory_space<vmem>>, vector<1x32xf32>
    %c0_4 = arith.constant 0 : index
    %c0_5 = arith.constant 0 : index
    %3 = vector.load %arg3[%c0_4, %c0_5] : memref<1x32xf32, #tpu.memory_space<vmem>>, vector<1x32xf32>
    %cst = arith.constant dense<0.000000e+00> : vector<16xf32>
    %4 = vector.multi_reduction <add>, %1, %cst [1] : vector<16x32xf32> to vector<16xf32>
    %5 = vector.shape_cast %4 : vector<16xf32> to vector<16x1xf32>
    %cst_6 = arith.constant 3.200000e+01 : f32
    %6 = vector.broadcast %cst_6 : f32 to vector<16x1xf32>
    %7 = arith.divf %5, %6 : vector<16x1xf32>
    %8 = vector.broadcast %7 : vector<16x1xf32> to vector<16x32xf32>
    %9 = arith.subf %1, %8 : vector<16x32xf32>
    %10 = arith.mulf %9, %9 : vector<16x32xf32>
    %cst_7 = arith.constant dense<0.000000e+00> : vector<16xf32>
    %11 = vector.multi_reduction <add>, %10, %cst_7 [1] : vector<16x32xf32> to vector<16xf32>
    %12 = vector.shape_cast %11 : vector<16xf32> to vector<16x1xf32>
    %cst_8 = arith.constant 3.200000e+01 : f32
    %13 = vector.broadcast %cst_8 : f32 to vector<16x1xf32>
    %14 = arith.divf %12, %13 : vector<16x1xf32>
    %15 = vector.broadcast %7 : vector<16x1xf32> to vector<16x32xf32>
    %16 = arith.subf %1, %15 : vector<16x32xf32>
    %cst_9 = arith.constant 9.99999974E-6 : f32
    %17 = vector.broadcast %cst_9 : f32 to vector<16x1xf32>
    %18 = arith.addf %14, %17 : vector<16x1xf32>
    %19 = math.sqrt %18 : vector<16x1xf32>
    %20 = vector.broadcast %19 : vector<16x1xf32> to vector<16x32xf32>
    %21 = arith.divf %16, %20 : vector<16x32xf32>
    %22 = vector.broadcast %2 : vector<1x32xf32> to vector<16x32xf32>
    %23 = arith.mulf %21, %22 : vector<16x32xf32>
    %24 = vector.broadcast %3 : vector<1x32xf32> to vector<16x32xf32>
    %25 = arith.addf %23, %24 : vector<16x32xf32>
    %cst_10 = arith.constant dense<0.000000e+00> : vector<32xf32>
    %26 = vector.multi_reduction <add>, %25, %cst_10 [0] : vector<16x32xf32> to vector<32xf32>
    %27 = vector.shape_cast %26 : vector<32xf32> to vector<1x32xf32>
    %cst_11 = arith.constant 1.600000e+01 : f32
    %28 = vector.broadcast %cst_11 : f32 to vector<1x32xf32>
    %29 = arith.divf %27, %28 : vector<1x32xf32>
    %30 = vector.broadcast %29 : vector<1x32xf32> to vector<16x32xf32>
    %31 = arith.subf %25, %30 : vector<16x32xf32>
    %c0_12 = arith.constant 0 : index
    %c0_13 = arith.constant 0 : index
    %c0_14 = arith.constant 0 : index
    %32 = vector.load %arg4[%c0_12, %c0_13, %c0_14] : memref<1x16x32xf32, #tpu.memory_space<vmem>>, vector<1x16x32xf32>
    %33 = vector.shape_cast %32 : vector<1x16x32xf32> to vector<16x32xf32>
    %34 = vector.shape_cast %31 : vector<16x32xf32> to vector<1x16x32xf32>
    tpu.vector_store %arg4[%c0_12, %c0_13, %c0_14], %34 {strides = array<i32>} : memref<1x16x32xf32, #tpu.memory_space<vmem>>, vector<1x16x32xf32>,
    return
  }
  func.func @transform_0(%arg0: i32) -> (i32, i32, i32) {
    %c0_i32 = arith.constant 0 : i32
    %c0_i32_0 = arith.constant 0 : i32
    %c0_i32_1 = arith.constant 0 : i32
    return %arg0, %c0_i32, %c0_i32_0 : i32, i32, i32
  }
  func.func @transform_1(%arg0: i32) -> (i32, i32) {
    %c0_i32 = arith.constant 0 : i32
    %c0_i32_0 = arith.constant 0 : i32
    %c0_i32_1 = arith.constant 0 : i32
    return %c0_i32, %c0_i32_0 : i32, i32
  }
  func.func @transform_2(%arg0: i32) -> (i32, i32) {
    %c0_i32 = arith.constant 0 : i32
    %c0_i32_0 = arith.constant 0 : i32
    %c0_i32_1 = arith.constant 0 : i32
    return %c0_i32, %c0_i32_0 : i32, i32
  }
  func.func @transform_3(%arg0: i32) -> (i32, i32, i32) {
    %c0_i32 = arith.constant 0 : i32
    %c0_i32_0 = arith.constant 0 : i32
    %c0_i32_1 = arith.constant 0 : i32
    return %arg0, %c0_i32, %c0_i32_0 : i32, i32, i32
  }
}

module attributes {stable_mosaic.version = 11 : i64} {
  func.func @kernel(%arg0: i32, %arg1: memref<1x16x32xf32, #tpu.memory_space<vmem>>, %arg2: memref<1x16x4xf32, #tpu.memory_space<vmem>>, %arg3: memref<1x32xf32, #tpu.memory_space<vmem>>, %arg4: memref<1x32xf32, #tpu.memory_space<vmem>>, %arg5: memref<32x4xf32, #tpu.memory_space<vmem>>, %arg6: memref<1x4xf32, #tpu.memory_space<vmem>>, %arg7: memref<1x16x4xf32, #tpu.memory_space<vmem>>) attributes {dimension_semantics = [#tpu.dimension_semantics<parallel>], iteration_bounds = array<i64: 2>, scalar_prefetch = 0 : i64, scratch_operands = 0 : i64, tpu.core_type = #tpu.core_type<tc>, window_params = [{transform_indices = @transform_0, window_bounds = array<i64: 1, 16, 32>}, {transform_indices = @transform_1, window_bounds = array<i64: 1, 16, 4>}, {pipeline_mode = #tpu.pipeline_mode<synchronous>, transform_indices = @transform_2, window_bounds = array<i64: 1, 32>}, {pipeline_mode = #tpu.pipeline_mode<synchronous>, transform_indices = @transform_3, window_bounds = array<i64: 1, 32>}, {pipeline_mode = #tpu.pipeline_mode<synchronous>, transform_indices = @transform_4, window_bounds = array<i64: 32, 4>}, {pipeline_mode = #tpu.pipeline_mode<synchronous>, transform_indices = @transform_5, window_bounds = array<i64: 1, 4>}, {transform_indices = @transform_6, window_bounds = array<i64: 1, 16, 4>}]} {
    %c0 = arith.constant 0 : index
    %c0_0 = arith.constant 0 : index
    %c0_1 = arith.constant 0 : index
    %0 = vector.load %arg1[%c0, %c0_0, %c0_1] : memref<1x16x32xf32, #tpu.memory_space<vmem>>, vector<1x16x32xf32>
    %1 = vector.shape_cast %0 : vector<1x16x32xf32> to vector<16x32xf32>
    %c0_2 = arith.constant 0 : index
    %c0_3 = arith.constant 0 : index
    %2 = vector.load %arg3[%c0_2, %c0_3] : memref<1x32xf32, #tpu.memory_space<vmem>>, vector<1x32xf32>
    %c0_4 = arith.constant 0 : index
    %c0_5 = arith.constant 0 : index
    %3 = vector.load %arg4[%c0_4, %c0_5] : memref<1x32xf32, #tpu.memory_space<vmem>>, vector<1x32xf32>
    %cst = arith.constant dense<0.000000e+00> : vector<16xf32>
    %4 = vector.multi_reduction <add>, %1, %cst [1] : vector<16x32xf32> to vector<16xf32>
    %5 = vector.shape_cast %4 : vector<16xf32> to vector<16x1xf32>
    %cst_6 = arith.constant 3.200000e+01 : f32
    %6 = vector.broadcast %cst_6 : f32 to vector<16x1xf32>
    %7 = arith.divf %5, %6 : vector<16x1xf32>
    %8 = vector.broadcast %7 : vector<16x1xf32> to vector<16x32xf32>
    %9 = arith.subf %1, %8 : vector<16x32xf32>
    %10 = arith.mulf %9, %9 : vector<16x32xf32>
    %cst_7 = arith.constant dense<0.000000e+00> : vector<16xf32>
    %11 = vector.multi_reduction <add>, %10, %cst_7 [1] : vector<16x32xf32> to vector<16xf32>
    %12 = vector.shape_cast %11 : vector<16xf32> to vector<16x1xf32>
    %cst_8 = arith.constant 3.200000e+01 : f32
    %13 = vector.broadcast %cst_8 : f32 to vector<16x1xf32>
    %14 = arith.divf %12, %13 : vector<16x1xf32>
    %15 = vector.broadcast %7 : vector<16x1xf32> to vector<16x32xf32>
    %16 = arith.subf %1, %15 : vector<16x32xf32>
    %cst_9 = arith.constant 9.99999974E-6 : f32
    %17 = vector.broadcast %cst_9 : f32 to vector<16x1xf32>
    %18 = arith.addf %14, %17 : vector<16x1xf32>
    %19 = math.sqrt %18 : vector<16x1xf32>
    %20 = vector.broadcast %19 : vector<16x1xf32> to vector<16x32xf32>
    %21 = arith.divf %16, %20 : vector<16x32xf32>
    %22 = vector.broadcast %2 : vector<1x32xf32> to vector<16x32xf32>
    %23 = arith.mulf %21, %22 : vector<16x32xf32>
    %24 = vector.broadcast %3 : vector<1x32xf32> to vector<16x32xf32>
    %25 = arith.addf %23, %24 : vector<16x32xf32>
    %cst_10 = arith.constant dense<0.000000e+00> : vector<32xf32>
    %26 = vector.multi_reduction <add>, %25, %cst_10 [0] : vector<16x32xf32> to vector<32xf32>
    %27 = vector.shape_cast %26 : vector<32xf32> to vector<1x32xf32>
    %cst_11 = arith.constant 1.600000e+01 : f32
    %28 = vector.broadcast %cst_11 : f32 to vector<1x32xf32>
    %29 = arith.divf %27, %28 : vector<1x32xf32>
    %30 = vector.broadcast %29 : vector<1x32xf32> to vector<16x32xf32>
    %31 = arith.subf %25, %30 : vector<16x32xf32>
    %c0_12 = arith.constant 0 : index
    %c0_13 = arith.constant 0 : index
    %c0_14 = arith.constant 0 : index
    %32 = vector.load %arg2[%c0_12, %c0_13, %c0_14] : memref<1x16x4xf32, #tpu.memory_space<vmem>>, vector<1x16x4xf32>
    %33 = vector.shape_cast %32 : vector<1x16x4xf32> to vector<16x4xf32>
    %c0_15 = arith.constant 0 : index
    %c0_16 = arith.constant 0 : index
    %34 = vector.load %arg5[%c0_15, %c0_16] : memref<32x4xf32, #tpu.memory_space<vmem>>, vector<32x4xf32>
    %35 = arith.truncf %31 : vector<16x32xf32> to vector<16x32xbf16>
    %36 = arith.truncf %34 : vector<32x4xf32> to vector<32x4xbf16>
    %cst_17 = arith.constant dense<0.000000e+00> : vector<16x4xf32>
    %37 = tpu.matmul %35, %36, %cst_17 {dimension_numbers = #tpu.dot_dimension_numbers<[1], [0], [0], [1], [0, 0, 1, 1], [], []>} : vector<16x32xbf16>, vector<32x4xbf16>, vector<16x4xf32> -> vector<16x4xf32>
    %38 = arith.addf %33, %37 : vector<16x4xf32>
    %c0_18 = arith.constant 0 : index
    %c0_19 = arith.constant 0 : index
    %39 = vector.load %arg6[%c0_18, %c0_19] : memref<1x4xf32, #tpu.memory_space<vmem>>, vector<1x4xf32>
    %40 = vector.broadcast %39 : vector<1x4xf32> to vector<16x4xf32>
    %41 = arith.addf %38, %40 : vector<16x4xf32>
    %c0_20 = arith.constant 0 : index
    %c0_21 = arith.constant 0 : index
    %c0_22 = arith.constant 0 : index
    %42 = vector.load %arg7[%c0_20, %c0_21, %c0_22] : memref<1x16x4xf32, #tpu.memory_space<vmem>>, vector<1x16x4xf32>
    %43 = vector.shape_cast %42 : vector<1x16x4xf32> to vector<16x4xf32>
    %44 = vector.shape_cast %41 : vector<16x4xf32> to vector<1x16x4xf32>
    tpu.vector_store %arg7[%c0_20, %c0_21, %c0_22], %44 {strides = array<i32>} : memref<1x16x4xf32, #tpu.memory_space<vmem>>, vector<1x16x4xf32>,
    return
  }
  func.func @transform_0(%arg0: i32) -> (i32, i32, i32) {
    %c0_i32 = arith.constant 0 : i32
    %c0_i32_0 = arith.constant 0 : i32
    %c0_i32_1 = arith.constant 0 : i32
    return %arg0, %c0_i32, %c0_i32_0 : i32, i32, i32
  }
  func.func @transform_1(%arg0: i32) -> (i32, i32, i32) {
    %c0_i32 = arith.constant 0 : i32
    %c0_i32_0 = arith.constant 0 : i32
    %c0_i32_1 = arith.constant 0 : i32
    return %arg0, %c0_i32, %c0_i32_0 : i32, i32, i32
  }
  func.func @transform_2(%arg0: i32) -> (i32, i32) {
    %c0_i32 = arith.constant 0 : i32
    %c0_i32_0 = arith.constant 0 : i32
    %c0_i32_1 = arith.constant 0 : i32
    return %c0_i32, %c0_i32_0 : i32, i32
  }
  func.func @transform_3(%arg0: i32) -> (i32, i32) {
    %c0_i32 = arith.constant 0 : i32
    %c0_i32_0 = arith.constant 0 : i32
    %c0_i32_1 = arith.constant 0 : i32
    return %c0_i32, %c0_i32_0 : i32, i32
  }
  func.func @transform_4(%arg0: i32) -> (i32, i32) {
    %c0_i32 = arith.constant 0 : i32
    %c0_i32_0 = arith.constant 0 : i32
    %c0_i32_1 = arith.constant 0 : i32
    return %c0_i32, %c0_i32_0 : i32, i32
  }
  func.func @transform_5(%arg0: i32) -> (i32, i32) {
    %c0_i32 = arith.constant 0 : i32
    %c0_i32_0 = arith.constant 0 : i32
    %c0_i32_1 = arith.constant 0 : i32
    return %c0_i32, %c0_i32_0 : i32, i32
  }
  func.func @transform_6(%arg0: i32) -> (i32, i32, i32) {
    %c0_i32 = arith.constant 0 : i32
    %c0_i32_0 = arith.constant 0 : i32
    %c0_i32_1 = arith.constant 0 : i32
    return %arg0, %c0_i32, %c0_i32_0 : i32, i32, i32
  }
}

module attributes {stable_mosaic.version = 11 : i64} {
  func.func @kernel(%arg0: i32, %arg1: memref<1x16x32xf32, #tpu.memory_space<vmem>>, %arg2: memref<1x16x32xf32, #tpu.memory_space<vmem>>, %arg3: memref<32x32xf32, #tpu.memory_space<vmem>>, %arg4: memref<1x32xf32, #tpu.memory_space<vmem>>, %arg5: memref<32x32xf32, #tpu.memory_space<vmem>>, %arg6: memref<1x32xf32, #tpu.memory_space<vmem>>, %arg7: memref<32x32xf32, #tpu.memory_space<vmem>>, %arg8: memref<1x32xf32, #tpu.memory_space<vmem>>, %arg9: memref<32x32xf32, #tpu.memory_space<vmem>>, %arg10: memref<1x32xf32, #tpu.memory_space<vmem>>, %arg11: memref<32x32xf32, #tpu.memory_space<vmem>>, %arg12: memref<1x32xf32, #tpu.memory_space<vmem>>, %arg13: memref<32x32xf32, #tpu.memory_space<vmem>>, %arg14: memref<1x32xf32, #tpu.memory_space<vmem>>, %arg15: memref<32x32xf32, #tpu.memory_space<vmem>>, %arg16: memref<1x32xf32, #tpu.memory_space<vmem>>, %arg17: memref<32x32xf32, #tpu.memory_space<vmem>>, %arg18: memref<1x32xf32, #tpu.memory_space<vmem>>, %arg19: memref<16x16xf32, #tpu.memory_space<vmem>>, %arg20: memref<32x32xf32, #tpu.memory_space<vmem>>, %arg21: memref<32x32xf32, #tpu.memory_space<vmem>>, %arg22: memref<32x4xf32, #tpu.memory_space<vmem>>, %arg23: memref<32x4xf32, #tpu.memory_space<vmem>>, %arg24: memref<32x4xf32, #tpu.memory_space<vmem>>, %arg25: memref<1x16x32xf32, #tpu.memory_space<vmem>>, %arg26: memref<1x16x4xf32, #tpu.memory_space<vmem>>) attributes {dimension_semantics = [#tpu.dimension_semantics<parallel>], iteration_bounds = array<i64: 2>, scalar_prefetch = 0 : i64, scratch_operands = 0 : i64, tpu.core_type = #tpu.core_type<tc>, window_params = [{transform_indices = @transform_0, window_bounds = array<i64: 1, 16, 32>}, {transform_indices = @transform_1, window_bounds = array<i64: 1, 16, 32>}, {pipeline_mode = #tpu.pipeline_mode<synchronous>, transform_indices = @transform_2, window_bounds = array<i64: 32, 32>}, {pipeline_mode = #tpu.pipeline_mode<synchronous>, transform_indices = @transform_3, window_bounds = array<i64: 1, 32>}, {pipeline_mode = #tpu.pipeline_mode<synchronous>, transform_indices = @transform_4, window_bounds = array<i64: 32, 32>}, {pipeline_mode = #tpu.pipeline_mode<synchronous>, transform_indices = @transform_5, window_bounds = array<i64: 1, 32>}, {pipeline_mode = #tpu.pipeline_mode<synchronous>, transform_indices = @transform_6, window_bounds = array<i64: 32, 32>}, {pipeline_mode = #tpu.pipeline_mode<synchronous>, transform_indices = @transform_7, window_bounds = array<i64: 1, 32>}, {pipeline_mode = #tpu.pipeline_mode<synchronous>, transform_indices = @transform_8, window_bounds = array<i64: 32, 32>}, {pipeline_mode = #tpu.pipeline_mode<synchronous>, transform_indices = @transform_9, window_bounds = array<i64: 1, 32>}, {pipeline_mode = #tpu.pipeline_mode<synchronous>, transform_indices = @transform_10, window_bounds = array<i64: 32, 32>}, {pipeline_mode = #tpu.pipeline_mode<synchronous>, transform_indices = @transform_11, window_bounds = array<i64: 1, 32>}, {pipeline_mode = #tpu.pipeline_mode<synchronous>, transform_indices = @transform_12, window_bounds = array<i64: 32, 32>}, {pipeline_mode = #tpu.pipeline_mode<synchronous>, transform_indices = @transform_13, window_bounds = array<i64: 1, 32>}, {pipeline_mode = #tpu.pipeline_mode<synchronous>, transform_indices = @transform_14, window_bounds = array<i64: 32, 32>}, {pipeline_mode = #tpu.pipeline_mode<synchronous>, transform_indices = @transform_15, window_bounds = array<i64: 1, 32>}, {pipeline_mode = #tpu.pipeline_mode<synchronous>, transform_indices = @transform_16, window_bounds = array<i64: 32, 32>}, {pipeline_mode = #tpu.pipeline_mode<synchronous>, transform_indices = @transform_17, window_bounds = array<i64: 1, 32>}, {pipeline_mode = #tpu.pipeline_mode<synchronous>, transform_indices = @transform_18, window_bounds = array<i64: 16, 16>}, {pipeline_mode = #tpu.pipeline_mode<synchronous>, transform_indices = @transform_19, window_bounds = array<i64: 32, 32>}, {pipeline_mode = #tpu.pipeline_mode<synchronous>, transform_indices = @transform_20, window_bounds = array<i64: 32, 32>}, {pipeline_mode = #tpu.pipeline_mode<synchronous>, transform_indices = @transform_21, window_bounds = array<i64: 32, 4>}, {pipeline_mode = #tpu.pipeline_mode<synchronous>, transform_indices = @transform_22, window_bounds = array<i64: 32, 4>}, {pipeline_mode = #tpu.pipeline_mode<synchronous>, transform_indices = @transform_23, window_bounds = array<i64: 32, 4>}, {transform_indices = @transform_24, window_bounds = array<i64: 1, 16, 32>}, {transform_indices = @transform_25, window_bounds = array<i64: 1, 16, 4>}]} {
    %c0 = arith.constant 0 : index
    %c0_0 = arith.constant 0 : index
    %c0_1 = arith.constant 0 : index
    %0 = vector.load %arg1[%c0, %c0_0, %c0_1] : memref<1x16x32xf32, #tpu.memory_space<vmem>>, vector<1x16x32xf32>
    %1 = vector.shape_cast %0 : vector<1x16x32xf32> to vector<16x32xf32>
    %c0_2 = arith.constant 0 : index
    %c0_3 = arith.constant 0 : index
    %c0_4 = arith.constant 0 : index
    %2 = vector.load %arg2[%c0_2, %c0_3, %c0_4] : memref<1x16x32xf32, #tpu.memory_space<vmem>>, vector<1x16x32xf32>
    %3 = vector.shape_cast %2 : vector<1x16x32xf32> to vector<16x32xf32>
    %c0_5 = arith.constant 0 : index
    %c0_6 = arith.constant 0 : index
    %4 = vector.load %arg19[%c0_5, %c0_6] : memref<16x16xf32, #tpu.memory_space<vmem>>, vector<16x16xf32>
    %c0_7 = arith.constant 0 : index
    %c0_8 = arith.constant 0 : index
    %5 = vector.load %arg3[%c0_7, %c0_8] : memref<32x32xf32, #tpu.memory_space<vmem>>, vector<32x32xf32>
    %c0_9 = arith.constant 0 : index
    %c0_10 = arith.constant 0 : index
    %6 = vector.load %arg4[%c0_9, %c0_10] : memref<1x32xf32, #tpu.memory_space<vmem>>, vector<1x32xf32>
    %c0_11 = arith.constant 0 : index
    %c0_12 = arith.constant 0 : index
    %7 = vector.load %arg5[%c0_11, %c0_12] : memref<32x32xf32, #tpu.memory_space<vmem>>, vector<32x32xf32>
    %c0_13 = arith.constant 0 : index
    %c0_14 = arith.constant 0 : index
    %8 = vector.load %arg6[%c0_13, %c0_14] : memref<1x32xf32, #tpu.memory_space<vmem>>, vector<1x32xf32>
    %c0_15 = arith.constant 0 : index
    %c0_16 = arith.constant 0 : index
    %9 = vector.load %arg7[%c0_15, %c0_16] : memref<32x32xf32, #tpu.memory_space<vmem>>, vector<32x32xf32>
    %c0_17 = arith.constant 0 : index
    %c0_18 = arith.constant 0 : index
    %10 = vector.load %arg8[%c0_17, %c0_18] : memref<1x32xf32, #tpu.memory_space<vmem>>, vector<1x32xf32>
    %c0_19 = arith.constant 0 : index
    %c0_20 = arith.constant 0 : index
    %11 = vector.load %arg9[%c0_19, %c0_20] : memref<32x32xf32, #tpu.memory_space<vmem>>, vector<32x32xf32>
    %c0_21 = arith.constant 0 : index
    %c0_22 = arith.constant 0 : index
    %12 = vector.load %arg10[%c0_21, %c0_22] : memref<1x32xf32, #tpu.memory_space<vmem>>, vector<1x32xf32>
    %13 = arith.truncf %1 : vector<16x32xf32> to vector<16x32xbf16>
    %14 = arith.truncf %5 : vector<32x32xf32> to vector<32x32xbf16>
    %cst = arith.constant dense<0.000000e+00> : vector<16x32xf32>
    %15 = tpu.matmul %13, %14, %cst {dimension_numbers = #tpu.dot_dimension_numbers<[1], [0], [0], [1], [0, 0, 1, 1], [], []>} : vector<16x32xbf16>, vector<32x32xbf16>, vector<16x32xf32> -> vector<16x32xf32>
    %16 = vector.broadcast %6 : vector<1x32xf32> to vector<16x32xf32>
    %17 = arith.addf %15, %16 : vector<16x32xf32>
    %18 = arith.truncf %1 : vector<16x32xf32> to vector<16x32xbf16>
    %19 = arith.truncf %7 : vector<32x32xf32> to vector<32x32xbf16>
    %cst_23 = arith.constant dense<0.000000e+00> : vector<16x32xf32>
    %20 = tpu.matmul %18, %19, %cst_23 {dimension_numbers = #tpu.dot_dimension_numbers<[1], [0], [0], [1], [0, 0, 1, 1], [], []>} : vector<16x32xbf16>, vector<32x32xbf16>, vector<16x32xf32> -> vector<16x32xf32>
    %21 = vector.broadcast %8 : vector<1x32xf32> to vector<16x32xf32>
    %22 = arith.addf %20, %21 : vector<16x32xf32>
    %23 = arith.truncf %1 : vector<16x32xf32> to vector<16x32xbf16>
    %24 = arith.truncf %9 : vector<32x32xf32> to vector<32x32xbf16>
    %cst_24 = arith.constant dense<0.000000e+00> : vector<16x32xf32>
    %25 = tpu.matmul %23, %24, %cst_24 {dimension_numbers = #tpu.dot_dimension_numbers<[1], [0], [0], [1], [0, 0, 1, 1], [], []>} : vector<16x32xbf16>, vector<32x32xbf16>, vector<16x32xf32> -> vector<16x32xf32>
    %26 = vector.broadcast %10 : vector<1x32xf32> to vector<16x32xf32>
    %27 = arith.addf %25, %26 : vector<16x32xf32>
    %28 = arith.truncf %17 : vector<16x32xf32> to vector<16x32xbf16>
    %29 = arith.truncf %22 : vector<16x32xf32> to vector<16x32xbf16>
    %cst_25 = arith.constant dense<0.000000e+00> : vector<16x16xf32>
    %30 = tpu.matmul %28, %29, %cst_25 {dimension_numbers = #tpu.dot_dimension_numbers<[1], [1], [0], [0], [0, 0, 1, 0], [], []>} : vector<16x32xbf16>, vector<16x32xbf16>, vector<16x16xf32> -> vector<16x16xf32>
    %31 = tpu.iota {dimensions = array<i32: 0>} : vector<16x16xi32>
    %32 = arith.sitofp %31 : vector<16x16xi32> to vector<16x16xf32>
    %33 = tpu.iota {dimensions = array<i32: 1>} : vector<16x16xi32>
    %34 = arith.sitofp %33 : vector<16x16xi32> to vector<16x16xf32>
    %35 = tpu.iota {dimensions = array<i32: 1>} : vector<1x16xi32>
    %36 = arith.sitofp %35 : vector<1x16xi32> to vector<1x16xf32>
    %37 = arith.subf %32, %34 : vector<16x16xf32>
    %cst_26 = arith.constant 1.600000e+01 : f32
    %38 = vector.broadcast %cst_26 : f32 to vector<16x16xf32>
    %39 = arith.addf %37, %38 : vector<16x16xf32>
    %cst_27 = arith.constant 0.000000e+00 : f32
    %40 = vector.broadcast %cst_27 : f32 to vector<1x16xf32>
    %cst_28 = arith.constant 0.000000e+00 : f32
    %41 = vector.broadcast %cst_28 : f32 to vector<16x16xf32>
    %42 = arith.cmpf oeq, %39, %41 : vector<16x16xf32>
    %cst_29 = arith.constant 1.600000e+01 : f32
    %43 = vector.broadcast %cst_29 : f32 to vector<16x16xf32>
    %44 = arith.cmpf oeq, %39, %43 : vector<16x16xf32>
    %45 = arith.ori %42, %44 : vector<16x16xi1>
    %cst_30 = arith.constant 0.000000e+00 : f32
    %46 = vector.broadcast %cst_30 : f32 to vector<16x16xf32>
    %47 = arith.select %45, %30, %46 : vector<16x16xi1>, vector<16x16xf32>
    %48 = vector.shape_cast %47 : vector<16x16xf32> to vector<1x16x16xf32>
    %cst_31 = arith.constant dense<0.000000e+00> : vector<1xf32>
    %49 = vector.multi_reduction <add>, %48, %cst_31 [1, 2] : vector<1x16x16xf32> to vector<1xf32>
    %50 = vector.shape_cast %49 : vector<1xf32> to vector<1x1x1xf32>
    %51 = vector.extract %50[0, 0, 0] : f32 from vector<1x1x1xf32>
    %52 = vector.broadcast %51 : f32 to vector<1x1xf32>
    %cst_32 = arith.constant 0.000000e+00 : f32
    %53 = vector.broadcast %cst_32 : f32 to vector<1x16xf32>
    %54 = arith.cmpf oeq, %36, %53 : vector<1x16xf32>
    %cst_33 = arith.constant 0.000000e+00 : f32
    %55 = vector.shape_cast %52 : vector<1x1xf32> to vector<1x1xf32>
    %56 = vector.broadcast %55 : vector<1x1xf32> to vector<1x16xf32>
    %57 = vector.broadcast %cst_33 : f32 to vector<1x16xf32>
    %58 = arith.select %54, %56, %57 : vector<1x16xi1>, vector<1x16xf32>
    %59 = arith.addf %40, %58 : vector<1x16xf32>
    %cst_34 = arith.constant 1.000000e+00 : f32
    %60 = vector.broadcast %cst_34 : f32 to vector<16x16xf32>
    %61 = arith.cmpf oeq, %39, %60 : vector<16x16xf32>
    %cst_35 = arith.constant 1.700000e+01 : f32
    %62 = vector.broadcast %cst_35 : f32 to vector<16x16xf32>
    %63 = arith.cmpf oeq, %39, %62 : vector<16x16xf32>
    %64 = arith.ori %61, %63 : vector<16x16xi1>
    %cst_36 = arith.constant 0.000000e+00 : f32
    %65 = vector.broadcast %cst_36 : f32 to vector<16x16xf32>
    %66 = arith.select %64, %30, %65 : vector<16x16xi1>, vector<16x16xf32>
    %67 = vector.shape_cast %66 : vector<16x16xf32> to vector<1x16x16xf32>
    %cst_37 = arith.constant dense<0.000000e+00> : vector<1xf32>
    %68 = vector.multi_reduction <add>, %67, %cst_37 [1, 2] : vector<1x16x16xf32> to vector<1xf32>
    %69 = vector.shape_cast %68 : vector<1xf32> to vector<1x1x1xf32>
    %70 = vector.extract %69[0, 0, 0] : f32 from vector<1x1x1xf32>
    %71 = vector.broadcast %70 : f32 to vector<1x1xf32>
    %cst_38 = arith.constant 1.000000e+00 : f32
    %72 = vector.broadcast %cst_38 : f32 to vector<1x16xf32>
    %73 = arith.cmpf oeq, %36, %72 : vector<1x16xf32>
    %cst_39 = arith.constant 0.000000e+00 : f32
    %74 = vector.shape_cast %71 : vector<1x1xf32> to vector<1x1xf32>
    %75 = vector.broadcast %74 : vector<1x1xf32> to vector<1x16xf32>
    %76 = vector.broadcast %cst_39 : f32 to vector<1x16xf32>
    %77 = arith.select %73, %75, %76 : vector<1x16xi1>, vector<1x16xf32>
    %78 = arith.addf %59, %77 : vector<1x16xf32>
    %cst_40 = arith.constant 2.000000e+00 : f32
    %79 = vector.broadcast %cst_40 : f32 to vector<16x16xf32>
    %80 = arith.cmpf oeq, %39, %79 : vector<16x16xf32>
    %cst_41 = arith.constant 1.800000e+01 : f32
    %81 = vector.broadcast %cst_41 : f32 to vector<16x16xf32>
    %82 = arith.cmpf oeq, %39, %81 : vector<16x16xf32>
    %83 = arith.ori %80, %82 : vector<16x16xi1>
    %cst_42 = arith.constant 0.000000e+00 : f32
    %84 = vector.broadcast %cst_42 : f32 to vector<16x16xf32>
    %85 = arith.select %83, %30, %84 : vector<16x16xi1>, vector<16x16xf32>
    %86 = vector.shape_cast %85 : vector<16x16xf32> to vector<1x16x16xf32>
    %cst_43 = arith.constant dense<0.000000e+00> : vector<1xf32>
    %87 = vector.multi_reduction <add>, %86, %cst_43 [1, 2] : vector<1x16x16xf32> to vector<1xf32>
    %88 = vector.shape_cast %87 : vector<1xf32> to vector<1x1x1xf32>
    %89 = vector.extract %88[0, 0, 0] : f32 from vector<1x1x1xf32>
    %90 = vector.broadcast %89 : f32 to vector<1x1xf32>
    %cst_44 = arith.constant 2.000000e+00 : f32
    %91 = vector.broadcast %cst_44 : f32 to vector<1x16xf32>
    %92 = arith.cmpf oeq, %36, %91 : vector<1x16xf32>
    %cst_45 = arith.constant 0.000000e+00 : f32
    %93 = vector.shape_cast %90 : vector<1x1xf32> to vector<1x1xf32>
    %94 = vector.broadcast %93 : vector<1x1xf32> to vector<1x16xf32>
    %95 = vector.broadcast %cst_45 : f32 to vector<1x16xf32>
    %96 = arith.select %92, %94, %95 : vector<1x16xi1>, vector<1x16xf32>
    %97 = arith.addf %78, %96 : vector<1x16xf32>
    %cst_46 = arith.constant 3.000000e+00 : f32
    %98 = vector.broadcast %cst_46 : f32 to vector<16x16xf32>
    %99 = arith.cmpf oeq, %39, %98 : vector<16x16xf32>
    %cst_47 = arith.constant 1.900000e+01 : f32
    %100 = vector.broadcast %cst_47 : f32 to vector<16x16xf32>
    %101 = arith.cmpf oeq, %39, %100 : vector<16x16xf32>
    %102 = arith.ori %99, %101 : vector<16x16xi1>
    %cst_48 = arith.constant 0.000000e+00 : f32
    %103 = vector.broadcast %cst_48 : f32 to vector<16x16xf32>
    %104 = arith.select %102, %30, %103 : vector<16x16xi1>, vector<16x16xf32>
    %105 = vector.shape_cast %104 : vector<16x16xf32> to vector<1x16x16xf32>
    %cst_49 = arith.constant dense<0.000000e+00> : vector<1xf32>
    %106 = vector.multi_reduction <add>, %105, %cst_49 [1, 2] : vector<1x16x16xf32> to vector<1xf32>
    %107 = vector.shape_cast %106 : vector<1xf32> to vector<1x1x1xf32>
    %108 = vector.extract %107[0, 0, 0] : f32 from vector<1x1x1xf32>
    %109 = vector.broadcast %108 : f32 to vector<1x1xf32>
    %cst_50 = arith.constant 3.000000e+00 : f32
    %110 = vector.broadcast %cst_50 : f32 to vector<1x16xf32>
    %111 = arith.cmpf oeq, %36, %110 : vector<1x16xf32>
    %cst_51 = arith.constant 0.000000e+00 : f32
    %112 = vector.shape_cast %109 : vector<1x1xf32> to vector<1x1xf32>
    %113 = vector.broadcast %112 : vector<1x1xf32> to vector<1x16xf32>
    %114 = vector.broadcast %cst_51 : f32 to vector<1x16xf32>
    %115 = arith.select %111, %113, %114 : vector<1x16xi1>, vector<1x16xf32>
    %116 = arith.addf %97, %115 : vector<1x16xf32>
    %cst_52 = arith.constant 4.000000e+00 : f32
    %117 = vector.broadcast %cst_52 : f32 to vector<16x16xf32>
    %118 = arith.cmpf oeq, %39, %117 : vector<16x16xf32>
    %cst_53 = arith.constant 2.000000e+01 : f32
    %119 = vector.broadcast %cst_53 : f32 to vector<16x16xf32>
    %120 = arith.cmpf oeq, %39, %119 : vector<16x16xf32>
    %121 = arith.ori %118, %120 : vector<16x16xi1>
    %cst_54 = arith.constant 0.000000e+00 : f32
    %122 = vector.broadcast %cst_54 : f32 to vector<16x16xf32>
    %123 = arith.select %121, %30, %122 : vector<16x16xi1>, vector<16x16xf32>
    %124 = vector.shape_cast %123 : vector<16x16xf32> to vector<1x16x16xf32>
    %cst_55 = arith.constant dense<0.000000e+00> : vector<1xf32>
    %125 = vector.multi_reduction <add>, %124, %cst_55 [1, 2] : vector<1x16x16xf32> to vector<1xf32>
    %126 = vector.shape_cast %125 : vector<1xf32> to vector<1x1x1xf32>
    %127 = vector.extract %126[0, 0, 0] : f32 from vector<1x1x1xf32>
    %128 = vector.broadcast %127 : f32 to vector<1x1xf32>
    %cst_56 = arith.constant 4.000000e+00 : f32
    %129 = vector.broadcast %cst_56 : f32 to vector<1x16xf32>
    %130 = arith.cmpf oeq, %36, %129 : vector<1x16xf32>
    %cst_57 = arith.constant 0.000000e+00 : f32
    %131 = vector.shape_cast %128 : vector<1x1xf32> to vector<1x1xf32>
    %132 = vector.broadcast %131 : vector<1x1xf32> to vector<1x16xf32>
    %133 = vector.broadcast %cst_57 : f32 to vector<1x16xf32>
    %134 = arith.select %130, %132, %133 : vector<1x16xi1>, vector<1x16xf32>
    %135 = arith.addf %116, %134 : vector<1x16xf32>
    %cst_58 = arith.constant 5.000000e+00 : f32
    %136 = vector.broadcast %cst_58 : f32 to vector<16x16xf32>
    %137 = arith.cmpf oeq, %39, %136 : vector<16x16xf32>
    %cst_59 = arith.constant 2.100000e+01 : f32
    %138 = vector.broadcast %cst_59 : f32 to vector<16x16xf32>
    %139 = arith.cmpf oeq, %39, %138 : vector<16x16xf32>
    %140 = arith.ori %137, %139 : vector<16x16xi1>
    %cst_60 = arith.constant 0.000000e+00 : f32
    %141 = vector.broadcast %cst_60 : f32 to vector<16x16xf32>
    %142 = arith.select %140, %30, %141 : vector<16x16xi1>, vector<16x16xf32>
    %143 = vector.shape_cast %142 : vector<16x16xf32> to vector<1x16x16xf32>
    %cst_61 = arith.constant dense<0.000000e+00> : vector<1xf32>
    %144 = vector.multi_reduction <add>, %143, %cst_61 [1, 2] : vector<1x16x16xf32> to vector<1xf32>
    %145 = vector.shape_cast %144 : vector<1xf32> to vector<1x1x1xf32>
    %146 = vector.extract %145[0, 0, 0] : f32 from vector<1x1x1xf32>
    %147 = vector.broadcast %146 : f32 to vector<1x1xf32>
    %cst_62 = arith.constant 5.000000e+00 : f32
    %148 = vector.broadcast %cst_62 : f32 to vector<1x16xf32>
    %149 = arith.cmpf oeq, %36, %148 : vector<1x16xf32>
    %cst_63 = arith.constant 0.000000e+00 : f32
    %150 = vector.shape_cast %147 : vector<1x1xf32> to vector<1x1xf32>
    %151 = vector.broadcast %150 : vector<1x1xf32> to vector<1x16xf32>
    %152 = vector.broadcast %cst_63 : f32 to vector<1x16xf32>
    %153 = arith.select %149, %151, %152 : vector<1x16xi1>, vector<1x16xf32>
    %154 = arith.addf %135, %153 : vector<1x16xf32>
    %cst_64 = arith.constant 6.000000e+00 : f32
    %155 = vector.broadcast %cst_64 : f32 to vector<16x16xf32>
    %156 = arith.cmpf oeq, %39, %155 : vector<16x16xf32>
    %cst_65 = arith.constant 2.200000e+01 : f32
    %157 = vector.broadcast %cst_65 : f32 to vector<16x16xf32>
    %158 = arith.cmpf oeq, %39, %157 : vector<16x16xf32>
    %159 = arith.ori %156, %158 : vector<16x16xi1>
    %cst_66 = arith.constant 0.000000e+00 : f32
    %160 = vector.broadcast %cst_66 : f32 to vector<16x16xf32>
    %161 = arith.select %159, %30, %160 : vector<16x16xi1>, vector<16x16xf32>
    %162 = vector.shape_cast %161 : vector<16x16xf32> to vector<1x16x16xf32>
    %cst_67 = arith.constant dense<0.000000e+00> : vector<1xf32>
    %163 = vector.multi_reduction <add>, %162, %cst_67 [1, 2] : vector<1x16x16xf32> to vector<1xf32>
    %164 = vector.shape_cast %163 : vector<1xf32> to vector<1x1x1xf32>
    %165 = vector.extract %164[0, 0, 0] : f32 from vector<1x1x1xf32>
    %166 = vector.broadcast %165 : f32 to vector<1x1xf32>
    %cst_68 = arith.constant 6.000000e+00 : f32
    %167 = vector.broadcast %cst_68 : f32 to vector<1x16xf32>
    %168 = arith.cmpf oeq, %36, %167 : vector<1x16xf32>
    %cst_69 = arith.constant 0.000000e+00 : f32
    %169 = vector.shape_cast %166 : vector<1x1xf32> to vector<1x1xf32>
    %170 = vector.broadcast %169 : vector<1x1xf32> to vector<1x16xf32>
    %171 = vector.broadcast %cst_69 : f32 to vector<1x16xf32>
    %172 = arith.select %168, %170, %171 : vector<1x16xi1>, vector<1x16xf32>
    %173 = arith.addf %154, %172 : vector<1x16xf32>
    %cst_70 = arith.constant 7.000000e+00 : f32
    %174 = vector.broadcast %cst_70 : f32 to vector<16x16xf32>
    %175 = arith.cmpf oeq, %39, %174 : vector<16x16xf32>
    %cst_71 = arith.constant 2.300000e+01 : f32
    %176 = vector.broadcast %cst_71 : f32 to vector<16x16xf32>
    %177 = arith.cmpf oeq, %39, %176 : vector<16x16xf32>
    %178 = arith.ori %175, %177 : vector<16x16xi1>
    %cst_72 = arith.constant 0.000000e+00 : f32
    %179 = vector.broadcast %cst_72 : f32 to vector<16x16xf32>
    %180 = arith.select %178, %30, %179 : vector<16x16xi1>, vector<16x16xf32>
    %181 = vector.shape_cast %180 : vector<16x16xf32> to vector<1x16x16xf32>
    %cst_73 = arith.constant dense<0.000000e+00> : vector<1xf32>
    %182 = vector.multi_reduction <add>, %181, %cst_73 [1, 2] : vector<1x16x16xf32> to vector<1xf32>
    %183 = vector.shape_cast %182 : vector<1xf32> to vector<1x1x1xf32>
    %184 = vector.extract %183[0, 0, 0] : f32 from vector<1x1x1xf32>
    %185 = vector.broadcast %184 : f32 to vector<1x1xf32>
    %cst_74 = arith.constant 7.000000e+00 : f32
    %186 = vector.broadcast %cst_74 : f32 to vector<1x16xf32>
    %187 = arith.cmpf oeq, %36, %186 : vector<1x16xf32>
    %cst_75 = arith.constant 0.000000e+00 : f32
    %188 = vector.shape_cast %185 : vector<1x1xf32> to vector<1x1xf32>
    %189 = vector.broadcast %188 : vector<1x1xf32> to vector<1x16xf32>
    %190 = vector.broadcast %cst_75 : f32 to vector<1x16xf32>
    %191 = arith.select %187, %189, %190 : vector<1x16xi1>, vector<1x16xf32>
    %192 = arith.addf %173, %191 : vector<1x16xf32>
    %cst_76 = arith.constant 8.000000e+00 : f32
    %193 = vector.broadcast %cst_76 : f32 to vector<16x16xf32>
    %194 = arith.cmpf oeq, %39, %193 : vector<16x16xf32>
    %cst_77 = arith.constant 2.400000e+01 : f32
    %195 = vector.broadcast %cst_77 : f32 to vector<16x16xf32>
    %196 = arith.cmpf oeq, %39, %195 : vector<16x16xf32>
    %197 = arith.ori %194, %196 : vector<16x16xi1>
    %cst_78 = arith.constant 0.000000e+00 : f32
    %198 = vector.broadcast %cst_78 : f32 to vector<16x16xf32>
    %199 = arith.select %197, %30, %198 : vector<16x16xi1>, vector<16x16xf32>
    %200 = vector.shape_cast %199 : vector<16x16xf32> to vector<1x16x16xf32>
    %cst_79 = arith.constant dense<0.000000e+00> : vector<1xf32>
    %201 = vector.multi_reduction <add>, %200, %cst_79 [1, 2] : vector<1x16x16xf32> to vector<1xf32>
    %202 = vector.shape_cast %201 : vector<1xf32> to vector<1x1x1xf32>
    %203 = vector.extract %202[0, 0, 0] : f32 from vector<1x1x1xf32>
    %204 = vector.broadcast %203 : f32 to vector<1x1xf32>
    %cst_80 = arith.constant 8.000000e+00 : f32
    %205 = vector.broadcast %cst_80 : f32 to vector<1x16xf32>
    %206 = arith.cmpf oeq, %36, %205 : vector<1x16xf32>
    %cst_81 = arith.constant 0.000000e+00 : f32
    %207 = vector.shape_cast %204 : vector<1x1xf32> to vector<1x1xf32>
    %208 = vector.broadcast %207 : vector<1x1xf32> to vector<1x16xf32>
    %209 = vector.broadcast %cst_81 : f32 to vector<1x16xf32>
    %210 = arith.select %206, %208, %209 : vector<1x16xi1>, vector<1x16xf32>
    %211 = arith.addf %192, %210 : vector<1x16xf32>
    %cst_82 = arith.constant 9.000000e+00 : f32
    %212 = vector.broadcast %cst_82 : f32 to vector<16x16xf32>
    %213 = arith.cmpf oeq, %39, %212 : vector<16x16xf32>
    %cst_83 = arith.constant 2.500000e+01 : f32
    %214 = vector.broadcast %cst_83 : f32 to vector<16x16xf32>
    %215 = arith.cmpf oeq, %39, %214 : vector<16x16xf32>
    %216 = arith.ori %213, %215 : vector<16x16xi1>
    %cst_84 = arith.constant 0.000000e+00 : f32
    %217 = vector.broadcast %cst_84 : f32 to vector<16x16xf32>
    %218 = arith.select %216, %30, %217 : vector<16x16xi1>, vector<16x16xf32>
    %219 = vector.shape_cast %218 : vector<16x16xf32> to vector<1x16x16xf32>
    %cst_85 = arith.constant dense<0.000000e+00> : vector<1xf32>
    %220 = vector.multi_reduction <add>, %219, %cst_85 [1, 2] : vector<1x16x16xf32> to vector<1xf32>
    %221 = vector.shape_cast %220 : vector<1xf32> to vector<1x1x1xf32>
    %222 = vector.extract %221[0, 0, 0] : f32 from vector<1x1x1xf32>
    %223 = vector.broadcast %222 : f32 to vector<1x1xf32>
    %cst_86 = arith.constant 9.000000e+00 : f32
    %224 = vector.broadcast %cst_86 : f32 to vector<1x16xf32>
    %225 = arith.cmpf oeq, %36, %224 : vector<1x16xf32>
    %cst_87 = arith.constant 0.000000e+00 : f32
    %226 = vector.shape_cast %223 : vector<1x1xf32> to vector<1x1xf32>
    %227 = vector.broadcast %226 : vector<1x1xf32> to vector<1x16xf32>
    %228 = vector.broadcast %cst_87 : f32 to vector<1x16xf32>
    %229 = arith.select %225, %227, %228 : vector<1x16xi1>, vector<1x16xf32>
    %230 = arith.addf %211, %229 : vector<1x16xf32>
    %cst_88 = arith.constant 1.000000e+01 : f32
    %231 = vector.broadcast %cst_88 : f32 to vector<16x16xf32>
    %232 = arith.cmpf oeq, %39, %231 : vector<16x16xf32>
    %cst_89 = arith.constant 2.600000e+01 : f32
    %233 = vector.broadcast %cst_89 : f32 to vector<16x16xf32>
    %234 = arith.cmpf oeq, %39, %233 : vector<16x16xf32>
    %235 = arith.ori %232, %234 : vector<16x16xi1>
    %cst_90 = arith.constant 0.000000e+00 : f32
    %236 = vector.broadcast %cst_90 : f32 to vector<16x16xf32>
    %237 = arith.select %235, %30, %236 : vector<16x16xi1>, vector<16x16xf32>
    %238 = vector.shape_cast %237 : vector<16x16xf32> to vector<1x16x16xf32>
    %cst_91 = arith.constant dense<0.000000e+00> : vector<1xf32>
    %239 = vector.multi_reduction <add>, %238, %cst_91 [1, 2] : vector<1x16x16xf32> to vector<1xf32>
    %240 = vector.shape_cast %239 : vector<1xf32> to vector<1x1x1xf32>
    %241 = vector.extract %240[0, 0, 0] : f32 from vector<1x1x1xf32>
    %242 = vector.broadcast %241 : f32 to vector<1x1xf32>
    %cst_92 = arith.constant 1.000000e+01 : f32
    %243 = vector.broadcast %cst_92 : f32 to vector<1x16xf32>
    %244 = arith.cmpf oeq, %36, %243 : vector<1x16xf32>
    %cst_93 = arith.constant 0.000000e+00 : f32
    %245 = vector.shape_cast %242 : vector<1x1xf32> to vector<1x1xf32>
    %246 = vector.broadcast %245 : vector<1x1xf32> to vector<1x16xf32>
    %247 = vector.broadcast %cst_93 : f32 to vector<1x16xf32>
    %248 = arith.select %244, %246, %247 : vector<1x16xi1>, vector<1x16xf32>
    %249 = arith.addf %230, %248 : vector<1x16xf32>
    %cst_94 = arith.constant 1.100000e+01 : f32
    %250 = vector.broadcast %cst_94 : f32 to vector<16x16xf32>
    %251 = arith.cmpf oeq, %39, %250 : vector<16x16xf32>
    %cst_95 = arith.constant 2.700000e+01 : f32
    %252 = vector.broadcast %cst_95 : f32 to vector<16x16xf32>
    %253 = arith.cmpf oeq, %39, %252 : vector<16x16xf32>
    %254 = arith.ori %251, %253 : vector<16x16xi1>
    %cst_96 = arith.constant 0.000000e+00 : f32
    %255 = vector.broadcast %cst_96 : f32 to vector<16x16xf32>
    %256 = arith.select %254, %30, %255 : vector<16x16xi1>, vector<16x16xf32>
    %257 = vector.shape_cast %256 : vector<16x16xf32> to vector<1x16x16xf32>
    %cst_97 = arith.constant dense<0.000000e+00> : vector<1xf32>
    %258 = vector.multi_reduction <add>, %257, %cst_97 [1, 2] : vector<1x16x16xf32> to vector<1xf32>
    %259 = vector.shape_cast %258 : vector<1xf32> to vector<1x1x1xf32>
    %260 = vector.extract %259[0, 0, 0] : f32 from vector<1x1x1xf32>
    %261 = vector.broadcast %260 : f32 to vector<1x1xf32>
    %cst_98 = arith.constant 1.100000e+01 : f32
    %262 = vector.broadcast %cst_98 : f32 to vector<1x16xf32>
    %263 = arith.cmpf oeq, %36, %262 : vector<1x16xf32>
    %cst_99 = arith.constant 0.000000e+00 : f32
    %264 = vector.shape_cast %261 : vector<1x1xf32> to vector<1x1xf32>
    %265 = vector.broadcast %264 : vector<1x1xf32> to vector<1x16xf32>
    %266 = vector.broadcast %cst_99 : f32 to vector<1x16xf32>
    %267 = arith.select %263, %265, %266 : vector<1x16xi1>, vector<1x16xf32>
    %268 = arith.addf %249, %267 : vector<1x16xf32>
    %cst_100 = arith.constant 1.200000e+01 : f32
    %269 = vector.broadcast %cst_100 : f32 to vector<16x16xf32>
    %270 = arith.cmpf oeq, %39, %269 : vector<16x16xf32>
    %cst_101 = arith.constant 2.800000e+01 : f32
    %271 = vector.broadcast %cst_101 : f32 to vector<16x16xf32>
    %272 = arith.cmpf oeq, %39, %271 : vector<16x16xf32>
    %273 = arith.ori %270, %272 : vector<16x16xi1>
    %cst_102 = arith.constant 0.000000e+00 : f32
    %274 = vector.broadcast %cst_102 : f32 to vector<16x16xf32>
    %275 = arith.select %273, %30, %274 : vector<16x16xi1>, vector<16x16xf32>
    %276 = vector.shape_cast %275 : vector<16x16xf32> to vector<1x16x16xf32>
    %cst_103 = arith.constant dense<0.000000e+00> : vector<1xf32>
    %277 = vector.multi_reduction <add>, %276, %cst_103 [1, 2] : vector<1x16x16xf32> to vector<1xf32>
    %278 = vector.shape_cast %277 : vector<1xf32> to vector<1x1x1xf32>
    %279 = vector.extract %278[0, 0, 0] : f32 from vector<1x1x1xf32>
    %280 = vector.broadcast %279 : f32 to vector<1x1xf32>
    %cst_104 = arith.constant 1.200000e+01 : f32
    %281 = vector.broadcast %cst_104 : f32 to vector<1x16xf32>
    %282 = arith.cmpf oeq, %36, %281 : vector<1x16xf32>
    %cst_105 = arith.constant 0.000000e+00 : f32
    %283 = vector.shape_cast %280 : vector<1x1xf32> to vector<1x1xf32>
    %284 = vector.broadcast %283 : vector<1x1xf32> to vector<1x16xf32>
    %285 = vector.broadcast %cst_105 : f32 to vector<1x16xf32>
    %286 = arith.select %282, %284, %285 : vector<1x16xi1>, vector<1x16xf32>
    %287 = arith.addf %268, %286 : vector<1x16xf32>
    %cst_106 = arith.constant 1.300000e+01 : f32
    %288 = vector.broadcast %cst_106 : f32 to vector<16x16xf32>
    %289 = arith.cmpf oeq, %39, %288 : vector<16x16xf32>
    %cst_107 = arith.constant 2.900000e+01 : f32
    %290 = vector.broadcast %cst_107 : f32 to vector<16x16xf32>
    %291 = arith.cmpf oeq, %39, %290 : vector<16x16xf32>
    %292 = arith.ori %289, %291 : vector<16x16xi1>
    %cst_108 = arith.constant 0.000000e+00 : f32
    %293 = vector.broadcast %cst_108 : f32 to vector<16x16xf32>
    %294 = arith.select %292, %30, %293 : vector<16x16xi1>, vector<16x16xf32>
    %295 = vector.shape_cast %294 : vector<16x16xf32> to vector<1x16x16xf32>
    %cst_109 = arith.constant dense<0.000000e+00> : vector<1xf32>
    %296 = vector.multi_reduction <add>, %295, %cst_109 [1, 2] : vector<1x16x16xf32> to vector<1xf32>
    %297 = vector.shape_cast %296 : vector<1xf32> to vector<1x1x1xf32>
    %298 = vector.extract %297[0, 0, 0] : f32 from vector<1x1x1xf32>
    %299 = vector.broadcast %298 : f32 to vector<1x1xf32>
    %cst_110 = arith.constant 1.300000e+01 : f32
    %300 = vector.broadcast %cst_110 : f32 to vector<1x16xf32>
    %301 = arith.cmpf oeq, %36, %300 : vector<1x16xf32>
    %cst_111 = arith.constant 0.000000e+00 : f32
    %302 = vector.shape_cast %299 : vector<1x1xf32> to vector<1x1xf32>
    %303 = vector.broadcast %302 : vector<1x1xf32> to vector<1x16xf32>
    %304 = vector.broadcast %cst_111 : f32 to vector<1x16xf32>
    %305 = arith.select %301, %303, %304 : vector<1x16xi1>, vector<1x16xf32>
    %306 = arith.addf %287, %305 : vector<1x16xf32>
    %cst_112 = arith.constant 1.400000e+01 : f32
    %307 = vector.broadcast %cst_112 : f32 to vector<16x16xf32>
    %308 = arith.cmpf oeq, %39, %307 : vector<16x16xf32>
    %cst_113 = arith.constant 3.000000e+01 : f32
    %309 = vector.broadcast %cst_113 : f32 to vector<16x16xf32>
    %310 = arith.cmpf oeq, %39, %309 : vector<16x16xf32>
    %311 = arith.ori %308, %310 : vector<16x16xi1>
    %cst_114 = arith.constant 0.000000e+00 : f32
    %312 = vector.broadcast %cst_114 : f32 to vector<16x16xf32>
    %313 = arith.select %311, %30, %312 : vector<16x16xi1>, vector<16x16xf32>
    %314 = vector.shape_cast %313 : vector<16x16xf32> to vector<1x16x16xf32>
    %cst_115 = arith.constant dense<0.000000e+00> : vector<1xf32>
    %315 = vector.multi_reduction <add>, %314, %cst_115 [1, 2] : vector<1x16x16xf32> to vector<1xf32>
    %316 = vector.shape_cast %315 : vector<1xf32> to vector<1x1x1xf32>
    %317 = vector.extract %316[0, 0, 0] : f32 from vector<1x1x1xf32>
    %318 = vector.broadcast %317 : f32 to vector<1x1xf32>
    %cst_116 = arith.constant 1.400000e+01 : f32
    %319 = vector.broadcast %cst_116 : f32 to vector<1x16xf32>
    %320 = arith.cmpf oeq, %36, %319 : vector<1x16xf32>
    %cst_117 = arith.constant 0.000000e+00 : f32
    %321 = vector.shape_cast %318 : vector<1x1xf32> to vector<1x1xf32>
    %322 = vector.broadcast %321 : vector<1x1xf32> to vector<1x16xf32>
    %323 = vector.broadcast %cst_117 : f32 to vector<1x16xf32>
    %324 = arith.select %320, %322, %323 : vector<1x16xi1>, vector<1x16xf32>
    %325 = arith.addf %306, %324 : vector<1x16xf32>
    %cst_118 = arith.constant 1.500000e+01 : f32
    %326 = vector.broadcast %cst_118 : f32 to vector<16x16xf32>
    %327 = arith.cmpf oeq, %39, %326 : vector<16x16xf32>
    %cst_119 = arith.constant 3.100000e+01 : f32
    %328 = vector.broadcast %cst_119 : f32 to vector<16x16xf32>
    %329 = arith.cmpf oeq, %39, %328 : vector<16x16xf32>
    %330 = arith.ori %327, %329 : vector<16x16xi1>
    %cst_120 = arith.constant 0.000000e+00 : f32
    %331 = vector.broadcast %cst_120 : f32 to vector<16x16xf32>
    %332 = arith.select %330, %30, %331 : vector<16x16xi1>, vector<16x16xf32>
    %333 = vector.shape_cast %332 : vector<16x16xf32> to vector<1x16x16xf32>
    %cst_121 = arith.constant dense<0.000000e+00> : vector<1xf32>
    %334 = vector.multi_reduction <add>, %333, %cst_121 [1, 2] : vector<1x16x16xf32> to vector<1xf32>
    %335 = vector.shape_cast %334 : vector<1xf32> to vector<1x1x1xf32>
    %336 = vector.extract %335[0, 0, 0] : f32 from vector<1x1x1xf32>
    %337 = vector.broadcast %336 : f32 to vector<1x1xf32>
    %cst_122 = arith.constant 1.500000e+01 : f32
    %338 = vector.broadcast %cst_122 : f32 to vector<1x16xf32>
    %339 = arith.cmpf oeq, %36, %338 : vector<1x16xf32>
    %cst_123 = arith.constant 0.000000e+00 : f32
    %340 = vector.shape_cast %337 : vector<1x1xf32> to vector<1x1xf32>
    %341 = vector.broadcast %340 : vector<1x1xf32> to vector<1x16xf32>
    %342 = vector.broadcast %cst_123 : f32 to vector<1x16xf32>
    %343 = arith.select %339, %341, %342 : vector<1x16xi1>, vector<1x16xf32>
    %344 = arith.addf %325, %343 : vector<1x16xf32>
    %cst_124 = arith.constant 3.125000e-02 : f32
    %345 = vector.broadcast %cst_124 : f32 to vector<1x16xf32>
    %346 = arith.mulf %344, %345 : vector<1x16xf32>
    %347 = vector.shape_cast %346 : vector<1x16xf32> to vector<1x1x16xf32>
    %cst_125 = arith.constant dense<0xFF800000> : vector<1xf32>
    %348 = vector.multi_reduction <maximumf>, %347, %cst_125 [1, 2] : vector<1x1x16xf32> to vector<1xf32>
    %349 = vector.shape_cast %348 : vector<1xf32> to vector<1x1x1xf32>
    %350 = vector.extract %349[0, 0, 0] : f32 from vector<1x1x1xf32>
    %351 = vector.broadcast %350 : f32 to vector<1x1xf32>
    %352 = vector.broadcast %351 : vector<1x1xf32> to vector<1x16xf32>
    %353 = arith.cmpf oge, %346, %352 : vector<1x16xf32>
    %cst_126 = arith.constant 1.600000e+01 : f32
    %354 = vector.broadcast %cst_126 : f32 to vector<1x16xf32>
    %355 = arith.select %353, %36, %354 : vector<1x16xi1>, vector<1x16xf32>
    %356 = vector.shape_cast %355 : vector<1x16xf32> to vector<1x1x16xf32>
    %cst_127 = arith.constant dense<0x7F800000> : vector<1xf32>
    %357 = vector.multi_reduction <minimumf>, %356, %cst_127 [1, 2] : vector<1x1x16xf32> to vector<1xf32>
    %358 = vector.shape_cast %357 : vector<1xf32> to vector<1x1x1xf32>
    %359 = vector.extract %358[0, 0, 0] : f32 from vector<1x1x1xf32>
    %360 = vector.broadcast %359 : f32 to vector<1x1xf32>
    %361 = vector.broadcast %360 : vector<1x1xf32> to vector<1x16xf32>
    %362 = arith.cmpf oeq, %36, %361 : vector<1x16xf32>
    %cst_128 = arith.constant -1.000000e+30 : f32
    %363 = vector.broadcast %cst_128 : f32 to vector<1x16xf32>
    %364 = arith.select %362, %363, %346 : vector<1x16xi1>, vector<1x16xf32>
    %365 = vector.shape_cast %364 : vector<1x16xf32> to vector<1x1x16xf32>
    %cst_129 = arith.constant dense<0xFF800000> : vector<1xf32>
    %366 = vector.multi_reduction <maximumf>, %365, %cst_129 [1, 2] : vector<1x1x16xf32> to vector<1xf32>
    %367 = vector.shape_cast %366 : vector<1xf32> to vector<1x1x1xf32>
    %368 = vector.extract %367[0, 0, 0] : f32 from vector<1x1x1xf32>
    %369 = vector.broadcast %368 : f32 to vector<1x1xf32>
    %370 = vector.broadcast %369 : vector<1x1xf32> to vector<1x16xf32>
    %371 = arith.cmpf oge, %364, %370 : vector<1x16xf32>
    %cst_130 = arith.constant 1.600000e+01 : f32
    %372 = vector.broadcast %cst_130 : f32 to vector<1x16xf32>
    %373 = arith.select %371, %36, %372 : vector<1x16xi1>, vector<1x16xf32>
    %374 = vector.shape_cast %373 : vector<1x16xf32> to vector<1x1x16xf32>
    %cst_131 = arith.constant dense<0x7F800000> : vector<1xf32>
    %375 = vector.multi_reduction <minimumf>, %374, %cst_131 [1, 2] : vector<1x1x16xf32> to vector<1xf32>
    %376 = vector.shape_cast %375 : vector<1xf32> to vector<1x1x1xf32>
    %377 = vector.extract %376[0, 0, 0] : f32 from vector<1x1x1xf32>
    %378 = vector.broadcast %377 : f32 to vector<1x1xf32>
    %379 = arith.subf %351, %351 : vector<1x1xf32>
    %380 = math.exp %379 : vector<1x1xf32>
    %381 = arith.subf %369, %351 : vector<1x1xf32>
    %382 = math.exp %381 : vector<1x1xf32>
    %383 = arith.addf %380, %382 : vector<1x1xf32>
    %cst_132 = arith.constant 0.000000e+00 : f32
    %384 = vector.broadcast %cst_132 : f32 to vector<16x16xf32>
    %385 = vector.broadcast %360 : vector<1x1xf32> to vector<16x16xf32>
    %386 = arith.addf %32, %385 : vector<16x16xf32>
    %387 = arith.subf %386, %34 : vector<16x16xf32>
    %cst_133 = arith.constant 0.000000e+00 : f32
    %388 = vector.broadcast %cst_133 : f32 to vector<16x16xf32>
    %389 = arith.cmpf oeq, %387, %388 : vector<16x16xf32>
    %cst_134 = arith.constant 1.600000e+01 : f32
    %390 = vector.broadcast %cst_134 : f32 to vector<16x16xf32>
    %391 = arith.cmpf oeq, %387, %390 : vector<16x16xf32>
    %392 = arith.ori %389, %391 : vector<16x16xi1>
    %393 = arith.divf %380, %383 : vector<1x1xf32>
    %cst_135 = arith.constant 0.000000e+00 : f32
    %394 = vector.shape_cast %393 : vector<1x1xf32> to vector<1x1xf32>
    %395 = vector.broadcast %394 : vector<1x1xf32> to vector<16x16xf32>
    %396 = vector.broadcast %cst_135 : f32 to vector<16x16xf32>
    %397 = arith.select %392, %395, %396 : vector<16x16xi1>, vector<16x16xf32>
    %398 = arith.addf %384, %397 : vector<16x16xf32>
    %399 = vector.broadcast %378 : vector<1x1xf32> to vector<16x16xf32>
    %400 = arith.addf %32, %399 : vector<16x16xf32>
    %401 = arith.subf %400, %34 : vector<16x16xf32>
    %cst_136 = arith.constant 0.000000e+00 : f32
    %402 = vector.broadcast %cst_136 : f32 to vector<16x16xf32>
    %403 = arith.cmpf oeq, %401, %402 : vector<16x16xf32>
    %cst_137 = arith.constant 1.600000e+01 : f32
    %404 = vector.broadcast %cst_137 : f32 to vector<16x16xf32>
    %405 = arith.cmpf oeq, %401, %404 : vector<16x16xf32>
    %406 = arith.ori %403, %405 : vector<16x16xi1>
    %407 = arith.divf %382, %383 : vector<1x1xf32>
    %cst_138 = arith.constant 0.000000e+00 : f32
    %408 = vector.shape_cast %407 : vector<1x1xf32> to vector<1x1xf32>
    %409 = vector.broadcast %408 : vector<1x1xf32> to vector<16x16xf32>
    %410 = vector.broadcast %cst_138 : f32 to vector<16x16xf32>
    %411 = arith.select %406, %409, %410 : vector<16x16xi1>, vector<16x16xf32>
    %412 = arith.addf %398, %411 : vector<16x16xf32>
    %413 = arith.truncf %412 : vector<16x16xf32> to vector<16x16xbf16>
    %414 = arith.truncf %27 : vector<16x32xf32> to vector<16x32xbf16>
    %cst_139 = arith.constant dense<0.000000e+00> : vector<16x32xf32>
    %415 = tpu.matmul %413, %414, %cst_139 {dimension_numbers = #tpu.dot_dimension_numbers<[1], [0], [0], [1], [0, 0, 1, 1], [], []>} : vector<16x16xbf16>, vector<16x32xbf16>, vector<16x32xf32> -> vector<16x32xf32>
    %416 = arith.truncf %415 : vector<16x32xf32> to vector<16x32xbf16>
    %417 = arith.truncf %11 : vector<32x32xf32> to vector<32x32xbf16>
    %cst_140 = arith.constant dense<0.000000e+00> : vector<16x32xf32>
    %418 = tpu.matmul %416, %417, %cst_140 {dimension_numbers = #tpu.dot_dimension_numbers<[1], [0], [0], [1], [0, 0, 1, 1], [], []>} : vector<16x32xbf16>, vector<32x32xbf16>, vector<16x32xf32> -> vector<16x32xf32>
    %419 = vector.broadcast %12 : vector<1x32xf32> to vector<16x32xf32>
    %420 = arith.addf %418, %419 : vector<16x32xf32>
    %421 = arith.addf %1, %420 : vector<16x32xf32>
    %422 = arith.truncf %4 : vector<16x16xf32> to vector<16x16xbf16>
    %423 = arith.truncf %421 : vector<16x32xf32> to vector<16x32xbf16>
    %cst_141 = arith.constant dense<0.000000e+00> : vector<16x32xf32>
    %424 = tpu.matmul %422, %423, %cst_141 {dimension_numbers = #tpu.dot_dimension_numbers<[1], [0], [0], [1], [0, 0, 1, 1], [], []>} : vector<16x16xbf16>, vector<16x32xbf16>, vector<16x32xf32> -> vector<16x32xf32>
    %425 = arith.subf %421, %424 : vector<16x32xf32>
    %c0_142 = arith.constant 0 : index
    %c0_143 = arith.constant 0 : index
    %426 = vector.load %arg11[%c0_142, %c0_143] : memref<32x32xf32, #tpu.memory_space<vmem>>, vector<32x32xf32>
    %c0_144 = arith.constant 0 : index
    %c0_145 = arith.constant 0 : index
    %427 = vector.load %arg12[%c0_144, %c0_145] : memref<1x32xf32, #tpu.memory_space<vmem>>, vector<1x32xf32>
    %c0_146 = arith.constant 0 : index
    %c0_147 = arith.constant 0 : index
    %428 = vector.load %arg13[%c0_146, %c0_147] : memref<32x32xf32, #tpu.memory_space<vmem>>, vector<32x32xf32>
    %c0_148 = arith.constant 0 : index
    %c0_149 = arith.constant 0 : index
    %429 = vector.load %arg14[%c0_148, %c0_149] : memref<1x32xf32, #tpu.memory_space<vmem>>, vector<1x32xf32>
    %c0_150 = arith.constant 0 : index
    %c0_151 = arith.constant 0 : index
    %430 = vector.load %arg15[%c0_150, %c0_151] : memref<32x32xf32, #tpu.memory_space<vmem>>, vector<32x32xf32>
    %c0_152 = arith.constant 0 : index
    %c0_153 = arith.constant 0 : index
    %431 = vector.load %arg16[%c0_152, %c0_153] : memref<1x32xf32, #tpu.memory_space<vmem>>, vector<1x32xf32>
    %c0_154 = arith.constant 0 : index
    %c0_155 = arith.constant 0 : index
    %432 = vector.load %arg17[%c0_154, %c0_155] : memref<32x32xf32, #tpu.memory_space<vmem>>, vector<32x32xf32>
    %c0_156 = arith.constant 0 : index
    %c0_157 = arith.constant 0 : index
    %433 = vector.load %arg18[%c0_156, %c0_157] : memref<1x32xf32, #tpu.memory_space<vmem>>, vector<1x32xf32>
    %434 = arith.truncf %425 : vector<16x32xf32> to vector<16x32xbf16>
    %435 = arith.truncf %426 : vector<32x32xf32> to vector<32x32xbf16>
    %cst_158 = arith.constant dense<0.000000e+00> : vector<16x32xf32>
    %436 = tpu.matmul %434, %435, %cst_158 {dimension_numbers = #tpu.dot_dimension_numbers<[1], [0], [0], [1], [0, 0, 1, 1], [], []>} : vector<16x32xbf16>, vector<32x32xbf16>, vector<16x32xf32> -> vector<16x32xf32>
    %437 = vector.broadcast %427 : vector<1x32xf32> to vector<16x32xf32>
    %438 = arith.addf %436, %437 : vector<16x32xf32>
    %439 = arith.truncf %3 : vector<16x32xf32> to vector<16x32xbf16>
    %440 = arith.truncf %428 : vector<32x32xf32> to vector<32x32xbf16>
    %cst_159 = arith.constant dense<0.000000e+00> : vector<16x32xf32>
    %441 = tpu.matmul %439, %440, %cst_159 {dimension_numbers = #tpu.dot_dimension_numbers<[1], [0], [0], [1], [0, 0, 1, 1], [], []>} : vector<16x32xbf16>, vector<32x32xbf16>, vector<16x32xf32> -> vector<16x32xf32>
    %442 = vector.broadcast %429 : vector<1x32xf32> to vector<16x32xf32>
    %443 = arith.addf %441, %442 : vector<16x32xf32>
    %444 = arith.truncf %3 : vector<16x32xf32> to vector<16x32xbf16>
    %445 = arith.truncf %430 : vector<32x32xf32> to vector<32x32xbf16>
    %cst_160 = arith.constant dense<0.000000e+00> : vector<16x32xf32>
    %446 = tpu.matmul %444, %445, %cst_160 {dimension_numbers = #tpu.dot_dimension_numbers<[1], [0], [0], [1], [0, 0, 1, 1], [], []>} : vector<16x32xbf16>, vector<32x32xbf16>, vector<16x32xf32> -> vector<16x32xf32>
    %447 = vector.broadcast %431 : vector<1x32xf32> to vector<16x32xf32>
    %448 = arith.addf %446, %447 : vector<16x32xf32>
    %449 = arith.truncf %438 : vector<16x32xf32> to vector<16x32xbf16>
    %450 = arith.truncf %443 : vector<16x32xf32> to vector<16x32xbf16>
    %cst_161 = arith.constant dense<0.000000e+00> : vector<16x16xf32>
    %451 = tpu.matmul %449, %450, %cst_161 {dimension_numbers = #tpu.dot_dimension_numbers<[1], [1], [0], [0], [0, 0, 1, 0], [], []>} : vector<16x32xbf16>, vector<16x32xbf16>, vector<16x16xf32> -> vector<16x16xf32>
    %452 = tpu.iota {dimensions = array<i32: 0>} : vector<16x16xi32>
    %453 = arith.sitofp %452 : vector<16x16xi32> to vector<16x16xf32>
    %454 = tpu.iota {dimensions = array<i32: 1>} : vector<16x16xi32>
    %455 = arith.sitofp %454 : vector<16x16xi32> to vector<16x16xf32>
    %456 = tpu.iota {dimensions = array<i32: 1>} : vector<1x16xi32>
    %457 = arith.sitofp %456 : vector<1x16xi32> to vector<1x16xf32>
    %458 = arith.subf %453, %455 : vector<16x16xf32>
    %cst_162 = arith.constant 1.600000e+01 : f32
    %459 = vector.broadcast %cst_162 : f32 to vector<16x16xf32>
    %460 = arith.addf %458, %459 : vector<16x16xf32>
    %cst_163 = arith.constant 0.000000e+00 : f32
    %461 = vector.broadcast %cst_163 : f32 to vector<1x16xf32>
    %cst_164 = arith.constant 0.000000e+00 : f32
    %462 = vector.broadcast %cst_164 : f32 to vector<16x16xf32>
    %463 = arith.cmpf oeq, %460, %462 : vector<16x16xf32>
    %cst_165 = arith.constant 1.600000e+01 : f32
    %464 = vector.broadcast %cst_165 : f32 to vector<16x16xf32>
    %465 = arith.cmpf oeq, %460, %464 : vector<16x16xf32>
    %466 = arith.ori %463, %465 : vector<16x16xi1>
    %cst_166 = arith.constant 0.000000e+00 : f32
    %467 = vector.broadcast %cst_166 : f32 to vector<16x16xf32>
    %468 = arith.select %466, %451, %467 : vector<16x16xi1>, vector<16x16xf32>
    %469 = vector.shape_cast %468 : vector<16x16xf32> to vector<1x16x16xf32>
    %cst_167 = arith.constant dense<0.000000e+00> : vector<1xf32>
    %470 = vector.multi_reduction <add>, %469, %cst_167 [1, 2] : vector<1x16x16xf32> to vector<1xf32>
    %471 = vector.shape_cast %470 : vector<1xf32> to vector<1x1x1xf32>
    %472 = vector.extract %471[0, 0, 0] : f32 from vector<1x1x1xf32>
    %473 = vector.broadcast %472 : f32 to vector<1x1xf32>
    %cst_168 = arith.constant 0.000000e+00 : f32
    %474 = vector.broadcast %cst_168 : f32 to vector<1x16xf32>
    %475 = arith.cmpf oeq, %457, %474 : vector<1x16xf32>
    %cst_169 = arith.constant 0.000000e+00 : f32
    %476 = vector.shape_cast %473 : vector<1x1xf32> to vector<1x1xf32>
    %477 = vector.broadcast %476 : vector<1x1xf32> to vector<1x16xf32>
    %478 = vector.broadcast %cst_169 : f32 to vector<1x16xf32>
    %479 = arith.select %475, %477, %478 : vector<1x16xi1>, vector<1x16xf32>
    %480 = arith.addf %461, %479 : vector<1x16xf32>
    %cst_170 = arith.constant 1.000000e+00 : f32
    %481 = vector.broadcast %cst_170 : f32 to vector<16x16xf32>
    %482 = arith.cmpf oeq, %460, %481 : vector<16x16xf32>
    %cst_171 = arith.constant 1.700000e+01 : f32
    %483 = vector.broadcast %cst_171 : f32 to vector<16x16xf32>
    %484 = arith.cmpf oeq, %460, %483 : vector<16x16xf32>
    %485 = arith.ori %482, %484 : vector<16x16xi1>
    %cst_172 = arith.constant 0.000000e+00 : f32
    %486 = vector.broadcast %cst_172 : f32 to vector<16x16xf32>
    %487 = arith.select %485, %451, %486 : vector<16x16xi1>, vector<16x16xf32>
    %488 = vector.shape_cast %487 : vector<16x16xf32> to vector<1x16x16xf32>
    %cst_173 = arith.constant dense<0.000000e+00> : vector<1xf32>
    %489 = vector.multi_reduction <add>, %488, %cst_173 [1, 2] : vector<1x16x16xf32> to vector<1xf32>
    %490 = vector.shape_cast %489 : vector<1xf32> to vector<1x1x1xf32>
    %491 = vector.extract %490[0, 0, 0] : f32 from vector<1x1x1xf32>
    %492 = vector.broadcast %491 : f32 to vector<1x1xf32>
    %cst_174 = arith.constant 1.000000e+00 : f32
    %493 = vector.broadcast %cst_174 : f32 to vector<1x16xf32>
    %494 = arith.cmpf oeq, %457, %493 : vector<1x16xf32>
    %cst_175 = arith.constant 0.000000e+00 : f32
    %495 = vector.shape_cast %492 : vector<1x1xf32> to vector<1x1xf32>
    %496 = vector.broadcast %495 : vector<1x1xf32> to vector<1x16xf32>
    %497 = vector.broadcast %cst_175 : f32 to vector<1x16xf32>
    %498 = arith.select %494, %496, %497 : vector<1x16xi1>, vector<1x16xf32>
    %499 = arith.addf %480, %498 : vector<1x16xf32>
    %cst_176 = arith.constant 2.000000e+00 : f32
    %500 = vector.broadcast %cst_176 : f32 to vector<16x16xf32>
    %501 = arith.cmpf oeq, %460, %500 : vector<16x16xf32>
    %cst_177 = arith.constant 1.800000e+01 : f32
    %502 = vector.broadcast %cst_177 : f32 to vector<16x16xf32>
    %503 = arith.cmpf oeq, %460, %502 : vector<16x16xf32>
    %504 = arith.ori %501, %503 : vector<16x16xi1>
    %cst_178 = arith.constant 0.000000e+00 : f32
    %505 = vector.broadcast %cst_178 : f32 to vector<16x16xf32>
    %506 = arith.select %504, %451, %505 : vector<16x16xi1>, vector<16x16xf32>
    %507 = vector.shape_cast %506 : vector<16x16xf32> to vector<1x16x16xf32>
    %cst_179 = arith.constant dense<0.000000e+00> : vector<1xf32>
    %508 = vector.multi_reduction <add>, %507, %cst_179 [1, 2] : vector<1x16x16xf32> to vector<1xf32>
    %509 = vector.shape_cast %508 : vector<1xf32> to vector<1x1x1xf32>
    %510 = vector.extract %509[0, 0, 0] : f32 from vector<1x1x1xf32>
    %511 = vector.broadcast %510 : f32 to vector<1x1xf32>
    %cst_180 = arith.constant 2.000000e+00 : f32
    %512 = vector.broadcast %cst_180 : f32 to vector<1x16xf32>
    %513 = arith.cmpf oeq, %457, %512 : vector<1x16xf32>
    %cst_181 = arith.constant 0.000000e+00 : f32
    %514 = vector.shape_cast %511 : vector<1x1xf32> to vector<1x1xf32>
    %515 = vector.broadcast %514 : vector<1x1xf32> to vector<1x16xf32>
    %516 = vector.broadcast %cst_181 : f32 to vector<1x16xf32>
    %517 = arith.select %513, %515, %516 : vector<1x16xi1>, vector<1x16xf32>
    %518 = arith.addf %499, %517 : vector<1x16xf32>
    %cst_182 = arith.constant 3.000000e+00 : f32
    %519 = vector.broadcast %cst_182 : f32 to vector<16x16xf32>
    %520 = arith.cmpf oeq, %460, %519 : vector<16x16xf32>
    %cst_183 = arith.constant 1.900000e+01 : f32
    %521 = vector.broadcast %cst_183 : f32 to vector<16x16xf32>
    %522 = arith.cmpf oeq, %460, %521 : vector<16x16xf32>
    %523 = arith.ori %520, %522 : vector<16x16xi1>
    %cst_184 = arith.constant 0.000000e+00 : f32
    %524 = vector.broadcast %cst_184 : f32 to vector<16x16xf32>
    %525 = arith.select %523, %451, %524 : vector<16x16xi1>, vector<16x16xf32>
    %526 = vector.shape_cast %525 : vector<16x16xf32> to vector<1x16x16xf32>
    %cst_185 = arith.constant dense<0.000000e+00> : vector<1xf32>
    %527 = vector.multi_reduction <add>, %526, %cst_185 [1, 2] : vector<1x16x16xf32> to vector<1xf32>
    %528 = vector.shape_cast %527 : vector<1xf32> to vector<1x1x1xf32>
    %529 = vector.extract %528[0, 0, 0] : f32 from vector<1x1x1xf32>
    %530 = vector.broadcast %529 : f32 to vector<1x1xf32>
    %cst_186 = arith.constant 3.000000e+00 : f32
    %531 = vector.broadcast %cst_186 : f32 to vector<1x16xf32>
    %532 = arith.cmpf oeq, %457, %531 : vector<1x16xf32>
    %cst_187 = arith.constant 0.000000e+00 : f32
    %533 = vector.shape_cast %530 : vector<1x1xf32> to vector<1x1xf32>
    %534 = vector.broadcast %533 : vector<1x1xf32> to vector<1x16xf32>
    %535 = vector.broadcast %cst_187 : f32 to vector<1x16xf32>
    %536 = arith.select %532, %534, %535 : vector<1x16xi1>, vector<1x16xf32>
    %537 = arith.addf %518, %536 : vector<1x16xf32>
    %cst_188 = arith.constant 4.000000e+00 : f32
    %538 = vector.broadcast %cst_188 : f32 to vector<16x16xf32>
    %539 = arith.cmpf oeq, %460, %538 : vector<16x16xf32>
    %cst_189 = arith.constant 2.000000e+01 : f32
    %540 = vector.broadcast %cst_189 : f32 to vector<16x16xf32>
    %541 = arith.cmpf oeq, %460, %540 : vector<16x16xf32>
    %542 = arith.ori %539, %541 : vector<16x16xi1>
    %cst_190 = arith.constant 0.000000e+00 : f32
    %543 = vector.broadcast %cst_190 : f32 to vector<16x16xf32>
    %544 = arith.select %542, %451, %543 : vector<16x16xi1>, vector<16x16xf32>
    %545 = vector.shape_cast %544 : vector<16x16xf32> to vector<1x16x16xf32>
    %cst_191 = arith.constant dense<0.000000e+00> : vector<1xf32>
    %546 = vector.multi_reduction <add>, %545, %cst_191 [1, 2] : vector<1x16x16xf32> to vector<1xf32>
    %547 = vector.shape_cast %546 : vector<1xf32> to vector<1x1x1xf32>
    %548 = vector.extract %547[0, 0, 0] : f32 from vector<1x1x1xf32>
    %549 = vector.broadcast %548 : f32 to vector<1x1xf32>
    %cst_192 = arith.constant 4.000000e+00 : f32
    %550 = vector.broadcast %cst_192 : f32 to vector<1x16xf32>
    %551 = arith.cmpf oeq, %457, %550 : vector<1x16xf32>
    %cst_193 = arith.constant 0.000000e+00 : f32
    %552 = vector.shape_cast %549 : vector<1x1xf32> to vector<1x1xf32>
    %553 = vector.broadcast %552 : vector<1x1xf32> to vector<1x16xf32>
    %554 = vector.broadcast %cst_193 : f32 to vector<1x16xf32>
    %555 = arith.select %551, %553, %554 : vector<1x16xi1>, vector<1x16xf32>
    %556 = arith.addf %537, %555 : vector<1x16xf32>
    %cst_194 = arith.constant 5.000000e+00 : f32
    %557 = vector.broadcast %cst_194 : f32 to vector<16x16xf32>
    %558 = arith.cmpf oeq, %460, %557 : vector<16x16xf32>
    %cst_195 = arith.constant 2.100000e+01 : f32
    %559 = vector.broadcast %cst_195 : f32 to vector<16x16xf32>
    %560 = arith.cmpf oeq, %460, %559 : vector<16x16xf32>
    %561 = arith.ori %558, %560 : vector<16x16xi1>
    %cst_196 = arith.constant 0.000000e+00 : f32
    %562 = vector.broadcast %cst_196 : f32 to vector<16x16xf32>
    %563 = arith.select %561, %451, %562 : vector<16x16xi1>, vector<16x16xf32>
    %564 = vector.shape_cast %563 : vector<16x16xf32> to vector<1x16x16xf32>
    %cst_197 = arith.constant dense<0.000000e+00> : vector<1xf32>
    %565 = vector.multi_reduction <add>, %564, %cst_197 [1, 2] : vector<1x16x16xf32> to vector<1xf32>
    %566 = vector.shape_cast %565 : vector<1xf32> to vector<1x1x1xf32>
    %567 = vector.extract %566[0, 0, 0] : f32 from vector<1x1x1xf32>
    %568 = vector.broadcast %567 : f32 to vector<1x1xf32>
    %cst_198 = arith.constant 5.000000e+00 : f32
    %569 = vector.broadcast %cst_198 : f32 to vector<1x16xf32>
    %570 = arith.cmpf oeq, %457, %569 : vector<1x16xf32>
    %cst_199 = arith.constant 0.000000e+00 : f32
    %571 = vector.shape_cast %568 : vector<1x1xf32> to vector<1x1xf32>
    %572 = vector.broadcast %571 : vector<1x1xf32> to vector<1x16xf32>
    %573 = vector.broadcast %cst_199 : f32 to vector<1x16xf32>
    %574 = arith.select %570, %572, %573 : vector<1x16xi1>, vector<1x16xf32>
    %575 = arith.addf %556, %574 : vector<1x16xf32>
    %cst_200 = arith.constant 6.000000e+00 : f32
    %576 = vector.broadcast %cst_200 : f32 to vector<16x16xf32>
    %577 = arith.cmpf oeq, %460, %576 : vector<16x16xf32>
    %cst_201 = arith.constant 2.200000e+01 : f32
    %578 = vector.broadcast %cst_201 : f32 to vector<16x16xf32>
    %579 = arith.cmpf oeq, %460, %578 : vector<16x16xf32>
    %580 = arith.ori %577, %579 : vector<16x16xi1>
    %cst_202 = arith.constant 0.000000e+00 : f32
    %581 = vector.broadcast %cst_202 : f32 to vector<16x16xf32>
    %582 = arith.select %580, %451, %581 : vector<16x16xi1>, vector<16x16xf32>
    %583 = vector.shape_cast %582 : vector<16x16xf32> to vector<1x16x16xf32>
    %cst_203 = arith.constant dense<0.000000e+00> : vector<1xf32>
    %584 = vector.multi_reduction <add>, %583, %cst_203 [1, 2] : vector<1x16x16xf32> to vector<1xf32>
    %585 = vector.shape_cast %584 : vector<1xf32> to vector<1x1x1xf32>
    %586 = vector.extract %585[0, 0, 0] : f32 from vector<1x1x1xf32>
    %587 = vector.broadcast %586 : f32 to vector<1x1xf32>
    %cst_204 = arith.constant 6.000000e+00 : f32
    %588 = vector.broadcast %cst_204 : f32 to vector<1x16xf32>
    %589 = arith.cmpf oeq, %457, %588 : vector<1x16xf32>
    %cst_205 = arith.constant 0.000000e+00 : f32
    %590 = vector.shape_cast %587 : vector<1x1xf32> to vector<1x1xf32>
    %591 = vector.broadcast %590 : vector<1x1xf32> to vector<1x16xf32>
    %592 = vector.broadcast %cst_205 : f32 to vector<1x16xf32>
    %593 = arith.select %589, %591, %592 : vector<1x16xi1>, vector<1x16xf32>
    %594 = arith.addf %575, %593 : vector<1x16xf32>
    %cst_206 = arith.constant 7.000000e+00 : f32
    %595 = vector.broadcast %cst_206 : f32 to vector<16x16xf32>
    %596 = arith.cmpf oeq, %460, %595 : vector<16x16xf32>
    %cst_207 = arith.constant 2.300000e+01 : f32
    %597 = vector.broadcast %cst_207 : f32 to vector<16x16xf32>
    %598 = arith.cmpf oeq, %460, %597 : vector<16x16xf32>
    %599 = arith.ori %596, %598 : vector<16x16xi1>
    %cst_208 = arith.constant 0.000000e+00 : f32
    %600 = vector.broadcast %cst_208 : f32 to vector<16x16xf32>
    %601 = arith.select %599, %451, %600 : vector<16x16xi1>, vector<16x16xf32>
    %602 = vector.shape_cast %601 : vector<16x16xf32> to vector<1x16x16xf32>
    %cst_209 = arith.constant dense<0.000000e+00> : vector<1xf32>
    %603 = vector.multi_reduction <add>, %602, %cst_209 [1, 2] : vector<1x16x16xf32> to vector<1xf32>
    %604 = vector.shape_cast %603 : vector<1xf32> to vector<1x1x1xf32>
    %605 = vector.extract %604[0, 0, 0] : f32 from vector<1x1x1xf32>
    %606 = vector.broadcast %605 : f32 to vector<1x1xf32>
    %cst_210 = arith.constant 7.000000e+00 : f32
    %607 = vector.broadcast %cst_210 : f32 to vector<1x16xf32>
    %608 = arith.cmpf oeq, %457, %607 : vector<1x16xf32>
    %cst_211 = arith.constant 0.000000e+00 : f32
    %609 = vector.shape_cast %606 : vector<1x1xf32> to vector<1x1xf32>
    %610 = vector.broadcast %609 : vector<1x1xf32> to vector<1x16xf32>
    %611 = vector.broadcast %cst_211 : f32 to vector<1x16xf32>
    %612 = arith.select %608, %610, %611 : vector<1x16xi1>, vector<1x16xf32>
    %613 = arith.addf %594, %612 : vector<1x16xf32>
    %cst_212 = arith.constant 8.000000e+00 : f32
    %614 = vector.broadcast %cst_212 : f32 to vector<16x16xf32>
    %615 = arith.cmpf oeq, %460, %614 : vector<16x16xf32>
    %cst_213 = arith.constant 2.400000e+01 : f32
    %616 = vector.broadcast %cst_213 : f32 to vector<16x16xf32>
    %617 = arith.cmpf oeq, %460, %616 : vector<16x16xf32>
    %618 = arith.ori %615, %617 : vector<16x16xi1>
    %cst_214 = arith.constant 0.000000e+00 : f32
    %619 = vector.broadcast %cst_214 : f32 to vector<16x16xf32>
    %620 = arith.select %618, %451, %619 : vector<16x16xi1>, vector<16x16xf32>
    %621 = vector.shape_cast %620 : vector<16x16xf32> to vector<1x16x16xf32>
    %cst_215 = arith.constant dense<0.000000e+00> : vector<1xf32>
    %622 = vector.multi_reduction <add>, %621, %cst_215 [1, 2] : vector<1x16x16xf32> to vector<1xf32>
    %623 = vector.shape_cast %622 : vector<1xf32> to vector<1x1x1xf32>
    %624 = vector.extract %623[0, 0, 0] : f32 from vector<1x1x1xf32>
    %625 = vector.broadcast %624 : f32 to vector<1x1xf32>
    %cst_216 = arith.constant 8.000000e+00 : f32
    %626 = vector.broadcast %cst_216 : f32 to vector<1x16xf32>
    %627 = arith.cmpf oeq, %457, %626 : vector<1x16xf32>
    %cst_217 = arith.constant 0.000000e+00 : f32
    %628 = vector.shape_cast %625 : vector<1x1xf32> to vector<1x1xf32>
    %629 = vector.broadcast %628 : vector<1x1xf32> to vector<1x16xf32>
    %630 = vector.broadcast %cst_217 : f32 to vector<1x16xf32>
    %631 = arith.select %627, %629, %630 : vector<1x16xi1>, vector<1x16xf32>
    %632 = arith.addf %613, %631 : vector<1x16xf32>
    %cst_218 = arith.constant 9.000000e+00 : f32
    %633 = vector.broadcast %cst_218 : f32 to vector<16x16xf32>
    %634 = arith.cmpf oeq, %460, %633 : vector<16x16xf32>
    %cst_219 = arith.constant 2.500000e+01 : f32
    %635 = vector.broadcast %cst_219 : f32 to vector<16x16xf32>
    %636 = arith.cmpf oeq, %460, %635 : vector<16x16xf32>
    %637 = arith.ori %634, %636 : vector<16x16xi1>
    %cst_220 = arith.constant 0.000000e+00 : f32
    %638 = vector.broadcast %cst_220 : f32 to vector<16x16xf32>
    %639 = arith.select %637, %451, %638 : vector<16x16xi1>, vector<16x16xf32>
    %640 = vector.shape_cast %639 : vector<16x16xf32> to vector<1x16x16xf32>
    %cst_221 = arith.constant dense<0.000000e+00> : vector<1xf32>
    %641 = vector.multi_reduction <add>, %640, %cst_221 [1, 2] : vector<1x16x16xf32> to vector<1xf32>
    %642 = vector.shape_cast %641 : vector<1xf32> to vector<1x1x1xf32>
    %643 = vector.extract %642[0, 0, 0] : f32 from vector<1x1x1xf32>
    %644 = vector.broadcast %643 : f32 to vector<1x1xf32>
    %cst_222 = arith.constant 9.000000e+00 : f32
    %645 = vector.broadcast %cst_222 : f32 to vector<1x16xf32>
    %646 = arith.cmpf oeq, %457, %645 : vector<1x16xf32>
    %cst_223 = arith.constant 0.000000e+00 : f32
    %647 = vector.shape_cast %644 : vector<1x1xf32> to vector<1x1xf32>
    %648 = vector.broadcast %647 : vector<1x1xf32> to vector<1x16xf32>
    %649 = vector.broadcast %cst_223 : f32 to vector<1x16xf32>
    %650 = arith.select %646, %648, %649 : vector<1x16xi1>, vector<1x16xf32>
    %651 = arith.addf %632, %650 : vector<1x16xf32>
    %cst_224 = arith.constant 1.000000e+01 : f32
    %652 = vector.broadcast %cst_224 : f32 to vector<16x16xf32>
    %653 = arith.cmpf oeq, %460, %652 : vector<16x16xf32>
    %cst_225 = arith.constant 2.600000e+01 : f32
    %654 = vector.broadcast %cst_225 : f32 to vector<16x16xf32>
    %655 = arith.cmpf oeq, %460, %654 : vector<16x16xf32>
    %656 = arith.ori %653, %655 : vector<16x16xi1>
    %cst_226 = arith.constant 0.000000e+00 : f32
    %657 = vector.broadcast %cst_226 : f32 to vector<16x16xf32>
    %658 = arith.select %656, %451, %657 : vector<16x16xi1>, vector<16x16xf32>
    %659 = vector.shape_cast %658 : vector<16x16xf32> to vector<1x16x16xf32>
    %cst_227 = arith.constant dense<0.000000e+00> : vector<1xf32>
    %660 = vector.multi_reduction <add>, %659, %cst_227 [1, 2] : vector<1x16x16xf32> to vector<1xf32>
    %661 = vector.shape_cast %660 : vector<1xf32> to vector<1x1x1xf32>
    %662 = vector.extract %661[0, 0, 0] : f32 from vector<1x1x1xf32>
    %663 = vector.broadcast %662 : f32 to vector<1x1xf32>
    %cst_228 = arith.constant 1.000000e+01 : f32
    %664 = vector.broadcast %cst_228 : f32 to vector<1x16xf32>
    %665 = arith.cmpf oeq, %457, %664 : vector<1x16xf32>
    %cst_229 = arith.constant 0.000000e+00 : f32
    %666 = vector.shape_cast %663 : vector<1x1xf32> to vector<1x1xf32>
    %667 = vector.broadcast %666 : vector<1x1xf32> to vector<1x16xf32>
    %668 = vector.broadcast %cst_229 : f32 to vector<1x16xf32>
    %669 = arith.select %665, %667, %668 : vector<1x16xi1>, vector<1x16xf32>
    %670 = arith.addf %651, %669 : vector<1x16xf32>
    %cst_230 = arith.constant 1.100000e+01 : f32
    %671 = vector.broadcast %cst_230 : f32 to vector<16x16xf32>
    %672 = arith.cmpf oeq, %460, %671 : vector<16x16xf32>
    %cst_231 = arith.constant 2.700000e+01 : f32
    %673 = vector.broadcast %cst_231 : f32 to vector<16x16xf32>
    %674 = arith.cmpf oeq, %460, %673 : vector<16x16xf32>
    %675 = arith.ori %672, %674 : vector<16x16xi1>
    %cst_232 = arith.constant 0.000000e+00 : f32
    %676 = vector.broadcast %cst_232 : f32 to vector<16x16xf32>
    %677 = arith.select %675, %451, %676 : vector<16x16xi1>, vector<16x16xf32>
    %678 = vector.shape_cast %677 : vector<16x16xf32> to vector<1x16x16xf32>
    %cst_233 = arith.constant dense<0.000000e+00> : vector<1xf32>
    %679 = vector.multi_reduction <add>, %678, %cst_233 [1, 2] : vector<1x16x16xf32> to vector<1xf32>
    %680 = vector.shape_cast %679 : vector<1xf32> to vector<1x1x1xf32>
    %681 = vector.extract %680[0, 0, 0] : f32 from vector<1x1x1xf32>
    %682 = vector.broadcast %681 : f32 to vector<1x1xf32>
    %cst_234 = arith.constant 1.100000e+01 : f32
    %683 = vector.broadcast %cst_234 : f32 to vector<1x16xf32>
    %684 = arith.cmpf oeq, %457, %683 : vector<1x16xf32>
    %cst_235 = arith.constant 0.000000e+00 : f32
    %685 = vector.shape_cast %682 : vector<1x1xf32> to vector<1x1xf32>
    %686 = vector.broadcast %685 : vector<1x1xf32> to vector<1x16xf32>
    %687 = vector.broadcast %cst_235 : f32 to vector<1x16xf32>
    %688 = arith.select %684, %686, %687 : vector<1x16xi1>, vector<1x16xf32>
    %689 = arith.addf %670, %688 : vector<1x16xf32>
    %cst_236 = arith.constant 1.200000e+01 : f32
    %690 = vector.broadcast %cst_236 : f32 to vector<16x16xf32>
    %691 = arith.cmpf oeq, %460, %690 : vector<16x16xf32>
    %cst_237 = arith.constant 2.800000e+01 : f32
    %692 = vector.broadcast %cst_237 : f32 to vector<16x16xf32>
    %693 = arith.cmpf oeq, %460, %692 : vector<16x16xf32>
    %694 = arith.ori %691, %693 : vector<16x16xi1>
    %cst_238 = arith.constant 0.000000e+00 : f32
    %695 = vector.broadcast %cst_238 : f32 to vector<16x16xf32>
    %696 = arith.select %694, %451, %695 : vector<16x16xi1>, vector<16x16xf32>
    %697 = vector.shape_cast %696 : vector<16x16xf32> to vector<1x16x16xf32>
    %cst_239 = arith.constant dense<0.000000e+00> : vector<1xf32>
    %698 = vector.multi_reduction <add>, %697, %cst_239 [1, 2] : vector<1x16x16xf32> to vector<1xf32>
    %699 = vector.shape_cast %698 : vector<1xf32> to vector<1x1x1xf32>
    %700 = vector.extract %699[0, 0, 0] : f32 from vector<1x1x1xf32>
    %701 = vector.broadcast %700 : f32 to vector<1x1xf32>
    %cst_240 = arith.constant 1.200000e+01 : f32
    %702 = vector.broadcast %cst_240 : f32 to vector<1x16xf32>
    %703 = arith.cmpf oeq, %457, %702 : vector<1x16xf32>
    %cst_241 = arith.constant 0.000000e+00 : f32
    %704 = vector.shape_cast %701 : vector<1x1xf32> to vector<1x1xf32>
    %705 = vector.broadcast %704 : vector<1x1xf32> to vector<1x16xf32>
    %706 = vector.broadcast %cst_241 : f32 to vector<1x16xf32>
    %707 = arith.select %703, %705, %706 : vector<1x16xi1>, vector<1x16xf32>
    %708 = arith.addf %689, %707 : vector<1x16xf32>
    %cst_242 = arith.constant 1.300000e+01 : f32
    %709 = vector.broadcast %cst_242 : f32 to vector<16x16xf32>
    %710 = arith.cmpf oeq, %460, %709 : vector<16x16xf32>
    %cst_243 = arith.constant 2.900000e+01 : f32
    %711 = vector.broadcast %cst_243 : f32 to vector<16x16xf32>
    %712 = arith.cmpf oeq, %460, %711 : vector<16x16xf32>
    %713 = arith.ori %710, %712 : vector<16x16xi1>
    %cst_244 = arith.constant 0.000000e+00 : f32
    %714 = vector.broadcast %cst_244 : f32 to vector<16x16xf32>
    %715 = arith.select %713, %451, %714 : vector<16x16xi1>, vector<16x16xf32>
    %716 = vector.shape_cast %715 : vector<16x16xf32> to vector<1x16x16xf32>
    %cst_245 = arith.constant dense<0.000000e+00> : vector<1xf32>
    %717 = vector.multi_reduction <add>, %716, %cst_245 [1, 2] : vector<1x16x16xf32> to vector<1xf32>
    %718 = vector.shape_cast %717 : vector<1xf32> to vector<1x1x1xf32>
    %719 = vector.extract %718[0, 0, 0] : f32 from vector<1x1x1xf32>
    %720 = vector.broadcast %719 : f32 to vector<1x1xf32>
    %cst_246 = arith.constant 1.300000e+01 : f32
    %721 = vector.broadcast %cst_246 : f32 to vector<1x16xf32>
    %722 = arith.cmpf oeq, %457, %721 : vector<1x16xf32>
    %cst_247 = arith.constant 0.000000e+00 : f32
    %723 = vector.shape_cast %720 : vector<1x1xf32> to vector<1x1xf32>
    %724 = vector.broadcast %723 : vector<1x1xf32> to vector<1x16xf32>
    %725 = vector.broadcast %cst_247 : f32 to vector<1x16xf32>
    %726 = arith.select %722, %724, %725 : vector<1x16xi1>, vector<1x16xf32>
    %727 = arith.addf %708, %726 : vector<1x16xf32>
    %cst_248 = arith.constant 1.400000e+01 : f32
    %728 = vector.broadcast %cst_248 : f32 to vector<16x16xf32>
    %729 = arith.cmpf oeq, %460, %728 : vector<16x16xf32>
    %cst_249 = arith.constant 3.000000e+01 : f32
    %730 = vector.broadcast %cst_249 : f32 to vector<16x16xf32>
    %731 = arith.cmpf oeq, %460, %730 : vector<16x16xf32>
    %732 = arith.ori %729, %731 : vector<16x16xi1>
    %cst_250 = arith.constant 0.000000e+00 : f32
    %733 = vector.broadcast %cst_250 : f32 to vector<16x16xf32>
    %734 = arith.select %732, %451, %733 : vector<16x16xi1>, vector<16x16xf32>
    %735 = vector.shape_cast %734 : vector<16x16xf32> to vector<1x16x16xf32>
    %cst_251 = arith.constant dense<0.000000e+00> : vector<1xf32>
    %736 = vector.multi_reduction <add>, %735, %cst_251 [1, 2] : vector<1x16x16xf32> to vector<1xf32>
    %737 = vector.shape_cast %736 : vector<1xf32> to vector<1x1x1xf32>
    %738 = vector.extract %737[0, 0, 0] : f32 from vector<1x1x1xf32>
    %739 = vector.broadcast %738 : f32 to vector<1x1xf32>
    %cst_252 = arith.constant 1.400000e+01 : f32
    %740 = vector.broadcast %cst_252 : f32 to vector<1x16xf32>
    %741 = arith.cmpf oeq, %457, %740 : vector<1x16xf32>
    %cst_253 = arith.constant 0.000000e+00 : f32
    %742 = vector.shape_cast %739 : vector<1x1xf32> to vector<1x1xf32>
    %743 = vector.broadcast %742 : vector<1x1xf32> to vector<1x16xf32>
    %744 = vector.broadcast %cst_253 : f32 to vector<1x16xf32>
    %745 = arith.select %741, %743, %744 : vector<1x16xi1>, vector<1x16xf32>
    %746 = arith.addf %727, %745 : vector<1x16xf32>
    %cst_254 = arith.constant 1.500000e+01 : f32
    %747 = vector.broadcast %cst_254 : f32 to vector<16x16xf32>
    %748 = arith.cmpf oeq, %460, %747 : vector<16x16xf32>
    %cst_255 = arith.constant 3.100000e+01 : f32
    %749 = vector.broadcast %cst_255 : f32 to vector<16x16xf32>
    %750 = arith.cmpf oeq, %460, %749 : vector<16x16xf32>
    %751 = arith.ori %748, %750 : vector<16x16xi1>
    %cst_256 = arith.constant 0.000000e+00 : f32
    %752 = vector.broadcast %cst_256 : f32 to vector<16x16xf32>
    %753 = arith.select %751, %451, %752 : vector<16x16xi1>, vector<16x16xf32>
    %754 = vector.shape_cast %753 : vector<16x16xf32> to vector<1x16x16xf32>
    %cst_257 = arith.constant dense<0.000000e+00> : vector<1xf32>
    %755 = vector.multi_reduction <add>, %754, %cst_257 [1, 2] : vector<1x16x16xf32> to vector<1xf32>
    %756 = vector.shape_cast %755 : vector<1xf32> to vector<1x1x1xf32>
    %757 = vector.extract %756[0, 0, 0] : f32 from vector<1x1x1xf32>
    %758 = vector.broadcast %757 : f32 to vector<1x1xf32>
    %cst_258 = arith.constant 1.500000e+01 : f32
    %759 = vector.broadcast %cst_258 : f32 to vector<1x16xf32>
    %760 = arith.cmpf oeq, %457, %759 : vector<1x16xf32>
    %cst_259 = arith.constant 0.000000e+00 : f32
    %761 = vector.shape_cast %758 : vector<1x1xf32> to vector<1x1xf32>
    %762 = vector.broadcast %761 : vector<1x1xf32> to vector<1x16xf32>
    %763 = vector.broadcast %cst_259 : f32 to vector<1x16xf32>
    %764 = arith.select %760, %762, %763 : vector<1x16xi1>, vector<1x16xf32>
    %765 = arith.addf %746, %764 : vector<1x16xf32>
    %cst_260 = arith.constant 3.125000e-02 : f32
    %766 = vector.broadcast %cst_260 : f32 to vector<1x16xf32>
    %767 = arith.mulf %765, %766 : vector<1x16xf32>
    %768 = vector.shape_cast %767 : vector<1x16xf32> to vector<1x1x16xf32>
    %cst_261 = arith.constant dense<0xFF800000> : vector<1xf32>
    %769 = vector.multi_reduction <maximumf>, %768, %cst_261 [1, 2] : vector<1x1x16xf32> to vector<1xf32>
    %770 = vector.shape_cast %769 : vector<1xf32> to vector<1x1x1xf32>
    %771 = vector.extract %770[0, 0, 0] : f32 from vector<1x1x1xf32>
    %772 = vector.broadcast %771 : f32 to vector<1x1xf32>
    %773 = vector.broadcast %772 : vector<1x1xf32> to vector<1x16xf32>
    %774 = arith.cmpf oge, %767, %773 : vector<1x16xf32>
    %cst_262 = arith.constant 1.600000e+01 : f32
    %775 = vector.broadcast %cst_262 : f32 to vector<1x16xf32>
    %776 = arith.select %774, %457, %775 : vector<1x16xi1>, vector<1x16xf32>
    %777 = vector.shape_cast %776 : vector<1x16xf32> to vector<1x1x16xf32>
    %cst_263 = arith.constant dense<0x7F800000> : vector<1xf32>
    %778 = vector.multi_reduction <minimumf>, %777, %cst_263 [1, 2] : vector<1x1x16xf32> to vector<1xf32>
    %779 = vector.shape_cast %778 : vector<1xf32> to vector<1x1x1xf32>
    %780 = vector.extract %779[0, 0, 0] : f32 from vector<1x1x1xf32>
    %781 = vector.broadcast %780 : f32 to vector<1x1xf32>
    %782 = vector.broadcast %781 : vector<1x1xf32> to vector<1x16xf32>
    %783 = arith.cmpf oeq, %457, %782 : vector<1x16xf32>
    %cst_264 = arith.constant -1.000000e+30 : f32
    %784 = vector.broadcast %cst_264 : f32 to vector<1x16xf32>
    %785 = arith.select %783, %784, %767 : vector<1x16xi1>, vector<1x16xf32>
    %786 = vector.shape_cast %785 : vector<1x16xf32> to vector<1x1x16xf32>
    %cst_265 = arith.constant dense<0xFF800000> : vector<1xf32>
    %787 = vector.multi_reduction <maximumf>, %786, %cst_265 [1, 2] : vector<1x1x16xf32> to vector<1xf32>
    %788 = vector.shape_cast %787 : vector<1xf32> to vector<1x1x1xf32>
    %789 = vector.extract %788[0, 0, 0] : f32 from vector<1x1x1xf32>
    %790 = vector.broadcast %789 : f32 to vector<1x1xf32>
    %791 = vector.broadcast %790 : vector<1x1xf32> to vector<1x16xf32>
    %792 = arith.cmpf oge, %785, %791 : vector<1x16xf32>
    %cst_266 = arith.constant 1.600000e+01 : f32
    %793 = vector.broadcast %cst_266 : f32 to vector<1x16xf32>
    %794 = arith.select %792, %457, %793 : vector<1x16xi1>, vector<1x16xf32>
    %795 = vector.shape_cast %794 : vector<1x16xf32> to vector<1x1x16xf32>
    %cst_267 = arith.constant dense<0x7F800000> : vector<1xf32>
    %796 = vector.multi_reduction <minimumf>, %795, %cst_267 [1, 2] : vector<1x1x16xf32> to vector<1xf32>
    %797 = vector.shape_cast %796 : vector<1xf32> to vector<1x1x1xf32>
    %798 = vector.extract %797[0, 0, 0] : f32 from vector<1x1x1xf32>
    %799 = vector.broadcast %798 : f32 to vector<1x1xf32>
    %800 = arith.subf %772, %772 : vector<1x1xf32>
    %801 = math.exp %800 : vector<1x1xf32>
    %802 = arith.subf %790, %772 : vector<1x1xf32>
    %803 = math.exp %802 : vector<1x1xf32>
    %804 = arith.addf %801, %803 : vector<1x1xf32>
    %cst_268 = arith.constant 0.000000e+00 : f32
    %805 = vector.broadcast %cst_268 : f32 to vector<16x16xf32>
    %806 = vector.broadcast %781 : vector<1x1xf32> to vector<16x16xf32>
    %807 = arith.addf %453, %806 : vector<16x16xf32>
    %808 = arith.subf %807, %455 : vector<16x16xf32>
    %cst_269 = arith.constant 0.000000e+00 : f32
    %809 = vector.broadcast %cst_269 : f32 to vector<16x16xf32>
    %810 = arith.cmpf oeq, %808, %809 : vector<16x16xf32>
    %cst_270 = arith.constant 1.600000e+01 : f32
    %811 = vector.broadcast %cst_270 : f32 to vector<16x16xf32>
    %812 = arith.cmpf oeq, %808, %811 : vector<16x16xf32>
    %813 = arith.ori %810, %812 : vector<16x16xi1>
    %814 = arith.divf %801, %804 : vector<1x1xf32>
    %cst_271 = arith.constant 0.000000e+00 : f32
    %815 = vector.shape_cast %814 : vector<1x1xf32> to vector<1x1xf32>
    %816 = vector.broadcast %815 : vector<1x1xf32> to vector<16x16xf32>
    %817 = vector.broadcast %cst_271 : f32 to vector<16x16xf32>
    %818 = arith.select %813, %816, %817 : vector<16x16xi1>, vector<16x16xf32>
    %819 = arith.addf %805, %818 : vector<16x16xf32>
    %820 = vector.broadcast %799 : vector<1x1xf32> to vector<16x16xf32>
    %821 = arith.addf %453, %820 : vector<16x16xf32>
    %822 = arith.subf %821, %455 : vector<16x16xf32>
    %cst_272 = arith.constant 0.000000e+00 : f32
    %823 = vector.broadcast %cst_272 : f32 to vector<16x16xf32>
    %824 = arith.cmpf oeq, %822, %823 : vector<16x16xf32>
    %cst_273 = arith.constant 1.600000e+01 : f32
    %825 = vector.broadcast %cst_273 : f32 to vector<16x16xf32>
    %826 = arith.cmpf oeq, %822, %825 : vector<16x16xf32>
    %827 = arith.ori %824, %826 : vector<16x16xi1>
    %828 = arith.divf %803, %804 : vector<1x1xf32>
    %cst_274 = arith.constant 0.000000e+00 : f32
    %829 = vector.shape_cast %828 : vector<1x1xf32> to vector<1x1xf32>
    %830 = vector.broadcast %829 : vector<1x1xf32> to vector<16x16xf32>
    %831 = vector.broadcast %cst_274 : f32 to vector<16x16xf32>
    %832 = arith.select %827, %830, %831 : vector<16x16xi1>, vector<16x16xf32>
    %833 = arith.addf %819, %832 : vector<16x16xf32>
    %834 = arith.truncf %833 : vector<16x16xf32> to vector<16x16xbf16>
    %835 = arith.truncf %448 : vector<16x32xf32> to vector<16x32xbf16>
    %cst_275 = arith.constant dense<0.000000e+00> : vector<16x32xf32>
    %836 = tpu.matmul %834, %835, %cst_275 {dimension_numbers = #tpu.dot_dimension_numbers<[1], [0], [0], [1], [0, 0, 1, 1], [], []>} : vector<16x16xbf16>, vector<16x32xbf16>, vector<16x32xf32> -> vector<16x32xf32>
    %837 = arith.truncf %836 : vector<16x32xf32> to vector<16x32xbf16>
    %838 = arith.truncf %432 : vector<32x32xf32> to vector<32x32xbf16>
    %cst_276 = arith.constant dense<0.000000e+00> : vector<16x32xf32>
    %839 = tpu.matmul %837, %838, %cst_276 {dimension_numbers = #tpu.dot_dimension_numbers<[1], [0], [0], [1], [0, 0, 1, 1], [], []>} : vector<16x32xbf16>, vector<32x32xbf16>, vector<16x32xf32> -> vector<16x32xf32>
    %840 = vector.broadcast %433 : vector<1x32xf32> to vector<16x32xf32>
    %841 = arith.addf %839, %840 : vector<16x32xf32>
    %842 = arith.addf %425, %841 : vector<16x32xf32>
    %843 = arith.truncf %4 : vector<16x16xf32> to vector<16x16xbf16>
    %844 = arith.truncf %842 : vector<16x32xf32> to vector<16x32xbf16>
    %cst_277 = arith.constant dense<0.000000e+00> : vector<16x32xf32>
    %845 = tpu.matmul %843, %844, %cst_277 {dimension_numbers = #tpu.dot_dimension_numbers<[1], [0], [0], [1], [0, 0, 1, 1], [], []>} : vector<16x16xbf16>, vector<16x32xbf16>, vector<16x32xf32> -> vector<16x32xf32>
    %846 = arith.subf %842, %845 : vector<16x32xf32>
    %c0_278 = arith.constant 0 : index
    %c0_279 = arith.constant 0 : index
    %847 = vector.load %arg20[%c0_278, %c0_279] : memref<32x32xf32, #tpu.memory_space<vmem>>, vector<32x32xf32>
    %848 = arith.truncf %846 : vector<16x32xf32> to vector<16x32xbf16>
    %849 = arith.truncf %847 : vector<32x32xf32> to vector<32x32xbf16>
    %cst_280 = arith.constant dense<0.000000e+00> : vector<16x32xf32>
    %850 = tpu.matmul %848, %849, %cst_280 {dimension_numbers = #tpu.dot_dimension_numbers<[1], [0], [0], [1], [0, 0, 1, 1], [], []>} : vector<16x32xbf16>, vector<32x32xbf16>, vector<16x32xf32> -> vector<16x32xf32>
    %cst_281 = arith.constant 5.000000e-01 : f32
    %851 = vector.broadcast %cst_281 : f32 to vector<16x32xf32>
    %852 = arith.mulf %851, %850 : vector<16x32xf32>
    %cst_282 = arith.constant 0.707106769 : f32
    %853 = vector.broadcast %cst_282 : f32 to vector<16x32xf32>
    %854 = arith.mulf %850, %853 : vector<16x32xf32>
    %cst_283 = arith.constant 0.000000e+00 : f32
    %855 = vector.broadcast %cst_283 : f32 to vector<16x32xf32>
    %856 = arith.cmpf olt, %854, %855 : vector<16x32xf32>
    %cst_284 = arith.constant -1.000000e+00 : f32
    %cst_285 = arith.constant 1.000000e+00 : f32
    %857 = vector.broadcast %cst_284 : f32 to vector<16x32xf32>
    %858 = vector.broadcast %cst_285 : f32 to vector<16x32xf32>
    %859 = arith.select %856, %857, %858 : vector<16x32xi1>, vector<16x32xf32>
    %860 = math.absf %854 : vector<16x32xf32>
    %cst_286 = arith.constant 0.327591091 : f32
    %861 = vector.broadcast %cst_286 : f32 to vector<16x32xf32>
    %862 = arith.mulf %861, %860 : vector<16x32xf32>
    %cst_287 = arith.constant 1.000000e+00 : f32
    %863 = vector.broadcast %cst_287 : f32 to vector<16x32xf32>
    %864 = arith.addf %863, %862 : vector<16x32xf32>
    %cst_288 = arith.constant 1.000000e+00 : f32
    %865 = vector.broadcast %cst_288 : f32 to vector<16x32xf32>
    %866 = arith.divf %865, %864 : vector<16x32xf32>
    %cst_289 = arith.constant 1.06140542 : f32
    %867 = vector.broadcast %cst_289 : f32 to vector<16x32xf32>
    %868 = arith.mulf %867, %866 : vector<16x32xf32>
    %cst_290 = arith.constant -1.45315206 : f32
    %869 = vector.broadcast %cst_290 : f32 to vector<16x32xf32>
    %870 = arith.addf %868, %869 : vector<16x32xf32>
    %871 = arith.mulf %870, %866 : vector<16x32xf32>
    %cst_291 = arith.constant 1.42141378 : f32
    %872 = vector.broadcast %cst_291 : f32 to vector<16x32xf32>
    %873 = arith.addf %871, %872 : vector<16x32xf32>
    %874 = arith.mulf %873, %866 : vector<16x32xf32>
    %cst_292 = arith.constant -0.284496725 : f32
    %875 = vector.broadcast %cst_292 : f32 to vector<16x32xf32>
    %876 = arith.addf %874, %875 : vector<16x32xf32>
    %877 = arith.mulf %876, %866 : vector<16x32xf32>
    %cst_293 = arith.constant 0.254829586 : f32
    %878 = vector.broadcast %cst_293 : f32 to vector<16x32xf32>
    %879 = arith.addf %877, %878 : vector<16x32xf32>
    %880 = arith.mulf %879, %866 : vector<16x32xf32>
    %881 = arith.mulf %860, %860 : vector<16x32xf32>
    %cst_294 = arith.constant 0.000000e+00 : f32
    %882 = vector.broadcast %cst_294 : f32 to vector<16x32xf32>
    %883 = arith.subf %882, %881 : vector<16x32xf32>
    %884 = math.exp %883 : vector<16x32xf32>
    %885 = arith.mulf %880, %884 : vector<16x32xf32>
    %cst_295 = arith.constant 1.000000e+00 : f32
    %886 = vector.broadcast %cst_295 : f32 to vector<16x32xf32>
    %887 = arith.subf %886, %885 : vector<16x32xf32>
    %888 = arith.mulf %859, %887 : vector<16x32xf32>
    %cst_296 = arith.constant 1.000000e+00 : f32
    %889 = vector.broadcast %cst_296 : f32 to vector<16x32xf32>
    %890 = arith.addf %889, %888 : vector<16x32xf32>
    %891 = arith.mulf %852, %890 : vector<16x32xf32>
    %c0_297 = arith.constant 0 : index
    %c0_298 = arith.constant 0 : index
    %892 = vector.load %arg21[%c0_297, %c0_298] : memref<32x32xf32, #tpu.memory_space<vmem>>, vector<32x32xf32>
    %893 = arith.truncf %891 : vector<16x32xf32> to vector<16x32xbf16>
    %894 = arith.truncf %892 : vector<32x32xf32> to vector<32x32xbf16>
    %cst_299 = arith.constant dense<0.000000e+00> : vector<16x32xf32>
    %895 = tpu.matmul %893, %894, %cst_299 {dimension_numbers = #tpu.dot_dimension_numbers<[1], [0], [0], [1], [0, 0, 1, 1], [], []>} : vector<16x32xbf16>, vector<32x32xbf16>, vector<16x32xf32> -> vector<16x32xf32>
    %896 = arith.addf %846, %895 : vector<16x32xf32>
    %897 = arith.truncf %4 : vector<16x16xf32> to vector<16x16xbf16>
    %898 = arith.truncf %896 : vector<16x32xf32> to vector<16x32xbf16>
    %cst_300 = arith.constant dense<0.000000e+00> : vector<16x32xf32>
    %899 = tpu.matmul %897, %898, %cst_300 {dimension_numbers = #tpu.dot_dimension_numbers<[1], [0], [0], [1], [0, 0, 1, 1], [], []>} : vector<16x16xbf16>, vector<16x32xbf16>, vector<16x32xf32> -> vector<16x32xf32>
    %900 = arith.subf %896, %899 : vector<16x32xf32>
    %901 = arith.addf %424, %845 : vector<16x32xf32>
    %902 = arith.addf %901, %899 : vector<16x32xf32>
    %903 = tpu.iota {dimensions = array<i32: 0>} : vector<16x16xi32>
    %904 = arith.sitofp %903 : vector<16x16xi32> to vector<16x16xf32>
    %905 = tpu.iota {dimensions = array<i32: 1>} : vector<16x16xi32>
    %906 = arith.sitofp %905 : vector<16x16xi32> to vector<16x16xf32>
    %cst_301 = arith.constant -1.000000e+00 : f32
    %907 = vector.broadcast %cst_301 : f32 to vector<16x16xf32>
    %908 = arith.addf %904, %907 : vector<16x16xf32>
    %909 = arith.subf %908, %906 : vector<16x16xf32>
    %cst_302 = arith.constant 0.000000e+00 : f32
    %910 = vector.broadcast %cst_302 : f32 to vector<16x16xf32>
    %911 = arith.cmpf oeq, %909, %910 : vector<16x16xf32>
    %cst_303 = arith.constant 1.600000e+01 : f32
    %912 = vector.broadcast %cst_303 : f32 to vector<16x16xf32>
    %913 = arith.cmpf oeq, %909, %912 : vector<16x16xf32>
    %914 = arith.ori %911, %913 : vector<16x16xi1>
    %cst_304 = arith.constant -1.600000e+01 : f32
    %915 = vector.broadcast %cst_304 : f32 to vector<16x16xf32>
    %916 = arith.cmpf oeq, %909, %915 : vector<16x16xf32>
    %917 = arith.ori %914, %916 : vector<16x16xi1>
    %cst_305 = arith.constant 1.000000e+00 : f32
    %cst_306 = arith.constant 0.000000e+00 : f32
    %918 = vector.broadcast %cst_305 : f32 to vector<16x16xf32>
    %919 = vector.broadcast %cst_306 : f32 to vector<16x16xf32>
    %920 = arith.select %917, %918, %919 : vector<16x16xi1>, vector<16x16xf32>
    %921 = arith.truncf %920 : vector<16x16xf32> to vector<16x16xbf16>
    %922 = arith.truncf %902 : vector<16x32xf32> to vector<16x32xbf16>
    %cst_307 = arith.constant dense<0.000000e+00> : vector<16x32xf32>
    %923 = tpu.matmul %921, %922, %cst_307 {dimension_numbers = #tpu.dot_dimension_numbers<[1], [0], [0], [1], [0, 0, 1, 1], [], []>} : vector<16x16xbf16>, vector<16x32xbf16>, vector<16x32xf32> -> vector<16x32xf32>
    %c0_308 = arith.constant 0 : index
    %c0_309 = arith.constant 0 : index
    %924 = vector.load %arg22[%c0_308, %c0_309] : memref<32x4xf32, #tpu.memory_space<vmem>>, vector<32x4xf32>
    %925 = arith.truncf %923 : vector<16x32xf32> to vector<16x32xbf16>
    %926 = arith.truncf %924 : vector<32x4xf32> to vector<32x4xbf16>
    %cst_310 = arith.constant dense<0.000000e+00> : vector<16x4xf32>
    %927 = tpu.matmul %925, %926, %cst_310 {dimension_numbers = #tpu.dot_dimension_numbers<[1], [0], [0], [1], [0, 0, 1, 1], [], []>} : vector<16x32xbf16>, vector<32x4xbf16>, vector<16x4xf32> -> vector<16x4xf32>
    %c0_311 = arith.constant 0 : index
    %c0_312 = arith.constant 0 : index
    %928 = vector.load %arg23[%c0_311, %c0_312] : memref<32x4xf32, #tpu.memory_space<vmem>>, vector<32x4xf32>
    %929 = arith.truncf %902 : vector<16x32xf32> to vector<16x32xbf16>
    %930 = arith.truncf %928 : vector<32x4xf32> to vector<32x4xbf16>
    %cst_313 = arith.constant dense<0.000000e+00> : vector<16x4xf32>
    %931 = tpu.matmul %929, %930, %cst_313 {dimension_numbers = #tpu.dot_dimension_numbers<[1], [0], [0], [1], [0, 0, 1, 1], [], []>} : vector<16x32xbf16>, vector<32x4xbf16>, vector<16x4xf32> -> vector<16x4xf32>
    %932 = arith.addf %927, %931 : vector<16x4xf32>
    %933 = tpu.iota {dimensions = array<i32: 0>} : vector<16x16xi32>
    %934 = arith.sitofp %933 : vector<16x16xi32> to vector<16x16xf32>
    %935 = tpu.iota {dimensions = array<i32: 1>} : vector<16x16xi32>
    %936 = arith.sitofp %935 : vector<16x16xi32> to vector<16x16xf32>
    %cst_314 = arith.constant 1.000000e+00 : f32
    %937 = vector.broadcast %cst_314 : f32 to vector<16x16xf32>
    %938 = arith.addf %934, %937 : vector<16x16xf32>
    %939 = arith.subf %938, %936 : vector<16x16xf32>
    %cst_315 = arith.constant 0.000000e+00 : f32
    %940 = vector.broadcast %cst_315 : f32 to vector<16x16xf32>
    %941 = arith.cmpf oeq, %939, %940 : vector<16x16xf32>
    %cst_316 = arith.constant 1.600000e+01 : f32
    %942 = vector.broadcast %cst_316 : f32 to vector<16x16xf32>
    %943 = arith.cmpf oeq, %939, %942 : vector<16x16xf32>
    %944 = arith.ori %941, %943 : vector<16x16xi1>
    %cst_317 = arith.constant -1.600000e+01 : f32
    %945 = vector.broadcast %cst_317 : f32 to vector<16x16xf32>
    %946 = arith.cmpf oeq, %939, %945 : vector<16x16xf32>
    %947 = arith.ori %944, %946 : vector<16x16xi1>
    %cst_318 = arith.constant 1.000000e+00 : f32
    %cst_319 = arith.constant 0.000000e+00 : f32
    %948 = vector.broadcast %cst_318 : f32 to vector<16x16xf32>
    %949 = vector.broadcast %cst_319 : f32 to vector<16x16xf32>
    %950 = arith.select %947, %948, %949 : vector<16x16xi1>, vector<16x16xf32>
    %951 = arith.truncf %950 : vector<16x16xf32> to vector<16x16xbf16>
    %952 = arith.truncf %902 : vector<16x32xf32> to vector<16x32xbf16>
    %cst_320 = arith.constant dense<0.000000e+00> : vector<16x32xf32>
    %953 = tpu.matmul %951, %952, %cst_320 {dimension_numbers = #tpu.dot_dimension_numbers<[1], [0], [0], [1], [0, 0, 1, 1], [], []>} : vector<16x16xbf16>, vector<16x32xbf16>, vector<16x32xf32> -> vector<16x32xf32>
    %c0_321 = arith.constant 0 : index
    %c0_322 = arith.constant 0 : index
    %954 = vector.load %arg24[%c0_321, %c0_322] : memref<32x4xf32, #tpu.memory_space<vmem>>, vector<32x4xf32>
    %955 = arith.truncf %953 : vector<16x32xf32> to vector<16x32xbf16>
    %956 = arith.truncf %954 : vector<32x4xf32> to vector<32x4xbf16>
    %cst_323 = arith.constant dense<0.000000e+00> : vector<16x4xf32>
    %957 = tpu.matmul %955, %956, %cst_323 {dimension_numbers = #tpu.dot_dimension_numbers<[1], [0], [0], [1], [0, 0, 1, 1], [], []>} : vector<16x32xbf16>, vector<32x4xbf16>, vector<16x4xf32> -> vector<16x4xf32>
    %958 = arith.addf %932, %957 : vector<16x4xf32>
    %c0_324 = arith.constant 0 : index
    %c0_325 = arith.constant 0 : index
    %c0_326 = arith.constant 0 : index
    %959 = vector.load %arg25[%c0_324, %c0_325, %c0_326] : memref<1x16x32xf32, #tpu.memory_space<vmem>>, vector<1x16x32xf32>
    %960 = vector.shape_cast %959 : vector<1x16x32xf32> to vector<16x32xf32>
    %961 = vector.shape_cast %900 : vector<16x32xf32> to vector<1x16x32xf32>
    tpu.vector_store %arg25[%c0_324, %c0_325, %c0_326], %961 {strides = array<i32>} : memref<1x16x32xf32, #tpu.memory_space<vmem>>, vector<1x16x32xf32>,
    %c0_327 = arith.constant 0 : index
    %c0_328 = arith.constant 0 : index
    %c0_329 = arith.constant 0 : index
    %962 = vector.load %arg26[%c0_327, %c0_328, %c0_329] : memref<1x16x4xf32, #tpu.memory_space<vmem>>, vector<1x16x4xf32>
    %963 = vector.shape_cast %962 : vector<1x16x4xf32> to vector<16x4xf32>
    %964 = vector.shape_cast %958 : vector<16x4xf32> to vector<1x16x4xf32>
    tpu.vector_store %arg26[%c0_327, %c0_328, %c0_329], %964 {strides = array<i32>} : memref<1x16x4xf32, #tpu.memory_space<vmem>>, vector<1x16x4xf32>,
    return
  }
  func.func @transform_0(%arg0: i32) -> (i32, i32, i32) {
    %c0_i32 = arith.constant 0 : i32
    %c0_i32_0 = arith.constant 0 : i32
    %c0_i32_1 = arith.constant 0 : i32
    return %arg0, %c0_i32, %c0_i32_0 : i32, i32, i32
  }
  func.func @transform_1(%arg0: i32) -> (i32, i32, i32) {
    %c0_i32 = arith.constant 0 : i32
    %c0_i32_0 = arith.constant 0 : i32
    %c0_i32_1 = arith.constant 0 : i32
    return %arg0, %c0_i32, %c0_i32_0 : i32, i32, i32
  }
  func.func @transform_2(%arg0: i32) -> (i32, i32) {
    %c0_i32 = arith.constant 0 : i32
    %c0_i32_0 = arith.constant 0 : i32
    %c0_i32_1 = arith.constant 0 : i32
    return %c0_i32, %c0_i32_0 : i32, i32
  }
  func.func @transform_3(%arg0: i32) -> (i32, i32) {
    %c0_i32 = arith.constant 0 : i32
    %c0_i32_0 = arith.constant 0 : i32
    %c0_i32_1 = arith.constant 0 : i32
    return %c0_i32, %c0_i32_0 : i32, i32
  }
  func.func @transform_4(%arg0: i32) -> (i32, i32) {
    %c0_i32 = arith.constant 0 : i32
    %c0_i32_0 = arith.constant 0 : i32
    %c0_i32_1 = arith.constant 0 : i32
    return %c0_i32, %c0_i32_0 : i32, i32
  }
  func.func @transform_5(%arg0: i32) -> (i32, i32) {
    %c0_i32 = arith.constant 0 : i32
    %c0_i32_0 = arith.constant 0 : i32
    %c0_i32_1 = arith.constant 0 : i32
    return %c0_i32, %c0_i32_0 : i32, i32
  }
  func.func @transform_6(%arg0: i32) -> (i32, i32) {
    %c0_i32 = arith.constant 0 : i32
    %c0_i32_0 = arith.constant 0 : i32
    %c0_i32_1 = arith.constant 0 : i32
    return %c0_i32, %c0_i32_0 : i32, i32
  }
  func.func @transform_7(%arg0: i32) -> (i32, i32) {
    %c0_i32 = arith.constant 0 : i32
    %c0_i32_0 = arith.constant 0 : i32
    %c0_i32_1 = arith.constant 0 : i32
    return %c0_i32, %c0_i32_0 : i32, i32
  }
  func.func @transform_8(%arg0: i32) -> (i32, i32) {
    %c0_i32 = arith.constant 0 : i32
    %c0_i32_0 = arith.constant 0 : i32
    %c0_i32_1 = arith.constant 0 : i32
    return %c0_i32, %c0_i32_0 : i32, i32
  }
  func.func @transform_9(%arg0: i32) -> (i32, i32) {
    %c0_i32 = arith.constant 0 : i32
    %c0_i32_0 = arith.constant 0 : i32
    %c0_i32_1 = arith.constant 0 : i32
    return %c0_i32, %c0_i32_0 : i32, i32
  }
  func.func @transform_10(%arg0: i32) -> (i32, i32) {
    %c0_i32 = arith.constant 0 : i32
    %c0_i32_0 = arith.constant 0 : i32
    %c0_i32_1 = arith.constant 0 : i32
    return %c0_i32, %c0_i32_0 : i32, i32
  }
  func.func @transform_11(%arg0: i32) -> (i32, i32) {
    %c0_i32 = arith.constant 0 : i32
    %c0_i32_0 = arith.constant 0 : i32
    %c0_i32_1 = arith.constant 0 : i32
    return %c0_i32, %c0_i32_0 : i32, i32
  }
  func.func @transform_12(%arg0: i32) -> (i32, i32) {
    %c0_i32 = arith.constant 0 : i32
    %c0_i32_0 = arith.constant 0 : i32
    %c0_i32_1 = arith.constant 0 : i32
    return %c0_i32, %c0_i32_0 : i32, i32
  }
  func.func @transform_13(%arg0: i32) -> (i32, i32) {
    %c0_i32 = arith.constant 0 : i32
    %c0_i32_0 = arith.constant 0 : i32
    %c0_i32_1 = arith.constant 0 : i32
    return %c0_i32, %c0_i32_0 : i32, i32
  }
  func.func @transform_14(%arg0: i32) -> (i32, i32) {
    %c0_i32 = arith.constant 0 : i32
    %c0_i32_0 = arith.constant 0 : i32
    %c0_i32_1 = arith.constant 0 : i32
    return %c0_i32, %c0_i32_0 : i32, i32
  }
  func.func @transform_15(%arg0: i32) -> (i32, i32) {
    %c0_i32 = arith.constant 0 : i32
    %c0_i32_0 = arith.constant 0 : i32
    %c0_i32_1 = arith.constant 0 : i32
    return %c0_i32, %c0_i32_0 : i32, i32
  }
  func.func @transform_16(%arg0: i32) -> (i32, i32) {
    %c0_i32 = arith.constant 0 : i32
    %c0_i32_0 = arith.constant 0 : i32
    %c0_i32_1 = arith.constant 0 : i32
    return %c0_i32, %c0_i32_0 : i32, i32
  }
  func.func @transform_17(%arg0: i32) -> (i32, i32) {
    %c0_i32 = arith.constant 0 : i32
    %c0_i32_0 = arith.constant 0 : i32
    %c0_i32_1 = arith.constant 0 : i32
    return %c0_i32, %c0_i32_0 : i32, i32
  }
  func.func @transform_18(%arg0: i32) -> (i32, i32) {
    %c0_i32 = arith.constant 0 : i32
    %c0_i32_0 = arith.constant 0 : i32
    %c0_i32_1 = arith.constant 0 : i32
    return %c0_i32, %c0_i32_0 : i32, i32
  }
  func.func @transform_19(%arg0: i32) -> (i32, i32) {
    %c0_i32 = arith.constant 0 : i32
    %c0_i32_0 = arith.constant 0 : i32
    %c0_i32_1 = arith.constant 0 : i32
    return %c0_i32, %c0_i32_0 : i32, i32
  }
  func.func @transform_20(%arg0: i32) -> (i32, i32) {
    %c0_i32 = arith.constant 0 : i32
    %c0_i32_0 = arith.constant 0 : i32
    %c0_i32_1 = arith.constant 0 : i32
    return %c0_i32, %c0_i32_0 : i32, i32
  }
  func.func @transform_21(%arg0: i32) -> (i32, i32) {
    %c0_i32 = arith.constant 0 : i32
    %c0_i32_0 = arith.constant 0 : i32
    %c0_i32_1 = arith.constant 0 : i32
    return %c0_i32, %c0_i32_0 : i32, i32
  }
  func.func @transform_22(%arg0: i32) -> (i32, i32) {
    %c0_i32 = arith.constant 0 : i32
    %c0_i32_0 = arith.constant 0 : i32
    %c0_i32_1 = arith.constant 0 : i32
    return %c0_i32, %c0_i32_0 : i32, i32
  }
  func.func @transform_23(%arg0: i32) -> (i32, i32) {
    %c0_i32 = arith.constant 0 : i32
    %c0_i32_0 = arith.constant 0 : i32
    %c0_i32_1 = arith.constant 0 : i32
    return %c0_i32, %c0_i32_0 : i32, i32
  }
  func.func @transform_24(%arg0: i32) -> (i32, i32, i32) {
    %c0_i32 = arith.constant 0 : i32
    %c0_i32_0 = arith.constant 0 : i32
    %c0_i32_1 = arith.constant 0 : i32
    return %arg0, %c0_i32, %c0_i32_0 : i32, i32, i32
  }
  func.func @transform_25(%arg0: i32) -> (i32, i32, i32) {
    %c0_i32 = arith.constant 0 : i32
    %c0_i32_0 = arith.constant 0 : i32
    %c0_i32_1 = arith.constant 0 : i32
    return %arg0, %c0_i32, %c0_i32_0 : i32, i32, i32
  }
}

</mosaic_0001>

<bundles_post_ra>
// kernel: _lambda_.15
= control target key start
LH: loop header
LB: loop body
LE: loop exit
PB: predicated region body
PF: predicated region fallthrough
CT: control target
= control target key end

     0   :  { %vm35_vm0 = vcmask 1045504   ;;  %vm28_vm1 = vcmask 97280   ;;  %vm58_vm2 = vcmask 261120   ;;  %s132_s1 = inlined_call_operand.vmem [shape: f32[12,32], index: 1, kind: input, shape index: {}]   ;;  %s133_s0 = inlined_call_operand.vmem [shape: f32[32,12], index: 0, kind: input, shape index: {}]   ;;  %s134_s2 = inlined_call_operand.vmem [shape: f32[32,32], index: 2, kind: input, shape index: {}]   ;;  %s135_s3 = inlined_call_operand.vmem [shape: f32[32,32], index: 3, kind: output, shape index: {}]  }
   0x1   :  { %v19_v0 = vld [vmem:[%s132_s1] sm:$0xff]  ;;  %v20_v1 = vld [vmem:[%s132_s1 + $0x8] sm:$0xf]  ;;  %v17_v5 = vld [vmem:[%s133_s0 + $0x10] sm:$0xff] }
   0x2   :  { %v15_v2 = vld [vmem:[%s133_s0] sm:$0xff]  ;;  %v23_v3 = vpack.c.bf16 %v20_v1, %v19_v0  ;;  %v16_v4 = vld [vmem:[%s133_s0 + $0x8] sm:$0xff]  ;;  %v18_v6 = vld [vmem:[%s133_s0 + $0x18] sm:$0xff] }
   0x3   :  { %v21_v8 = vpack.c.bf16 %v16_v4, %v15_v2  ;;  %v22_v9 = vpack.c.bf16 %v18_v6, %v17_v5  ;;  %v24_v10 = vld [vmem:[%s134_s2] sm:$0xff]  ;;  %v26_v11 = vld [vmem:[%s134_s2 + $0x10] sm:$0xff]  ;;  %v25_v16 = vld [vmem:[%s134_s2 + $0x8] sm:$0xff] }
   0x4   :  { %v37_v7 = vsel %vm35_vm0, %v23_v3, 0  ;;  %v27_v17 = vld [vmem:[%s134_s2 + $0x18] sm:$0xff] }
   0x5   :  { %46 = vmatpush.bf16.msra.mxu0 %v37_v7  ;;  %69 = vmatpush.bf16.msra.mxu1 %v37_v7 }
   0x8   :  { %67 = vmatmul.msk.bf16.vlgmr.msra.gmra.mxu0 %vm28_vm1, %v21_v8  ;;  %68 = vmatmul.msk.bf16.vlgmr.msra.gmra.mxu1 %vm28_vm1, %v22_v9 }
  0x85   :  { %v48_v12 = vpop.f32.mrf.mxu0  ;;  %v53_v13 = vpop.f32.mrf.mxu1 }
  0x86   :  { %v49_v14 = vadd.f32 %v48_v12, %v24_v10  ;;  %v54_v15 = vadd.f32 %v53_v13, %v26_v11 }
  0x88   :  { %59 = vst.msk [vmem:[%s135_s3] sm:$0xff] %vm58_vm2, %v49_v14 }
  0x89   :  { %61 = vst.msk [vmem:[%s135_s3 + $0x10] sm:$0xff] %vm58_vm2, %v54_v15 }
  0x8d   :  { %v50_v18 = vpop.f32.mrf.mxu0  ;;  %v55_v19 = vpop.f32.mrf.mxu1 }
  0x8e   :  { %v51_v20 = vadd.f32 %v50_v18, %v25_v16  ;;  %v56_v21 = vadd.f32 %v55_v19, %v27_v17 }
  0x90   :  { %60 = vst.msk [vmem:[%s135_s3 + $0x8] sm:$0xff] %vm58_vm2, %v51_v20 }
  0x91   :  { %62 = vst.msk [vmem:[%s135_s3 + $0x18] sm:$0xff] %vm58_vm2, %v56_v21 }

// kernel: _lambda_.9
= control target key start
LH: loop header
LB: loop body
LE: loop exit
PB: predicated region body
PF: predicated region fallthrough
CT: control target
= control target key end

     0   :  { %vm30_vm0 = vcmask 130048   ;;  %vm58_vm1 = vcmask 261120   ;;  %s146_s1 = inlined_call_operand.vmem [shape: f32[16,32], index: 1, kind: input, shape index: {}]   ;;  %s147_s0 = inlined_call_operand.vmem [shape: f32[8,16], index: 0, kind: input, shape index: {}]   ;;  %s148_s3 = inlined_call_operand.vmem [shape: f32[32,16], index: 3, kind: input, shape index: {}]   ;;  %s149_s2 = inlined_call_operand.vmem [shape: f32[1,32], index: 2, kind: input, shape index: {}]   ;;  %s150_s4 = inlined_call_operand.vmem [shape: f32[1,16], index: 4, kind: input, shape index: {}]   ;;  %s151_s5 = inlined_call_operand.vmem [shape: f32[8,16], index: 5, kind: output, shape index: {}]  }
   0x1   :  { %v22_v0 = vld [vmem:[%s146_s1] sm:$0xff]  ;;  %v23_v1 = vld [vmem:[%s146_s1 + $0x8] sm:$0xff]  ;;  %v49_v4 = vld [vmem:[%s148_s3 + $0x10] sm:$0xff] }
   0x2   :  { %v21_v2 = vld [vmem:[%s147_s0] sm:$0xff]  ;;  %v25_v3 = vpack.c.bf16 %v23_v1, %v22_v0  ;;  %v50_v5 = vld [vmem:[%s148_s3 + $0x18] sm:$0xff]  ;;  %v48_v9 = vld [vmem:[%s148_s3 + $0x8] sm:$0xff] }
   0x3   :  { %v24_v6 = vpack.c.bf16 %v21_v2, %v21_v2  ;;  %v53_v7 = vpack.c.bf16 %v50_v5, %v49_v4  ;;  %v47_v8 = vld [vmem:[%s148_s3] sm:$0xff] }
   0x4   :  { %41 = vmatpush.bf16.msra.mxu0 %v25_v3  ;;  %v52_v10 = vpack.c.bf16 %v48_v9, %v47_v8  ;;  %v82_v11 = vld [vmem:[%s149_s2] ss:$0 sm:$0xff] }
   0x5   :  { %68 = vmatpush.bf16.msra.mxu1 %v53_v7  ;;  %v83_v16 = vld [vmem:[%s150_s4] ss:$0 sm:$0xff] }
   0x7   :  { %80 = vmatmul.msk.bf16.vlgmr.msra.gmra.mxu0 %vm30_vm0, %v24_v6 }
   0x9   :  { %69 = vmatpush.bf16.msra.mxu1 %v52_v10 }
  0x84   :  { %v43_v12 = vpop.f32.mrf.mxu0 }
  0x85   :  { %v44_v13 = vadd.f32 %v82_v11, %v43_v12 }
  0x87   :  { %v51_v14 = vpack.c.bf16 %v44_v13, %v44_v13 }
  0x89   :  { %81 = vmatmul.msk.bf16.vlgmr.msra.gmra.mxu1 %vm58_vm1, %v51_v14 }
  0x8c   :  { %v45_v15 = vpop.f32.mrf.mxu0 }
 0x106   :  { %v71_v17 = vpop.f32.mrf.mxu1 }
 0x107   :  { %v72_v18 = vadd.f32 %v83_v16, %v71_v17 }
 0x109   :  { %75 = vst.msk [vmem:[%s151_s5] sm:$0xff] %vm30_vm0, %v72_v18 }
 0x10e   :  { %v73_v19 = vpop.f32.mrf.mxu1 }

// kernel: _lambda_.10
= control target key start
LH: loop header
LB: loop body
LE: loop exit
PB: predicated region body
PF: predicated region fallthrough
CT: control target
= control target key end

     0   :  { %s357_s12 = smov 0   ;;  %s383_s0 = inlined_call_operand.vmem [shape: f32[2,16,4], index: 0, kind: input, shape index: {}]   ;;  %s384_s1 = inlined_call_operand.vmem [shape: f32[16,16], index: 1, kind: input, shape index: {}]   ;;  %s385_s2 = inlined_call_operand.vmem [shape: f32[2,16,4], index: 2, kind: output, shape index: {0}]   ;;  %s386_s3 = inlined_call_operand.vmem [shape: f32[2,16,4], index: 3, kind: output, shape index: {1}]  }
   0x1 LB: > { %s304_s13 = sadd.s32 4294967295, %s335_s12   ;;  %p308_p0 = scmp.ge.s32.totalorder %s335_s12, 1  ;;  %s335_s12 = sphi %s357_s12, %s14_s12  }
   0x2   : > { %p140_p1 = scmp.lt.s32.totalorder %s335_s12, 3 }
   0x4   : > { %p141_p2 = pnand %p308_p0, %p140_p1 }
   0x5   : > { %p169_p3 = scmp.lt.s32.totalorder (!%p141_p2), %s304_s13, 1 }
   0x6   : > { %144 = sbr.rel (%p141_p2) target bundleno = 157 (0x9d), region = 28 }
   0xb   : > { %s388_s13 = smov (!%p169_p3, %s304_s13), 1  ;;  %v187_v0 = vld [vmem:[%s384_s1] sm:$0xff]  ;;  %v188_v1 = vld [vmem:[%s384_s1 + $0x8] sm:$0xff]  ;;  %vm191_vm0 = vcmask 130048   ;;  %vm211_vm1 = vcmask 31744  }
   0xc   : > { %s318_s14 = sshll.u32 %s388_s13, 4  ;;  %v189_v5 = vpack.c.bf16 %v188_v1, %v187_v0 }
   0xd   : > { %s173_s17 = scalar_lea.vmem %s383_s0, %s318_s14  ;;  %s183_s24 = scalar_lea.vmem %s386_s3, %s318_s14 }
   0xe   : > { %v185_v2 = vld [vmem:[%s173_s17] sm:$0xff]  ;;  %v186_v3 = vld [vmem:[%s173_s17 + $0x8] sm:$0xff]  ;;  %s178_s27 = scalar_lea.vmem %s385_s2, %s318_s14 }
   0xf   : > { %v190_v4 = vpack.c.bf16 %v186_v3, %v185_v2 }
  0x11   : > { %202 = vmatpush.bf16.msra.mxu0 %v190_v4 }
  0x14   : > { %315 = vmatmul.msk.bf16.vlgmr.msra.gmra.mxu0 %vm191_vm0, %v189_v5 }
  0x91   : > { %v204_v6 = vpop.f32.mrf.mxu0 }
  0x92   : > { %v209_v7 = vsub.f32 %v185_v2, %v204_v6  ;;  %214 = vst.msk [vmem:[%s183_s24] sm:$0xff] %vm211_vm1, %v204_v6 }
  0x94   : > { %212 = vst.msk [vmem:[%s178_s27] sm:$0xff] %vm211_vm1, %v209_v7 }
  0x99   : > { %v206_v8 = vpop.f32.mrf.mxu0 }
  0x9a   : > { %v210_v9 = vsub.f32 %v186_v3, %v206_v8  ;;  %215 = vst.msk [vmem:[%s183_s24 + $0x8] sm:$0xff] %vm211_vm1, %v206_v8 }
  0x9c   : > { %213 = vst.msk [vmem:[%s178_s27 + $0x8] sm:$0xff] %vm211_vm1, %v210_v9 }
  0x9d PF: > { %s14_s12 = sadd.s32 1, %s335_s12  }
  0x9e   : > { %p11_p4 = scmp.ge.s32.totalorder %s14_s12, 4  }
  0xa0   :  { %13 = sbr.rel (!%p11_p4) target bundleno = 1 (0x1), region = 70 }

// kernel: _lambda_.14
= control target key start
LH: loop header
LB: loop body
LE: loop exit
PB: predicated region body
PF: predicated region fallthrough
CT: control target
= control target key end

     0   :  { %s412_s12 = smov 0   ;;  %s460_s0 = inlined_call_operand.vmem [shape: f32[2,16,32], index: 0, kind: input, shape index: {}]   ;;  %s461_s1 = inlined_call_operand.vmem [shape: f32[1,32], index: 1, kind: input, shape index: {}]   ;;  %s462_s2 = inlined_call_operand.vmem [shape: f32[1,32], index: 2, kind: input, shape index: {}]   ;;  %s463_s3 = inlined_call_operand.vmem [shape: f32[2,16,32], index: 3, kind: output, shape index: {}]  }
   0x1 LB: > { %s345_s13 = sadd.s32 4294967295, %s388_s12   ;;  %p349_p0 = scmp.ge.s32.totalorder %s388_s12, 1  ;;  %s388_s12 = sphi %s412_s12, %s13_s12  }
   0x2   : > { %p137_p1 = scmp.lt.s32.totalorder %s388_s12, 3 }
   0x4   : > { %p138_p2 = pnand %p349_p0, %p137_p1 }
   0x5   : > { %p161_p3 = scmp.lt.s32.totalorder (!%p138_p2), %s345_s13, 1 }
   0x6   : > { %141 = sbr.rel (%p138_p2) target bundleno = 332 (0x14c), region = 32 }
   0xb   : > { %s465_s13 = smov (!%p161_p3, %s345_s13), 1  ;;  %vm175_vm0 = vcmask 261120   ;;  %v390_v4 = vmov 32.0   ;;  %v391_v60 = vmov 16.0   ;;  %v368_v62 = vld [vmem:[%s461_s1] ss:$0 sm:$0xff] }
   0xc   : > { %s356_s14 = sshll.u32 %s465_s13, 4  ;;  %370 = vrcp.f32 %v390_v4  ;;  %v369_v4 = vld [vmem:[%s462_s2] ss:$0 sm:$0xff] }
   0xd   : > { %s165_s17 = scalar_lea.vmem %s460_s0, %s356_s14  ;;  %s170_s24 = scalar_lea.vmem %s463_s3, %s356_s14 }
   0xe   : > { %v171_v0 = vld [vmem:[%s165_s17] sm:$0xff]  ;;  %v172_v2 = vld [vmem:[%s165_s17 + $0x8] sm:$0xff] }
   0xf   : > { %v176_v1 = vsel %vm175_vm0, %v171_v0, 0.0  ;;  %v179_v3 = vsel %vm175_vm0, %v172_v2, 0.0 }
  0x10   : > { %177 = vadd.xlane.f32.xlu0 %v176_v1 }
  0x12   : > { %v371_v5 = vpop.eup %370 }
  0x13   : > { %v183_v6 = vmul.f32 32.0, %v371_v5  ;;  %vm187_vm1 = vweird.f32 %v371_v5 }
  0x15   : > { %v184_v7 = vsub.f32 1.0, %v183_v6 }
  0x17   : > { %v185_v8 = vmul.f32 %v371_v5, %v184_v7 }
  0x18   : > { %180 = vadd.xlane.f32.xlu0 %v179_v3 }
  0x19   : > { %v186_v9 = vadd.f32 %v371_v5, %v185_v8 }
  0x1b   : > { %v188_v10 = vsel %vm187_vm1, %v371_v5, %v186_v9 }
  0x83   : > { %v178_v11 = vpop.xlane.xlu0 %177 }
  0x84   : > { %v189_v12 = vmul.f32 %v188_v10, %v178_v11 }
  0x86   : > { %v430_v13 = vsub.f32 %v171_v0, %v189_v12 }
  0x88   : > { %v193_v14 = vmul.f32 %v430_v13, %v430_v13 }
  0x8a   : > { %v195_v15 = vsel %vm175_vm0, %v193_v14, 0.0 }
  0x8b   : > { %196 = vadd.xlane.f32.xlu1 %v195_v15  ;;  %v181_v16 = vpop.xlane.xlu0 %180 }
  0x8c   : > { %v190_v17 = vmul.f32 %v188_v10, %v181_v16 }
  0x8e   : > { %v435_v18 = vsub.f32 %v172_v2, %v190_v17 }
  0x90   : > { %v194_v19 = vmul.f32 %v435_v18, %v435_v18 }
  0x92   : > { %v198_v20 = vsel %vm175_vm0, %v194_v19, 0.0 }
  0x93   : > { %199 = vadd.xlane.f32.xlu1 %v198_v20 }
  0xfe   : > { %v197_v21 = vpop.xlane.xlu1 %196 }
  0xff   : > { %v201_v22 = vmul.f32 %v197_v21, %v188_v10 }
 0x101   : > { %v203_v23 = vadd.f32 1e-05, %v201_v22 }
 0x103   : > { %372 = vrsqrt.f32 %v203_v23  ;;  %vm212_vm2 = vcmp.eq.f32.partialorder %v203_v23, inf  ;;  %v215_v37 = vand.u32 2147483648, %v203_v23  ;;  %vm214_vm3 = vcmp.eq.f32.partialorder %v203_v23, 0.0 }
 0x106   : > { %v200_v24 = vpop.xlane.xlu1 %199 }
 0x107   : > { %v202_v25 = vmul.f32 %v200_v24, %v188_v10 }
 0x109   : > { %v373_v26 = vpop.eup %372  ;;  %v204_v27 = vadd.f32 1e-05, %v202_v25 }
 0x10a   : > { %v206_v28 = vmul.f32 %v373_v26, %v203_v23 }
 0x10b   : > { %374 = vrsqrt.f32 %v204_v27  ;;  %vm224_vm4 = vcmp.eq.f32.partialorder %v204_v27, inf  ;;  %v227_v45 = vand.u32 2147483648, %v204_v27  ;;  %vm226_vm5 = vcmp.eq.f32.partialorder %v204_v27, 0.0 }
 0x10c   : > { %v207_v29 = vmul.f32 %v373_v26, %v206_v28 }
 0x10e   : > { %v208_v30 = vmul.f32 0.5, %v207_v29 }
 0x110   : > { %v209_v31 = vsub.f32 1.5, %v208_v30 }
 0x111   : > { %v375_v32 = vpop.eup %374 }
 0x112   : > { %v210_v33 = vmul.f32 %v373_v26, %v209_v31  ;;  %v218_v34 = vmul.f32 %v375_v32, %v204_v27 }
 0x114   : > { %v211_v35 = vmul.f32 %v210_v33, %v203_v23  ;;  %v219_v36 = vmul.f32 %v375_v32, %v218_v34 }
 0x116   : > { %v213_v38 = vsel %vm212_vm2, %v203_v23, %v211_v35  ;;  %v220_v39 = vmul.f32 0.5, %v219_v36 }
 0x117   : > { %v216_v40 = vsel %vm214_vm3, %v215_v37, %v213_v38 }
 0x118   : > { %376 = vrcp.f32 %v216_v40  ;;  %v221_v41 = vsub.f32 1.5, %v220_v39  ;;  %v240_v51 = vand.u32 2147483648, %v216_v40  ;;  %v238_v52 = vand.u32 2147483647, %v216_v40 }
 0x119   : > { %vm234_vm7 = vweird.f32 %v216_v40 }
 0x11a   : > { %v222_v42 = vmul.f32 %v375_v32, %v221_v41  ;;  %v241_v56 = vor.u32 1.1754944e-38, %v240_v51  ;;  %vm239_vm9 = vcmp.eq.f32.partialorder %v238_v52, 8.507059e+37 }
 0x11c   : > { %v223_v43 = vmul.f32 %v222_v42, %v204_v27 }
 0x11e   : > { %v377_v44 = vpop.eup %376  ;;  %v225_v47 = vsel %vm224_vm4, %v204_v27, %v223_v43 }
 0x11f   : > { %v230_v46 = vmul.f32 %v377_v44, %v216_v40  ;;  %v228_v48 = vsel %vm226_vm5, %v227_v45, %v225_v47  ;;  %vm235_vm6 = vweird.f32 %v377_v44 }
 0x120   : > { %378 = vrcp.f32 %v228_v48  ;;  %vm236_vm8 = vmor %vm234_vm7, %vm235_vm6  ;;  %v255_v61 = vand.u32 2147483648, %v228_v48  ;;  %v253_v1 = vand.u32 2147483647, %v228_v48  ;;  %vm249_vm11 = vweird.f32 %v228_v48 }
 0x121   : > { %v231_v49 = vsub.f32 1.0, %v230_v46  ;;  %380 = vrcp.f32 %v391_v60 }
 0x122   : > { %v256_v3 = vor.u32 1.1754944e-38, %v255_v61  ;;  %vm254_vm13 = vcmp.eq.f32.partialorder %v253_v1, 8.507059e+37 }
 0x123   : > { %v232_v50 = vmul.f32 %v377_v44, %v231_v49 }
 0x125   : > { %v233_v53 = vadd.f32 %v377_v44, %v232_v50 }
 0x126   : > { %v379_v54 = vpop.eup %378 }
 0x127   : > { %v237_v55 = vsel %vm236_vm8, %v377_v44, %v233_v53  ;;  %v245_v57 = vmul.f32 %v379_v54, %v228_v48  ;;  %vm250_vm10 = vweird.f32 %v379_v54  ;;  %v381_v7 = vpop.eup %380 }
 0x128   : > { %v242_v58 = vsel %vm239_vm9, %v241_v56, %v237_v55  ;;  %vm251_vm12 = vmor %vm249_vm11, %vm250_vm10  ;;  %v279_v11 = vmul.f32 16.0, %v381_v7  ;;  %vm283_vm14 = vweird.f32 %v381_v7 }
 0x129   : > { %v246_v59 = vsub.f32 1.0, %v245_v57  ;;  %v243_v63 = vmul.f32 %v242_v58, %v430_v13 }
 0x12a   : > { %v280_v15 = vsub.f32 1.0, %v279_v11 }
 0x12b   : > { %v247_v0 = vmul.f32 %v379_v54, %v246_v59  ;;  %v262_v5 = vmul.f32 %v368_v62, %v243_v63 }
 0x12c   : > { %v281_v20 = vmul.f32 %v381_v7, %v280_v15 }
 0x12d   : > { %v248_v2 = vadd.f32 %v379_v54, %v247_v0  ;;  %v267_v10 = vadd.f32 %v369_v4, %v262_v5 }
 0x12e   : > { %v282_v23 = vadd.f32 %v381_v7, %v281_v20 }
 0x12f   : > { %v252_v6 = vsel %vm251_vm12, %v379_v54, %v248_v2  ;;  %v269_v14 = vsel %vm175_vm0, %v267_v10, 0.0 }
 0x130   : > { %v257_v8 = vsel %vm254_vm13, %v256_v3, %v252_v6 }
 0x131   : > { %v258_v9 = vmul.f32 %v257_v8, %v435_v18  ;;  %v284_v18 = vsel %vm283_vm14, %v381_v7, %v282_v23 }
 0x133   : > { %v263_v12 = vmul.f32 %v368_v62, %v258_v9 }
 0x135   : > { %v268_v13 = vadd.f32 %v369_v4, %v263_v12 }
 0x137   : > { %v270_v16 = vsel %vm175_vm0, %v268_v13, 0.0 }
 0x138   : > { %v271_v17 = vadd.f32 %v270_v16, %v269_v14 }
 0x13a   : > { %v272_v19 = vrot.slane %v271_v17, 4 }
 0x13c   : > { %v273_v21 = vadd.f32 %v272_v19, %v271_v17 }
 0x13e   : > { %v274_v22 = vrot.slane %v273_v21, 2 }
 0x140   : > { %v275_v24 = vadd.f32 %v274_v22, %v273_v21 }
 0x142   : > { %v276_v25 = vrot.slane %v275_v24, 1 }
 0x144   : > { %v277_v26 = vadd.f32 %v276_v25, %v275_v24 }
 0x146   : > { %v285_v27 = vmul.f32 %v284_v18, %v277_v26 }
 0x148   : > { %v286_v28 = vsub.f32 %v267_v10, %v285_v27  ;;  %v287_v29 = vsub.f32 %v268_v13, %v285_v27 }
 0x14a   : > { %288 = vst.msk [vmem:[%s170_s24] sm:$0xff] %vm175_vm0, %v286_v28 }
 0x14b   : > { %289 = vst.msk [vmem:[%s170_s24 + $0x8] sm:$0xff] %vm175_vm0, %v287_v29 }
 0x14c PF: > { %s13_s12 = sadd.s32 1, %s388_s12  }
 0x14d   : > { %p10_p4 = scmp.ge.s32.totalorder %s13_s12, 4  }
 0x14f   :  { %12 = sbr.rel (!%p10_p4) target bundleno = 1 (0x1), region = 62 }

// kernel: _lambda_.12
= control target key start
LH: loop header
LB: loop body
LE: loop exit
PB: predicated region body
PF: predicated region fallthrough
CT: control target
= control target key end

     0   :  { %s1433_s21 = smov 0   ;;  %s2000_s0 = inlined_call_operand.vmem [shape: f32[2,16,32], index: 0, kind: input, shape index: {}]   ;;  %s2001_s1 = inlined_call_operand.vmem [shape: f32[32,32], index: 1, kind: input, shape index: {}]   ;;  %s2002_s2 = inlined_call_operand.vmem [shape: f32[1,32], index: 2, kind: input, shape index: {}]   ;;  %s2003_s3 = inlined_call_operand.vmem [shape: f32[32,32], index: 3, kind: input, shape index: {}]   ;;  %s2004_s4 = inlined_call_operand.vmem [shape: f32[1,32], index: 4, kind: input, shape index: {}]   ;;  %s2005_s5 = inlined_call_operand.vmem [shape: f32[32,32], index: 5, kind: input, shape index: {}]   ;;  %s2006_s6 = inlined_call_operand.vmem [shape: f32[1,32], index: 6, kind: input, shape index: {}]   ;;  %s2007_s7 = inlined_call_operand.vmem [shape: f32[32,32], index: 7, kind: input, shape index: {}]   ;;  %s2008_s8 = inlined_call_operand.vmem [shape: f32[1,32], index: 8, kind: input, shape index: {}]   ;;  %s2009_s9 = inlined_call_operand.vmem [shape: f32[16,16], index: 9, kind: input, shape index: {}]   ;;  %s2010_s10 = inlined_call_operand.vmem [shape: f32[32,32], index: 10, kind: input, shape index: {}]   ;;  %s2011_s11 = inlined_call_operand.vmem [shape: f32[32,32], index: 11, kind: input, shape index: {}]   ;;  %s2012_s12 = inlined_call_operand.vmem [shape: f32[2,16,32], index: 12, kind: output, shape index: {}]  }
   0x1 LB: > { %s1267_s22 = sadd.s32 4294967295, %s1365_s21   ;;  %p1271_p0 = scmp.ge.s32.totalorder %s1365_s21, 1  ;;  %s1365_s21 = sphi %s1433_s21, %s22_s21  }
   0x2   : > { %p362_p1 = scmp.lt.s32.totalorder %s1365_s21, 3 }
   0x4   : > { %p363_p2 = pnand %p1271_p0, %p362_p1 }
   0x5   : > { %p404_p3 = scmp.lt.s32.totalorder (!%p363_p2), %s1267_s22, 1 }
   0x6   : > { %366 = sbr.rel (%p363_p2) target bundleno = 2123 (0x84b), region = 68 }
   0xb   : > { %v421_v0 = vld [vmem:[%s2001_s1 + $0x10] sm:$0xff]  ;;  %v422_v1 = vld [vmem:[%s2001_s1 + $0x18] sm:$0xff]  ;;  %v419_v5 = vld [vmem:[%s2001_s1] sm:$0xff]  ;;  %s2086_s22 = smov (!%p404_p3, %s1267_s22), 1  ;;  %vm2013_vm0 = vcmask 261120   ;;  %v523_v28 = vlaneseq }
   0xc   : > { %v426_v2 = vld [vmem:[%s2003_s3 + $0x10] sm:$0xff]  ;;  %v441_v3 = vpack.c.bf16 %v422_v1, %v421_v0  ;;  %v427_v4 = vld [vmem:[%s2003_s3 + $0x18] sm:$0xff]  ;;  %v420_v6 = vld [vmem:[%s2001_s1 + $0x8] sm:$0xff]  ;;  %s1288_s23 = sshll.u32 %s2086_s22, 4 }
   0xd   : > { %v464_v7 = vpack.c.bf16 %v427_v4, %v426_v2  ;;  %v424_v8 = vld [vmem:[%s2003_s3] sm:$0xff]  ;;  %v425_v9 = vld [vmem:[%s2003_s3 + $0x8] sm:$0xff]  ;;  %v440_v10 = vpack.c.bf16 %v420_v6, %v419_v5  ;;  %s1473_s26 = scalar_lea.vmem %s2000_s0, %s1288_s23  ;;  %v524_v29 = vshrl.u32 %v523_v28, 7  ;;  %v529_v30 = vand.u32 127, %v523_v28 }
   0xe   : > { %455 = vmatpush.bf16.msra.mxu0 %v441_v3  ;;  %v463_v11 = vpack.c.bf16 %v425_v9, %v424_v8  ;;  %v415_v12 = vld [vmem:[%s1473_s26] sm:$0xff]  ;;  %v416_v13 = vld [vmem:[%s1473_s26 + $0x8] sm:$0xff] }
   0xf   : > { %474 = vmatpush.bf16.msra.mxu1 %v464_v7  ;;  %v1477_v14 = vpack.c.bf16 %v416_v13, %v415_v12  ;;  %v1340_v17 = vld [vmem:[%s2004_s4] ss:$0 sm:$0xff]  ;;  %v525_v31 = vadd.s32 8, %v524_v29  ;;  %v1491_v32 = vcvt.s32.f32 %v524_v29  ;;  %v1493_v33 = vcvt.s32.f32 %v529_v30 }
  0x10   : > { %v1339_v21 = vld [vmem:[%s2002_s2] ss:$0 sm:$0xff] }
  0x11   : > { %v1495_v34 = vcvt.s32.f32 %v525_v31  ;;  %v531_v35 = vsub.f32 %v1491_v32, %v1493_v33 }
  0x12   : > { %456 = vmatpush.bf16.msra.mxu0 %v440_v10 }
  0x13   : > { %475 = vmatpush.bf16.msra.mxu1 %v463_v11  ;;  %v532_v36 = vsub.f32 %v1495_v34, %v1493_v33  ;;  %v1501_v37 = vadd.f32 16.0, %v531_v35 }
  0x15   : > { %1276 = vmatmul.msk.bf16.vlgmr.msra.gmra.mxu0 %vm2013_vm0, %v1477_v14  ;;  %v1503_v38 = vadd.f32 16.0, %v532_v36  ;;  %vm632_vm1 = vcmp.eq.f32.partialorder %v1501_v37, 4.0  ;;  %vm634_vm2 = vcmp.eq.f32.partialorder %v1501_v37, 20.0  ;;  %vm584_vm3 = vcmp.eq.f32.partialorder %v1501_v37, 2.0 }
  0x16   : > { %1277 = vmatmul.msk.bf16.vlgmr.msra.gmra.mxu1 %vm2013_vm0, %v1477_v14  ;;  %vm586_vm4 = vcmp.eq.f32.partialorder %v1501_v37, 18.0  ;;  %vm535_vm5 = vcmp.eq.f32.partialorder %v1501_v37, 0.0  ;;  %vm537_vm6 = vcmp.eq.f32.partialorder %v1501_v37, 16.0  ;;  %vm1515_vm9 = vmor %vm632_vm1, %vm634_vm2  ;;  %vm656_vm2 = vcmp.eq.f32.partialorder %v1501_v37, 5.0 }
  0x17   : > { %vm633_vm7 = vcmp.eq.f32.partialorder %v1503_v38, 4.0  ;;  %vm635_vm8 = vcmp.eq.f32.partialorder %v1503_v38, 20.0  ;;  %vm585_vm10 = vcmp.eq.f32.partialorder %v1503_v38, 2.0  ;;  %vm587_vm11 = vcmp.eq.f32.partialorder %v1503_v38, 18.0  ;;  %vm1521_vm12 = vmor %vm584_vm3, %vm586_vm4 }
  0x18   : > { %vm536_vm13 = vcmp.eq.f32.partialorder %v1503_v38, 0.0  ;;  %vm538_vm14 = vcmp.eq.f32.partialorder %v1503_v38, 16.0  ;;  %vm1527_vm15 = vmor %vm535_vm5, %vm537_vm6  ;;  %vm658_vm4 = vcmp.eq.f32.partialorder %v1501_v37, 21.0  ;;  %vm563_vm5 = vcmp.eq.f32.partialorder %v1503_v38, 17.0 }
  0x19   : > { %vm1531_vm1 = vmor %vm633_vm7, %vm635_vm8  ;;  %vm657_vm7 = vcmp.eq.f32.partialorder %v1503_v38, 5.0  ;;  %vm659_vm8 = vcmp.eq.f32.partialorder %v1503_v38, 21.0 }
  0x1a   : > { %vm1539_vm3 = vmor %vm585_vm10, %vm587_vm11  ;;  %vm609_vm10 = vcmp.eq.f32.partialorder %v1503_v38, 3.0  ;;  %vm611_vm11 = vcmp.eq.f32.partialorder %v1503_v38, 19.0 }
  0x1b   : > { %vm1548_vm6 = vmor %vm536_vm13, %vm538_vm14  ;;  %vm561_vm14 = vcmp.eq.f32.partialorder %v1503_v38, 1.0 }
  0x1c   : > { %vm1566_vm13 = vmor %vm656_vm2, %vm658_vm4  ;;  %vm2034_vm4 = vcmp.eq.f32.partialorder %v1501_v37, 3.0 }
  0x1d   : > { %vm1587_vm2 = vmor %vm657_vm7, %vm659_vm8  ;;  %vm728_vm7 = vcmp.eq.f32.partialorder %v1501_v37, 8.0  ;;  %vm730_vm8 = vcmp.eq.f32.partialorder %v1501_v37, 24.0 }
  0x92   : > { %v458_v16 = vpop.f32.mrf.mxu0 }
  0x93   : > { %v477_v15 = vpop.f32.mrf.mxu1  ;;  %v459_v25 = vadd.f32 %v1339_v21, %v458_v16 }
  0x94   : > { %v478_v19 = vadd.f32 %v1340_v17, %v477_v15 }
  0x9a   : > { %v460_v23 = vpop.f32.mrf.mxu0 }
  0x9b   : > { %v479_v18 = vpop.f32.mrf.mxu1  ;;  %v461_v26 = vadd.f32 %v1339_v21, %v460_v23 }
  0x9c   : > { %v480_v20 = vadd.f32 %v1340_v17, %v479_v18 }
  0x9d   : > { %v501_v27 = vpack.c.bf16 %v461_v26, %v459_v25 }
  0x9e   : > { %v502_v22 = vpack.c.bf16 %v480_v20, %v478_v19 }
  0xa0   : > { %v507_v24 = vsel %vm2013_vm0, %v502_v22, 0 }
  0xa1   : > { %516 = vmatpush.bf16.xpose.msra.mxu3 %v507_v24 }
  0xa8   : > { %1279 = vmatmul.msk.bf16.vlgmr.msra.gmra.mxu3 %vm2013_vm0, %v501_v27  ;;  %vm543_vm0 = vcmask 130048  }
 0x12b   : > { %v1509_v39 = vpop.f32.mrf.mxu3 }
 0x12c   : > { %v638_v44 = vsel %vm1515_vm9, %v1509_v39, 0.0  ;;  %v590_v46 = vsel %vm1521_vm12, %v1509_v39, 0.0  ;;  %vm610_vm9 = vcmp.eq.f32.partialorder %v1501_v37, 19.0  ;;  %v541_v48 = vsel %vm1527_vm15, %v1509_v39, 0.0 }
 0x12d   : > { %vm560_vm12 = vcmp.eq.f32.partialorder %v1501_v37, 1.0  ;;  %v640_v50 = vsel %vm543_vm0, %v638_v44, 0.0  ;;  %vm562_vm15 = vcmp.eq.f32.partialorder %v1501_v37, 17.0  ;;  %v592_v54 = vsel %vm543_vm0, %v590_v46, 0.0 }
 0x12e   : > { %v544_v59 = vsel %vm543_vm0, %v541_v48, 0.0  ;;  %v662_v7 = vsel %vm1566_vm13, %v1509_v39, 0.0  ;;  %vm683_vm13 = vcmp.eq.f32.partialorder %v1503_v38, 22.0 }
 0x12f   : > { %v664_v16 = vsel %vm543_vm0, %v662_v7, 0.0 }
 0x133   : > { %v1561_v49 = vpop.f32.mrf.mxu3 }
 0x134   : > { %v639_v52 = vsel %vm1531_vm1, %v1561_v49, 0.0  ;;  %v591_v53 = vsel %vm1539_vm3, %v1561_v49, 0.0  ;;  %v542_v55 = vsel %vm1548_vm6, %v1561_v49, 0.0  ;;  %vm1599_vm1 = vmor %vm609_vm10, %vm611_vm11  ;;  %v663_v3 = vsel %vm1587_vm2, %v1561_v49, 0.0 }
 0x135   : > { %v641_v57 = vsel %vm543_vm0, %v639_v52, 0.0  ;;  %v593_v58 = vsel %vm543_vm0, %v591_v53, 0.0  ;;  %v545_v60 = vsel %vm543_vm0, %v542_v55, 0.0  ;;  %vm1605_vm3 = vmor %vm561_vm14, %vm563_vm5  ;;  %v615_v4 = vsel %vm1599_vm1, %v1561_v49, 0.0 }
 0x136   : > { %v642_v62 = vadd.f32 %v641_v57, %v640_v50  ;;  %v594_v63 = vadd.f32 %v593_v58, %v592_v54  ;;  %v546_v0 = vadd.f32 %v545_v60, %v544_v59  ;;  %vm1613_vm6 = vmor %vm2034_vm4, %vm610_vm9  ;;  %v567_v6 = vsel %vm1605_vm3, %v1561_v49, 0.0 }
 0x137   : > { %vm1627_vm5 = vmor %vm560_vm12, %vm562_vm15  ;;  %vm729_vm9 = vcmp.eq.f32.partialorder %v1503_v38, 8.0  ;;  %vm731_vm10 = vcmp.eq.f32.partialorder %v1503_v38, 24.0  ;;  %vm705_vm11 = vcmp.eq.f32.partialorder %v1503_v38, 7.0  ;;  %v614_v8 = vsel %vm1613_vm6, %v1509_v39, 0.0 }
 0x138   : > { %643 = vadd.xlane.f32.xlu2 %v642_v62  ;;  %595 = vadd.xlane.f32.xlu1 %v594_v63  ;;  %vm707_vm12 = vcmp.eq.f32.partialorder %v1503_v38, 23.0  ;;  %vm681_vm14 = vcmp.eq.f32.partialorder %v1503_v38, 6.0  ;;  %v665_v9 = vsel %vm543_vm0, %v663_v3, 0.0  ;;  %v617_v10 = vsel %vm543_vm0, %v615_v4, 0.0  ;;  %vm1652_vm15 = vmor %vm728_vm7, %vm730_vm8 }
 0x139   : > { %547 = vadd.xlane.f32.xlu0 %v546_v0  ;;  %v566_v11 = vsel %vm1627_vm5, %v1509_v39, 0.0  ;;  %v569_v13 = vsel %vm543_vm0, %v567_v6, 0.0  ;;  %vm1658_vm2 = vmor %vm729_vm9, %vm731_vm10  ;;  %vm704_vm1 = vcmp.eq.f32.partialorder %v1501_v37, 7.0  ;;  %vm706_vm3 = vcmp.eq.f32.partialorder %v1501_v37, 23.0 }
 0x13a   : > { %v616_v17 = vsel %vm543_vm0, %v614_v8, 0.0  ;;  %vm1668_vm4 = vmor %vm705_vm11, %vm707_vm12  ;;  %vm680_vm6 = vcmp.eq.f32.partialorder %v1501_v37, 6.0  ;;  %vm682_vm5 = vcmp.eq.f32.partialorder %v1501_v37, 22.0  ;;  %v666_v19 = vadd.f32 %v665_v9, %v664_v16 }
 0x13b   : > { %v618_v20 = vadd.f32 %v617_v10, %v616_v17  ;;  %v568_v21 = vsel %vm543_vm0, %v566_v11, 0.0  ;;  %vm1677_vm7 = vmor %vm681_vm14, %vm683_vm13  ;;  %v735_v25 = vsel %vm1658_vm2, %v1561_v49, 0.0  ;;  %v711_v26 = vsel %vm1668_vm4, %v1561_v49, 0.0 }
 0x13c   : > { %v570_v23 = vadd.f32 %v569_v13, %v568_v21  ;;  %vm1681_vm8 = vmor %vm704_vm1, %vm706_vm3  ;;  %vm800_vm10 = vcmp.eq.f32.partialorder %v1501_v37, 11.0  ;;  %vm802_vm11 = vcmp.eq.f32.partialorder %v1501_v37, 27.0  ;;  %v687_v28 = vsel %vm1677_vm7, %v1561_v49, 0.0 }
 0x13d   : > { %vm1691_vm9 = vmor %vm680_vm6, %vm682_vm5  ;;  %vm801_vm12 = vcmp.eq.f32.partialorder %v1503_v38, 11.0  ;;  %vm803_vm14 = vcmp.eq.f32.partialorder %v1503_v38, 27.0  ;;  %vm777_vm13 = vcmp.eq.f32.partialorder %v1503_v38, 10.0  ;;  %v734_v29 = vsel %vm1652_vm15, %v1509_v39, 0.0 }
 0x13e   : > { %v710_v30 = vsel %vm1681_vm8, %v1509_v39, 0.0  ;;  %vm779_vm2 = vcmp.eq.f32.partialorder %v1503_v38, 26.0  ;;  %vm753_vm1 = vcmp.eq.f32.partialorder %v1503_v38, 9.0  ;;  %v737_v31 = vsel %vm543_vm0, %v735_v25, 0.0  ;;  %vm1716_vm3 = vmor %vm800_vm10, %vm802_vm11 }
 0x13f   : > { %v713_v35 = vsel %vm543_vm0, %v711_v26, 0.0  ;;  %v686_v36 = vsel %vm1691_vm9, %v1509_v39, 0.0  ;;  %vm755_vm15 = vcmp.eq.f32.partialorder %v1503_v38, 25.0  ;;  %v689_v41 = vsel %vm543_vm0, %v687_v28, 0.0  ;;  %vm1722_vm4 = vmor %vm801_vm12, %vm803_vm14 }
 0x140   : > { %667 = vadd.xlane.f32.xlu2 %v666_v19  ;;  %619 = vadd.xlane.f32.xlu1 %v618_v20  ;;  %vm776_vm6 = vcmp.eq.f32.partialorder %v1501_v37, 10.0  ;;  %vm778_vm5 = vcmp.eq.f32.partialorder %v1501_v37, 26.0  ;;  %v736_v43 = vsel %vm543_vm0, %v734_v29, 0.0  ;;  %v712_v44 = vsel %vm543_vm0, %v710_v30, 0.0  ;;  %vm1732_vm7 = vmor %vm777_vm13, %vm779_vm2 }
 0x141   : > { %571 = vadd.xlane.f32.xlu0 %v570_v23  ;;  %vm752_vm8 = vcmp.eq.f32.partialorder %v1501_v37, 9.0  ;;  %vm754_vm9 = vcmp.eq.f32.partialorder %v1501_v37, 25.0  ;;  %v738_v46 = vadd.f32 %v737_v31, %v736_v43  ;;  %v714_v47 = vadd.f32 %v713_v35, %v712_v44  ;;  %vm1741_vm10 = vmor %vm753_vm1, %vm755_vm15 }
 0x142   : > { %v688_v48 = vsel %vm543_vm0, %v686_v36, 0.0  ;;  %vm1745_vm11 = vmor %vm776_vm6, %vm778_vm5  ;;  %v807_v53 = vsel %vm1722_vm4, %v1561_v49, 0.0  ;;  %v783_v54 = vsel %vm1732_vm7, %v1561_v49, 0.0  ;;  %vm872_vm14 = vcmp.eq.f32.partialorder %v1501_v37, 14.0 }
 0x143   : > { %v690_v51 = vadd.f32 %v689_v41, %v688_v48  ;;  %vm1755_vm12 = vmor %vm752_vm8, %vm754_vm9  ;;  %vm874_vm13 = vcmp.eq.f32.partialorder %v1501_v37, 30.0  ;;  %v759_v56 = vsel %vm1741_vm10, %v1561_v49, 0.0  ;;  %vm873_vm2 = vcmp.eq.f32.partialorder %v1503_v38, 14.0 }
 0x144   : > { %vm875_vm1 = vcmp.eq.f32.partialorder %v1503_v38, 30.0  ;;  %vm849_vm15 = vcmp.eq.f32.partialorder %v1503_v38, 13.0  ;;  %v806_v57 = vsel %vm1716_vm3, %v1509_v39, 0.0  ;;  %v782_v58 = vsel %vm1745_vm11, %v1509_v39, 0.0  ;;  %vm1780_vm5 = vmor %vm872_vm14, %vm874_vm13 }
 0x145   : > { %vm851_vm4 = vcmp.eq.f32.partialorder %v1503_v38, 29.0  ;;  %vm825_vm6 = vcmp.eq.f32.partialorder %v1503_v38, 12.0  ;;  %v809_v59 = vsel %vm543_vm0, %v807_v53, 0.0  ;;  %v785_v60 = vsel %vm543_vm0, %v783_v54, 0.0  ;;  %vm1786_vm7 = vmor %vm873_vm2, %vm875_vm1 }
 0x146   : > { %v758_v61 = vsel %vm1755_vm12, %v1509_v39, 0.0  ;;  %vm827_vm3 = vcmp.eq.f32.partialorder %v1503_v38, 28.0  ;;  %v761_v63 = vsel %vm543_vm0, %v759_v56, 0.0  ;;  %vm848_vm8 = vcmp.eq.f32.partialorder %v1501_v37, 13.0  ;;  %vm1796_vm10 = vmor %vm849_vm15, %vm851_vm4 }
 0x147   : > { %vm850_vm9 = vcmp.eq.f32.partialorder %v1501_v37, 29.0  ;;  %v808_v1 = vsel %vm543_vm0, %v806_v57, 0.0  ;;  %v784_v2 = vsel %vm543_vm0, %v782_v58, 0.0  ;;  %vm824_vm11 = vcmp.eq.f32.partialorder %v1501_v37, 12.0  ;;  %vm1805_vm14 = vmor %vm825_vm6, %vm827_vm3 }
 0x148   : > { %739 = vadd.xlane.f32.xlu2 %v738_v46  ;;  %715 = vadd.xlane.f32.xlu1 %v714_v47  ;;  %vm826_vm12 = vcmp.eq.f32.partialorder %v1501_v37, 28.0  ;;  %v810_v4 = vadd.f32 %v809_v59, %v808_v1  ;;  %v786_v5 = vadd.f32 %v785_v60, %v784_v2  ;;  %v760_v6 = vsel %vm543_vm0, %v758_v61, 0.0  ;;  %vm1809_vm13 = vmor %vm848_vm8, %vm850_vm9 }
 0x149   : > { %691 = vadd.xlane.f32.xlu0 %v690_v51  ;;  %v762_v8 = vadd.f32 %v761_v63, %v760_v6  ;;  %v879_v10 = vsel %vm1786_vm7, %v1561_v49, 0.0  ;;  %v855_v11 = vsel %vm1796_vm10, %v1561_v49, 0.0  ;;  %vm1819_vm2 = vmor %vm824_vm11, %vm826_vm12  ;;  %v831_v13 = vsel %vm1805_vm14, %v1561_v49, 0.0 }
 0x14a   : > { %v878_v15 = vsel %vm1780_vm5, %v1509_v39, 0.0  ;;  %v854_v16 = vsel %vm1809_vm13, %v1509_v39, 0.0  ;;  %vm897_vm1 = vcmp.eq.f32.partialorder %v1503_v38, 15.0  ;;  %v881_v17 = vsel %vm543_vm0, %v879_v10, 0.0 }
 0x14b   : > { %v857_v18 = vsel %vm543_vm0, %v855_v11, 0.0  ;;  %v830_v19 = vsel %vm1819_vm2, %v1509_v39, 0.0  ;;  %vm899_vm15 = vcmp.eq.f32.partialorder %v1503_v38, 31.0  ;;  %v833_v20 = vsel %vm543_vm0, %v831_v13, 0.0 }
 0x14c   : > { %v880_v21 = vsel %vm543_vm0, %v878_v15, 0.0  ;;  %v856_v22 = vsel %vm543_vm0, %v854_v16, 0.0  ;;  %vm896_vm4 = vcmp.eq.f32.partialorder %v1501_v37, 15.0  ;;  %vm898_vm6 = vcmp.eq.f32.partialorder %v1501_v37, 31.0  ;;  %vm901_vm5 = vmor %vm897_vm1, %vm899_vm15 }
 0x14d   : > { %v882_v23 = vadd.f32 %v881_v17, %v880_v21  ;;  %v858_v24 = vadd.f32 %v857_v18, %v856_v22  ;;  %v832_v25 = vsel %vm543_vm0, %v830_v19, 0.0  ;;  %vm900_vm3 = vmor %vm896_vm4, %vm898_vm6  ;;  %v903_v38 = vsel %vm901_vm5, %v1561_v49, 0.0 }
 0x14e   : > { %v834_v26 = vadd.f32 %v833_v20, %v832_v25  ;;  %v902_v27 = vsel %vm900_vm3, %v1509_v39, 0.0  ;;  %v905_v28 = vsel %vm543_vm0, %v903_v38, 0.0  ;;  %vm556_vm7 = vcmp.eq.f32.partialorder %v1493_v33, 0.0 }
 0x14f   : > { %v904_v29 = vsel %vm543_vm0, %v902_v27, 0.0  ;;  %vm580_vm8 = vcmp.eq.f32.partialorder %v1493_v33, 1.0  ;;  %vm604_vm9 = vcmp.eq.f32.partialorder %v1493_v33, 2.0  ;;  %vm628_vm10 = vcmp.eq.f32.partialorder %v1493_v33, 3.0 }
 0x150   : > { %811 = vadd.xlane.f32.xlu2 %v810_v4  ;;  %787 = vadd.xlane.f32.xlu1 %v786_v5  ;;  %v906_v30 = vadd.f32 %v905_v28, %v904_v29  ;;  %vm652_vm11 = vcmp.eq.f32.partialorder %v1493_v33, 4.0  ;;  %vm676_vm12 = vcmp.eq.f32.partialorder %v1493_v33, 5.0  ;;  %vm700_vm14 = vcmp.eq.f32.partialorder %v1493_v33, 6.0 }
 0x151   : > { %763 = vadd.xlane.f32.xlu0 %v762_v8  ;;  %vm724_vm13 = vcmp.eq.f32.partialorder %v1493_v33, 7.0  ;;  %vm748_vm2 = vcmp.eq.f32.partialorder %v1493_v33, 8.0  ;;  %vm772_vm1 = vcmp.eq.f32.partialorder %v1493_v33, 9.0  ;;  %vm796_vm15 = vcmp.eq.f32.partialorder %v1493_v33, 10.0 }
 0x152   : > { %vm820_vm4 = vcmp.eq.f32.partialorder %v1493_v33, 11.0  ;;  %vm844_vm6 = vcmp.eq.f32.partialorder %v1493_v33, 12.0  ;;  %vm868_vm5 = vcmp.eq.f32.partialorder %v1493_v33, 13.0  ;;  %vm892_vm3 = vcmp.eq.f32.partialorder %v1493_v33, 14.0 }
 0x158   : > { %883 = vadd.xlane.f32.xlu2 %v882_v23  ;;  %859 = vadd.xlane.f32.xlu1 %v858_v24 }
 0x159   : > { %835 = vadd.xlane.f32.xlu0 %v834_v26 }
 0x161   : > { %907 = vadd.xlane.f32.xlu0 %v906_v30 }
 0x1ab   : > { %v644_v37 = vpop.xlane.xlu2 %643  ;;  %v596_v31 = vpop.xlane.xlu1 %595 }
 0x1ac   : > { %v597_v35 = vrot.slane %v596_v31, 4  ;;  %v548_v36 = vpop.xlane.xlu0 %547  ;;  %v645_v41 = vrot.slane %v644_v37, 4 }
 0x1ad   : > { %v549_v40 = vrot.slane %v548_v36, 4 }
 0x1ae   : > { %v598_v43 = vadd.f32 %v597_v35, %v596_v31  ;;  %v646_v45 = vadd.f32 %v645_v41, %v644_v37 }
 0x1af   : > { %v550_v42 = vadd.f32 %v549_v40, %v548_v36 }
 0x1b0   : > { %v599_v39 = vrot.slane %v598_v43, 2  ;;  %v647_v54 = vrot.slane %v646_v45, 2 }
 0x1b1   : > { %v551_v44 = vrot.slane %v550_v42, 2 }
 0x1b2   : > { %v600_v61 = vadd.f32 %v599_v39, %v598_v43  ;;  %v648_v0 = vadd.f32 %v647_v54, %v646_v45 }
 0x1b3   : > { %v668_v46 = vpop.xlane.xlu2 %667  ;;  %v620_v49 = vpop.xlane.xlu1 %619  ;;  %v552_v47 = vadd.f32 %v551_v44, %v550_v42 }
 0x1b4   : > { %v669_v48 = vrot.slane %v668_v46, 4  ;;  %v621_v50 = vrot.slane %v620_v49, 4  ;;  %v572_v51 = vpop.xlane.xlu0 %571  ;;  %v601_v8 = vrot.slane %v600_v61, 1  ;;  %v649_v16 = vrot.slane %v648_v0, 1 }
 0x1b5   : > { %v573_v52 = vrot.slane %v572_v51, 4  ;;  %v553_v53 = vrot.slane %v552_v47, 1 }
 0x1b6   : > { %v670_v55 = vadd.f32 %v669_v48, %v668_v46  ;;  %v622_v56 = vadd.f32 %v621_v50, %v620_v49  ;;  %v602_v22 = vadd.f32 %v601_v8, %v600_v61  ;;  %v650_v25 = vadd.f32 %v649_v16, %v648_v0 }
 0x1b7   : > { %v574_v57 = vadd.f32 %v573_v52, %v572_v51  ;;  %v554_v58 = vadd.f32 %v553_v53, %v552_v47 }
 0x1b8   : > { %v671_v59 = vrot.slane %v670_v55, 2  ;;  %v623_v60 = vrot.slane %v622_v56, 2 }
 0x1b9   : > { %v575_v62 = vrot.slane %v574_v57, 2  ;;  %1290 = vpush %v554_v58 }
 0x1ba   : > { %v624_v63 = vadd.f32 %v623_v60, %v622_v56  ;;  %v672_v1 = vadd.f32 %v671_v59, %v670_v55 }
 0x1bb   : > { %v740_v2 = vpop.xlane.xlu2 %739  ;;  %v716_v3 = vpop.xlane.xlu1 %715  ;;  %v576_v4 = vadd.f32 %v575_v62, %v574_v57 }
 0x1bc   : > { %v741_v5 = vrot.slane %v740_v2, 4  ;;  %v717_v6 = vrot.slane %v716_v3, 4  ;;  %v692_v7 = vpop.xlane.xlu0 %691  ;;  %v625_v9 = vrot.slane %v624_v63, 1  ;;  %v673_v12 = vrot.slane %v672_v1, 1 }
 0x1bd   : > { %v693_v10 = vrot.slane %v692_v7, 4  ;;  %v577_v11 = vrot.slane %v576_v4, 1 }
 0x1be   : > { %v742_v13 = vadd.f32 %v741_v5, %v740_v2  ;;  %v718_v15 = vadd.f32 %v717_v6, %v716_v3  ;;  %v626_v19 = vadd.f32 %v625_v9, %v624_v63  ;;  %v674_v24 = vadd.f32 %v673_v12, %v672_v1 }
 0x1bf   : > { %v694_v17 = vadd.f32 %v693_v10, %v692_v7  ;;  %v578_v18 = vadd.f32 %v577_v11, %v576_v4 }
 0x1c0   : > { %v743_v20 = vrot.slane %v742_v13, 2  ;;  %v719_v21 = vrot.slane %v718_v15, 2 }
 0x1c1   : > { %v695_v23 = vrot.slane %v694_v17, 2  ;;  %1292 = vpush %v578_v18 }
 0x1c2   : > { %1294 = vpush %v602_v22  ;;  %v720_v26 = vadd.f32 %v719_v21, %v718_v15  ;;  %v744_v38 = vadd.f32 %v743_v20, %v742_v13 }
 0x1c3   : > { %1296 = vpush %v626_v19  ;;  %v812_v27 = vpop.xlane.xlu2 %811  ;;  %v788_v28 = vpop.xlane.xlu1 %787  ;;  %v696_v29 = vadd.f32 %v695_v23, %v694_v17 }
 0x1c4   : > { %1298 = vpush %v650_v25  ;;  %v813_v30 = vrot.slane %v812_v27, 4  ;;  %v789_v37 = vrot.slane %v788_v28, 4  ;;  %v764_v31 = vpop.xlane.xlu0 %763  ;;  %v721_v35 = vrot.slane %v720_v26, 1  ;;  %v745_v36 = vrot.slane %v744_v38, 1 }
 0x1c5   : > { %1300 = vpush %v674_v24  ;;  %v765_v40 = vrot.slane %v764_v31, 4  ;;  %v697_v41 = vrot.slane %v696_v29, 1 }
 0x1c6   : > { %v814_v42 = vadd.f32 %v813_v30, %v812_v27  ;;  %v790_v43 = vadd.f32 %v789_v37, %v788_v28  ;;  %v722_v44 = vadd.f32 %v721_v35, %v720_v26  ;;  %v746_v49 = vadd.f32 %v745_v36, %v744_v38 }
 0x1c7   : > { %v766_v45 = vadd.f32 %v765_v40, %v764_v31  ;;  %v698_v46 = vadd.f32 %v697_v41, %v696_v29 }
 0x1c8   : > { %v815_v47 = vrot.slane %v814_v42, 2  ;;  %v791_v39 = vrot.slane %v790_v43, 2 }
 0x1c9   : > { %v767_v48 = vrot.slane %v766_v45, 2  ;;  %1302 = vpush %v698_v46 }
 0x1ca   : > { %1304 = vpush %v722_v44  ;;  %v792_v50 = vadd.f32 %v791_v39, %v790_v43  ;;  %v816_v51 = vadd.f32 %v815_v47, %v814_v42 }
 0x1cb   : > { %1306 = vpush %v746_v49  ;;  %v884_v52 = vpop.xlane.xlu2 %883  ;;  %v860_v53 = vpop.xlane.xlu1 %859  ;;  %v768_v54 = vadd.f32 %v767_v48, %v766_v45 }
 0x1cc   : > { %v885_v55 = vrot.slane %v884_v52, 4  ;;  %v861_v56 = vrot.slane %v860_v53, 4  ;;  %v836_v57 = vpop.xlane.xlu0 %835  ;;  %v793_v58 = vrot.slane %v792_v50, 1  ;;  %v817_v59 = vrot.slane %v816_v51, 1 }
 0x1cd   : > { %v837_v60 = vrot.slane %v836_v57, 4  ;;  %v769_v61 = vrot.slane %v768_v54, 1 }
 0x1ce   : > { %v886_v62 = vadd.f32 %v885_v55, %v884_v52  ;;  %v862_v63 = vadd.f32 %v861_v56, %v860_v53  ;;  %v794_v0 = vadd.f32 %v793_v58, %v792_v50  ;;  %v818_v3 = vadd.f32 %v817_v59, %v816_v51 }
 0x1cf   : > { %v838_v1 = vadd.f32 %v837_v60, %v836_v57  ;;  %v770_v2 = vadd.f32 %v769_v61, %v768_v54 }
 0x1d0   : > { %v887_v4 = vrot.slane %v886_v62, 2  ;;  %v863_v5 = vrot.slane %v862_v63, 2 }
 0x1d1   : > { %v839_v6 = vrot.slane %v838_v1, 2  ;;  %1308 = vpush %v770_v2 }
 0x1d2   : > { %1310 = vpush %v794_v0  ;;  %v864_v7 = vadd.f32 %v863_v5, %v862_v63  ;;  %v888_v8 = vadd.f32 %v887_v4, %v886_v62 }
 0x1d3   : > { %1312 = vpush %v818_v3  ;;  %v840_v9 = vadd.f32 %v839_v6, %v838_v1 }
 0x1d4   : > { %v908_v10 = vpop.xlane.xlu0 %907  ;;  %v865_v11 = vrot.slane %v864_v7, 1  ;;  %v889_v12 = vrot.slane %v888_v8, 1 }
 0x1d5   : > { %v909_v13 = vrot.slane %v908_v10, 4  ;;  %v841_v15 = vrot.slane %v840_v9, 1 }
 0x1d6   : > { %v866_v16 = vadd.f32 %v865_v11, %v864_v7  ;;  %v890_v19 = vadd.f32 %v889_v12, %v888_v8 }
 0x1d7   : > { %v910_v17 = vadd.f32 %v909_v13, %v908_v10  ;;  %v842_v18 = vadd.f32 %v841_v15, %v840_v9 }
 0x1d9   : > { %v911_v20 = vrot.slane %v910_v17, 2  ;;  %1314 = vpush %v842_v18 }
 0x1da   : > { %1316 = vpush %v866_v16 }
 0x1db   : > { %1318 = vpush %v890_v19  ;;  %v912_v21 = vadd.f32 %v911_v20, %v910_v17 }
 0x1dd   : > { %v913_v22 = vrot.slane %v912_v21, 1 }
 0x1df   : > { %v914_v23 = vadd.f32 %v913_v22, %v912_v21  ;;  %v431_v22 = vld [vmem:[%s2005_s5 + $0x10] sm:$0xff] }
 0x1e1   : > { %1320 = vpush %v914_v23  ;;  %v432_v23 = vld [vmem:[%s2005_s5 + $0x18] sm:$0xff] }
 0x1ea   : > { %s1291_s13 = spop %1290 }
 0x1eb   : > { %v557_v24 = vstv %s1291_s13 }
 0x1ec   : > { %v558_v26 = vsel %vm556_vm7, %v557_v24, 0.0  ;;  %vm916_vm7 = vcmp.eq.f32.partialorder %v1493_v33, 15.0  ;;  %v429_v24 = vld [vmem:[%s2005_s5] sm:$0xff] }
 0x1f2   : > { %s1293_s14 = spop %1292 }
 0x1f3   : > { %v581_v25 = vstv %s1293_s14  ;;  %s1295_s15 = spop %1294 }
 0x1f4   : > { %v582_v38 = vsel %vm580_vm8, %v581_v25, 0.0  ;;  %v605_v27 = vstv %s1295_s15  ;;  %s1297_s16 = spop %1296  ;;  %v483_v25 = vpack.c.bf16 %v432_v23, %v431_v22 }
 0x1f5   : > { %v583_v28 = vadd.f32 %v582_v38, %v558_v26  ;;  %v629_v29 = vstv %s1297_s16  ;;  %s1299_s17 = spop %1298  ;;  %v606_v30 = vsel %vm604_vm9, %v605_v27, 0.0  ;;  %v430_v26 = vld [vmem:[%s2005_s5 + $0x8] sm:$0xff] }
 0x1f6   : > { %s1301_s18 = spop %1300  ;;  %v653_v31 = vstv %s1299_s17  ;;  %v630_v35 = vsel %vm628_vm10, %v629_v29, 0.0  ;;  %493 = vmatpush.bf16.msra.mxu2 %v483_v25  ;;  %v482_v38 = vpack.c.bf16 %v430_v26, %v429_v24  ;;  %vm2075_vm10 = vcmask 261120   ;;  %v1357_v25 = vld [vmem:[%s1473_s26] sm:$0xff]  ;;  %s413_s17 = scalar_lea.vmem %s2012_s12, %s1288_s23 }
 0x1f7   : > { %v607_v37 = vadd.f32 %v606_v30, %v583_v28  ;;  %v677_v40 = vstv %s1301_s18  ;;  %v654_v41 = vsel %vm652_vm11, %v653_v31, 0.0 }
 0x1f8   : > { %v678_v44 = vsel %vm676_vm12, %v677_v40, 0.0 }
 0x1f9   : > { %v631_v36 = vadd.f32 %v630_v35, %v607_v37 }
 0x1fa   : > { %s1303_s19 = spop %1302  ;;  %494 = vmatpush.bf16.msra.mxu2 %v482_v38  ;;  %v1358_v38 = vld [vmem:[%s1473_s26 + $0x8] sm:$0xff] }
 0x1fb   : > { %v655_v42 = vadd.f32 %v654_v41, %v631_v36  ;;  %v701_v43 = vstv %s1303_s19  ;;  %s1305_s20 = spop %1304 }
 0x1fc   : > { %s1307_s24 = spop %1306  ;;  %v725_v46 = vstv %s1305_s20  ;;  %v702_v49 = vsel %vm700_vm14, %v701_v43, 0.0 }
 0x1fd   : > { %v679_v45 = vadd.f32 %v678_v44, %v655_v42  ;;  %v749_v39 = vstv %s1307_s24  ;;  %v726_v48 = vsel %vm724_vm13, %v725_v46, 0.0  ;;  %1278 = vmatmul.msk.bf16.vlgmr.msra.gmra.mxu2 %vm2075_vm10, %v1477_v14 }
 0x1fe   : > { %v750_v51 = vsel %vm748_vm2, %v749_v39, 0.0 }
 0x1ff   : > { %v703_v47 = vadd.f32 %v702_v49, %v679_v45 }
 0x201   : > { %v727_v50 = vadd.f32 %v726_v48, %v703_v47 }
 0x202   : > { %s1309_s25 = spop %1308 }
 0x203   : > { %v751_v52 = vadd.f32 %v750_v51, %v727_v50  ;;  %v773_v53 = vstv %s1309_s25  ;;  %s1311_s27 = spop %1310 }
 0x204   : > { %v774_v54 = vsel %vm772_vm1, %v773_v53, 0.0  ;;  %v797_v55 = vstv %s1311_s27  ;;  %s1313_s28 = spop %1312 }
 0x205   : > { %v775_v56 = vadd.f32 %v774_v54, %v751_v52  ;;  %v798_v57 = vsel %vm796_vm15, %v797_v55, 0.0  ;;  %v821_v59 = vstv %s1313_s28 }
 0x206   : > { %v822_v60 = vsel %vm820_vm4, %v821_v59, 0.0 }
 0x207   : > { %v799_v58 = vadd.f32 %v798_v57, %v775_v56 }
 0x209   : > { %v823_v61 = vadd.f32 %v822_v60, %v799_v58 }
 0x20a   : > { %s1315_s29 = spop %1314 }
 0x20b   : > { %v845_v62 = vstv %s1315_s29  ;;  %s1317_s30 = spop %1316 }
 0x20c   : > { %v846_v63 = vsel %vm844_vm6, %v845_v62, 0.0  ;;  %v869_v0 = vstv %s1317_s30  ;;  %s1319_s13 = spop %1318 }
 0x20d   : > { %v847_v1 = vadd.f32 %v846_v63, %v823_v61  ;;  %v870_v2 = vsel %vm868_vm5, %v869_v0, 0.0  ;;  %v893_v4 = vstv %s1319_s13  ;;  %v1341_v61 = vld [vmem:[%s2006_s6] ss:$0 sm:$0xff] }
 0x20e   : > { %v894_v5 = vsel %vm892_vm3, %v893_v4, 0.0 }
 0x20f   : > { %v871_v3 = vadd.f32 %v870_v2, %v847_v1 }
 0x211   : > { %v895_v6 = vadd.f32 %v894_v5, %v871_v3 }
 0x212   : > { %s1321_s14 = spop %1320 }
 0x213   : > { %v917_v7 = vstv %s1321_s14 }
 0x214   : > { %v918_v8 = vsel %vm916_vm7, %v917_v7, 0.0 }
 0x215   : > { %v919_v9 = vadd.f32 %v918_v8, %v895_v6 }
 0x217   : > { %v920_v10 = vmul.f32 0.03125, %v919_v9 }
 0x219   : > { %v921_v11 = vsel %vm543_vm0, %v920_v10, -inf }
 0x21a   : > { %922 = vmax.xlane.f32.xlu1 %v921_v11 }
 0x280   : > { %v496_v60 = vpop.f32.mrf.mxu2 }
 0x281   : > { %v497_v63 = vadd.f32 %v1341_v61, %v496_v60 }
 0x288   : > { %v498_v62 = vpop.f32.mrf.mxu2 }
 0x289   : > { %v499_v0 = vadd.f32 %v1341_v61, %v498_v62 }
 0x28b   : > { %v999_v1 = vpack.c.bf16 %v499_v0, %v497_v63 }
 0x28d   : > { %v923_v12 = vpop.xlane.xlu1 %922  ;;  %1010 = vmatpush.bf16.msrb.mxu0 %v999_v1 }
 0x28e   : > { %1322 = vpush %v923_v12 }
 0x2bf   : > { %s1323_s15 = spop %1322 }
 0x2c0   : > { %v925_v13 = vstv %s1323_s15 }
 0x2c1   : > { %vm926_vm8 = vcmp.ge.f32.partialorder %v920_v10, %v925_v13  ;;  %v946_v27 = vsub.f32 %v925_v13, %v925_v13 }
 0x2c2   : > { %v927_v15 = vsel %vm926_vm8, %v1493_v33, 16.0 }
 0x2c3   : > { %v928_v16 = vsel %vm543_vm0, %v927_v15, inf  ;;  %v947_v28 = vmul.f32 1.442695, %v946_v27  ;;  %v435_v15 = vld [vmem:[%s2007_s7 + $0x8] sm:$0xff] }
 0x2c4   : > { %929 = vmin.xlane.f32.xlu2 %v928_v16 }
 0x2c5   : > { %1343 = vpow2.f32 %v947_v28  ;;  %v417_v28 = vld [vmem:[%s2009_s9] sm:$0xff] }
 0x2cb   : > { %v1344_v36 = vpop.eup %1343 }
 0x337   : > { %v930_v17 = vpop.xlane.xlu2 %929 }
 0x338   : > { %1324 = vpush %v930_v17 }
 0x369   : > { %s1325_s16 = spop %1324 }
 0x36a   : > { %v932_v18 = vstv %s1325_s16 }
 0x36b   : > { %vm933_vm9 = vcmp.eq.f32.partialorder %v1493_v33, %v932_v18  ;;  %v953_v14 = vadd.f32 %v932_v18, %v1491_v32  ;;  %v954_v43 = vadd.f32 %v932_v18, %v1495_v34 }
 0x36c   : > { %v934_v19 = vsel %vm933_vm9, -1e+30, %v920_v10 }
 0x36d   : > { %v935_v20 = vsel %vm543_vm0, %v934_v19, -inf  ;;  %v955_v46 = vsub.f32 %v953_v14, %v1493_v33  ;;  %v956_v47 = vsub.f32 %v954_v43, %v1493_v33 }
 0x36e   : > { %936 = vmax.xlane.f32.xlu0 %v935_v20 }
 0x36f   : > { %vm957_vm13 = vcmp.eq.f32.partialorder %v955_v46, 0.0  ;;  %vm959_vm2 = vcmp.eq.f32.partialorder %v955_v46, 16.0  ;;  %vm958_vm15 = vcmp.eq.f32.partialorder %v956_v47, 0.0  ;;  %vm960_vm4 = vcmp.eq.f32.partialorder %v956_v47, 16.0 }
 0x370   : > { %vm1890_vm5 = vmor %vm957_vm13, %vm959_vm2 }
 0x371   : > { %vm1894_vm3 = vmor %vm958_vm15, %vm960_vm4 }
 0x3e1   : > { %v937_v21 = vpop.xlane.xlu0 %936 }
 0x3e2   : > { %1326 = vpush %v937_v21  ;;  %v1342_v21 = vld [vmem:[%s2008_s8] ss:$0 sm:$0xff] }
 0x413   : > { %s1327_s29 = spop %1326 }
 0x414   : > { %v939_v29 = vstv %s1327_s29 }
 0x415   : > { %vm940_vm11 = vcmp.ge.f32.partialorder %v934_v19, %v939_v29  ;;  %v949_v30 = vsub.f32 %v939_v29, %v925_v13  ;;  %v434_v13 = vld [vmem:[%s2007_s7] sm:$0xff]  ;;  %v418_v29 = vld [vmem:[%s2009_s9 + $0x8] sm:$0xff] }
 0x416   : > { %v941_v37 = vsel %vm940_vm11, %v1493_v33, 16.0  ;;  %v1018_v16 = vpack.c.bf16 %v435_v15, %v434_v13  ;;  %v1167_v15 = vld [vmem:[%s2011_s11] sm:$0xff] }
 0x417   : > { %v950_v31 = vmul.f32 1.442695, %v949_v30  ;;  %v942_v35 = vsel %vm543_vm0, %v941_v37, inf  ;;  %v1934_v37 = vpack.c.bf16 %v418_v29, %v417_v28 }
 0x418   : > { %943 = vmin.xlane.f32.xlu1 %v942_v35  ;;  %v1066_v35 = vld [vmem:[%s2010_s10 + $0x18] sm:$0xff] }
 0x419   : > { %1345 = vpow2.f32 %v950_v31  ;;  %v1065_v31 = vld [vmem:[%s2010_s10 + $0x10] sm:$0xff] }
 0x41f   : > { %v1346_v40 = vpop.eup %1345 }
 0x420   : > { %v952_v41 = vadd.f32 %v1346_v40, %v1344_v36 }
 0x422   : > { %1347 = vrcp.f32 %v952_v41  ;;  %v974_v49 = vand.u32 2147483648, %v952_v41  ;;  %v972_v48 = vand.u32 2147483647, %v952_v41  ;;  %vm968_vm14 = vweird.f32 %v952_v41 }
 0x424   : > { %v975_v51 = vor.u32 1.1754944e-38, %v974_v49  ;;  %vm973_vm6 = vcmp.eq.f32.partialorder %v972_v48, 8.507059e+37 }
 0x428   : > { %v1348_v42 = vpop.eup %1347 }
 0x429   : > { %v964_v44 = vmul.f32 %v1348_v42, %v952_v41  ;;  %vm969_vm12 = vweird.f32 %v1348_v42  ;;  %v1064_v41 = vld [vmem:[%s2010_s10 + $0x8] sm:$0xff] }
 0x42a   : > { %vm970_vm1 = vmor %vm968_vm14, %vm969_vm12  ;;  %vm2080_vm14 = vcmask 261120  }
 0x42b   : > { %v965_v45 = vsub.f32 1.0, %v964_v44  ;;  %vm2081_vm13 = vmmov %vm2080_vm14 }
 0x42d   : > { %v966_v39 = vmul.f32 %v1348_v42, %v965_v45 }
 0x42f   : > { %v967_v50 = vadd.f32 %v1348_v42, %v966_v39 }
 0x431   : > { %v971_v52 = vsel %vm970_vm1, %v1348_v42, %v967_v50 }
 0x432   : > { %v976_v53 = vsel %vm973_vm6, %v975_v51, %v971_v52 }
 0x433   : > { %v977_v55 = vmul.f32 %v1344_v36, %v976_v53  ;;  %v993_v7 = vmul.f32 %v1346_v40, %v976_v53  ;;  %v1069_v36 = vpack.c.bf16 %v1066_v35, %v1065_v31  ;;  %v1063_v40 = vld [vmem:[%s2010_s10] sm:$0xff] }
 0x434   : > { %v1068_v42 = vpack.c.bf16 %v1064_v41, %v1063_v40 }
 0x435   : > { %v978_v57 = vsel %vm1890_vm5, %v977_v55, 0.0  ;;  %v979_v58 = vsel %vm1894_vm3, %v977_v55, 0.0  ;;  %1079 = vmatpush.bf16.msrb.mxu3 %v1069_v36 }
 0x439   : > { %1080 = vmatpush.bf16.msrb.mxu3 %v1068_v42 }
 0x48b   : > { %v944_v59 = vpop.xlane.xlu1 %943 }
 0x48c   : > { %1328 = vpush %v944_v59 }
 0x4bd   : > { %s1329_s14 = spop %1328 }
 0x4be   : > { %v982_v2 = vstv %s1329_s14 }
 0x4bf   : > { %v983_v3 = vadd.f32 %v982_v2, %v1491_v32  ;;  %v984_v4 = vadd.f32 %v982_v2, %v1495_v34  ;;  %v436_v32 = vld [vmem:[%s2007_s7 + $0x10] sm:$0xff] }
 0x4c1   : > { %v985_v5 = vsub.f32 %v983_v3, %v1493_v33  ;;  %v986_v6 = vsub.f32 %v984_v4, %v1493_v33  ;;  %v437_v33 = vld [vmem:[%s2007_s7 + $0x18] sm:$0xff] }
 0x4c2   : > { %v1019_v34 = vpack.c.bf16 %v437_v33, %v436_v32 }
 0x4c3   : > { %vm987_vm7 = vcmp.eq.f32.partialorder %v985_v5, 0.0  ;;  %vm988_vm8 = vcmp.eq.f32.partialorder %v986_v6, 0.0  ;;  %vm989_vm9 = vcmp.eq.f32.partialorder %v985_v5, 16.0  ;;  %vm990_vm10 = vcmp.eq.f32.partialorder %v986_v6, 16.0 }
 0x4c4   : > { %vm991_vm11 = vmor %vm987_vm7, %vm989_vm9  ;;  %1032 = vmatpush.bf16.msrb.mxu1 %v1019_v34 }
 0x4c5   : > { %vm992_vm12 = vmor %vm988_vm8, %vm990_vm10  ;;  %v994_v8 = vsel %vm991_vm11, %v993_v7, 0.0 }
 0x4c6   : > { %v995_v9 = vsel %vm992_vm12, %v993_v7, 0.0  ;;  %v996_v10 = vadd.f32 %v994_v8, %v978_v57  ;;  %vm2082_vm10 = vmmov %vm2081_vm13 }
 0x4c7   : > { %v997_v11 = vadd.f32 %v995_v9, %v979_v58  ;;  %vm2083_vm11 = vmmov %vm2082_vm10 }
 0x4c8   : > { %1033 = vmatpush.bf16.msrb.mxu1 %v1018_v16  ;;  %v1168_v16 = vld [vmem:[%s2011_s11 + $0x8] sm:$0xff]  ;;  %vm2084_vm12 = vmmov %vm2082_vm10 }
 0x4c9   : > { %v998_v12 = vpack.c.bf16 %v997_v11, %v996_v10  ;;  %v1169_v11 = vld [vmem:[%s2011_s11 + $0x10] sm:$0xff] }
 0x4cb   : > { %1280 = vmatmul.msk.bf16.vlgmr.msrb.gmra.mxu0 %vm543_vm0, %v998_v12  ;;  %v1170_v12 = vld [vmem:[%s2011_s11 + $0x18] sm:$0xff] }
 0x4cc   : > { %v1173_v34 = vpack.c.bf16 %v1170_v12, %v1169_v11 }
 0x4ce   : > { %1183 = vmatpush.bf16.msra.mxu0 %v1173_v34 }
 0x548   : > { %v1012_v17 = vpop.f32.mrf.mxu0 }
 0x550   : > { %v1014_v18 = vpop.f32.mrf.mxu0 }
 0x551   : > { %v1017_v19 = vpack.c.bf16 %v1014_v18, %v1012_v17 }
 0x553   : > { %1281 = vmatmul.msk.bf16.vlgmr.msrb.gmra.mxu1 %vm2080_vm14, %v1017_v19  ;;  %v1172_v19 = vpack.c.bf16 %v1168_v16, %v1167_v15 }
 0x555   : > { %1184 = vmatpush.bf16.msra.mxu0 %v1172_v19 }
 0x5d0   : > { %v1035_v20 = vpop.f32.mrf.mxu1 }
 0x5d1   : > { %v1036_v22 = vadd.f32 %v1342_v21, %v1035_v20 }
 0x5d3   : > { %v1040_v26 = vadd.f32 %v1357_v25, %v1036_v22 }
 0x5d8   : > { %v1037_v23 = vpop.f32.mrf.mxu1 }
 0x5d9   : > { %v1038_v24 = vadd.f32 %v1342_v21, %v1037_v23 }
 0x5db   : > { %v1041_v27 = vadd.f32 %v1358_v38, %v1038_v24 }
 0x5dd   : > { %v1043_v30 = vpack.c.bf16 %v1041_v27, %v1040_v26 }
 0x5df   : > { %1054 = vmatpush.bf16.msrb.mxu2 %v1043_v30 }
 0x5e2   : > { %1282 = vmatmul.msk.bf16.vlgmr.msrb.gmra.mxu2 %vm543_vm0, %v1934_v37 }
 0x665   : > { %v1056_v14 = vpop.f32.mrf.mxu2 }
 0x666   : > { %v1950_v44 = vsub.f32 %v1040_v26, %v1056_v14 }
 0x66d   : > { %v1058_v43 = vpop.f32.mrf.mxu2 }
 0x66e   : > { %v1952_v45 = vsub.f32 %v1041_v27, %v1058_v43 }
 0x670   : > { %v1067_v46 = vpack.c.bf16 %v1952_v45, %v1950_v44 }
 0x672   : > { %1283 = vmatmul.msk.bf16.vlgmr.msrb.gmra.mxu3 %vm2081_vm13, %v1067_v46 }
 0x6f5   : > { %v1957_v49 = vpop.f32.mrf.mxu3 }
 0x6f6   : > { %v1960_v47 = vmul.f32 0.70710677, %v1957_v49 }
 0x6f8   : > { %v1095_v39 = vand.u32 2147483647, %v1960_v47  ;;  %vm1091_vm8 = vcmp.lt.f32.partialorder %v1960_v47, 0.0 }
 0x6fa   : > { %v1097_v48 = vmul.f32 0.3275911, %v1095_v39  ;;  %v1149_v5 = vmul.f32 %v1095_v39, %v1095_v39 }
 0x6fc   : > { %v1099_v50 = vadd.f32 1.0, %v1097_v48  ;;  %v1151_v33 = vsub.f32 0.0, %v1149_v5 }
 0x6fd   : > { %v1963_v51 = vpop.f32.mrf.mxu3 }
 0x6fe   : > { %1349 = vrcp.f32 %v1099_v50  ;;  %v1966_v52 = vmul.f32 0.70710677, %v1963_v51  ;;  %v1112_v59 = vand.u32 2147483648, %v1099_v50  ;;  %v1110_v61 = vand.u32 2147483647, %v1099_v50 }
 0x6ff   : > { %vm1106_vm1 = vweird.f32 %v1099_v50  ;;  %v1153_v22 = vmul.f32 1.442695, %v1151_v33 }
 0x700   : > { %v1096_v53 = vand.u32 2147483647, %v1966_v52  ;;  %v1113_v63 = vor.u32 1.1754944e-38, %v1112_v59  ;;  %vm1111_vm4 = vcmp.eq.f32.partialorder %v1110_v61, 8.507059e+37  ;;  %vm1092_vm9 = vcmp.lt.f32.partialorder %v1966_v52, 0.0 }
 0x701   : > { %v1087_v61 = vmul.f32 0.5, %v1957_v49 }
 0x702   : > { %v1098_v54 = vmul.f32 0.3275911, %v1096_v53  ;;  %v1150_v24 = vmul.f32 %v1096_v53, %v1096_v53  ;;  %v1367_v53 = vmov 1.0  }
 0x704   : > { %v1350_v55 = vpop.eup %1349  ;;  %v1100_v57 = vadd.f32 1.0, %v1098_v54  ;;  %v1152_v28 = vsub.f32 0.0, %v1150_v24  ;;  %v1093_v54 = vsel %vm1091_vm8, -1.0, %v1367_v53 }
 0x705   : > { %v1102_v56 = vmul.f32 %v1350_v55, %v1099_v50  ;;  %vm1107_vm2 = vweird.f32 %v1350_v55 }
 0x706   : > { %1351 = vrcp.f32 %v1100_v57  ;;  %vm1108_vm15 = vmor %vm1106_vm1, %vm1107_vm2  ;;  %v1127_v8 = vand.u32 2147483648, %v1100_v57  ;;  %v1125_v10 = vand.u32 2147483647, %v1100_v57  ;;  %vm1121_vm5 = vweird.f32 %v1100_v57 }
 0x707   : > { %v1103_v58 = vsub.f32 1.0, %v1102_v56  ;;  %1353 = vpow2.f32 %v1153_v22  ;;  %v1155_v36 = vmul.f32 1.442695, %v1152_v28 }
 0x708   : > { %v1128_v18 = vor.u32 1.1754944e-38, %v1127_v8  ;;  %vm1126_vm7 = vcmp.eq.f32.partialorder %v1125_v10, 8.507059e+37 }
 0x709   : > { %v1104_v60 = vmul.f32 %v1350_v55, %v1103_v58  ;;  %1355 = vpow2.f32 %v1155_v36  ;;  %v1094_v58 = vsel %vm1092_vm9, -1.0, %v1367_v53 }
 0x70b   : > { %v1105_v62 = vadd.f32 %v1350_v55, %v1104_v60 }
 0x70c   : > { %v1352_v0 = vpop.eup %1351 }
 0x70d   : > { %v1109_v1 = vsel %vm1108_vm15, %v1350_v55, %v1105_v62  ;;  %v1117_v3 = vmul.f32 %v1352_v0, %v1100_v57  ;;  %vm1122_vm6 = vweird.f32 %v1352_v0  ;;  %v1354_v41 = vpop.eup %1353  ;;  %v1088_v62 = vmul.f32 0.5, %v1963_v51 }
 0x70e   : > { %v1114_v2 = vsel %vm1111_vm4, %v1113_v63, %v1109_v1  ;;  %vm1123_vm3 = vmor %vm1121_vm5, %vm1122_vm6 }
 0x70f   : > { %v1131_v4 = vmul.f32 1.0614054, %v1114_v2  ;;  %v1118_v6 = vsub.f32 1.0, %v1117_v3  ;;  %v1356_v50 = vpop.eup %1355 }
 0x711   : > { %v1133_v7 = vadd.f32 -1.4531521, %v1131_v4  ;;  %v1119_v9 = vmul.f32 %v1352_v0, %v1118_v6 }
 0x713   : > { %v1135_v32 = vmul.f32 %v1133_v7, %v1114_v2  ;;  %v1120_v13 = vadd.f32 %v1352_v0, %v1119_v9 }
 0x715   : > { %v1137_v17 = vadd.f32 1.4214138, %v1135_v32  ;;  %v1124_v20 = vsel %vm1123_vm3, %v1352_v0, %v1120_v13 }
 0x716   : > { %v1129_v23 = vsel %vm1126_vm7, %v1128_v18, %v1124_v20 }
 0x717   : > { %v1139_v21 = vmul.f32 %v1137_v17, %v1114_v2  ;;  %v1132_v25 = vmul.f32 1.0614054, %v1129_v23 }
 0x719   : > { %v1141_v26 = vadd.f32 -0.28449672, %v1139_v21  ;;  %v1134_v38 = vadd.f32 -1.4531521, %v1132_v25 }
 0x71b   : > { %v1143_v27 = vmul.f32 %v1141_v26, %v1114_v2  ;;  %v1136_v29 = vmul.f32 %v1134_v38, %v1129_v23 }
 0x71d   : > { %v1145_v30 = vadd.f32 0.2548296, %v1143_v27  ;;  %v1138_v31 = vadd.f32 1.4214138, %v1136_v29 }
 0x71f   : > { %v1147_v35 = vmul.f32 %v1145_v30, %v1114_v2  ;;  %v1140_v40 = vmul.f32 %v1138_v31, %v1129_v23 }
 0x721   : > { %v1157_v42 = vmul.f32 %v1354_v41, %v1147_v35  ;;  %v1142_v14 = vadd.f32 -0.28449672, %v1140_v40 }
 0x723   : > { %v1144_v43 = vmul.f32 %v1142_v14, %v1129_v23  ;;  %v1159_v46 = vsub.f32 1.0, %v1157_v42 }
 0x725   : > { %v1146_v39 = vadd.f32 0.2548296, %v1144_v43  ;;  %v1161_v55 = vmul.f32 %v1159_v46, %v1093_v54 }
 0x727   : > { %v1148_v48 = vmul.f32 %v1146_v39, %v1129_v23  ;;  %v1163_v59 = vadd.f32 1.0, %v1161_v55 }
 0x729   : > { %v1158_v56 = vmul.f32 %v1356_v50, %v1148_v48  ;;  %v1165_v63 = vmul.f32 %v1163_v59, %v1087_v61 }
 0x72b   : > { %v1160_v57 = vsub.f32 1.0, %v1158_v56 }
 0x72d   : > { %v1162_v60 = vmul.f32 %v1160_v57, %v1094_v58 }
 0x72f   : > { %v1164_v47 = vadd.f32 1.0, %v1162_v60 }
 0x731   : > { %v1166_v0 = vmul.f32 %v1164_v47, %v1088_v62 }
 0x733   : > { %v1171_v1 = vpack.c.bf16 %v1166_v0, %v1165_v63 }
 0x735   : > { %1284 = vmatmul.msk.bf16.vlgmr.msra.gmra.mxu0 %vm2082_vm10, %v1171_v1 }
 0x7b2   : > { %v1186_v2 = vpop.f32.mrf.mxu0 }
 0x7b3   : > { %v1191_v52 = vadd.f32 %v1186_v2, %v1950_v44 }
 0x7ba   : > { %v1188_v3 = vpop.f32.mrf.mxu0 }
 0x7bb   : > { %v1192_v4 = vadd.f32 %v1188_v3, %v1952_v45 }
 0x7bd   : > { %v1193_v5 = vpack.c.bf16 %v1192_v4, %v1191_v52 }
 0x7bf   : > { %1201 = vmatpush.bf16.msra.mxu1 %v1193_v5 }
 0x7c2   : > { %1285 = vmatmul.msk.bf16.vlgmr.msra.gmra.mxu1 %vm543_vm0, %v1934_v37 }
 0x83f   : > { %v1203_v49 = vpop.f32.mrf.mxu1 }
 0x840   : > { %v1208_v51 = vsub.f32 %v1191_v52, %v1203_v49 }
 0x842   : > { %1210 = vst.msk [vmem:[%s413_s17] sm:$0xff] %vm2083_vm11, %v1208_v51 }
 0x847   : > { %v1205_v6 = vpop.f32.mrf.mxu1 }
 0x848   : > { %v1209_v7 = vsub.f32 %v1192_v4, %v1205_v6 }
 0x84a   : > { %1211 = vst.msk [vmem:[%s413_s17 + $0x8] sm:$0xff] %vm2084_vm12, %v1209_v7 }
 0x84b PF: > { %s22_s21 = sadd.s32 1, %s1365_s21  }
 0x84c   : > { %p19_p4 = scmp.ge.s32.totalorder %s22_s21, 4  }
 0x84e   :  { %21 = sbr.rel (!%p19_p4) target bundleno = 1 (0x1), region = 98 }

// kernel: _lambda_.17
= control target key start
LH: loop header
LB: loop body
LE: loop exit
PB: predicated region body
PF: predicated region fallthrough
CT: control target
= control target key end

     0   :  { %s581_s21 = smov 0   ;;  %s644_s0 = inlined_call_operand.vmem [shape: f32[2,16,32], index: 0, kind: input, shape index: {}]   ;;  %s645_s1 = inlined_call_operand.vmem [shape: f32[2,16,4], index: 1, kind: input, shape index: {}]   ;;  %s646_s2 = inlined_call_operand.vmem [shape: f32[1,32], index: 2, kind: input, shape index: {}]   ;;  %s647_s3 = inlined_call_operand.vmem [shape: f32[1,32], index: 3, kind: input, shape index: {}]   ;;  %s648_s4 = inlined_call_operand.vmem [shape: f32[32,4], index: 4, kind: input, shape index: {}]   ;;  %s649_s5 = inlined_call_operand.vmem [shape: f32[1,4], index: 5, kind: input, shape index: {}]   ;;  %s650_s6 = inlined_call_operand.vmem [shape: f32[2,16,4], index: 6, kind: output, shape index: {}]  }
   0x1 LB: > { %s494_s22 = sadd.s32 4294967295, %s542_s21   ;;  %p498_p0 = scmp.ge.s32.totalorder %s542_s21, 1  ;;  %s542_s21 = sphi %s581_s21, %s16_s21  }
   0x2   : > { %p222_p1 = scmp.lt.s32.totalorder %s542_s21, 3 }
   0x4   : > { %p223_p2 = pnand %p498_p0, %p222_p1 }
   0x5   : > { %p257_p3 = scmp.lt.s32.totalorder (!%p223_p2), %s494_s22, 1 }
   0x6   : > { %226 = sbr.rel (%p223_p2) target bundleno = 471 (0x1d7), region = 44 }
   0xb   : > { %s652_s22 = smov (!%p257_p3, %s494_s22), 1  ;;  %vm277_vm0 = vcmask 261120   ;;  %v544_v4 = vmov 32.0   ;;  %v394_v21 = vld [vmem:[%s648_s4 + $0x10] sm:$0xff]  ;;  %v395_v22 = vld [vmem:[%s648_s4 + $0x18] sm:$0xff]  ;;  %v392_v23 = vld [vmem:[%s648_s4] sm:$0xff] }
   0xc   : > { %s589_s23 = sshll.u32 %s652_s22, 4  ;;  %524 = vrcp.f32 %v544_v4  ;;  %v398_v24 = vpack.c.bf16 %v395_v22, %v394_v21  ;;  %v393_v25 = vld [vmem:[%s648_s4 + $0x8] sm:$0xff]  ;;  %vm424_vm15 = vcmask 31744  }
   0xd   : > { %s261_s26 = scalar_lea.vmem %s644_s0, %s589_s23  ;;  %v397_v28 = vpack.c.bf16 %v393_v25, %v392_v23  ;;  %s266_s17 = scalar_lea.vmem %s645_s1, %s589_s23 }
   0xe   : > { %v273_v0 = vld [vmem:[%s261_s26] sm:$0xff]  ;;  %v274_v2 = vld [vmem:[%s261_s26 + $0x8] sm:$0xff]  ;;  %408 = vmatpush.bf16.msra.mxu0 %v398_v24  ;;  %s271_s24 = scalar_lea.vmem %s650_s6, %s589_s23 }
   0xf   : > { %v278_v1 = vsel %vm277_vm0, %v273_v0, 0.0  ;;  %v281_v3 = vsel %vm277_vm0, %v274_v2, 0.0 }
  0x10   : > { %279 = vadd.xlane.f32.xlu0 %v278_v1 }
  0x12   : > { %v525_v5 = vpop.eup %524  ;;  %409 = vmatpush.bf16.msra.mxu0 %v397_v28 }
  0x13   : > { %v285_v6 = vmul.f32 32.0, %v525_v5  ;;  %vm289_vm1 = vweird.f32 %v525_v5 }
  0x15   : > { %v286_v7 = vsub.f32 1.0, %v285_v6 }
  0x17   : > { %v287_v8 = vmul.f32 %v525_v5, %v286_v7  ;;  %v521_v7 = vld [vmem:[%s646_s2] ss:$0 sm:$0xff] }
  0x18   : > { %282 = vadd.xlane.f32.xlu0 %v281_v3  ;;  %v545_v3 = vmov 16.0  }
  0x19   : > { %v288_v9 = vadd.f32 %v525_v5, %v287_v8 }
  0x1b   : > { %v290_v10 = vsel %vm289_vm1, %v525_v5, %v288_v9 }
  0x83   : > { %v280_v11 = vpop.xlane.xlu0 %279 }
  0x84   : > { %v291_v12 = vmul.f32 %v290_v10, %v280_v11 }
  0x86   : > { %v597_v13 = vsub.f32 %v273_v0, %v291_v12  ;;  %v522_v12 = vld [vmem:[%s647_s3] ss:$0 sm:$0xff] }
  0x88   : > { %v295_v14 = vmul.f32 %v597_v13, %v597_v13 }
  0x8a   : > { %v297_v15 = vsel %vm277_vm0, %v295_v14, 0.0 }
  0x8b   : > { %298 = vadd.xlane.f32.xlu1 %v297_v15  ;;  %v283_v16 = vpop.xlane.xlu0 %282 }
  0x8c   : > { %v292_v17 = vmul.f32 %v290_v10, %v283_v16 }
  0x8e   : > { %v602_v18 = vsub.f32 %v274_v2, %v292_v17 }
  0x90   : > { %v296_v19 = vmul.f32 %v602_v18, %v602_v18 }
  0x92   : > { %v300_v20 = vsel %vm277_vm0, %v296_v19, 0.0 }
  0x93   : > { %301 = vadd.xlane.f32.xlu1 %v300_v20 }
  0xfe   : > { %v299_v26 = vpop.xlane.xlu1 %298 }
  0xff   : > { %v303_v27 = vmul.f32 %v299_v26, %v290_v10 }
 0x101   : > { %v305_v29 = vadd.f32 1e-05, %v303_v27 }
 0x103   : > { %526 = vrsqrt.f32 %v305_v29  ;;  %vm314_vm2 = vcmp.eq.f32.partialorder %v305_v29, inf  ;;  %v317_v43 = vand.u32 2147483648, %v305_v29  ;;  %vm316_vm3 = vcmp.eq.f32.partialorder %v305_v29, 0.0 }
 0x106   : > { %v302_v30 = vpop.xlane.xlu1 %301 }
 0x107   : > { %v304_v31 = vmul.f32 %v302_v30, %v290_v10 }
 0x109   : > { %v527_v32 = vpop.eup %526  ;;  %v306_v33 = vadd.f32 1e-05, %v304_v31 }
 0x10a   : > { %v308_v34 = vmul.f32 %v527_v32, %v305_v29 }
 0x10b   : > { %528 = vrsqrt.f32 %v306_v33  ;;  %vm326_vm4 = vcmp.eq.f32.partialorder %v306_v33, inf  ;;  %v329_v50 = vand.u32 2147483648, %v306_v33  ;;  %vm328_vm5 = vcmp.eq.f32.partialorder %v306_v33, 0.0 }
 0x10c   : > { %v309_v35 = vmul.f32 %v527_v32, %v308_v34 }
 0x10e   : > { %v310_v36 = vmul.f32 0.5, %v309_v35 }
 0x110   : > { %v311_v37 = vsub.f32 1.5, %v310_v36 }
 0x111   : > { %v529_v38 = vpop.eup %528 }
 0x112   : > { %v312_v39 = vmul.f32 %v527_v32, %v311_v37  ;;  %v320_v40 = vmul.f32 %v529_v38, %v306_v33  ;;  %v390_v37 = vld [vmem:[%s266_s17] sm:$0xff] }
 0x114   : > { %v313_v41 = vmul.f32 %v312_v39, %v305_v29  ;;  %v321_v42 = vmul.f32 %v529_v38, %v320_v40 }
 0x116   : > { %v322_v44 = vmul.f32 0.5, %v321_v42  ;;  %v315_v45 = vsel %vm314_vm2, %v305_v29, %v313_v41  ;;  %v391_v42 = vld [vmem:[%s266_s17 + $0x8] sm:$0xff] }
 0x117   : > { %v318_v46 = vsel %vm316_vm3, %v317_v43, %v315_v45 }
 0x118   : > { %v323_v47 = vsub.f32 1.5, %v322_v44  ;;  %530 = vrcp.f32 %v318_v46  ;;  %v342_v56 = vand.u32 2147483648, %v318_v46  ;;  %v340_v58 = vand.u32 2147483647, %v318_v46 }
 0x119   : > { %vm336_vm7 = vweird.f32 %v318_v46 }
 0x11a   : > { %v324_v48 = vmul.f32 %v529_v38, %v323_v47  ;;  %v343_v61 = vor.u32 1.1754944e-38, %v342_v56  ;;  %vm341_vm9 = vcmp.eq.f32.partialorder %v340_v58, 8.507059e+37  ;;  %v523_v38 = vld [vmem:[%s649_s5] ss:$0 sm:$0xff] }
 0x11c   : > { %v325_v49 = vmul.f32 %v324_v48, %v306_v33 }
 0x11e   : > { %v531_v51 = vpop.eup %530  ;;  %v327_v52 = vsel %vm326_vm4, %v306_v33, %v325_v49 }
 0x11f   : > { %v330_v53 = vsel %vm328_vm5, %v329_v50, %v327_v52  ;;  %v332_v54 = vmul.f32 %v531_v51, %v318_v46  ;;  %vm337_vm6 = vweird.f32 %v531_v51 }
 0x120   : > { %532 = vrcp.f32 %v330_v53  ;;  %vm338_vm8 = vmor %vm336_vm7, %vm337_vm6  ;;  %v357_v2 = vand.u32 2147483648, %v330_v53  ;;  %v355_v6 = vand.u32 2147483647, %v330_v53  ;;  %vm351_vm11 = vweird.f32 %v330_v53 }
 0x121   : > { %v333_v55 = vsub.f32 1.0, %v332_v54  ;;  %534 = vrcp.f32 %v545_v3 }
 0x122   : > { %v358_v9 = vor.u32 1.1754944e-38, %v357_v2  ;;  %vm356_vm13 = vcmp.eq.f32.partialorder %v355_v6, 8.507059e+37 }
 0x123   : > { %v334_v57 = vmul.f32 %v531_v51, %v333_v55 }
 0x125   : > { %v335_v59 = vadd.f32 %v531_v51, %v334_v57 }
 0x126   : > { %v533_v60 = vpop.eup %532 }
 0x127   : > { %v339_v62 = vsel %vm338_vm8, %v531_v51, %v335_v59  ;;  %v347_v63 = vmul.f32 %v533_v60, %v330_v53  ;;  %vm352_vm10 = vweird.f32 %v533_v60  ;;  %v535_v14 = vpop.eup %534 }
 0x128   : > { %v344_v0 = vsel %vm341_vm9, %v343_v61, %v339_v62  ;;  %vm353_vm12 = vmor %vm351_vm11, %vm352_vm10  ;;  %v381_v19 = vmul.f32 16.0, %v535_v14  ;;  %vm385_vm14 = vweird.f32 %v535_v14 }
 0x129   : > { %v348_v1 = vsub.f32 1.0, %v347_v63  ;;  %v345_v4 = vmul.f32 %v344_v0, %v597_v13 }
 0x12a   : > { %v382_v23 = vsub.f32 1.0, %v381_v19 }
 0x12b   : > { %v349_v5 = vmul.f32 %v533_v60, %v348_v1  ;;  %v364_v11 = vmul.f32 %v521_v7, %v345_v4 }
 0x12c   : > { %v383_v26 = vmul.f32 %v535_v14, %v382_v23 }
 0x12d   : > { %v350_v8 = vadd.f32 %v533_v60, %v349_v5  ;;  %v369_v17 = vadd.f32 %v522_v12, %v364_v11 }
 0x12e   : > { %v384_v29 = vadd.f32 %v535_v14, %v383_v26 }
 0x12f   : > { %v354_v10 = vsel %vm353_vm12, %v533_v60, %v350_v8  ;;  %v371_v21 = vsel %vm277_vm0, %v369_v17, 0.0 }
 0x130   : > { %v359_v13 = vsel %vm356_vm13, %v358_v9, %v354_v10  ;;  %v386_v31 = vsel %vm385_vm14, %v535_v14, %v384_v29 }
 0x131   : > { %v360_v15 = vmul.f32 %v359_v13, %v602_v18 }
 0x133   : > { %v365_v16 = vmul.f32 %v521_v7, %v360_v15 }
 0x135   : > { %v370_v20 = vadd.f32 %v522_v12, %v365_v16 }
 0x137   : > { %v372_v22 = vsel %vm277_vm0, %v370_v20, 0.0 }
 0x138   : > { %v373_v24 = vadd.f32 %v372_v22, %v371_v21 }
 0x13a   : > { %v374_v25 = vrot.slane %v373_v24, 4 }
 0x13c   : > { %v375_v27 = vadd.f32 %v374_v25, %v373_v24 }
 0x13e   : > { %v376_v28 = vrot.slane %v375_v27, 2 }
 0x140   : > { %v377_v30 = vadd.f32 %v376_v28, %v375_v27 }
 0x142   : > { %v378_v18 = vrot.slane %v377_v30, 1 }
 0x144   : > { %v379_v32 = vadd.f32 %v378_v18, %v377_v30 }
 0x146   : > { %v387_v33 = vmul.f32 %v386_v31, %v379_v32 }
 0x148   : > { %v388_v34 = vsub.f32 %v369_v17, %v387_v33  ;;  %v389_v35 = vsub.f32 %v370_v20, %v387_v33 }
 0x14a   : > { %v396_v36 = vpack.c.bf16 %v389_v35, %v388_v34 }
 0x14c   : > { %505 = vmatmul.msk.bf16.vlgmr.msra.gmra.mxu0 %vm277_vm0, %v396_v36 }
 0x1c9   : > { %v411_v39 = vpop.f32.mrf.mxu0 }
 0x1ca   : > { %v416_v40 = vadd.f32 %v411_v39, %v390_v37 }
 0x1cc   : > { %v422_v41 = vadd.f32 %v523_v38, %v416_v40 }
 0x1ce   : > { %425 = vst.msk [vmem:[%s271_s24] sm:$0xff] %vm424_vm15, %v422_v41 }
 0x1d1   : > { %v413_v43 = vpop.f32.mrf.mxu0 }
 0x1d2   : > { %v417_v44 = vadd.f32 %v413_v43, %v391_v42 }
 0x1d4   : > { %v423_v45 = vadd.f32 %v523_v38, %v417_v44 }
 0x1d6   : > { %426 = vst.msk [vmem:[%s271_s24 + $0x8] sm:$0xff] %vm424_vm15, %v423_v45 }
 0x1d7 PF: > { %s16_s21 = sadd.s32 1, %s542_s21  }
 0x1d8   : > { %p13_p4 = scmp.ge.s32.totalorder %s16_s21, 4  }
 0x1da   :  { %15 = sbr.rel (!%p13_p4) target bundleno = 1 (0x1), region = 77 }

// kernel: _lambda_.16
= control target key start
LH: loop header
LB: loop body
LE: loop exit
PB: predicated region body
PF: predicated region fallthrough
CT: control target
= control target key end

     0   :  { %s2666_s29 = smov 0   ;;  %s3619_s0 = inlined_call_operand.vmem [shape: f32[2,16,32], index: 0, kind: input, shape index: {}]   ;;  %s3620_s1 = inlined_call_operand.vmem [shape: f32[2,16,32], index: 1, kind: input, shape index: {}]   ;;  %s3621_s2 = inlined_call_operand.vmem [shape: f32[32,32], index: 2, kind: input, shape index: {}]   ;;  %s3622_s3 = inlined_call_operand.vmem [shape: f32[1,32], index: 3, kind: input, shape index: {}]   ;;  %s3623_s4 = inlined_call_operand.vmem [shape: f32[32,32], index: 4, kind: input, shape index: {}]   ;;  %s3624_s5 = inlined_call_operand.vmem [shape: f32[1,32], index: 5, kind: input, shape index: {}]   ;;  %s3625_s6 = inlined_call_operand.vmem [shape: f32[32,32], index: 6, kind: input, shape index: {}]   ;;  %s3626_s7 = inlined_call_operand.vmem [shape: f32[1,32], index: 7, kind: input, shape index: {}]   ;;  %s3627_s8 = inlined_call_operand.vmem [shape: f32[32,32], index: 8, kind: input, shape index: {}]   ;;  %s3628_s9 = inlined_call_operand.vmem [shape: f32[1,32], index: 9, kind: input, shape index: {}]   ;;  %s3629_s10 = inlined_call_operand.vmem [shape: f32[32,32], index: 10, kind: input, shape index: {}]   ;;  %s3630_s11 = inlined_call_operand.vmem [shape: f32[1,32], index: 11, kind: input, shape index: {}]   ;;  %s3631_s12 = inlined_call_operand.vmem [shape: f32[32,32], index: 12, kind: input, shape index: {}]   ;;  %s3632_s13 = inlined_call_operand.vmem [shape: f32[1,32], index: 13, kind: input, shape index: {}]   ;;  %s3633_s14 = inlined_call_operand.vmem [shape: f32[32,32], index: 14, kind: input, shape index: {}]   ;;  %s3634_s15 = inlined_call_operand.vmem [shape: f32[1,32], index: 15, kind: input, shape index: {}]   ;;  %s3635_s16 = inlined_call_operand.vmem [shape: f32[32,32], index: 16, kind: input, shape index: {}]   ;;  %s3636_s17 = inlined_call_operand.vmem [shape: f32[1,32], index: 17, kind: input, shape index: {}]   ;;  %s3637_s18 = inlined_call_operand.vmem [shape: f32[16,16], index: 18, kind: input, shape index: {}]   ;;  %s3638_s19 = inlined_call_operand.vmem [shape: f32[32,32], index: 19, kind: input, shape index: {}]   ;;  %s3639_s20 = inlined_call_operand.vmem [shape: f32[32,32], index: 20, kind: input, shape index: {}]   ;;  %s3640_s21 = inlined_call_operand.vmem [shape: f32[32,4], index: 21, kind: input, shape index: {}]   ;;  %s3641_s22 = inlined_call_operand.vmem [shape: f32[32,4], index: 22, kind: input, shape index: {}]   ;;  %s3642_s23 = inlined_call_operand.vmem [shape: f32[32,4], index: 23, kind: input, shape index: {}]   ;;  %s3643_s24 = inlined_call_operand.vmem [shape: f32[2,16,32], index: 24, kind: output, shape index: {0}]   ;;  %s3644_s25 = inlined_call_operand.vmem [shape: f32[2,16,4], index: 25, kind: output, shape index: {1}]  }
   0x1   :  { %3700 = sst [smem:[#allocation6_spill]] %s3619_s0 }
   0x2   :  { %3701 = sst [smem:[#allocation7_spill]] %s3620_s1 }
   0x3   :  { %3702 = sst [smem:[#allocation8_spill]] %s3621_s2 }
   0x4   :  { %3703 = sst [smem:[#allocation9_spill]] %s3622_s3 }
   0x5   :  { %3704 = sst [smem:[#allocation10_spill]] %s3623_s4 }
   0x6   :  { %3705 = sst [smem:[#allocation11_spill]] %s3624_s5 }
   0x7   :  { %3706 = sst [smem:[#allocation12_spill]] %s3625_s6 }
   0x8   :  { %3707 = sst [smem:[#allocation13_spill]] %s3626_s7 }
   0x9   :  { %3708 = sst [smem:[#allocation14_spill]] %s3627_s8 }
   0xa   :  { %3709 = sst [smem:[#allocation15_spill]] %s3628_s9 }
   0xb LB: > { %s2365_s2 = sadd.s32 4294967295, %s2532_s29   ;;  %p2369_p0 = scmp.ge.s32.totalorder %s2532_s29, 1  ;;  %s2532_s29 = sphi %s2666_s29, %s36_s29  }
   0xc   : > { %p700_p1 = scmp.lt.s32.totalorder %s2532_s29, 3 }
   0xe   : > { %p701_p2 = pnand %p2369_p0, %p700_p1 }
  0x10   : > { %704 = sbr.rel (%p701_p2) target bundleno = 4064 (0xfe0), region = 116 }
  0x15   : > { %s3710_s7 = sld [smem:[#allocation8_spill]]  ;;  %p778_p3 = scmp.lt.s32.totalorder %s2365_s2, 1  ;;  %vm3649_vm0 = vcmask 261120   ;;  %v909_v28 = vlaneseq  ;;  %v3715_v40 = vmov 0  ;;  %v3719_v42 = vmov 0 }
  0x16   : > { %s3711_s27 = sld [smem:[#allocation10_spill]]  ;;  %v3721_v43 = vmov 0  ;;  %v3723_v45 = vmov 0  ;;  %v3725_v47 = vmov 0  ;;  %v3728_v51 = vmov 0 }
  0x17   : > { %s3939_s2 = smov (!%p778_p3, %s2365_s2), 1  ;;  %s3712_s9 = sld [smem:[#allocation6_spill]]  ;;  %v910_v29 = vshrl.u32 %v909_v28, 7  ;;  %v915_v30 = vand.u32 127, %v909_v28  ;;  %v3731_v56 = vmov 0  ;;  %v3734_v61 = vmov 0 }
  0x18   : > { %s2698_s8 = sshll.u32 %s3939_s2, 4  ;;  %s3713_s6 = sld [smem:[#allocation11_spill]] }
  0x19   : > { %s3714_s26 = sld [smem:[#allocation9_spill]]  ;;  %v911_v31 = vadd.s32 8, %v910_v29  ;;  %v2722_v32 = vcvt.s32.f32 %v910_v29  ;;  %v2724_v33 = vcvt.s32.f32 %v915_v30 }
  0x1b   : > { %v807_v0 = vld [vmem:[%s3710_s7 + $0x10] sm:$0xff]  ;;  %v808_v1 = vld [vmem:[%s3710_s7 + $0x18] sm:$0xff]  ;;  %v805_v5 = vld [vmem:[%s3710_s7] sm:$0xff]  ;;  %v2726_v34 = vcvt.s32.f32 %v911_v31  ;;  %v917_v35 = vsub.f32 %v2722_v32, %v2724_v33 }
  0x1c   : > { %v812_v2 = vld [vmem:[%s3711_s27 + $0x10] sm:$0xff]  ;;  %v827_v3 = vpack.c.bf16 %v808_v1, %v807_v0  ;;  %v813_v4 = vld [vmem:[%s3711_s27 + $0x18] sm:$0xff]  ;;  %v806_v6 = vld [vmem:[%s3710_s7 + $0x8] sm:$0xff]  ;;  %v3736_v1 = vmov 0 }
  0x1d   : > { %v850_v7 = vpack.c.bf16 %v813_v4, %v812_v2  ;;  %v810_v8 = vld [vmem:[%s3711_s27] sm:$0xff]  ;;  %v811_v9 = vld [vmem:[%s3711_s27 + $0x8] sm:$0xff]  ;;  %v826_v10 = vpack.c.bf16 %v806_v6, %v805_v5  ;;  %s2704_s5 = scalar_lea.vmem %s3712_s9, %s2698_s8  ;;  %v918_v36 = vsub.f32 %v2726_v34, %v2724_v33  ;;  %v2732_v37 = vadd.f32 16.0, %v917_v35 }
  0x1e   : > { %841 = vmatpush.bf16.msra.mxu0 %v827_v3  ;;  %v849_v11 = vpack.c.bf16 %v811_v9, %v810_v8  ;;  %v799_v12 = vld [vmem:[%s2704_s5] sm:$0xff]  ;;  %v800_v13 = vld [vmem:[%s2704_s5 + $0x8] sm:$0xff]  ;;  %v3740_v2 = vmov 0  ;;  %v3744_v5 = vmov 0 }
  0x1f   : > { %860 = vmatpush.bf16.msra.mxu1 %v850_v7  ;;  %v2708_v14 = vpack.c.bf16 %v800_v13, %v799_v12  ;;  %v2497_v17 = vld [vmem:[%s3713_s6] ss:$0 sm:$0xff]  ;;  %v2734_v38 = vadd.f32 16.0, %v918_v36  ;;  %vm1018_vm1 = vcmp.eq.f32.partialorder %v2732_v37, 4.0  ;;  %vm1020_vm2 = vcmp.eq.f32.partialorder %v2732_v37, 20.0 }
  0x20   : > { %v2496_v21 = vld [vmem:[%s3714_s26] ss:$0 sm:$0xff]  ;;  %vm970_vm3 = vcmp.eq.f32.partialorder %v2732_v37, 2.0  ;;  %vm972_vm4 = vcmp.eq.f32.partialorder %v2732_v37, 18.0  ;;  %vm921_vm5 = vcmp.eq.f32.partialorder %v2732_v37, 0.0  ;;  %vm923_vm6 = vcmp.eq.f32.partialorder %v2732_v37, 16.0  ;;  %vm2746_vm9 = vmor %vm1018_vm1, %vm1020_vm2 }
  0x21   : > { %vm1019_vm7 = vcmp.eq.f32.partialorder %v2734_v38, 4.0  ;;  %vm1021_vm8 = vcmp.eq.f32.partialorder %v2734_v38, 20.0  ;;  %v3716_v40 = vsel %vm2746_vm9, 4294967295, %v3715_v40  ;;  %vm971_vm10 = vcmp.eq.f32.partialorder %v2734_v38, 2.0  ;;  %vm2752_vm12 = vmor %vm970_vm3, %vm972_vm4 }
  0x22   : > { %842 = vmatpush.bf16.msra.mxu0 %v826_v10  ;;  %vm973_vm11 = vcmp.eq.f32.partialorder %v2734_v38, 18.0  ;;  %vm922_vm13 = vcmp.eq.f32.partialorder %v2734_v38, 0.0  ;;  %vm924_vm14 = vcmp.eq.f32.partialorder %v2734_v38, 16.0  ;;  %vm2758_vm15 = vmor %vm921_vm5, %vm923_vm6  ;;  %vm1044_vm4 = vcmp.eq.f32.partialorder %v2732_v37, 21.0 }
  0x23   : > { %861 = vmatpush.bf16.msra.mxu1 %v849_v11  ;;  %v3720_v42 = vsel %vm2758_vm15, 4294967295, %v3719_v42  ;;  %vm2762_vm1 = vmor %vm1019_vm7, %vm1021_vm8  ;;  %vm1045_vm8 = vcmp.eq.f32.partialorder %v2734_v38, 21.0  ;;  %vm997_vm5 = vcmp.eq.f32.partialorder %v2734_v38, 19.0  ;;  %vm3733_vm2 = vcmp.eq.f32.partialorder %v2734_v38, 3.0 }
  0x24   : > { %v3722_v43 = vsel %vm2762_vm1, 4294967295, %v3721_v43  ;;  %vm2770_vm3 = vmor %vm971_vm10, %vm973_vm11  ;;  %vm947_vm10 = vcmp.eq.f32.partialorder %v2734_v38, 1.0  ;;  %vm949_vm11 = vcmp.eq.f32.partialorder %v2734_v38, 17.0  ;;  %v3748_v12 = vmov 0 }
  0x25   : > { %2378 = vmatmul.msk.bf16.vlgmr.msra.gmra.mxu0 %vm3649_vm0, %v2708_v14  ;;  %v3724_v45 = vsel %vm2770_vm3, 4294967295, %v3723_v45  ;;  %vm2779_vm6 = vmor %vm922_vm13, %vm924_vm14  ;;  %vm3727_vm13 = vcmp.eq.f32.partialorder %v2732_v37, 5.0 }
  0x26   : > { %2379 = vmatmul.msk.bf16.vlgmr.msra.gmra.mxu1 %vm3649_vm0, %v2708_v14  ;;  %v3726_v47 = vsel %vm2779_vm6, 4294967295, %v3725_v47  ;;  %vm2797_vm14 = vmor %vm3727_vm13, %vm1044_vm4  ;;  %vm3730_vm4 = vcmp.eq.f32.partialorder %v2734_v38, 5.0 }
  0x27   : > { %v3729_v51 = vsel %vm2797_vm14, 4294967295, %v3728_v51  ;;  %vm2818_vm13 = vmor %vm3730_vm4, %vm1045_vm8  ;;  %vm3738_vm4 = vcmp.eq.f32.partialorder %v2732_v37, 19.0 }
  0x28   : > { %v3732_v56 = vsel %vm2818_vm13, 4294967295, %v3731_v56  ;;  %vm2830_vm7 = vmor %vm3733_vm2, %vm997_vm5  ;;  %vm3742_vm2 = vcmp.eq.f32.partialorder %v2732_v37, 17.0  ;;  %vm3743_vm5 = vcmp.eq.f32.partialorder %v2732_v37, 1.0 }
  0x29   : > { %v3735_v61 = vsel %vm2830_vm7, 4294967295, %v3734_v61  ;;  %vm2836_vm8 = vmor %vm947_vm10, %vm949_vm11  ;;  %vm1116_vm11 = vcmp.eq.f32.partialorder %v2732_v37, 24.0 }
  0x2a   : > { %v3737_v1 = vsel %vm2836_vm8, 4294967295, %v3736_v1  ;;  %vm2858_vm10 = vmor %vm3743_vm5, %vm3742_vm2  ;;  %vm1093_vm2 = vcmp.eq.f32.partialorder %v2734_v38, 23.0 }
  0x2b   : > { %v3745_v5 = vsel %vm2858_vm10, 4294967295, %v3744_v5 }
  0xa2   : > { %v844_v16 = vpop.f32.mrf.mxu0 }
  0xa3   : > { %v863_v15 = vpop.f32.mrf.mxu1  ;;  %v845_v25 = vadd.f32 %v2496_v21, %v844_v16 }
  0xa4   : > { %v864_v19 = vadd.f32 %v2497_v17, %v863_v15  ;;  %v3751_v15 = vmov 0 }
  0xaa   : > { %v846_v23 = vpop.f32.mrf.mxu0 }
  0xab   : > { %v865_v18 = vpop.f32.mrf.mxu1  ;;  %v847_v26 = vadd.f32 %v2496_v21, %v846_v23 }
  0xac   : > { %v866_v20 = vadd.f32 %v2497_v17, %v865_v18  ;;  %v3756_v18 = vmov 0 }
  0xad   : > { %v887_v27 = vpack.c.bf16 %v847_v26, %v845_v25 }
  0xae   : > { %v888_v22 = vpack.c.bf16 %v866_v20, %v864_v19 }
  0xb0   : > { %v893_v24 = vsel %vm3649_vm0, %v888_v22, 0  ;;  %v3760_v22 = vmov 0 }
  0xb1   : > { %902 = vmatpush.bf16.xpose.msra.mxu3 %v893_v24  ;;  %v3762_v24 = vmov 0 }
  0xb8   : > { %2381 = vmatmul.msk.bf16.vlgmr.msra.gmra.mxu3 %vm3649_vm0, %v887_v27  ;;  %vm3650_vm0 = vcmask 130048   ;;  %v3764_v27 = vmov 0 }
 0x13b   : > { %v2740_v39 = vpop.f32.mrf.mxu3 }
 0x13c   : > { %v1024_v44 = vsel %vm2746_vm9, %v2740_v39, 0.0  ;;  %v976_v46 = vsel %vm2752_vm12, %v2740_v39, 0.0  ;;  %v927_v48 = vsel %vm2758_vm15, %v2740_v39, 0.0  ;;  %v1048_v7 = vsel %vm2797_vm14, %v2740_v39, 0.0 }
 0x13d   : > { %v1026_v50 = vsel %vm3650_vm0, %v1024_v44, 0.0  ;;  %v978_v54 = vsel %vm3650_vm0, %v976_v46, 0.0  ;;  %v930_v59 = vsel %vm3650_vm0, %v927_v48, 0.0  ;;  %v952_v11 = vsel %vm2858_vm10, %v2740_v39, 0.0 }
 0x13e   : > { %vm1069_vm14 = vcmp.eq.f32.partialorder %v2734_v38, 22.0  ;;  %vm3759_vm15 = vcmp.eq.f32.partialorder %v2734_v38, 6.0  ;;  %v3767_v44 = vmov 0  ;;  %v3770_v48 = vmov 0 }
 0x13f   : > { %vm2908_vm10 = vmor %vm3759_vm15, %vm1069_vm14  ;;  %vm1186_vm15 = vcmp.eq.f32.partialorder %v2732_v37, 11.0  ;;  %vm1188_vm14 = vcmp.eq.f32.partialorder %v2732_v37, 27.0 }
 0x140   : > { %v3761_v22 = vsel %vm2908_vm10, 4294967295, %v3760_v22 }
 0x143   : > { %v2792_v49 = vpop.f32.mrf.mxu3 }
 0x144   : > { %v1025_v52 = vsel %vm2762_vm1, %v2792_v49, 0.0  ;;  %v977_v53 = vsel %vm2770_vm3, %v2792_v49, 0.0  ;;  %v928_v55 = vsel %vm2779_vm6, %v2792_v49, 0.0  ;;  %v1049_v3 = vsel %vm2818_vm13, %v2792_v49, 0.0 }
 0x145   : > { %v1027_v57 = vsel %vm3650_vm0, %v1025_v52, 0.0  ;;  %v979_v58 = vsel %vm3650_vm0, %v977_v53, 0.0  ;;  %v931_v60 = vsel %vm3650_vm0, %v928_v55, 0.0  ;;  %vm3739_vm0 = vcmp.eq.f32.partialorder %v2732_v37, 3.0 }
 0x146   : > { %v1028_v62 = vadd.f32 %v1027_v57, %v1026_v50  ;;  %v980_v63 = vadd.f32 %v979_v58, %v978_v54  ;;  %v932_v0 = vadd.f32 %v931_v60, %v930_v59  ;;  %vm2844_vm9 = vmor %vm3739_vm0, %vm3738_vm4  ;;  %v1001_v4 = vsel %vm2830_vm7, %v2792_v49, 0.0 }
 0x147   : > { %v3741_v2 = vsel %vm2844_vm9, 4294967295, %v3740_v2  ;;  %vm1114_vm0 = vcmp.eq.f32.partialorder %v2732_v37, 8.0  ;;  %v953_v6 = vsel %vm2836_vm8, %v2792_v49, 0.0  ;;  %vm1115_vm4 = vcmp.eq.f32.partialorder %v2734_v38, 8.0 }
 0x148   : > { %1029 = vadd.xlane.f32.xlu2 %v1028_v62  ;;  %981 = vadd.xlane.f32.xlu1 %v980_v63  ;;  %vm1117_vm7 = vcmp.eq.f32.partialorder %v2734_v38, 24.0  ;;  %v1000_v8 = vsel %vm2844_vm9, %v2740_v39, 0.0  ;;  %vm3746_vm13 = vcmask 130048   ;;  %vm2883_vm1 = vmor %vm1114_vm0, %vm1116_vm11  ;;  %vm3755_vm0 = vcmp.eq.f32.partialorder %v2734_v38, 7.0 }
 0x149   : > { %933 = vadd.xlane.f32.xlu0 %v932_v0  ;;  %v1051_v9 = vsel %vm3746_vm13, %v1049_v3, 0.0  ;;  %vm3747_vm6 = vmmov %vm3746_vm13  ;;  %v3749_v12 = vsel %vm2883_vm1, 4294967295, %v3748_v12  ;;  %vm1090_vm13 = vcmp.eq.f32.partialorder %v2732_v37, 7.0  ;;  %v1073_v28 = vsel %vm2908_vm10, %v2792_v49, 0.0 }
 0x14a   : > { %v1003_v10 = vsel %vm3747_vm6, %v1001_v4, 0.0  ;;  %vm3750_vm8 = vmmov %vm3747_vm6  ;;  %vm1092_vm6 = vcmp.eq.f32.partialorder %v2732_v37, 23.0  ;;  %v1120_v29 = vsel %vm2883_vm1, %v2740_v39, 0.0  ;;  %vm1141_vm1 = vcmp.eq.f32.partialorder %v2734_v38, 25.0 }
 0x14b   : > { %v955_v13 = vsel %vm3750_vm8, %v953_v6, 0.0  ;;  %vm2889_vm9 = vmor %vm1115_vm4, %vm1117_vm7  ;;  %vm1068_vm7 = vcmp.eq.f32.partialorder %v2732_v37, 22.0  ;;  %v3775_v53 = vmov 0  ;;  %v3779_v58 = vmov 0 }
 0x14c   : > { %v3752_v15 = vsel %vm2889_vm9, 4294967295, %v3751_v15  ;;  %vm3753_vm5 = vmmov %vm3750_vm8  ;;  %vm1066_vm8 = vcmp.eq.f32.partialorder %v2732_v37, 6.0  ;;  %v1121_v25 = vsel %vm2889_vm9, %v2792_v49, 0.0  ;;  %v3781_v60 = vmov 0 }
 0x14d   : > { %v1050_v16 = vsel %vm3753_vm5, %v1048_v7, 0.0  ;;  %vm3754_vm3 = vmmov %vm3753_vm5  ;;  %vm1187_vm5 = vcmp.eq.f32.partialorder %v2734_v38, 11.0  ;;  %v3783_v0 = vmov 0 }
 0x14e   : > { %v1002_v17 = vsel %vm3754_vm3, %v1000_v8, 0.0  ;;  %vm2899_vm11 = vmor %vm3755_vm0, %vm1093_vm2  ;;  %v1052_v19 = vadd.f32 %v1051_v9, %v1050_v16  ;;  %vm1165_vm0 = vcmp.eq.f32.partialorder %v2734_v38, 26.0 }
 0x14f   : > { %v3757_v18 = vsel %vm2899_vm11, 4294967295, %v3756_v18  ;;  %v1004_v20 = vadd.f32 %v1003_v10, %v1002_v17  ;;  %vm3758_vm4 = vmmov %vm3754_vm3  ;;  %v1097_v26 = vsel %vm2899_vm11, %v2792_v49, 0.0 }
 0x150   : > { %v954_v21 = vsel %vm3758_vm4, %v952_v11, 0.0  ;;  %vm2912_vm3 = vmor %vm1090_vm13, %vm1092_vm6  ;;  %1053 = vadd.xlane.f32.xlu2 %v1052_v19  ;;  %vm1189_vm13 = vcmp.eq.f32.partialorder %v2734_v38, 27.0  ;;  %v1099_v35 = vsel %vm3758_vm4, %v1097_v26, 0.0 }
 0x151   : > { %v956_v23 = vadd.f32 %v955_v13, %v954_v21  ;;  %v3763_v24 = vsel %vm2912_vm3, 4294967295, %v3762_v24  ;;  %1005 = vadd.xlane.f32.xlu1 %v1004_v20  ;;  %vm2922_vm2 = vmor %vm1066_vm8, %vm1068_vm7  ;;  %v1096_v30 = vsel %vm2912_vm3, %v2740_v39, 0.0 }
 0x152   : > { %v3765_v27 = vsel %vm2922_vm2, 4294967295, %v3764_v27  ;;  %vm3766_vm7 = vmmov %vm3758_vm4  ;;  %v1072_v36 = vsel %vm2922_vm2, %v2740_v39, 0.0  ;;  %vm3778_vm2 = vcmp.eq.f32.partialorder %v2734_v38, 9.0 }
 0x153   : > { %957 = vadd.xlane.f32.xlu0 %v956_v23  ;;  %v1123_v31 = vsel %vm3766_vm7, %v1121_v25, 0.0  ;;  %vm2947_vm6 = vmor %vm1186_vm15, %vm1188_vm14  ;;  %vm1162_vm7 = vcmp.eq.f32.partialorder %v2732_v37, 10.0  ;;  %vm3774_vm15 = vcmp.eq.f32.partialorder %v2734_v38, 10.0 }
 0x154   : > { %v3768_v44 = vsel %vm2947_vm6, 4294967295, %v3767_v44  ;;  %vm3769_vm10 = vmmov %vm3758_vm4  ;;  %vm1164_vm4 = vcmp.eq.f32.partialorder %v2732_v37, 26.0  ;;  %v1192_v4 = vsel %vm2947_vm6, %v2740_v39, 0.0  ;;  %vm1213_vm6 = vcmp.eq.f32.partialorder %v2734_v38, 28.0 }
 0x155   : > { %v1075_v46 = vsel %vm3769_vm10, %v1073_v28, 0.0  ;;  %vm2953_vm3 = vmor %vm1187_vm5, %vm1189_vm13  ;;  %vm1140_vm5 = vcmp.eq.f32.partialorder %v2732_v37, 25.0  ;;  %v3801_v28 = vmov 0 }
 0x156   : > { %v3771_v48 = vsel %vm2953_vm3, 4294967295, %v3770_v48  ;;  %vm3772_vm8 = vmmov %vm3769_vm10  ;;  %vm1138_vm10 = vcmp.eq.f32.partialorder %v2732_v37, 9.0  ;;  %v1193_v62 = vsel %vm2953_vm3, %v2792_v49, 0.0 }
 0x157   : > { %v1122_v50 = vsel %vm3772_vm8, %v1120_v29, 0.0  ;;  %vm3773_vm11 = vmmov %vm3772_vm8 }
 0x158   : > { %v1098_v52 = vsel %vm3773_vm11, %v1096_v30, 0.0  ;;  %vm2963_vm14 = vmor %vm3774_vm15, %vm1165_vm0  ;;  %v1124_v54 = vadd.f32 %v1123_v31, %v1122_v50  ;;  %vm1237_vm15 = vcmp.eq.f32.partialorder %v2734_v38, 29.0  ;;  %v3804_v31 = vmov 0 }
 0x159   : > { %v3776_v53 = vsel %vm2963_vm14, 4294967295, %v3775_v53  ;;  %v1100_v55 = vadd.f32 %v1099_v35, %v1098_v52  ;;  %vm3777_vm13 = vmmov %vm3772_vm8  ;;  %v1169_v63 = vsel %vm2963_vm14, %v2792_v49, 0.0  ;;  %vm1259_vm8 = vcmp.eq.f32.partialorder %v2734_v38, 14.0 }
 0x15a   : > { %v1074_v57 = vsel %vm3777_vm13, %v1072_v36, 0.0  ;;  %vm2972_vm9 = vmor %vm3778_vm2, %vm1141_vm1  ;;  %1125 = vadd.xlane.f32.xlu2 %v1124_v54  ;;  %vm1258_vm1 = vcmp.eq.f32.partialorder %v2732_v37, 14.0  ;;  %vm1260_vm2 = vcmp.eq.f32.partialorder %v2732_v37, 30.0 }
 0x15b   : > { %v3780_v58 = vsel %vm2972_vm9, 4294967295, %v3779_v58  ;;  %v1076_v59 = vadd.f32 %v1075_v46, %v1074_v57  ;;  %vm2976_vm11 = vmor %vm1162_vm7, %vm1164_vm4  ;;  %1101 = vadd.xlane.f32.xlu1 %v1100_v55  ;;  %v1145_v3 = vsel %vm2972_vm9, %v2792_v49, 0.0  ;;  %vm1261_vm7 = vcmp.eq.f32.partialorder %v2734_v38, 30.0 }
 0x15c   : > { %v3782_v60 = vsel %vm2976_vm11, 4294967295, %v3781_v60  ;;  %vm2986_vm0 = vmor %vm1138_vm10, %vm1140_vm5  ;;  %v1168_v6 = vsel %vm2976_vm11, %v2740_v39, 0.0 }
 0x15d   : > { %v3784_v0 = vsel %vm2986_vm0, 4294967295, %v3783_v0  ;;  %1077 = vadd.xlane.f32.xlu0 %v1076_v59  ;;  %vm3785_vm5 = vmmov %vm3777_vm13  ;;  %v1144_v9 = vsel %vm2986_vm0, %v2740_v39, 0.0  ;;  %vm3798_vm0 = vcmp.eq.f32.partialorder %v2734_v38, 12.0 }
 0x15e   : > { %v1195_v7 = vsel %vm3785_vm5, %v1193_v62, 0.0  ;;  %vm3786_vm13 = vmmov %vm3785_vm5 }
 0x15f   : > { %v1171_v8 = vsel %vm3786_vm13, %v1169_v63, 0.0  ;;  %vm3011_vm4 = vmor %vm1258_vm1, %vm1260_vm2  ;;  %vm1236_vm13 = vcmp.eq.f32.partialorder %v2732_v37, 29.0  ;;  %vm3794_vm1 = vcmp.eq.f32.partialorder %v2734_v38, 13.0 }
 0x160   : > { %vm3789_vm9 = vmmov %vm3785_vm5  ;;  %vm1234_vm5 = vcmp.eq.f32.partialorder %v2732_v37, 13.0  ;;  %v1264_v36 = vsel %vm3011_vm4, %v2740_v39, 0.0 }
 0x161   : > { %v1147_v11 = vsel %vm3789_vm9, %v1145_v3, 0.0  ;;  %vm3017_vm11 = vmor %vm1259_vm8, %vm1261_vm7  ;;  %vm1212_vm8 = vcmp.eq.f32.partialorder %v2732_v37, 28.0 }
 0x162   : > { %vm3792_vm10 = vmmov %vm3789_vm9  ;;  %v1265_v29 = vsel %vm3017_vm11, %v2792_v49, 0.0 }
 0x163   : > { %v1194_v16 = vsel %vm3792_vm10, %v1192_v4, 0.0  ;;  %vm3793_vm14 = vmmov %vm3789_vm9  ;;  %vm1210_vm9 = vcmp.eq.f32.partialorder %v2732_v37, 12.0  ;;  %v3812_v4 = vmov 0 }
 0x164   : > { %v1170_v17 = vsel %vm3793_vm14, %v1168_v6, 0.0  ;;  %vm3027_vm2 = vmor %vm3794_vm1, %vm1237_vm15  ;;  %v1196_v20 = vadd.f32 %v1195_v7, %v1194_v16 }
 0x165   : > { %v1172_v21 = vadd.f32 %v1171_v8, %v1170_v17  ;;  %vm3797_vm7 = vmmov %vm3792_vm10  ;;  %v1241_v30 = vsel %vm3027_vm2, %v2792_v49, 0.0 }
 0x166   : > { %v1146_v23 = vsel %vm3797_vm7, %v1144_v9, 0.0  ;;  %vm3036_vm3 = vmor %vm3798_vm0, %vm1213_vm6  ;;  %1197 = vadd.xlane.f32.xlu2 %v1196_v20  ;;  %vm1283_vm6 = vcmp.eq.f32.partialorder %v2734_v38, 15.0 }
 0x167   : > { %v1148_v26 = vadd.f32 %v1147_v11, %v1146_v23  ;;  %vm3040_vm14 = vmor %vm1234_vm5, %vm1236_vm13  ;;  %1173 = vadd.xlane.f32.xlu1 %v1172_v21  ;;  %v1217_v35 = vsel %vm3036_vm3, %v2792_v49, 0.0  ;;  %vm1285_vm5 = vcmp.eq.f32.partialorder %v2734_v38, 31.0  ;;  %v3815_v38 = vmov 0 }
 0x168   : > { %v3802_v28 = vsel %vm3040_vm14, 4294967295, %v3801_v28  ;;  %vm3050_vm15 = vmor %vm1210_vm9, %vm1212_vm8  ;;  %v1240_v46 = vsel %vm3040_vm14, %v2740_v39, 0.0  ;;  %vm1282_vm8 = vcmp.eq.f32.partialorder %v2732_v37, 15.0 }
 0x169   : > { %3803 = vst [vmem:[#allocation2_spill] sm:$0xff] %v3802_v28  ;;  %v3805_v31 = vsel %vm3050_vm15, 4294967295, %v3804_v31  ;;  %1149 = vadd.xlane.f32.xlu0 %v1148_v26  ;;  %vm3807_vm0 = vmmov %vm3797_vm7  ;;  %v1216_v54 = vsel %vm3050_vm15, %v2740_v39, 0.0  ;;  %vm1284_vm7 = vcmp.eq.f32.partialorder %v2732_v37, 31.0 }
 0x16a   : > { %3806 = vst [vmem:[#allocation3_spill] sm:$0xff] %v3805_v31  ;;  %v1267_v50 = vsel %vm3807_vm0, %v1265_v29, 0.0  ;;  %vm3808_vm10 = vmmov %vm3807_vm0  ;;  %v1218_v3 = vsel %vm3807_vm0, %v1216_v54, 0.0 }
 0x16b   : > { %v1243_v52 = vsel %vm3808_vm10, %v1241_v30, 0.0  ;;  %vm3809_vm13 = vmmov %vm3807_vm0 }
 0x16c   : > { %v1219_v55 = vsel %vm3809_vm13, %v1217_v35, 0.0  ;;  %vm3810_vm1 = vmmov %vm3807_vm0 }
 0x16d   : > { %v1266_v57 = vsel %vm3810_vm1, %v1264_v36, 0.0  ;;  %vm3811_vm9 = vmmov %vm3807_vm0  ;;  %v1220_v6 = vadd.f32 %v1219_v55, %v1218_v3  ;;  %vm3693_vm1 = vcmp.eq.f32.partialorder %v2724_v33, 0.0 }
 0x16e   : > { %v1242_v59 = vsel %vm3811_vm9, %v1240_v46, 0.0  ;;  %v1268_v62 = vadd.f32 %v1267_v50, %v1266_v57  ;;  %vm3076_vm10 = vmor %vm1283_vm6, %vm1285_vm5  ;;  %vm3692_vm9 = vcmp.eq.f32.partialorder %v2724_v33, 1.0 }
 0x16f   : > { %v1244_v63 = vadd.f32 %v1243_v52, %v1242_v59  ;;  %v3813_v4 = vsel %vm3076_vm10, 4294967295, %v3812_v4  ;;  %vm3080_vm13 = vmor %vm1282_vm8, %vm1284_vm7  ;;  %v1289_v37 = vsel %vm3076_vm10, %v2792_v49, 0.0  ;;  %vm3680_vm8 = vcmp.eq.f32.partialorder %v2724_v33, 2.0 }
 0x170   : > { %3814 = vst [vmem:[#allocation4_spill] sm:$0xff] %v3813_v4  ;;  %1269 = vadd.xlane.f32.xlu2 %v1268_v62  ;;  %v3816_v38 = vsel %vm3080_vm13, 4294967295, %v3815_v38  ;;  %v1288_v7 = vsel %vm3080_vm13, %v2740_v39, 0.0  ;;  %vm3818_vm6 = vmmov %vm3807_vm0  ;;  %vm3678_vm7 = vcmp.eq.f32.partialorder %v2724_v33, 3.0 }
 0x171   : > { %1245 = vadd.xlane.f32.xlu1 %v1244_v63  ;;  %3817 = vst [vmem:[#allocation5_spill] sm:$0xff] %v3816_v38  ;;  %1221 = vadd.xlane.f32.xlu0 %v1220_v6  ;;  %v1291_v8 = vsel %vm3818_vm6, %v1289_v37, 0.0  ;;  %vm3819_vm5 = vmmov %vm3807_vm0  ;;  %vm3679_vm0 = vcmp.eq.f32.partialorder %v2724_v33, 4.0  ;;  %vm3681_vm6 = vcmp.eq.f32.partialorder %v2724_v33, 5.0  ;;  %v3889_v19 = vld [vmem:[#allocation3_spill] sm:$0xff] }
 0x172   : > { %v1290_v9 = vsel %vm3819_vm5, %v1288_v7, 0.0  ;;  %vm3689_vm5 = vcmp.eq.f32.partialorder %v2724_v33, 6.0 }
 0x173   : > { %v1292_v11 = vadd.f32 %v1291_v8, %v1290_v9 }
 0x179   : > { %1293 = vadd.xlane.f32.xlu0 %v1292_v11 }
 0x1bb   : > { %v1030_v16 = vpop.xlane.xlu2 %1029  ;;  %v982_v17 = vpop.xlane.xlu1 %981 }
 0x1bc   : > { %v983_v20 = vrot.slane %v982_v17, 4  ;;  %v934_v21 = vpop.xlane.xlu0 %933  ;;  %v1031_v26 = vrot.slane %v1030_v16, 4 }
 0x1bd   : > { %v935_v23 = vrot.slane %v934_v21, 4 }
 0x1be   : > { %v984_v30 = vadd.f32 %v983_v20, %v982_v17  ;;  %v1032_v49 = vadd.f32 %v1031_v26, %v1030_v16 }
 0x1bf   : > { %v936_v29 = vadd.f32 %v935_v23, %v934_v21 }
 0x1c0   : > { %v985_v39 = vrot.slane %v984_v30, 2  ;;  %v1033_v62 = vrot.slane %v1032_v49, 2 }
 0x1c1   : > { %v937_v35 = vrot.slane %v936_v29, 2 }
 0x1c2   : > { %v986_v9 = vadd.f32 %v985_v39, %v984_v30  ;;  %v1034_v17 = vadd.f32 %v1033_v62, %v1032_v49 }
 0x1c3   : > { %v1054_v36 = vpop.xlane.xlu2 %1053  ;;  %v938_v50 = vadd.f32 %v937_v35, %v936_v29 }
 0x1c4   : > { %v1006_v46 = vpop.xlane.xlu1 %1005  ;;  %v1055_v52 = vrot.slane %v1054_v36, 4  ;;  %v987_v4 = vrot.slane %v986_v9, 1 }
 0x1c5   : > { %v1007_v54 = vrot.slane %v1006_v46, 4  ;;  %v939_v59 = vrot.slane %v938_v50, 1 }
 0x1c6   : > { %v958_v55 = vpop.xlane.xlu0 %957  ;;  %v1056_v63 = vadd.f32 %v1055_v52, %v1054_v36  ;;  %v988_v62 = vadd.f32 %v987_v4, %v986_v9 }
 0x1c7   : > { %v959_v57 = vrot.slane %v958_v55, 4  ;;  %v1008_v3 = vadd.f32 %v1007_v54, %v1006_v46  ;;  %v940_v37 = vadd.f32 %v939_v59, %v938_v50 }
 0x1c8   : > { %v1057_v7 = vrot.slane %v1056_v63, 2 }
 0x1c9   : > { %v960_v6 = vadd.f32 %v959_v57, %v958_v55  ;;  %v1009_v8 = vrot.slane %v1008_v3, 2  ;;  %2406 = vpush %v940_v37  ;;  %v1035_v55 = vrot.slane %v1034_v17, 1 }
 0x1ca   : > { %v1058_v20 = vadd.f32 %v1057_v7, %v1056_v63 }
 0x1cb   : > { %v961_v11 = vrot.slane %v960_v6, 2  ;;  %v1010_v16 = vadd.f32 %v1009_v8, %v1008_v3 }
 0x1cc   : > { %v1059_v52 = vrot.slane %v1058_v20, 1 }
 0x1cd   : > { %v1126_v21 = vpop.xlane.xlu2 %1125  ;;  %v962_v26 = vadd.f32 %v961_v11, %v960_v6  ;;  %v1011_v31 = vrot.slane %v1010_v16, 1  ;;  %v1036_v6 = vadd.f32 %v1035_v55, %v1034_v17 }
 0x1ce   : > { %v1102_v23 = vpop.xlane.xlu1 %1101  ;;  %v1127_v29 = vrot.slane %v1126_v21, 4  ;;  %v1060_v3 = vadd.f32 %v1059_v52, %v1058_v20 }
 0x1cf   : > { %v1103_v35 = vrot.slane %v1102_v23, 4  ;;  %v963_v46 = vrot.slane %v962_v26, 1  ;;  %v1012_v57 = vadd.f32 %v1011_v31, %v1010_v16 }
 0x1d0   : > { %v1078_v38 = vpop.xlane.xlu0 %1077  ;;  %v1128_v50 = vadd.f32 %v1127_v29, %v1126_v21 }
 0x1d1   : > { %v1079_v36 = vrot.slane %v1078_v38, 4  ;;  %v1104_v54 = vadd.f32 %v1103_v35, %v1102_v23  ;;  %v964_v39 = vadd.f32 %v963_v46, %v962_v26 }
 0x1d2   : > { %v1129_v59 = vrot.slane %v1128_v50, 2 }
 0x1d3   : > { %v1080_v30 = vadd.f32 %v1079_v36, %v1078_v38  ;;  %v1105_v49 = vrot.slane %v1104_v54, 2  ;;  %2408 = vpush %v964_v39 }
 0x1d4   : > { %2410 = vpush %v988_v62  ;;  %v1130_v7 = vadd.f32 %v1129_v59, %v1128_v50 }
 0x1d5   : > { %v1081_v63 = vrot.slane %v1080_v30, 2  ;;  %v1106_v37 = vadd.f32 %v1105_v49, %v1104_v54  ;;  %2412 = vpush %v1012_v57 }
 0x1d6   : > { %2414 = vpush %v1036_v6  ;;  %v1131_v31 = vrot.slane %v1130_v7, 1 }
 0x1d7   : > { %v1082_v28 = vadd.f32 %v1081_v63, %v1080_v30  ;;  %v1107_v26 = vrot.slane %v1106_v37, 1  ;;  %2416 = vpush %v1060_v3 }
 0x1d8   : > { %v1132_v36 = vadd.f32 %v1131_v31, %v1130_v7 }
 0x1d9   : > { %v1198_v8 = vpop.xlane.xlu2 %1197  ;;  %v1083_v4 = vrot.slane %v1082_v28, 1  ;;  %v1108_v20 = vadd.f32 %v1107_v26, %v1106_v37 }
 0x1da   : > { %v1174_v11 = vpop.xlane.xlu1 %1173  ;;  %v1199_v21 = vrot.slane %v1198_v8, 4 }
 0x1db   : > { %v1175_v23 = vrot.slane %v1174_v11, 4  ;;  %v1084_v17 = vadd.f32 %v1083_v4, %v1082_v28 }
 0x1dc   : > { %v1150_v38 = vpop.xlane.xlu0 %1149  ;;  %v1200_v9 = vadd.f32 %v1199_v21, %v1198_v8 }
 0x1dd   : > { %v1151_v16 = vrot.slane %v1150_v38, 4  ;;  %v1176_v29 = vadd.f32 %v1175_v23, %v1174_v11  ;;  %2418 = vpush %v1084_v17 }
 0x1de   : > { %v1201_v46 = vrot.slane %v1200_v9, 2  ;;  %2420 = vpush %v1108_v20 }
 0x1df   : > { %v1152_v35 = vadd.f32 %v1151_v16, %v1150_v38  ;;  %v1177_v52 = vrot.slane %v1176_v29, 2  ;;  %2422 = vpush %v1132_v36 }
 0x1e0   : > { %v1202_v55 = vadd.f32 %v1201_v46, %v1200_v9 }
 0x1e1   : > { %v1153_v50 = vrot.slane %v1152_v35, 2  ;;  %v1178_v54 = vadd.f32 %v1177_v52, %v1176_v29 }
 0x1e2   : > { %v1203_v3 = vrot.slane %v1202_v55, 1 }
 0x1e3   : > { %v1270_v30 = vpop.xlane.xlu2 %1269  ;;  %v1154_v57 = vadd.f32 %v1153_v50, %v1152_v35  ;;  %v1179_v63 = vrot.slane %v1178_v54, 1 }
 0x1e4   : > { %v1246_v39 = vpop.xlane.xlu1 %1245  ;;  %v1271_v59 = vrot.slane %v1270_v30, 4  ;;  %v1222_v62 = vpop.xlane.xlu0 %1221  ;;  %v1204_v23 = vadd.f32 %v1203_v3, %v1202_v55 }
 0x1e5   : > { %v1247_v49 = vrot.slane %v1246_v39, 4  ;;  %v1223_v6 = vrot.slane %v1222_v62, 4  ;;  %v1155_v37 = vrot.slane %v1154_v57, 1  ;;  %v1180_v8 = vadd.f32 %v1179_v63, %v1178_v54 }
 0x1e6   : > { %v1272_v28 = vadd.f32 %v1271_v59, %v1270_v30 }
 0x1e7   : > { %v1248_v7 = vadd.f32 %v1247_v49, %v1246_v39  ;;  %v1224_v11 = vadd.f32 %v1223_v6, %v1222_v62  ;;  %v1156_v21 = vadd.f32 %v1155_v37, %v1154_v57 }
 0x1e8   : > { %v1273_v38 = vrot.slane %v1272_v28, 2 }
 0x1e9   : > { %v1249_v26 = vrot.slane %v1248_v7, 2  ;;  %v1225_v31 = vrot.slane %v1224_v11, 2  ;;  %2424 = vpush %v1156_v21 }
 0x1ea   : > { %2426 = vpush %v1180_v8  ;;  %v1274_v4 = vadd.f32 %v1273_v38, %v1272_v28 }
 0x1eb   : > { %v1250_v16 = vadd.f32 %v1249_v26, %v1248_v7  ;;  %2428 = vpush %v1204_v23  ;;  %v1226_v9 = vadd.f32 %v1225_v31, %v1224_v11 }
 0x1ec   : > { %v1294_v29 = vpop.xlane.xlu0 %1293  ;;  %v1275_v35 = vrot.slane %v1274_v4, 1 }
 0x1ed   : > { %v1251_v20 = vrot.slane %v1250_v16, 1  ;;  %v1295_v17 = vrot.slane %v1294_v29, 4  ;;  %v1227_v36 = vrot.slane %v1226_v9, 1 }
 0x1ee   : > { %v1276_v54 = vadd.f32 %v1275_v35, %v1274_v4 }
 0x1ef   : > { %v1252_v46 = vadd.f32 %v1251_v20, %v1250_v16  ;;  %v1296_v52 = vadd.f32 %v1295_v17, %v1294_v29  ;;  %v1228_v50 = vadd.f32 %v1227_v36, %v1226_v9 }
 0x1f1   : > { %v1297_v30 = vrot.slane %v1296_v52, 2  ;;  %2430 = vpush %v1228_v50 }
 0x1f2   : > { %2432 = vpush %v1252_v46 }
 0x1f3   : > { %2434 = vpush %v1276_v54  ;;  %v1298_v55 = vadd.f32 %v1297_v30, %v1296_v52 }
 0x1f5   : > { %v1299_v39 = vrot.slane %v1298_v55, 1 }
 0x1f7   : > { %v1300_v57 = vadd.f32 %v1299_v39, %v1298_v55 }
 0x1f9   : > { %2436 = vpush %v1300_v57 }
 0x1fa   : > { %s2407_s1 = spop %2406 }
 0x1fb   : > { %v943_v59 = vstv %s2407_s1 }
 0x1fc   : > { %v944_v62 = vsel %vm3693_vm1, %v943_v59, 0.0 }
 0x204   : > { %s2409_s4 = spop %2408 }
 0x205   : > { %v967_v49 = vstv %s2409_s4  ;;  %s2411_s28 = spop %2410 }
 0x206   : > { %v968_v63 = vsel %vm3692_vm9, %v967_v49, 0.0  ;;  %v991_v3 = vstv %s2411_s28  ;;  %s2413_s9 = spop %2412 }
 0x207   : > { %v969_v6 = vadd.f32 %v968_v63, %v944_v62  ;;  %v1015_v37 = vstv %s2413_s9  ;;  %s2415_s2 = spop %2414  ;;  %v992_v28 = vsel %vm3680_vm8, %v991_v3, 0.0  ;;  %vm3684_vm8 = vcmp.eq.f32.partialorder %v2724_v33, 9.0 }
 0x208   : > { %s2417_s0 = spop %2416  ;;  %v1039_v8 = vstv %s2415_s2  ;;  %v1016_v11 = vsel %vm3678_vm7, %v1015_v37, 0.0  ;;  %vm3682_vm7 = vcmp.eq.f32.partialorder %v2724_v33, 7.0 }
 0x209   : > { %v993_v7 = vadd.f32 %v992_v28, %v969_v6  ;;  %v1063_v23 = vstv %s2417_s0  ;;  %v1040_v38 = vsel %vm3679_vm0, %v1039_v8, 0.0  ;;  %vm3683_vm0 = vcmp.eq.f32.partialorder %v2724_v33, 8.0 }
 0x20a   : > { %v1064_v16 = vsel %vm3681_vm6, %v1063_v23, 0.0  ;;  %vm3685_vm6 = vcmp.eq.f32.partialorder %v2724_v33, 10.0 }
 0x20b   : > { %v1017_v21 = vadd.f32 %v1016_v11, %v993_v7 }
 0x20d   : > { %v1041_v26 = vadd.f32 %v1040_v38, %v1017_v21 }
 0x20e   : > { %s2419_s6 = spop %2418 }
 0x20f   : > { %v1087_v31 = vstv %s2419_s6  ;;  %s2421_s30 = spop %2420  ;;  %v1065_v4 = vadd.f32 %v1064_v16, %v1041_v26 }
 0x210   : > { %s2423_s3 = spop %2422  ;;  %v1111_v9 = vstv %s2421_s30  ;;  %v1088_v29 = vsel %vm3689_vm5, %v1087_v31, 0.0 }
 0x211   : > { %v1089_v20 = vadd.f32 %v1088_v29, %v1065_v4  ;;  %v1135_v35 = vstv %s2423_s3  ;;  %v1112_v17 = vsel %vm3682_vm7, %v1111_v9, 0.0  ;;  %vm3686_vm7 = vcmp.eq.f32.partialorder %v2724_v33, 11.0 }
 0x212   : > { %v1136_v46 = vsel %vm3683_vm0, %v1135_v35, 0.0  ;;  %vm3687_vm0 = vcmp.eq.f32.partialorder %v2724_v33, 12.0 }
 0x213   : > { %v1113_v36 = vadd.f32 %v1112_v17, %v1089_v20 }
 0x215   : > { %v1137_v52 = vadd.f32 %v1136_v46, %v1113_v36 }
 0x21a   : > { %s2425_s26 = spop %2424 }
 0x21b   : > { %v1159_v50 = vstv %s2425_s26  ;;  %s2427_s1 = spop %2426  ;;  %s3835_s26 = sld [smem:[#allocation7_spill]] }
 0x21c   : > { %v1160_v54 = vsel %vm3684_vm8, %v1159_v50, 0.0  ;;  %v1183_v30 = vstv %s2427_s1  ;;  %s2429_s4 = spop %2428  ;;  %vm3688_vm8 = vcmp.eq.f32.partialorder %v2724_v33, 13.0  ;;  %s3823_s1 = sld [smem:[#allocation12_spill]] }
 0x21d   : > { %v1161_v55 = vadd.f32 %v1160_v54, %v1137_v52  ;;  %v1184_v39 = vsel %vm3685_vm6, %v1183_v30, 0.0  ;;  %v1207_v59 = vstv %s2429_s4  ;;  %vm3691_vm6 = vcmp.eq.f32.partialorder %v2724_v33, 14.0  ;;  %s3829_s4 = sld [smem:[#allocation13_spill]] }
 0x21e   : > { %v1208_v49 = vsel %vm3686_vm7, %v1207_v59, 0.0  ;;  %vm3690_vm7 = vcmp.eq.f32.partialorder %v2724_v33, 15.0 }
 0x21f   : > { %v1185_v57 = vadd.f32 %v1184_v39, %v1161_v55 }
 0x221   : > { %v1209_v62 = vadd.f32 %v1208_v49, %v1185_v57 }
 0x222   : > { %s2431_s28 = spop %2430  ;;  %v817_v50 = vld [vmem:[%s3823_s1 + $0x10] sm:$0xff]  ;;  %v818_v54 = vld [vmem:[%s3823_s1 + $0x18] sm:$0xff]  ;;  %v815_v30 = vld [vmem:[%s3823_s1] sm:$0xff] }
 0x223   : > { %v1231_v63 = vstv %s2431_s28  ;;  %s2433_s9 = spop %2432  ;;  %v869_v55 = vpack.c.bf16 %v818_v54, %v817_v50  ;;  %v816_v39 = vld [vmem:[%s3823_s1 + $0x8] sm:$0xff] }
 0x224   : > { %v1232_v3 = vsel %vm3687_vm0, %v1231_v63, 0.0  ;;  %v1255_v6 = vstv %s2433_s9  ;;  %s2435_s2 = spop %2434  ;;  %vm3820_vm0 = vcmask 130048   ;;  %v868_v57 = vpack.c.bf16 %v816_v39, %v815_v30  ;;  %v2498_v39 = vld [vmem:[%s3829_s4] ss:$0 sm:$0xff]  ;;  %s3833_s4 = sld [smem:[#allocation15_spill]] }
 0x225   : > { %v1233_v37 = vadd.f32 %v1232_v3, %v1209_v62  ;;  %v1256_v28 = vsel %vm3688_vm8, %v1255_v6, 0.0  ;;  %v1279_v8 = vstv %s2435_s2  ;;  %vm3821_vm5 = vmmov %vm3820_vm0  ;;  %879 = vmatpush.bf16.msra.mxu2 %v869_v55 }
 0x226   : > { %v1280_v11 = vsel %vm3691_vm6, %v1279_v8, 0.0  ;;  %vm3822_vm6 = vmmov %vm3820_vm0 }
 0x227   : > { %v1257_v7 = vadd.f32 %v1256_v28, %v1233_v37 }
 0x229   : > { %v1281_v21 = vadd.f32 %v1280_v11, %v1257_v7  ;;  %880 = vmatpush.bf16.msra.mxu2 %v868_v57 }
 0x22a   : > { %s2437_s0 = spop %2436 }
 0x22b   : > { %v1303_v23 = vstv %s2437_s0  ;;  %s3831_s0 = sld [smem:[#allocation14_spill]] }
 0x22c   : > { %v1304_v38 = vsel %vm3690_vm7, %v1303_v23, 0.0 }
 0x22d   : > { %v1305_v26 = vadd.f32 %v1304_v38, %v1281_v21 }
 0x22f   : > { %v1306_v31 = vmul.f32 0.03125, %v1305_v26 }
 0x231   : > { %v1307_v16 = vsel %vm3820_vm0, %v1306_v31, -inf }
 0x232   : > { %1308 = vmax.xlane.f32.xlu1 %v1307_v16 }
 0x2a5   : > { %v1309_v4 = vpop.xlane.xlu1 %1308 }
 0x2a6   : > { %2438 = vpush %v1309_v4 }
 0x2d7   : > { %s2439_s6 = spop %2438 }
 0x2d8   : > { %v1311_v9 = vstv %s2439_s6 }
 0x2d9   : > { %vm1312_vm8 = vcmp.ge.f32.partialorder %v1306_v31, %v1311_v9  ;;  %v1332_v59 = vsub.f32 %v1311_v9, %v1311_v9 }
 0x2da   : > { %v1313_v29 = vsel %vm1312_vm8, %v2724_v33, 16.0  ;;  %vm3824_vm8 = vcmask 261120  }
 0x2db   : > { %v1314_v20 = vsel %vm3821_vm5, %v1313_v29, inf  ;;  %2380 = vmatmul.msk.bf16.vlgmr.msra.gmra.mxu2 %vm3824_vm8, %v2708_v14  ;;  %v1333_v49 = vmul.f32 1.442695, %v1332_v59 }
 0x2dc   : > { %1315 = vmin.xlane.f32.xlu2 %v1314_v20 }
 0x2dd   : > { %2504 = vpow2.f32 %v1333_v49 }
 0x2e3   : > { %v2505_v28 = vpop.eup %2504 }
 0x34f   : > { %v1316_v35 = vpop.xlane.xlu2 %1315 }
 0x350   : > { %2440 = vpush %v1316_v35 }
 0x35e   : > { %v882_v55 = vpop.f32.mrf.mxu2 }
 0x35f   : > { %v883_v59 = vadd.f32 %v2498_v39, %v882_v55 }
 0x366   : > { %v884_v57 = vpop.f32.mrf.mxu2 }
 0x367   : > { %v885_v49 = vadd.f32 %v2498_v39, %v884_v57  ;;  %v2524_v39 = vld [vmem:[%s2704_s5] sm:$0xff] }
 0x381   : > { %s2441_s30 = spop %2440 }
 0x382   : > { %v1318_v17 = vstv %s2441_s30 }
 0x383   : > { %vm1319_vm7 = vcmp.eq.f32.partialorder %v2724_v33, %v1318_v17  ;;  %v1339_v14 = vadd.f32 %v1318_v17, %v2722_v32  ;;  %v1340_v21 = vadd.f32 %v1318_v17, %v2726_v34 }
 0x384   : > { %v1320_v36 = vsel %vm1319_vm7, -1e+30, %v1306_v31 }
 0x385   : > { %v1321_v46 = vsel %vm3822_vm6, %v1320_v36, -inf  ;;  %v1341_v26 = vsub.f32 %v1339_v14, %v2724_v33  ;;  %v1342_v16 = vsub.f32 %v1340_v21, %v2724_v33 }
 0x386   : > { %1322 = vmax.xlane.f32.xlu0 %v1321_v46 }
 0x387   : > { %vm1343_vm8 = vcmp.eq.f32.partialorder %v1341_v26, 0.0  ;;  %vm1344_vm9 = vcmp.eq.f32.partialorder %v1342_v16, 0.0  ;;  %vm1346_vm1 = vcmp.eq.f32.partialorder %v1342_v16, 16.0  ;;  %v820_v16 = vld [vmem:[%s3831_s0] sm:$0xff] }
 0x388   : > { %vm3169_vm15 = vmor %vm1344_vm9, %vm1346_vm1 }
 0x3f9   : > { %v1323_v52 = vpop.xlane.xlu0 %1322 }
 0x3fa   : > { %2442 = vpush %v1323_v52 }
 0x42b   : > { %s2443_s30 = spop %2442 }
 0x42c   : > { %v1325_v62 = vstv %s2443_s30 }
 0x42d   : > { %vm1326_vm7 = vcmp.ge.f32.partialorder %v1320_v36, %v1325_v62  ;;  %v1335_v63 = vsub.f32 %v1325_v62, %v1311_v9  ;;  %v1385_v62 = vpack.c.bf16 %v885_v49, %v883_v59  ;;  %v1457_v36 = vld [vmem:[%s3631_s12 + $0x18] sm:$0xff]  ;;  %v2525_v59 = vld [vmem:[%s2704_s5 + $0x8] sm:$0xff]  ;;  %s787_s5 = scalar_lea.vmem %s3835_s26, %s2698_s8 }
 0x42e   : > { %v1327_v3 = vsel %vm1326_vm7, %v2724_v33, 16.0  ;;  %vm1345_vm7 = vcmp.eq.f32.partialorder %v1341_v26, 16.0  ;;  %v822_v26 = vld [vmem:[%s3831_s0 + $0x10] sm:$0xff] }
 0x42f   : > { %v1336_v6 = vmul.f32 1.442695, %v1335_v63  ;;  %v1328_v37 = vsel %vm3820_vm0, %v1327_v3, inf  ;;  %vm3165_vm10 = vmor %vm1343_vm8, %vm1345_vm7  ;;  %1396 = vmatpush.bf16.msrb.mxu0 %v1385_v62  ;;  %vm3832_vm8 = vcmask 261120   ;;  %v803_v62 = vld [vmem:[%s3637_s18] sm:$0xff] }
 0x430   : > { %1329 = vmin.xlane.f32.xlu1 %v1328_v37 }
 0x431   : > { %2506 = vpow2.f32 %v1336_v6 }
 0x437   : > { %v2507_v7 = vpop.eup %2506 }
 0x438   : > { %v1338_v8 = vadd.f32 %v2507_v7, %v2505_v28 }
 0x43a   : > { %2508 = vrcp.f32 %v1338_v8  ;;  %v1360_v31 = vand.u32 2147483648, %v1338_v8  ;;  %v1358_v9 = vand.u32 2147483647, %v1338_v8  ;;  %vm1354_vm5 = vweird.f32 %v1338_v8 }
 0x43c   : > { %v1361_v20 = vor.u32 1.1754944e-38, %v1360_v31  ;;  %vm1359_vm13 = vcmp.eq.f32.partialorder %v1358_v9, 8.507059e+37 }
 0x440   : > { %v2509_v11 = vpop.eup %2508 }
 0x441   : > { %v1350_v23 = vmul.f32 %v2509_v11, %v1338_v8  ;;  %vm1355_vm6 = vweird.f32 %v2509_v11 }
 0x442   : > { %vm1356_vm0 = vmor %vm1354_vm5, %vm1355_vm6  ;;  %vm3830_vm5 = vcmask 130048  }
 0x443   : > { %v1351_v38 = vsub.f32 1.0, %v1350_v23  ;;  %vm3834_vm7 = vmmov %vm3830_vm5 }
 0x445   : > { %v1352_v4 = vmul.f32 %v2509_v11, %v1351_v38 }
 0x447   : > { %v1353_v29 = vadd.f32 %v2509_v11, %v1352_v4  ;;  %v821_v4 = vld [vmem:[%s3831_s0 + $0x8] sm:$0xff] }
 0x448   : > { %v1404_v9 = vpack.c.bf16 %v821_v4, %v820_v16 }
 0x449   : > { %v1357_v35 = vsel %vm1356_vm0, %v2509_v11, %v1353_v29  ;;  %vm3836_vm0 = vmmov %vm3832_vm8 }
 0x44a   : > { %v1362_v17 = vsel %vm1359_vm13, %v1361_v20, %v1357_v35 }
 0x44b   : > { %v1363_v46 = vmul.f32 %v2505_v28, %v1362_v17  ;;  %v1379_v8 = vmul.f32 %v2507_v7, %v1362_v17  ;;  %v823_v7 = vld [vmem:[%s3831_s0 + $0x18] sm:$0xff]  ;;  %v1456_v17 = vld [vmem:[%s3631_s12 + $0x10] sm:$0xff] }
 0x44c   : > { %v1405_v31 = vpack.c.bf16 %v823_v7, %v822_v26  ;;  %v1449_v7 = vld [vmem:[%s3629_s10] sm:$0xff] }
 0x44d   : > { %v1364_v50 = vsel %vm3165_vm10, %v1363_v46, 0.0  ;;  %v1365_v54 = vsel %vm3169_vm15, %v1363_v46, 0.0  ;;  %v1494_v46 = vpack.c.bf16 %v1457_v36, %v1456_v17  ;;  %v2500_v36 = vld [vmem:[%s3632_s13] ss:$0 sm:$0xff] }
 0x44e   : > { %1418 = vmatpush.bf16.msrb.mxu1 %v1405_v31  ;;  %v1450_v31 = vld [vmem:[%s3629_s10 + $0x8] sm:$0xff] }
 0x44f   : > { %1507 = vmatpush.bf16.msra.mxu0 %v1494_v46  ;;  %v1470_v16 = vpack.c.bf16 %v1450_v31, %v1449_v7 }
 0x452   : > { %1419 = vmatpush.bf16.msrb.mxu1 %v1404_v9 }
 0x4a3   : > { %v1330_v30 = vpop.xlane.xlu1 %1329 }
 0x4a4   : > { %2444 = vpush %v1330_v30 }
 0x4d5   : > { %s2445_s28 = spop %2444 }
 0x4d6   : > { %v1368_v63 = vstv %s2445_s28 }
 0x4d7   : > { %v1369_v3 = vadd.f32 %v1368_v63, %v2722_v32  ;;  %v1370_v6 = vadd.f32 %v1368_v63, %v2726_v34  ;;  %v804_v63 = vld [vmem:[%s3637_s18 + $0x8] sm:$0xff] }
 0x4d9   : > { %v1371_v37 = vsub.f32 %v1369_v3, %v2724_v33  ;;  %v1372_v28 = vsub.f32 %v1370_v6, %v2724_v33  ;;  %v3215_v6 = vpack.c.bf16 %v804_v63, %v803_v62 }
 0x4db   : > { %vm1373_vm15 = vcmp.eq.f32.partialorder %v1371_v37, 0.0  ;;  %vm1374_vm10 = vcmp.eq.f32.partialorder %v1372_v28, 0.0  ;;  %vm1375_vm13 = vcmp.eq.f32.partialorder %v1371_v37, 16.0  ;;  %vm1376_vm1 = vcmp.eq.f32.partialorder %v1372_v28, 16.0  ;;  %v1454_v37 = vld [vmem:[%s3631_s12] sm:$0xff]  ;;  %v1455_v28 = vld [vmem:[%s3631_s12 + $0x8] sm:$0xff] }
 0x4dc   : > { %vm1377_vm9 = vmor %vm1373_vm15, %vm1375_vm13 }
 0x4dd   : > { %vm1378_vm6 = vmor %vm1374_vm10, %vm1376_vm1  ;;  %v1380_v11 = vsel %vm1377_vm9, %v1379_v8, 0.0  ;;  %vm3840_vm1 = vnez %v3745_v5  ;;  %vm3841_vm9 = vnez %v3720_v42 }
 0x4de   : > { %v1381_v14 = vsel %vm1378_vm6, %v1379_v8, 0.0  ;;  %v1382_v21 = vadd.f32 %v1380_v11, %v1364_v50  ;;  %v2499_v50 = vld [vmem:[%s3833_s4] ss:$0 sm:$0xff]  ;;  %v1493_v11 = vpack.c.bf16 %v1455_v28, %v1454_v37  ;;  %vm3837_vm15 = vmmov %vm3836_vm0 }
 0x4df   : > { %v1383_v23 = vadd.f32 %v1381_v14, %v1365_v54  ;;  %v801_v8 = vld [vmem:[%s787_s5] sm:$0xff]  ;;  %v802_v14 = vld [vmem:[%s787_s5 + $0x8] sm:$0xff]  ;;  %vm3838_vm10 = vmmov %vm3836_vm0 }
 0x4e0   : > { %1508 = vmatpush.bf16.msra.mxu0 %v1493_v11  ;;  %vm3839_vm13 = vmmov %vm3836_vm0 }
 0x4e1   : > { %v1384_v38 = vpack.c.bf16 %v1383_v23, %v1382_v21  ;;  %v1451_v21 = vld [vmem:[%s3629_s10 + $0x10] sm:$0xff]  ;;  %v1452_v23 = vld [vmem:[%s3629_s10 + $0x18] sm:$0xff]  ;;  %vm3842_vm6 = vmmov %vm3830_vm5 }
 0x4e2   : > { %v1471_v26 = vpack.c.bf16 %v1452_v23, %v1451_v21 }
 0x4e3   : > { %2382 = vmatmul.msk.bf16.vlgmr.msrb.gmra.mxu0 %vm3830_vm5, %v1384_v38  ;;  %v3235_v38 = vpack.c.bf16 %v802_v14, %v801_v8  ;;  %vm3843_vm5 = vnez %v3724_v45 }
 0x4e4   : > { %1484 = vmatpush.bf16.msrb.mxu3 %v1471_v26 }
 0x4e8   : > { %1485 = vmatpush.bf16.msrb.mxu3 %v1470_v16 }
 0x4f3   : > { %2386 = vmatmul.msk.bf16.vlgmr.msra.gmra.mxu0 %vm3836_vm0, %v3235_v38  ;;  %vm3847_vm0 = vmmov %vm3842_vm6 }
 0x560   : > { %v1398_v29 = vpop.f32.mrf.mxu0 }
 0x568   : > { %v1400_v20 = vpop.f32.mrf.mxu0 }
 0x569   : > { %v1403_v35 = vpack.c.bf16 %v1400_v20, %v1398_v29 }
 0x56b   : > { %2383 = vmatmul.msk.bf16.vlgmr.msrb.gmra.mxu1 %vm3832_vm8, %v1403_v35  ;;  %vm3844_vm8 = vnez %v3737_v1 }
 0x570   : > { %v1510_v17 = vpop.f32.mrf.mxu0 }
 0x571   : > { %v1511_v46 = vadd.f32 %v2500_v36, %v1510_v17 }
 0x5e8   : > { %v1421_v52 = vpop.f32.mrf.mxu1 }
 0x5e9   : > { %v1422_v54 = vadd.f32 %v2499_v50, %v1421_v52  ;;  %v1512_v52 = vpop.f32.mrf.mxu0 }
 0x5eb   : > { %v1426_v57 = vadd.f32 %v2524_v39, %v1422_v54  ;;  %v2501_v39 = vld [vmem:[%s3630_s11] ss:$0 sm:$0xff] }
 0x5f0   : > { %v1423_v30 = vpop.f32.mrf.mxu1 }
 0x5f1   : > { %v1424_v55 = vadd.f32 %v2499_v50, %v1423_v30  ;;  %v1513_v50 = vadd.f32 %v2500_v36, %v1512_v52 }
 0x5f3   : > { %v1427_v49 = vadd.f32 %v2525_v59, %v1424_v55  ;;  %v1535_v54 = vpack.c.bf16 %v1513_v50, %v1511_v46 }
 0x5f5   : > { %v1429_v3 = vpack.c.bf16 %v1427_v49, %v1426_v57  ;;  %v1540_v30 = vsel %vm3838_vm10, %v1535_v54, 0  ;;  %vm3849_vm10 = vmmov %vm3847_vm0 }
 0x5f7   : > { %1440 = vmatpush.bf16.msrb.mxu2 %v1429_v3 }
 0x5fa   : > { %2384 = vmatmul.msk.bf16.vlgmr.msrb.gmra.mxu2 %vm3834_vm7, %v3215_v6  ;;  %vm3846_vm7 = vnez %v3726_v47 }
 0x5fb   : > { %1549 = vmatpush.bf16.xpose.msra.mxu2 %v1540_v30 }
 0x67d   : > { %v3245_v4 = vpop.f32.mrf.mxu2 }
 0x67e   : > { %v3250_v29 = vsub.f32 %v1426_v57, %v3245_v4 }
 0x685   : > { %v3247_v9 = vpop.f32.mrf.mxu2 }
 0x686   : > { %v3253_v20 = vsub.f32 %v1427_v49, %v3247_v9 }
 0x688   : > { %v1469_v35 = vpack.c.bf16 %v3253_v20, %v3250_v29 }
 0x68a   : > { %2385 = vmatmul.msk.bf16.vlgmr.msrb.gmra.mxu3 %vm3837_vm15, %v1469_v35  ;;  %vm3848_vm15 = vmmov %vm3847_vm0 }
 0x70d   : > { %v1487_v55 = vpop.f32.mrf.mxu3 }
 0x70e   : > { %v1488_v59 = vadd.f32 %v2501_v39, %v1487_v55 }
 0x715   : > { %v1489_v57 = vpop.f32.mrf.mxu3 }
 0x716   : > { %v1490_v49 = vadd.f32 %v2501_v39, %v1489_v57 }
 0x718   : > { %v1534_v62 = vpack.c.bf16 %v1490_v49, %v1488_v59 }
 0x71a   : > { %2388 = vmatmul.msk.bf16.vlgmr.msra.gmra.mxu2 %vm3839_vm13, %v1534_v62  ;;  %vm3850_vm13 = vmmov %vm3847_vm0 }
 0x79d   : > { %v3266_v63 = vpop.f32.mrf.mxu2 }
 0x79e   : > { %v1590_v3 = vsel %vm2752_vm12, %v3266_v63, 0.0  ;;  %v1573_v37 = vsel %vm3840_vm1, %v3266_v63, 0.0  ;;  %v1556_v28 = vsel %vm3841_vm9, %v3266_v63, 0.0  ;;  %vm3845_vm12 = vmmov %vm3842_vm6  ;;  %vm3851_vm1 = vnez %v3732_v56 }
 0x79f   : > { %v1592_v11 = vsel %vm3842_vm6, %v1590_v3, 0.0  ;;  %v1575_v21 = vsel %vm3845_vm12, %v1573_v37, 0.0  ;;  %v1558_v26 = vsel %vm3849_vm10, %v1556_v28, 0.0  ;;  %vm3852_vm9 = vnez %v3722_v43  ;;  %vm3856_vm12 = vmmov %vm3847_vm0 }
 0x7a0   : > { %vm3853_vm6 = vnez %v3735_v61 }
 0x7a5   : > { %v3277_v8 = vpop.f32.mrf.mxu2 }
 0x7a6   : > { %v1591_v14 = vsel %vm3843_vm5, %v3277_v8, 0.0  ;;  %v1574_v41 = vsel %vm3844_vm8, %v3277_v8, 0.0  ;;  %v1557_v5 = vsel %vm3846_vm7, %v3277_v8, 0.0  ;;  %v1642_v1 = vsel %vm3851_vm1, %v3277_v8, 0.0  ;;  %vm3857_vm7 = vmmov %vm3847_vm0 }
 0x7a7   : > { %v1593_v42 = vsel %vm3847_vm0, %v1591_v14, 0.0  ;;  %v1576_v23 = vsel %vm3848_vm15, %v1574_v41, 0.0  ;;  %v1559_v7 = vsel %vm3850_vm13, %v1557_v5, 0.0  ;;  %v1625_v47 = vsel %vm3852_vm9, %v3277_v8, 0.0  ;;  %vm3859_vm15 = vmmov %vm3857_vm7 }
 0x7a8   : > { %v1594_v45 = vadd.f32 %v1593_v42, %v1592_v11  ;;  %v1577_v31 = vadd.f32 %v1576_v23, %v1575_v21  ;;  %v1560_v16 = vadd.f32 %v1559_v7, %v1558_v26  ;;  %v1608_v35 = vsel %vm3853_vm6, %v3277_v8, 0.0  ;;  %vm3860_vm10 = vmmov %vm3857_vm7 }
 0x7a9   : > { %vm3854_vm5 = vnez %v3729_v51  ;;  %vm3855_vm8 = vnez %v3716_v40  ;;  %v1644_v56 = vsel %vm3856_vm12, %v1642_v1, 0.0  ;;  %v1627_v46 = vsel %vm3857_vm7, %v1625_v47, 0.0  ;;  %vm3861_vm13 = vmmov %vm3857_vm7 }
 0x7aa   : > { %1595 = vadd.xlane.f32.xlu1 %v1594_v45  ;;  %1578 = vadd.xlane.f32.xlu0 %v1577_v31  ;;  %v1641_v17 = vsel %vm3854_vm5, %v3266_v63, 0.0  ;;  %v1624_v36 = vsel %vm3855_vm8, %v3266_v63, 0.0  ;;  %vm3858_vm0 = vnez %v3741_v2  ;;  %v1610_v52 = vsel %vm3859_vm15, %v1608_v35, 0.0  ;;  %vm3862_vm1 = vmmov %vm3857_vm7 }
 0x7ab   : > { %1561 = vadd.xlane.f32.xlu2 %v1560_v16  ;;  %v1607_v43 = vsel %vm3858_vm0, %v3266_v63, 0.0  ;;  %v1643_v61 = vsel %vm3860_vm10, %v1641_v17, 0.0  ;;  %v1626_v50 = vsel %vm3861_vm13, %v1624_v36, 0.0  ;;  %vm3863_vm9 = vnez %v3752_v15  ;;  %vm3868_vm7 = vmmov %vm3862_vm1 }
 0x7ac   : > { %v1645_v51 = vadd.f32 %v1644_v56, %v1643_v61  ;;  %v1628_v54 = vadd.f32 %v1627_v46, %v1626_v50  ;;  %v1609_v30 = vsel %vm3862_vm1, %v1607_v43, 0.0  ;;  %v1693_v55 = vsel %vm3863_vm9, %v3277_v8, 0.0  ;;  %vm3869_vm0 = vmmov %vm3862_vm1  ;;  %v3895_v61 = vld [vmem:[#allocation4_spill] sm:$0xff] }
 0x7ad   : > { %v1611_v40 = vadd.f32 %v1610_v52, %v1609_v30  ;;  %vm3864_vm6 = vnez %v3757_v18  ;;  %vm3865_vm5 = vnez %v3761_v22  ;;  %vm3866_vm8 = vnez %v3749_v12  ;;  %vm3871_vm10 = vmmov %vm3869_vm0 }
 0x7ae   : > { %v1676_v2 = vsel %vm3864_vm6, %v3277_v8, 0.0  ;;  %v1659_v39 = vsel %vm3865_vm5, %v3277_v8, 0.0  ;;  %v1692_v57 = vsel %vm3866_vm8, %v3266_v63, 0.0  ;;  %vm3867_vm12 = vnez %v3763_v24  ;;  %vm3872_vm13 = vmmov %vm3869_vm0 }
 0x7af   : > { %v1675_v59 = vsel %vm3867_vm12, %v3266_v63, 0.0  ;;  %v1695_v15 = vsel %vm3868_vm7, %v1693_v55, 0.0  ;;  %v1678_v49 = vsel %vm3869_vm0, %v1676_v2, 0.0  ;;  %vm3870_vm15 = vnez %v3765_v27  ;;  %vm3873_vm1 = vmmov %vm3869_vm0 }
 0x7b0   : > { %v1658_v18 = vsel %vm3870_vm15, %v3266_v63, 0.0  ;;  %v1661_v62 = vsel %vm3871_vm10, %v1659_v39, 0.0  ;;  %v1694_v22 = vsel %vm3872_vm13, %v1692_v57, 0.0  ;;  %v1677_v3 = vsel %vm3873_vm1, %v1675_v59, 0.0  ;;  %vm3874_vm9 = vmmov %vm3869_vm0 }
 0x7b1   : > { %v1696_v12 = vadd.f32 %v1695_v15, %v1694_v22  ;;  %v1679_v37 = vadd.f32 %v1678_v49, %v1677_v3  ;;  %v1660_v28 = vsel %vm3874_vm9, %v1658_v18, 0.0  ;;  %vm3875_vm6 = vnez %v3771_v48  ;;  %vm3880_vm15 = vmmov %vm3869_vm0 }
 0x7b2   : > { %1646 = vadd.xlane.f32.xlu1 %v1645_v51  ;;  %1629 = vadd.xlane.f32.xlu0 %v1628_v54  ;;  %v1662_v24 = vadd.f32 %v1661_v62, %v1660_v28  ;;  %v1744_v11 = vsel %vm3875_vm6, %v3277_v8, 0.0  ;;  %vm3876_vm5 = vnez %v3776_v53  ;;  %vm3877_vm8 = vnez %v3780_v58  ;;  %vm3882_vm13 = vmmov %vm3869_vm0  ;;  %v3897_v51 = vld [vmem:[#allocation5_spill] sm:$0xff] }
 0x7b3   : > { %1612 = vadd.xlane.f32.xlu2 %v1611_v40  ;;  %v1727_v27 = vsel %vm3876_vm5, %v3277_v8, 0.0  ;;  %v1710_v14 = vsel %vm3877_vm8, %v3277_v8, 0.0  ;;  %vm3878_vm12 = vnez %v3768_v44  ;;  %vm3879_vm7 = vnez %v3782_v60  ;;  %vm3883_vm1 = vmmov %vm3869_vm0 }
 0x7b4   : > { %v1743_v41 = vsel %vm3878_vm12, %v3266_v63, 0.0  ;;  %v1726_v21 = vsel %vm3879_vm7, %v3266_v63, 0.0  ;;  %v1746_v48 = vsel %vm3869_vm0, %v1744_v11, 0.0  ;;  %v1729_v5 = vsel %vm3880_vm15, %v1727_v27, 0.0  ;;  %vm3884_vm9 = vmmov %vm3869_vm0 }
 0x7b5   : > { %vm3881_vm10 = vnez %v3784_v0  ;;  %v1712_v42 = vsel %vm3882_vm13, %v1710_v14, 0.0  ;;  %v1745_v58 = vsel %vm3883_vm1, %v1743_v41, 0.0  ;;  %v1728_v23 = vsel %vm3884_vm9, %v1726_v21, 0.0  ;;  %vm3885_vm6 = vmmov %vm3869_vm0 }
 0x7b6   : > { %v1709_v53 = vsel %vm3881_vm10, %v3266_v63, 0.0  ;;  %v1747_v44 = vadd.f32 %v1746_v48, %v1745_v58  ;;  %v1730_v26 = vadd.f32 %v1729_v5, %v1728_v23  ;;  %v1795_v45 = vsel %vm3017_vm11, %v3277_v8, 0.0  ;;  %vm3887_vm5 = vmmov %vm3869_vm0 }
 0x7b7   : > { %v1711_v7 = vsel %vm3885_vm6, %v1709_v53, 0.0  ;;  %v1778_v0 = vsel %vm3027_vm2, %v3277_v8, 0.0  ;;  %v1761_v31 = vsel %vm3036_vm3, %v3277_v8, 0.0  ;;  %v1794_v16 = vsel %vm3011_vm4, %v3266_v63, 0.0  ;;  %vm3888_vm11 = vmmov %vm3869_vm0 }
 0x7b8   : > { %v1713_v60 = vadd.f32 %v1712_v42, %v1711_v7  ;;  %v1777_v47 = vsel %vm3040_vm14, %v3266_v63, 0.0  ;;  %v1797_v13 = vsel %vm3887_vm5, %v1795_v45, 0.0  ;;  %v1780_v35 = vsel %vm3888_vm11, %v1778_v0, 0.0  ;;  %vm3891_vm8 = vmmov %vm3869_vm0 }
 0x7b9   : > { %vm3890_vm2 = vnez %v3889_v19  ;;  %v1763_v36 = vsel %vm3891_vm8, %v1761_v31, 0.0  ;;  %vm3892_vm12 = vmmov %vm3869_vm0  ;;  %vm3896_vm14 = vnez %v3895_v61  ;;  %vm3898_vm7 = vnez %v3897_v51 }
 0x7ba   : > { %1697 = vadd.xlane.f32.xlu1 %v1696_v12  ;;  %1680 = vadd.xlane.f32.xlu0 %v1679_v37  ;;  %v1760_v17 = vsel %vm3890_vm2, %v3266_v63, 0.0  ;;  %v1796_v25 = vsel %vm3892_vm12, %v1794_v16, 0.0  ;;  %vm3893_vm3 = vmmov %vm3869_vm0  ;;  %v1812_v50 = vsel %vm3896_vm14, %v3277_v8, 0.0  ;;  %v1811_v54 = vsel %vm3898_vm7, %v3266_v63, 0.0 }
 0x7bb   : > { %1663 = vadd.xlane.f32.xlu2 %v1662_v24  ;;  %v1779_v56 = vsel %vm3893_vm3, %v1777_v47, 0.0  ;;  %v1798_v10 = vadd.f32 %v1797_v13, %v1796_v25  ;;  %vm3894_vm4 = vmmov %vm3869_vm0  ;;  %v1814_v30 = vsel %vm3869_vm0, %v1812_v50, 0.0  ;;  %vm3900_vm10 = vcmp.eq.f32.partialorder %v2724_v33, 0.0 }
 0x7bc   : > { %v1781_v46 = vadd.f32 %v1780_v35, %v1779_v56  ;;  %v1762_v43 = vsel %vm3894_vm4, %v1760_v17, 0.0  ;;  %vm3899_vm15 = vmmov %vm3869_vm0  ;;  %vm3901_vm13 = vcmp.eq.f32.partialorder %v2724_v33, 1.0  ;;  %vm3902_vm1 = vcmp.eq.f32.partialorder %v2724_v33, 2.0 }
 0x7bd   : > { %v1764_v52 = vadd.f32 %v1763_v36, %v1762_v43  ;;  %v1813_v40 = vsel %vm3899_vm15, %v1811_v54, 0.0  ;;  %vm3903_vm9 = vcmp.eq.f32.partialorder %v2724_v33, 3.0  ;;  %vm3904_vm6 = vcmp.eq.f32.partialorder %v2724_v33, 4.0 }
 0x7be   : > { %v1815_v55 = vadd.f32 %v1814_v30, %v1813_v40  ;;  %vm3905_vm5 = vcmp.eq.f32.partialorder %v2724_v33, 5.0  ;;  %vm3906_vm11 = vcmp.eq.f32.partialorder %v2724_v33, 6.0  ;;  %vm3907_vm2 = vcmp.eq.f32.partialorder %v2724_v33, 7.0 }
 0x7bf   : > { %vm3908_vm8 = vcmp.eq.f32.partialorder %v2724_v33, 8.0  ;;  %vm3909_vm12 = vcmp.eq.f32.partialorder %v2724_v33, 9.0  ;;  %vm3910_vm3 = vcmp.eq.f32.partialorder %v2724_v33, 10.0  ;;  %vm3911_vm4 = vcmp.eq.f32.partialorder %v2724_v33, 11.0 }
 0x7c0   : > { %vm3912_vm14 = vcmp.eq.f32.partialorder %v2724_v33, 12.0  ;;  %vm3913_vm7 = vcmp.eq.f32.partialorder %v2724_v33, 13.0  ;;  %vm3914_vm0 = vcmp.eq.f32.partialorder %v2724_v33, 14.0  ;;  %vm3915_vm15 = vcmp.eq.f32.partialorder %v2724_v33, 15.0 }
 0x7c2   : > { %1748 = vadd.xlane.f32.xlu1 %v1747_v44  ;;  %1731 = vadd.xlane.f32.xlu0 %v1730_v26 }
 0x7c3   : > { %1714 = vadd.xlane.f32.xlu2 %v1713_v60 }
 0x7ca   : > { %1799 = vadd.xlane.f32.xlu1 %v1798_v10  ;;  %1782 = vadd.xlane.f32.xlu0 %v1781_v46 }
 0x7cb   : > { %1765 = vadd.xlane.f32.xlu2 %v1764_v52 }
 0x7d3   : > { %1816 = vadd.xlane.f32.xlu2 %v1815_v55 }
 0x81d   : > { %v1596_v2 = vpop.xlane.xlu1 %1595  ;;  %v1579_v39 = vpop.xlane.xlu0 %1578 }
 0x81e   : > { %v1597_v57 = vrot.slane %v1596_v2, 4  ;;  %v1580_v59 = vrot.slane %v1579_v39, 4  ;;  %v1562_v15 = vpop.xlane.xlu2 %1561 }
 0x81f   : > { %v1563_v49 = vrot.slane %v1562_v15, 4 }
 0x820   : > { %v1598_v18 = vadd.f32 %v1597_v57, %v1596_v2  ;;  %v1581_v62 = vadd.f32 %v1580_v59, %v1579_v39 }
 0x821   : > { %v1564_v22 = vadd.f32 %v1563_v49, %v1562_v15 }
 0x822   : > { %v1599_v8 = vrot.slane %v1598_v18, 2  ;;  %v1582_v3 = vrot.slane %v1581_v62, 2 }
 0x823   : > { %v1565_v12 = vrot.slane %v1564_v22, 2 }
 0x824   : > { %v1583_v37 = vadd.f32 %v1582_v3, %v1581_v62  ;;  %v1600_v63 = vadd.f32 %v1599_v8, %v1598_v18 }
 0x825   : > { %v1647_v28 = vpop.xlane.xlu1 %1646  ;;  %v1630_v24 = vpop.xlane.xlu0 %1629  ;;  %v1566_v11 = vadd.f32 %v1565_v12, %v1564_v22 }
 0x826   : > { %v1648_v27 = vrot.slane %v1647_v28, 4  ;;  %v1631_v14 = vrot.slane %v1630_v24, 4  ;;  %v1613_v41 = vpop.xlane.xlu2 %1612  ;;  %v1584_v21 = vrot.slane %v1583_v37, 1  ;;  %v1601_v48 = vrot.slane %v1600_v63, 1 }
 0x827   : > { %v1614_v5 = vrot.slane %v1613_v41, 4  ;;  %v1567_v53 = vrot.slane %v1566_v11, 1 }
 0x828   : > { %v1649_v42 = vadd.f32 %v1648_v27, %v1647_v28  ;;  %v1632_v58 = vadd.f32 %v1631_v14, %v1630_v24  ;;  %v1585_v23 = vadd.f32 %v1584_v21, %v1583_v37  ;;  %v1602_v7 = vadd.f32 %v1601_v48, %v1600_v63 }
 0x829   : > { %v1615_v44 = vadd.f32 %v1614_v5, %v1613_v41  ;;  %v1568_v26 = vadd.f32 %v1567_v53, %v1566_v11 }
 0x82a   : > { %v1650_v60 = vrot.slane %v1649_v42, 2  ;;  %v1633_v45 = vrot.slane %v1632_v58, 2 }
 0x82b   : > { %v1616_v0 = vrot.slane %v1615_v44, 2  ;;  %2446 = vpush %v1568_v26 }
 0x82c   : > { %2448 = vpush %v1585_v23  ;;  %v1634_v31 = vadd.f32 %v1633_v45, %v1632_v58  ;;  %v1651_v16 = vadd.f32 %v1650_v60, %v1649_v42 }
 0x82d   : > { %2450 = vpush %v1602_v7  ;;  %v1698_v1 = vpop.xlane.xlu1 %1697  ;;  %v1681_v47 = vpop.xlane.xlu0 %1680  ;;  %v1617_v13 = vadd.f32 %v1616_v0, %v1615_v44 }
 0x82e   : > { %v1699_v35 = vrot.slane %v1698_v1, 4  ;;  %v1682_v19 = vrot.slane %v1681_v47, 4  ;;  %v1664_v17 = vpop.xlane.xlu2 %1663  ;;  %v1635_v36 = vrot.slane %v1634_v31, 1  ;;  %v1652_v25 = vrot.slane %v1651_v16, 1 }
 0x82f   : > { %v1665_v56 = vrot.slane %v1664_v17, 4  ;;  %v1618_v10 = vrot.slane %v1617_v13, 1 }
 0x830   : > { %v1700_v46 = vadd.f32 %v1699_v35, %v1698_v1  ;;  %v1683_v43 = vadd.f32 %v1682_v19, %v1681_v47  ;;  %v1636_v52 = vadd.f32 %v1635_v36, %v1634_v31  ;;  %v1653_v51 = vadd.f32 %v1652_v25, %v1651_v16 }
 0x831   : > { %v1666_v61 = vadd.f32 %v1665_v56, %v1664_v17  ;;  %v1619_v50 = vadd.f32 %v1618_v10, %v1617_v13 }
 0x832   : > { %v1701_v54 = vrot.slane %v1700_v46, 2  ;;  %v1684_v30 = vrot.slane %v1683_v43, 2 }
 0x833   : > { %v1667_v40 = vrot.slane %v1666_v61, 2  ;;  %2452 = vpush %v1619_v50 }
 0x834   : > { %2454 = vpush %v1636_v52  ;;  %v1685_v55 = vadd.f32 %v1684_v30, %v1683_v43  ;;  %v1702_v2 = vadd.f32 %v1701_v54, %v1700_v46 }
 0x835   : > { %2456 = vpush %v1653_v51  ;;  %v1749_v39 = vpop.xlane.xlu1 %1748  ;;  %v1732_v57 = vpop.xlane.xlu0 %1731  ;;  %v1668_v59 = vadd.f32 %v1667_v40, %v1666_v61 }
 0x836   : > { %v1750_v15 = vrot.slane %v1749_v39, 4  ;;  %v1733_v49 = vrot.slane %v1732_v57, 4  ;;  %v1715_v18 = vpop.xlane.xlu2 %1714  ;;  %v1686_v62 = vrot.slane %v1685_v55, 1  ;;  %v1703_v22 = vrot.slane %v1702_v2, 1 }
 0x837   : > { %v1716_v8 = vrot.slane %v1715_v18, 4  ;;  %v1669_v3 = vrot.slane %v1668_v59, 1 }
 0x838   : > { %v1751_v12 = vadd.f32 %v1750_v15, %v1749_v39  ;;  %v1734_v37 = vadd.f32 %v1733_v49, %v1732_v57  ;;  %v1687_v63 = vadd.f32 %v1686_v62, %v1685_v55  ;;  %v1704_v11 = vadd.f32 %v1703_v22, %v1702_v2 }
 0x839   : > { %v1717_v28 = vadd.f32 %v1716_v8, %v1715_v18  ;;  %v1670_v24 = vadd.f32 %v1669_v3, %v1668_v59 }
 0x83a   : > { %v1752_v27 = vrot.slane %v1751_v12, 2  ;;  %v1735_v14 = vrot.slane %v1734_v37, 2 }
 0x83b   : > { %v1718_v41 = vrot.slane %v1717_v28, 2  ;;  %2458 = vpush %v1670_v24 }
 0x83c   : > { %2460 = vpush %v1687_v63  ;;  %v1736_v21 = vadd.f32 %v1735_v14, %v1734_v37  ;;  %v1753_v48 = vadd.f32 %v1752_v27, %v1751_v12 }
 0x83d   : > { %2462 = vpush %v1704_v11  ;;  %v1800_v5 = vpop.xlane.xlu1 %1799  ;;  %v1783_v53 = vpop.xlane.xlu0 %1782  ;;  %v1719_v42 = vadd.f32 %v1718_v41, %v1717_v28 }
 0x83e   : > { %v1801_v58 = vrot.slane %v1800_v5, 4  ;;  %v1784_v23 = vrot.slane %v1783_v53, 4  ;;  %v1766_v44 = vpop.xlane.xlu2 %1765  ;;  %v1737_v26 = vrot.slane %v1736_v21, 1  ;;  %v1754_v7 = vrot.slane %v1753_v48, 1 }
 0x83f   : > { %v1767_v60 = vrot.slane %v1766_v44, 4  ;;  %v1720_v45 = vrot.slane %v1719_v42, 1 }
 0x840   : > { %v1802_v0 = vadd.f32 %v1801_v58, %v1800_v5  ;;  %v1785_v31 = vadd.f32 %v1784_v23, %v1783_v53  ;;  %v1738_v16 = vadd.f32 %v1737_v26, %v1736_v21  ;;  %v1755_v13 = vadd.f32 %v1754_v7, %v1753_v48 }
 0x841   : > { %v1768_v1 = vadd.f32 %v1767_v60, %v1766_v44  ;;  %v1721_v47 = vadd.f32 %v1720_v45, %v1719_v42 }
 0x842   : > { %v1803_v35 = vrot.slane %v1802_v0, 2  ;;  %v1786_v19 = vrot.slane %v1785_v31, 2 }
 0x843   : > { %v1769_v17 = vrot.slane %v1768_v1, 2  ;;  %2464 = vpush %v1721_v47 }
 0x844   : > { %2466 = vpush %v1738_v16  ;;  %v1787_v36 = vadd.f32 %v1786_v19, %v1785_v31  ;;  %v1804_v25 = vadd.f32 %v1803_v35, %v1802_v0 }
 0x845   : > { %2468 = vpush %v1755_v13  ;;  %v1770_v56 = vadd.f32 %v1769_v17, %v1768_v1 }
 0x846   : > { %v1817_v10 = vpop.xlane.xlu2 %1816  ;;  %v1788_v46 = vrot.slane %v1787_v36, 1  ;;  %v1805_v43 = vrot.slane %v1804_v25, 1 }
 0x847   : > { %v1818_v52 = vrot.slane %v1817_v10, 4  ;;  %v1771_v61 = vrot.slane %v1770_v56, 1 }
 0x848   : > { %v1789_v50 = vadd.f32 %v1788_v46, %v1787_v36  ;;  %v1806_v30 = vadd.f32 %v1805_v43, %v1804_v25 }
 0x849   : > { %v1819_v51 = vadd.f32 %v1818_v52, %v1817_v10  ;;  %v1772_v54 = vadd.f32 %v1771_v61, %v1770_v56 }
 0x84b   : > { %v1820_v40 = vrot.slane %v1819_v51, 2  ;;  %2470 = vpush %v1772_v54 }
 0x84c   : > { %2472 = vpush %v1789_v50 }
 0x84d   : > { %2474 = vpush %v1806_v30  ;;  %v1821_v55 = vadd.f32 %v1820_v40, %v1819_v51 }
 0x84f   : > { %v1822_v2 = vrot.slane %v1821_v55, 1 }
 0x851   : > { %v1823_v39 = vadd.f32 %v1822_v2, %v1821_v55 }
 0x853   : > { %2476 = vpush %v1823_v39 }
 0x85c   : > { %s2447_s28 = spop %2446 }
 0x85d   : > { %v1570_v57 = vstv %s2447_s28  ;;  %s2449_s9 = spop %2448 }
 0x85e   : > { %v1571_v59 = vsel %vm3900_vm10, %v1570_v57, 0.0  ;;  %v1587_v15 = vstv %s2449_s9  ;;  %s2451_s2 = spop %2450  ;;  %vm3916_vm10 = vcmask 130048  }
 0x85f   : > { %v1588_v49 = vsel %vm3901_vm13, %v1587_v15, 0.0  ;;  %v1604_v62 = vstv %s2451_s2 }
 0x860   : > { %v1589_v18 = vadd.f32 %v1588_v49, %v1571_v59  ;;  %v1605_v22 = vsel %vm3902_vm1, %v1604_v62, 0.0  ;;  %vm3917_vm1 = vmmov %vm3916_vm10  ;;  %v1461_v49 = vld [vmem:[%s3633_s14 + $0x10] sm:$0xff]  ;;  %v1459_v62 = vld [vmem:[%s3633_s14] sm:$0xff] }
 0x862   : > { %v1606_v8 = vadd.f32 %v1605_v22, %v1589_v18  ;;  %v1462_v18 = vld [vmem:[%s3633_s14 + $0x18] sm:$0xff] }
 0x863   : > { %v1516_v22 = vpack.c.bf16 %v1462_v18, %v1461_v49  ;;  %v1464_v49 = vld [vmem:[%s3635_s16] sm:$0xff]  ;;  %v1465_v18 = vld [vmem:[%s3635_s16 + $0x8] sm:$0xff] }
 0x864   : > { %s2453_s6 = spop %2452 }
 0x865   : > { %v1621_v3 = vstv %s2453_s6  ;;  %s2455_s0 = spop %2454  ;;  %1526 = vmatpush.bf16.msra.mxu1 %v1516_v22 }
 0x866   : > { %v1622_v12 = vsel %vm3903_vm9, %v1621_v3, 0.0  ;;  %v1638_v37 = vstv %s2455_s0  ;;  %s2457_s30 = spop %2456 }
 0x867   : > { %v1623_v63 = vadd.f32 %v1622_v12, %v1606_v8  ;;  %v1639_v28 = vsel %vm3904_vm6, %v1638_v37, 0.0  ;;  %v1655_v11 = vstv %s2457_s30  ;;  %vm3918_vm6 = vmmov %vm3917_vm1  ;;  %v1460_v8 = vld [vmem:[%s3633_s14 + $0x8] sm:$0xff] }
 0x868   : > { %v1656_v27 = vsel %vm3905_vm5, %v1655_v11, 0.0  ;;  %v1515_v3 = vpack.c.bf16 %v1460_v8, %v1459_v62  ;;  %vm3919_vm5 = vcmask 261120   ;;  %v1926_v62 = vpack.c.bf16 %v1465_v18, %v1464_v49 }
 0x869   : > { %v1640_v24 = vadd.f32 %v1639_v28, %v1623_v63 }
 0x86a   : > { %1527 = vmatpush.bf16.msra.mxu1 %v1515_v3 }
 0x86b   : > { %v1657_v14 = vadd.f32 %v1656_v27, %v1640_v24 }
 0x86c   : > { %s2459_s3 = spop %2458 }
 0x86d   : > { %v1672_v41 = vstv %s2459_s3  ;;  %s2461_s26 = spop %2460  ;;  %2387 = vmatmul.msk.bf16.vlgmr.msra.gmra.mxu1 %vm3919_vm5, %v3235_v38  ;;  %s792_s3 = scalar_lea.vmem %s3643_s24, %s2698_s8 }
 0x86e   : > { %v1673_v21 = vsel %vm3906_vm11, %v1672_v41, 0.0  ;;  %v1689_v48 = vstv %s2461_s26  ;;  %s2463_s7 = spop %2462 }
 0x86f   : > { %v1674_v5 = vadd.f32 %v1673_v21, %v1657_v14  ;;  %v1690_v53 = vsel %vm3907_vm2, %v1689_v48, 0.0  ;;  %v1706_v58 = vstv %s2463_s7  ;;  %vm3920_vm2 = vmmov %vm3917_vm1 }
 0x870   : > { %v1707_v23 = vsel %vm3908_vm8, %v1706_v58, 0.0 }
 0x871   : > { %v1691_v42 = vadd.f32 %v1690_v53, %v1674_v5 }
 0x873   : > { %v1708_v44 = vadd.f32 %v1707_v23, %v1691_v42 }
 0x874   : > { %s2465_s1 = spop %2464 }
 0x875   : > { %v1723_v26 = vstv %s2465_s1  ;;  %s2467_s5 = spop %2466 }
 0x876   : > { %v1724_v7 = vsel %vm3909_vm12, %v1723_v26, 0.0  ;;  %v1740_v60 = vstv %s2467_s5  ;;  %s2469_s4 = spop %2468 }
 0x877   : > { %v1725_v45 = vadd.f32 %v1724_v7, %v1708_v44  ;;  %v1741_v0 = vsel %vm3910_vm3, %v1740_v60, 0.0  ;;  %v1757_v16 = vstv %s2469_s4 }
 0x878   : > { %v1758_v1 = vsel %vm3911_vm4, %v1757_v16, 0.0 }
 0x879   : > { %v1742_v31 = vadd.f32 %v1741_v0, %v1725_v45 }
 0x87b   : > { %v1759_v47 = vadd.f32 %v1758_v1, %v1742_v31 }
 0x87c   : > { %s2471_s28 = spop %2470 }
 0x87d   : > { %v1774_v13 = vstv %s2471_s28  ;;  %s2473_s9 = spop %2472 }
 0x87e   : > { %v1775_v35 = vsel %vm3912_vm14, %v1774_v13, 0.0  ;;  %v1791_v19 = vstv %s2473_s9  ;;  %s2475_s2 = spop %2474  ;;  %s797_s9 = scalar_lea.vmem %s3644_s25, %s2698_s8 }
 0x87f   : > { %v1776_v17 = vadd.f32 %v1775_v35, %v1759_v47  ;;  %v1792_v36 = vsel %vm3913_vm7, %v1791_v19, 0.0  ;;  %v1808_v56 = vstv %s2475_s2 }
 0x880   : > { %v1809_v10 = vsel %vm3914_vm0, %v1808_v56, 0.0 }
 0x881   : > { %v1793_v25 = vadd.f32 %v1792_v36, %v1776_v17  ;;  %v2502_v36 = vld [vmem:[%s3634_s15] ss:$0 sm:$0xff] }
 0x883   : > { %v1810_v46 = vadd.f32 %v1809_v10, %v1793_v25 }
 0x884   : > { %s2477_s6 = spop %2476 }
 0x885   : > { %v1825_v43 = vstv %s2477_s6 }
 0x886   : > { %v1826_v52 = vsel %vm3915_vm15, %v1825_v43, 0.0 }
 0x887   : > { %v1827_v61 = vadd.f32 %v1826_v52, %v1810_v46 }
 0x889   : > { %v1828_v50 = vmul.f32 0.03125, %v1827_v61 }
 0x88b   : > { %v1829_v51 = vsel %vm3916_vm10, %v1828_v50, -inf }
 0x88c   : > { %1830 = vmax.xlane.f32.xlu0 %v1829_v51 }
 0x8ea   : > { %v1529_v19 = vpop.f32.mrf.mxu1 }
 0x8eb   : > { %v1530_v25 = vadd.f32 %v2502_v36, %v1529_v19 }
 0x8f2   : > { %v1531_v56 = vpop.f32.mrf.mxu1 }
 0x8f3   : > { %v1532_v10 = vadd.f32 %v2502_v36, %v1531_v56 }
 0x8f5   : > { %v1907_v46 = vpack.c.bf16 %v1532_v10, %v1530_v25 }
 0x8f7   : > { %1918 = vmatpush.bf16.msra.mxu3 %v1907_v46 }
 0x8ff   : > { %v1831_v54 = vpop.xlane.xlu0 %1830 }
 0x900   : > { %2478 = vpush %v1831_v54 }
 0x931   : > { %s2479_s0 = spop %2478 }
 0x932   : > { %v1833_v30 = vstv %s2479_s0 }
 0x933   : > { %vm1834_vm13 = vcmp.ge.f32.partialorder %v1828_v50, %v1833_v30  ;;  %v1854_v12 = vsub.f32 %v1833_v30, %v1833_v30 }
 0x934   : > { %v1835_v40 = vsel %vm1834_vm13, %v2724_v33, 16.0 }
 0x935   : > { %v1836_v55 = vsel %vm3917_vm1, %v1835_v40, inf  ;;  %v1855_v37 = vmul.f32 1.442695, %v1854_v12 }
 0x936   : > { %1837 = vmin.xlane.f32.xlu1 %v1836_v55 }
 0x937   : > { %2510 = vpow2.f32 %v1855_v37  ;;  %v2503_v37 = vld [vmem:[%s3636_s17] ss:$0 sm:$0xff] }
 0x93d   : > { %v2511_v14 = vpop.eup %2510 }
 0x9a9   : > { %v1838_v2 = vpop.xlane.xlu1 %1837 }
 0x9aa   : > { %2480 = vpush %v1838_v2 }
 0x9db   : > { %s2481_s30 = spop %2480 }
 0x9dc   : > { %v1840_v39 = vstv %s2481_s30 }
 0x9dd   : > { %vm1841_vm9 = vcmp.eq.f32.partialorder %v2724_v33, %v1840_v39  ;;  %v1861_v38 = vadd.f32 %v1840_v39, %v2722_v32  ;;  %v1862_v5 = vadd.f32 %v1840_v39, %v2726_v34 }
 0x9de   : > { %v1842_v57 = vsel %vm1841_vm9, -1e+30, %v1828_v50 }
 0x9df   : > { %v1843_v59 = vsel %vm3918_vm6, %v1842_v57, -inf  ;;  %v1863_v58 = vsub.f32 %v1861_v38, %v2724_v33  ;;  %v1864_v44 = vsub.f32 %v1862_v5, %v2724_v33 }
 0x9e0   : > { %1844 = vmax.xlane.f32.xlu2 %v1843_v59  ;;  %v1467_v59 = vld [vmem:[%s3635_s16 + $0x18] sm:$0xff] }
 0x9e1   : > { %vm1865_vm3 = vcmp.eq.f32.partialorder %v1863_v58, 0.0  ;;  %vm1867_vm4 = vcmp.eq.f32.partialorder %v1863_v58, 16.0  ;;  %vm1866_vm7 = vcmp.eq.f32.partialorder %v1864_v44, 0.0  ;;  %vm1868_vm0 = vcmp.eq.f32.partialorder %v1864_v44, 16.0 }
 0x9e2   : > { %vm3455_vm10 = vmor %vm1865_vm3, %vm1867_vm4 }
 0x9e3   : > { %vm3459_vm13 = vmor %vm1866_vm7, %vm1868_vm0 }
 0xa53   : > { %v1845_v15 = vpop.xlane.xlu2 %1844 }
 0xa54   : > { %2482 = vpush %v1845_v15 }
 0xa85   : > { %s2483_s2 = spop %2482 }
 0xa86   : > { %v1847_v63 = vstv %s2483_s2 }
 0xa87   : > { %vm1848_vm11 = vcmp.ge.f32.partialorder %v1842_v57, %v1847_v63  ;;  %v1857_v28 = vsub.f32 %v1847_v63, %v1833_v30  ;;  %v1466_v57 = vld [vmem:[%s3635_s16 + $0x10] sm:$0xff] }
 0xa88   : > { %v1849_v24 = vsel %vm1848_vm11, %v2724_v33, 16.0  ;;  %v1927_v15 = vpack.c.bf16 %v1467_v59, %v1466_v57  ;;  %v2074_v57 = vld [vmem:[%s3639_s20 + $0x18] sm:$0xff] }
 0xa89   : > { %v1858_v11 = vmul.f32 1.442695, %v1857_v28  ;;  %v1850_v27 = vsel %vm3920_vm2, %v1849_v24, inf }
 0xa8a   : > { %1851 = vmin.xlane.f32.xlu0 %v1850_v27  ;;  %1940 = vmatpush.bf16.msrb.mxu0 %v1927_v15 }
 0xa8b   : > { %2512 = vpow2.f32 %v1858_v11 }
 0xa8e   : > { %1941 = vmatpush.bf16.msrb.mxu0 %v1926_v62  ;;  %v2071_v62 = vld [vmem:[%s3639_s20] sm:$0xff] }
 0xa91   : > { %v2513_v41 = vpop.eup %2512 }
 0xa92   : > { %v1860_v21 = vadd.f32 %v2513_v41, %v2511_v14 }
 0xa94   : > { %2514 = vrcp.f32 %v1860_v21  ;;  %v1882_v23 = vand.u32 2147483648, %v1860_v21  ;;  %v1880_v7 = vand.u32 2147483647, %v1860_v21  ;;  %vm1876_vm12 = vweird.f32 %v1860_v21 }
 0xa96   : > { %v1883_v45 = vor.u32 1.1754944e-38, %v1882_v23  ;;  %vm1881_vm15 = vcmp.eq.f32.partialorder %v1880_v7, 8.507059e+37 }
 0xa9a   : > { %v2515_v48 = vpop.eup %2514 }
 0xa9b   : > { %v1872_v53 = vmul.f32 %v2515_v48, %v1860_v21  ;;  %vm1877_vm8 = vweird.f32 %v2515_v48  ;;  %v1970_v21 = vld [vmem:[%s3638_s19 + $0x18] sm:$0xff] }
 0xa9c   : > { %vm1878_vm14 = vmor %vm1876_vm12, %vm1877_vm8  ;;  %vm3925_vm8 = vcmask 130048   ;;  %vm3926_vm12 = vcmask 261120  }
 0xa9d   : > { %v1873_v42 = vsub.f32 1.0, %v1872_v53  ;;  %vm3927_vm3 = vmmov %vm3925_vm8 }
 0xa9e   : > { %vm3928_vm4 = vmmov %vm3926_vm12 }
 0xa9f   : > { %v1874_v26 = vmul.f32 %v2515_v48, %v1873_v42 }
 0xaa1   : > { %v1875_v60 = vadd.f32 %v2515_v48, %v1874_v26 }
 0xaa3   : > { %v1879_v0 = vsel %vm1878_vm14, %v2515_v48, %v1875_v60 }
 0xaa4   : > { %v1884_v31 = vsel %vm1881_vm15, %v1883_v45, %v1879_v0 }
 0xaa5   : > { %v1885_v1 = vmul.f32 %v2511_v14, %v1884_v31  ;;  %v1901_v54 = vmul.f32 %v2513_v41, %v1884_v31  ;;  %v1969_v41 = vld [vmem:[%s3638_s19 + $0x10] sm:$0xff] }
 0xaa6   : > { %v1973_v48 = vpack.c.bf16 %v1970_v21, %v1969_v41 }
 0xaa7   : > { %v1886_v13 = vsel %vm3455_vm10, %v1885_v1, 0.0  ;;  %v1887_v35 = vsel %vm3459_vm13, %v1885_v1, 0.0 }
 0xaa8   : > { %1983 = vmatpush.bf16.msrb.mxu2 %v1973_v48 }
 0xafd   : > { %v1852_v17 = vpop.xlane.xlu0 %1851 }
 0xafe   : > { %2484 = vpush %v1852_v17 }
 0xb2f   : > { %s2485_s30 = spop %2484 }
 0xb30   : > { %v1890_v43 = vstv %s2485_s30 }
 0xb31   : > { %v1891_v52 = vadd.f32 %v1890_v43, %v2722_v32  ;;  %v1892_v61 = vadd.f32 %v1890_v43, %v2726_v34 }
 0xb33   : > { %v1893_v50 = vsub.f32 %v1891_v52, %v2724_v33  ;;  %v1894_v51 = vsub.f32 %v1892_v61, %v2724_v33 }
 0xb35   : > { %vm1895_vm1 = vcmp.eq.f32.partialorder %v1893_v50, 0.0  ;;  %vm1896_vm9 = vcmp.eq.f32.partialorder %v1894_v51, 0.0  ;;  %vm1897_vm6 = vcmp.eq.f32.partialorder %v1893_v50, 16.0  ;;  %vm1898_vm5 = vcmp.eq.f32.partialorder %v1894_v51, 16.0 }
 0xb36   : > { %vm1899_vm11 = vmor %vm1895_vm1, %vm1897_vm6 }
 0xb37   : > { %vm1900_vm2 = vmor %vm1896_vm9, %vm1898_vm5  ;;  %v1902_v30 = vsel %vm1899_vm11, %v1901_v54, 0.0 }
 0xb38   : > { %v1903_v40 = vsel %vm1900_vm2, %v1901_v54, 0.0  ;;  %v1904_v55 = vadd.f32 %v1902_v30, %v1886_v13  ;;  %vm3929_vm11 = vmmov %vm3928_vm4 }
 0xb39   : > { %v1905_v2 = vadd.f32 %v1903_v40, %v1887_v35  ;;  %vm3930_vm2 = vmmov %vm3927_vm3 }
 0xb3b   : > { %v1906_v39 = vpack.c.bf16 %v1905_v2, %v1904_v55 }
 0xb3d   : > { %2389 = vmatmul.msk.bf16.vlgmr.msra.gmra.mxu3 %vm3925_vm8, %v1906_v39  ;;  %v2073_v39 = vld [vmem:[%s3639_s20 + $0x10] sm:$0xff] }
 0xb3e   : > { %v2077_v49 = vpack.c.bf16 %v2074_v57, %v2073_v39 }
 0xb40   : > { %2087 = vmatpush.bf16.msrb.mxu3 %v2077_v49  ;;  %v2119_v49 = vadd.f32 -1.0, %v2726_v34 }
 0xbc0   : > { %v1920_v22 = vpop.f32.mrf.mxu3 }
 0xbc8   : > { %v1922_v8 = vpop.f32.mrf.mxu3 }
 0xbc9   : > { %v1925_v3 = vpack.c.bf16 %v1922_v8, %v1920_v22  ;;  %v2072_v22 = vld [vmem:[%s3639_s20 + $0x8] sm:$0xff] }
 0xbcb   : > { %2390 = vmatmul.msk.bf16.vlgmr.msrb.gmra.mxu0 %vm3926_vm12, %v1925_v3 }
 0xc48   : > { %v1943_v12 = vpop.f32.mrf.mxu0 }
 0xc49   : > { %v1944_v63 = vadd.f32 %v2503_v37, %v1943_v12  ;;  %v2076_v12 = vpack.c.bf16 %v2072_v22, %v2071_v62  ;;  %v2200_v62 = vadd.f32 1.0, %v2722_v32  ;;  %v2201_v22 = vadd.f32 1.0, %v2726_v34 }
 0xc4b   : > { %v1948_v11 = vadd.f32 %v1944_v63, %v3250_v29  ;;  %v1967_v29 = vld [vmem:[%s3638_s19] sm:$0xff]  ;;  %2088 = vmatpush.bf16.msrb.mxu3 %v2076_v12  ;;  %v2203_v12 = vsub.f32 %v2201_v22, %v2724_v33 }
 0xc50   : > { %v1945_v28 = vpop.f32.mrf.mxu0 }
 0xc51   : > { %v1946_v24 = vadd.f32 %v2503_v37, %v1945_v28 }
 0xc53   : > { %v1949_v27 = vadd.f32 %v1946_v24, %v3253_v20  ;;  %v1968_v20 = vld [vmem:[%s3638_s19 + $0x8] sm:$0xff] }
 0xc54   : > { %v1972_v38 = vpack.c.bf16 %v1968_v20, %v1967_v29 }
 0xc55   : > { %v1950_v14 = vpack.c.bf16 %v1949_v27, %v1948_v11 }
 0xc56   : > { %1984 = vmatpush.bf16.msrb.mxu2 %v1972_v38 }
 0xc57   : > { %1958 = vmatpush.bf16.msrb.mxu1 %v1950_v14 }
 0xc5a   : > { %2391 = vmatmul.msk.bf16.vlgmr.msrb.gmra.mxu1 %vm3927_vm3, %v3215_v6 }
 0xcd7   : > { %v3507_v5 = vpop.f32.mrf.mxu1 }
 0xcd8   : > { %v3512_v42 = vsub.f32 %v1948_v11, %v3507_v5 }
 0xcdf   : > { %v3509_v53 = vpop.f32.mrf.mxu1 }
 0xce0   : > { %v3515_v58 = vsub.f32 %v1949_v27, %v3509_v53  ;;  %v2115_v34 = vadd.f32 %v3509_v53, %v3247_v9  ;;  %v2155_v9 = vld [vmem:[%s3640_s21 + $0x10] sm:$0xff] }
 0xce2   : > { %v1971_v23 = vpack.c.bf16 %v3515_v58, %v3512_v42 }
 0xce4   : > { %2392 = vmatmul.msk.bf16.vlgmr.msrb.gmra.mxu2 %vm3928_vm4, %v1971_v23 }
 0xd67   : > { %v3520_v44 = vpop.f32.mrf.mxu2 }
 0xd68   : > { %v3523_v26 = vmul.f32 0.70710677, %v3520_v44 }
 0xd6a   : > { %v1999_v7 = vand.u32 2147483647, %v3523_v26  ;;  %vm1995_vm6 = vcmp.lt.f32.partialorder %v3523_v26, 0.0 }
 0xd6c   : > { %v2001_v60 = vmul.f32 0.3275911, %v1999_v7  ;;  %v2053_v51 = vmul.f32 %v1999_v7, %v1999_v7 }
 0xd6e   : > { %v2003_v45 = vadd.f32 1.0, %v2001_v60  ;;  %v2055_v15 = vsub.f32 0.0, %v2053_v51 }
 0xd6f   : > { %v3526_v0 = vpop.f32.mrf.mxu2 }
 0xd70   : > { %2516 = vrcp.f32 %v2003_v45  ;;  %v3529_v31 = vmul.f32 0.70710677, %v3526_v0  ;;  %v2016_v17 = vand.u32 2147483648, %v2003_v45  ;;  %v2014_v25 = vand.u32 2147483647, %v2003_v45 }
 0xd71   : > { %vm2010_vm7 = vweird.f32 %v2003_v45  ;;  %v2057_v28 = vmul.f32 1.442695, %v2055_v15  ;;  %v1992_v51 = vmul.f32 0.5, %v3526_v0  ;;  %v2163_v0 = vld [vmem:[%s3641_s22 + $0x18] sm:$0xff] }
 0xd72   : > { %v2000_v16 = vand.u32 2147483647, %v3529_v31  ;;  %v2017_v10 = vor.u32 1.1754944e-38, %v2016_v17  ;;  %vm2015_vm15 = vcmp.eq.f32.partialorder %v2014_v25, 8.507059e+37  ;;  %vm1996_vm5 = vcmp.lt.f32.partialorder %v3529_v31, 0.0 }
 0xd74   : > { %v2002_v1 = vmul.f32 0.3275911, %v2000_v16  ;;  %v2054_v11 = vmul.f32 %v2000_v16, %v2000_v16 }
 0xd76   : > { %v2517_v47 = vpop.eup %2516  ;;  %v2004_v35 = vadd.f32 1.0, %v2002_v1  ;;  %v2056_v48 = vsub.f32 0.0, %v2054_v11 }
 0xd77   : > { %v2006_v13 = vmul.f32 %v2517_v47, %v2003_v45  ;;  %vm2011_vm14 = vweird.f32 %v2517_v47 }
 0xd78   : > { %2518 = vrcp.f32 %v2004_v35  ;;  %vm2012_vm0 = vmor %vm2010_vm7, %vm2011_vm14  ;;  %v2031_v40 = vand.u32 2147483648, %v2004_v35  ;;  %v2029_v2 = vand.u32 2147483647, %v2004_v35  ;;  %vm2025_vm13 = vweird.f32 %v2004_v35 }
 0xd79   : > { %v2007_v19 = vsub.f32 1.0, %v2006_v13  ;;  %2520 = vpow2.f32 %v2057_v28  ;;  %v2059_v7 = vmul.f32 1.442695, %v2056_v48  ;;  %v2535_v28 = vmov 0.0  }
 0xd7a   : > { %v2032_v3 = vor.u32 1.1754944e-38, %v2031_v40  ;;  %vm2030_vm9 = vcmp.eq.f32.partialorder %v2029_v2, 8.507059e+37 }
 0xd7b   : > { %v2008_v36 = vmul.f32 %v2517_v47, %v2007_v19  ;;  %2522 = vpow2.f32 %v2059_v7 }
 0xd7d   : > { %v2009_v56 = vadd.f32 %v2517_v47, %v2008_v36  ;;  %v2534_v36 = vmov 1.0  }
 0xd7e   : > { %v2519_v46 = vpop.eup %2518  ;;  %v1997_v25 = vsel %vm1995_vm6, -1.0, %v2534_v36 }
 0xd7f   : > { %v2013_v43 = vsel %vm2012_vm0, %v2517_v47, %v2009_v56  ;;  %v2021_v61 = vmul.f32 %v2519_v46, %v2004_v35  ;;  %vm2026_vm10 = vweird.f32 %v2519_v46  ;;  %v2521_v45 = vpop.eup %2520 }
 0xd80   : > { %v2018_v52 = vsel %vm2015_vm15, %v2017_v10, %v2013_v43  ;;  %vm2027_vm1 = vmor %vm2025_vm13, %vm2026_vm10  ;;  %v1998_v43 = vsel %vm1996_vm5, -1.0, %v2534_v36  ;;  %vm2205_vm13 = vcmp.eq.f32.partialorder %v2203_v12, 0.0 }
 0xd81   : > { %v2035_v50 = vmul.f32 1.0614054, %v2018_v52  ;;  %v2022_v54 = vsub.f32 1.0, %v2021_v61  ;;  %v2523_v17 = vpop.eup %2522  ;;  %vm3931_vm5 = vmmov %vm3929_vm11 }
 0xd83   : > { %v2037_v30 = vadd.f32 -1.4531521, %v2035_v50  ;;  %v2023_v55 = vmul.f32 %v2519_v46, %v2022_v54  ;;  %v1991_v50 = vmul.f32 0.5, %v3520_v44  ;;  %v2162_v44 = vld [vmem:[%s3641_s22 + $0x10] sm:$0xff] }
 0xd85   : > { %v2039_v59 = vmul.f32 %v2037_v30, %v2018_v52  ;;  %v2024_v18 = vadd.f32 %v2519_v46, %v2023_v55 }
 0xd87   : > { %v2041_v8 = vadd.f32 1.4214138, %v2039_v59  ;;  %v2028_v37 = vsel %vm2027_vm1, %v2519_v46, %v2024_v18  ;;  %v2165_v59 = vpack.c.bf16 %v2163_v0, %v2162_v44  ;;  %vm2207_vm1 = vcmp.eq.f32.partialorder %v2203_v12, 16.0 }
 0xd88   : > { %v2033_v24 = vsel %vm2030_vm9, %v2032_v3, %v2028_v37  ;;  %v2202_v3 = vsub.f32 %v2200_v62, %v2724_v33 }
 0xd89   : > { %v2043_v63 = vmul.f32 %v2041_v8, %v2018_v52  ;;  %v2036_v27 = vmul.f32 1.0614054, %v2033_v24  ;;  %2175 = vmatpush.bf16.msra.mxu2 %v2165_v59  ;;  %v2121_v8 = vsub.f32 %v2119_v49, %v2724_v33 }
 0xd8a   : > { %vm2204_vm0 = vcmp.eq.f32.partialorder %v2202_v3, 0.0  ;;  %vm2206_vm15 = vcmp.eq.f32.partialorder %v2202_v3, 16.0 }
 0xd8b   : > { %v2045_v14 = vadd.f32 -0.28449672, %v2043_v63  ;;  %v2038_v41 = vadd.f32 -1.4531521, %v2036_v27  ;;  %vm2123_vm3 = vcmp.eq.f32.partialorder %v2121_v8, 0.0  ;;  %vm2125_vm4 = vcmp.eq.f32.partialorder %v2121_v8, 16.0 }
 0xd8c   : > { %vm2127_vm10 = vmor %vm2123_vm3, %vm2125_vm4  ;;  %vm2129_vm9 = vcmp.eq.f32.partialorder %v2121_v8, -16.0 }
 0xd8d   : > { %v2047_v21 = vmul.f32 %v2045_v14, %v2018_v52  ;;  %v2040_v29 = vmul.f32 %v2038_v41, %v2033_v24  ;;  %vm2131_vm3 = vmor %vm2127_vm10, %vm2129_vm9  ;;  %vm2262_vm9 = vcmask 31744  }
 0xd8e   : > { %v2133_v41 = vsel %vm2131_vm3, 1.0, %v2535_v28 }
 0xd8f   : > { %v2049_v20 = vadd.f32 0.2548296, %v2047_v21  ;;  %v2042_v38 = vadd.f32 1.4214138, %v2040_v29 }
 0xd91   : > { %v2051_v23 = vmul.f32 %v2049_v20, %v2018_v52  ;;  %v2044_v60 = vmul.f32 %v2042_v38, %v2033_v24  ;;  %v2236_v38 = vld [vmem:[%s3642_s23 + $0x10] sm:$0xff] }
 0xd93   : > { %v2061_v1 = vmul.f32 %v2521_v45, %v2051_v23  ;;  %v2046_v47 = vadd.f32 -0.28449672, %v2044_v60  ;;  %v2237_v23 = vld [vmem:[%s3642_s23 + $0x18] sm:$0xff]  ;;  %v2153_v60 = vld [vmem:[%s3640_s21] sm:$0xff]  ;;  %v2154_v45 = vld [vmem:[%s3640_s21 + $0x8] sm:$0xff] }
 0xd94   : > { %v2240_v7 = vpack.c.bf16 %v2237_v23, %v2236_v38 }
 0xd95   : > { %v2048_v13 = vmul.f32 %v2046_v47, %v2033_v24  ;;  %v2063_v16 = vsub.f32 1.0, %v2061_v1  ;;  %v2158_v1 = vpack.c.bf16 %v2154_v45, %v2153_v60  ;;  %v2234_v47 = vld [vmem:[%s3642_s23] sm:$0xff] }
 0xd97   : > { %v2050_v35 = vadd.f32 0.2548296, %v2048_v13  ;;  %v2065_v56 = vmul.f32 %v2063_v16, %v1997_v25  ;;  %v2235_v13 = vld [vmem:[%s3642_s23 + $0x8] sm:$0xff] }
 0xd98   : > { %v2239_v16 = vpack.c.bf16 %v2235_v13, %v2234_v47 }
 0xd99   : > { %v2052_v19 = vmul.f32 %v2050_v35, %v2033_v24  ;;  %v2067_v52 = vadd.f32 1.0, %v2065_v56 }
 0xd9b   : > { %v2062_v10 = vmul.f32 %v2523_v17, %v2052_v19  ;;  %v2069_v26 = vmul.f32 %v2067_v52, %v1991_v50 }
 0xd9d   : > { %v2064_v46 = vsub.f32 1.0, %v2062_v10 }
 0xd9f   : > { %v2066_v61 = vmul.f32 %v2064_v46, %v1998_v43 }
 0xda1   : > { %v2068_v54 = vadd.f32 1.0, %v2066_v61 }
 0xda3   : > { %v2070_v30 = vmul.f32 %v2068_v54, %v1992_v51 }
 0xda5   : > { %v2075_v40 = vpack.c.bf16 %v2070_v30, %v2069_v26 }
 0xda7   : > { %2393 = vmatmul.msk.bf16.vlgmr.msrb.gmra.mxu3 %vm3929_vm11, %v2075_v40  ;;  %vm2208_vm11 = vmor %vm2204_vm0, %vm2206_vm15  ;;  %vm3934_vm15 = vcmask 130048  }
 0xda8   : > { %vm3933_vm0 = vmmov %vm3931_vm5 }
 0xda9   : > { %vm3935_vm10 = vmmov %vm3934_vm15 }
 0xe2a   : > { %v2090_v55 = vpop.f32.mrf.mxu3 }
 0xe2b   : > { %v2095_v39 = vadd.f32 %v2090_v55, %v3512_v42  ;;  %v2160_v42 = vld [vmem:[%s3641_s22] sm:$0xff] }
 0xe32   : > { %v2092_v2 = vpop.f32.mrf.mxu3 }
 0xe33   : > { %v2096_v31 = vadd.f32 %v2092_v2, %v3515_v58  ;;  %v2161_v58 = vld [vmem:[%s3641_s22 + $0x8] sm:$0xff] }
 0xe34   : > { %v2164_v15 = vpack.c.bf16 %v2161_v58, %v2160_v42 }
 0xe35   : > { %v2097_v57 = vpack.c.bf16 %v2096_v31, %v2095_v39 }
 0xe36   : > { %2176 = vmatpush.bf16.msra.mxu2 %v2164_v15 }
 0xe37   : > { %2105 = vmatpush.bf16.msra.mxu0 %v2097_v57 }
 0xe3a   : > { %2394 = vmatmul.msk.bf16.vlgmr.msra.gmra.mxu0 %vm3930_vm2, %v3215_v6  ;;  %v2118_v6 = vadd.f32 -1.0, %v2722_v32  ;;  %vm2210_vm2 = vcmp.eq.f32.partialorder %v2202_v3, -16.0 }
 0xe3b   : > { %vm2212_vm4 = vmor %vm2208_vm11, %vm2210_vm2 }
 0xe3c   : > { %v2120_v18 = vsub.f32 %v2118_v6, %v2724_v33  ;;  %v2114_v33 = vadd.f32 %v3507_v5, %v3245_v4  ;;  %v2214_v21 = vsel %vm2212_vm4, 1.0, %v2535_v28  ;;  %v2156_v5 = vld [vmem:[%s3640_s21 + $0x18] sm:$0xff] }
 0xe3d   : > { %v2159_v53 = vpack.c.bf16 %v2156_v5, %v2155_v9 }
 0xe3e   : > { %vm2122_vm8 = vcmp.eq.f32.partialorder %v2120_v18, 0.0  ;;  %vm2124_vm12 = vcmp.eq.f32.partialorder %v2120_v18, 16.0  ;;  %vm2128_vm7 = vcmp.eq.f32.partialorder %v2120_v18, -16.0 }
 0xe3f   : > { %vm2126_vm14 = vmor %vm2122_vm8, %vm2124_vm12  ;;  %vm2211_vm12 = vcmp.eq.f32.partialorder %v2203_v12, -16.0  ;;  %2192 = vmatpush.bf16.msra.mxu3 %v2159_v53 }
 0xe40   : > { %vm2130_vm6 = vmor %vm2126_vm14, %vm2128_vm7 }
 0xe41   : > { %vm2209_vm8 = vmor %vm2205_vm13, %vm2207_vm1  ;;  %v2132_v24 = vsel %vm2130_vm6, 1.0, %v2535_v28 }
 0xe42   : > { %vm2213_vm7 = vmor %vm2209_vm8, %vm2211_vm12  ;;  %v2134_v20 = vpack.c.bf16 %v2133_v41, %v2132_v24 }
 0xe43   : > { %v2215_v48 = vsel %vm2213_vm7, 1.0, %v2535_v28  ;;  %vm3932_vm14 = vmmov %vm3931_vm5  ;;  %2193 = vmatpush.bf16.msra.mxu3 %v2158_v1 }
 0xe44   : > { %v2216_v4 = vpack.c.bf16 %v2215_v48, %v2214_v21  ;;  %vm3936_vm13 = vmmov %vm3933_vm0 }
 0xe45   : > { %vm3937_vm1 = vmmov %vm3933_vm0 }
 0xeb7   : > { %v2107_v37 = vpop.f32.mrf.mxu0 }
 0xeb8   : > { %v2112_v32 = vsub.f32 %v2095_v39, %v2107_v37  ;;  %v2116_v11 = vadd.f32 %v2114_v33, %v2107_v37 }
 0xeba   : > { %2260 = vst.msk [vmem:[%s792_s3] sm:$0xff] %vm3931_vm5, %v2112_v32 }
 0xebf   : > { %v2109_v63 = vpop.f32.mrf.mxu0 }
 0xec0   : > { %v2113_v27 = vsub.f32 %v2096_v31, %v2109_v63  ;;  %v2117_v14 = vadd.f32 %v2115_v34, %v2109_v63 }
 0xec2   : > { %v2135_v29 = vpack.c.bf16 %v2117_v14, %v2116_v11  ;;  %2261 = vst.msk [vmem:[%s792_s3 + $0x8] sm:$0xff] %vm3932_vm14, %v2113_v27 }
 0xec4   : > { %2146 = vmatpush.bf16.msra.mxu1 %v2135_v29  ;;  %2396 = vmatmul.msk.bf16.vlgmr.msra.gmra.mxu2 %vm3933_vm0, %v2135_v29 }
 0xec5   : > { %2227 = vmatpush.bf16.msrb.mxu0 %v2135_v29 }
 0xec7   : > { %2395 = vmatmul.msk.bf16.vlgmr.msra.gmra.mxu1 %vm3934_vm15, %v2134_v20 }
 0xec8   : > { %2398 = vmatmul.msk.bf16.vlgmr.msrb.gmra.mxu0 %vm3935_vm10, %v2216_v4  ;;  %2250 = vmatpush.bf16.msrb.mxu1 %v2240_v7 }
 0xecc   : > { %2251 = vmatpush.bf16.msrb.mxu1 %v2239_v16 }
 0xf44   : > { %v2148_v35 = vpop.f32.mrf.mxu1 }
 0xf45   : > { %v2229_v19 = vpop.f32.mrf.mxu0 }
 0xf47   : > { %v2178_v10 = vpop.f32.mrf.mxu2 }
 0xf4c   : > { %v2150_v17 = vpop.f32.mrf.mxu1 }
 0xf4d   : > { %v2157_v36 = vpack.c.bf16 %v2150_v17, %v2148_v35  ;;  %v2231_v25 = vpop.f32.mrf.mxu0 }
 0xf4e   : > { %v2238_v56 = vpack.c.bf16 %v2231_v25, %v2229_v19 }
 0xf4f   : > { %2397 = vmatmul.msk.bf16.vlgmr.msra.gmra.mxu3 %vm3936_vm13, %v2157_v36  ;;  %v2180_v50 = vpop.f32.mrf.mxu2 }
 0xf50   : > { %2399 = vmatmul.msk.bf16.vlgmr.msrb.gmra.mxu1 %vm3937_vm1, %v2238_v56 }
 0xfcd   : > { %v2253_v46 = vpop.f32.mrf.mxu1 }
 0xfd2   : > { %v2195_v43 = vpop.f32.mrf.mxu3 }
 0xfd3   : > { %v2196_v52 = vadd.f32 %v2195_v43, %v2178_v10 }
 0xfd5   : > { %v2258_v61 = vadd.f32 %v2253_v46, %v2196_v52  ;;  %v2255_v26 = vpop.f32.mrf.mxu1 }
 0xfd7   : > { %2263 = vst.msk [vmem:[%s797_s9] sm:$0xff] %vm2262_vm9, %v2258_v61 }
 0xfda   : > { %v2197_v51 = vpop.f32.mrf.mxu3 }
 0xfdb   : > { %v2198_v54 = vadd.f32 %v2197_v51, %v2180_v50 }
 0xfdd   : > { %v2259_v30 = vadd.f32 %v2255_v26, %v2198_v54 }
 0xfdf   : > { %2264 = vst.msk [vmem:[%s797_s9 + $0x8] sm:$0xff] %vm2262_vm9, %v2259_v30 }
 0xfe0 PF: > { %s36_s29 = sadd.s32 1, %s2532_s29  }
 0xfe1   : > { %p33_p4 = scmp.ge.s32.totalorder %s36_s29, 4  }
 0xfe3   :  { %35 = sbr.rel (!%p33_p4) target bundleno = 11 (0xb), region = 161 }

</bundles_post_ra>
